<compile_context>
chip_gen: v7x
topology: tpu7x:2x2x1
jax: 0.10.0
libtpu: 0.0.40
codegen_flags: <defaults>
</compile_context>

<pallas_src>
import math

import numpy as np
import jax
import jax.numpy as jnp
from jax.experimental import pallas as pl
from jax.experimental.pallas import tpu as pltpu

# ----------------------------------------------------------------------------
# Hyper-parameters (small, consistent with the module's __init__ structure)
# ----------------------------------------------------------------------------
INDIMS = 5
EMBEDDIM = 16
DYDIM = 6          # divisible by 3
STDIM = 4
DIFFUSE_STEP = 3
PRED_WINDOW = 1
EDGE_NUM = 25
NUM_CLUSTERS = 4   # TODO(synk): static stand-in for spatial_idx.max()+1 (TPU needs static shapes)

B = 2
N_NODES = 16
T_SHORT = 4
T_LONG = 2 * DIFFUSE_STEP


def _dot(a, b):
    return jnp.dot(a, b, preferred_element_type=jnp.float32)


def _batch_spec(arr):
    """Per-batch block: (1, rest...) selected by the batch grid index."""
    nd = arr.ndim
    return pl.BlockSpec((1,) + arr.shape[1:],
                        lambda b, _nd=nd: (b,) + (0,) * (_nd - 1))


def _shared_spec(arr):
    """Whole-array block, same block every grid step (weights/operators)."""
    nd = arr.ndim
    return pl.BlockSpec(arr.shape, lambda b, _nd=nd: (0,) * _nd)


# ----------------------------------------------------------------------------
# Fused encoder -> CIS -> decoder1 kernel (one batch item per grid step)
# ----------------------------------------------------------------------------
def _decode_kernel(*refs):
    o_ref = refs[-1]
    it = iter(refs[:-1])
    nxt = lambda: next(it)

    dxs = nxt()[0]      # [Ts, N, 2]   death input (short), pre-aggregated
    sxs = nxt()[0]      # [N, 2*IND]   static input (short)
    dxl = nxt()[0]      # [Tl, N, 2]   death input (long)
    sxl = nxt()[0]      # [N, 2*IND]   static input (long)
    pool = nxt()[0]     # [NC, N]      cluster mean-pool (already /(count+1))
    pvec = nxt()[0]     # [NC, 1]      count / N
    a = nxt()[...]      # [N, N]       shared GCN aggregation operator

    ds_w1 = nxt()[...]; ds_b1 = nxt()[...]; ds_w2 = nxt()[...]; ds_b2 = nxt()[...]
    ds_wi = nxt()[...]; ds_wh = nxt()[...]; ds_bb = nxt()[...]
    ss_w1 = nxt()[...]; ss_b1 = nxt()[...]; ss_w2 = nxt()[...]; ss_b2 = nxt()[...]
    dl_w1 = nxt()[...]; dl_b1 = nxt()[...]; dl_w2 = nxt()[...]; dl_b2 = nxt()[...]
    dl_wi = nxt()[...]; dl_wh = nxt()[...]; dl_bb = nxt()[...]
    sl_w1 = nxt()[...]; sl_b1 = nxt()[...]; sl_w2 = nxt()[...]; sl_b2 = nxt()[...]
    wk = nxt()[...]; bk = nxt()[...]
    wqx = nxt()[...]; bqx = nxt()[...]     # packed qmap|xmap weights
    ws = nxt()[...]; bs = nxt()[...]
    d1w1 = nxt()[...]; d1b1 = nxt()[...]; d1w2 = nxt()[...]; d1b2 = nxt()[...]
    d1w3 = nxt()[...]; d1b3 = nxt()[...]; d1w4 = nxt()[...]; d1b4 = nxt()[...]

    # TODO(synk): GCN definition not provided; assumed per layer
    #   h <- A @ h ; h <- h @ W + b, ReLU between layers.
    def gcn_death(x, w1, b1, w2, b2):
        # x: [T, N, 2] -> list of per-timestep [N, H]; ReLU after the stack
        # (GCN_LSTM applies F.relu to the GCN output).  T<=6: unrolled 2-D
        # matmuls are cheaper here than in-kernel reshapes/relayouts.
        outs = []
        for t in range(x.shape[0]):
            h = jnp.maximum(_dot(_dot(a, x[t]), w1) + b1, 0.0)
            h = jnp.maximum(_dot(_dot(a, h), w2) + b2, 0.0)
            outs.append(h)
        return outs

    def gcn_st(x, w1, b1, w2, b2):
        h = jnp.maximum(_dot(_dot(a, x), w1) + b1, 0.0)
        return _dot(_dot(a, h), w2) + b2

    def lstm2(xs, wi, wh, bb):
        # xs: list of per-timestep [N, H]; 2-layer LSTM, last hidden of layer 1.
        H = wh.shape[1]
        wi0, wi1 = wi[0], wi[1]
        wh0, wh1 = wh[0], wh[1]
        b0, b1 = bb[0], bb[1]

        def cell(xt, h, c, wik, whk, bk_):
            g = _dot(xt, wik) + _dot(h, whk) + bk_
            # full-width sigmoid/tanh (per review), then gate slices
            sg = jax.nn.sigmoid(g)
            tg = jnp.tanh(g)
            i = sg[:, 0:H]
            f = sg[:, H:2 * H]
            gg = tg[:, 2 * H:3 * H]
            o = sg[:, 3 * H:4 * H]
            c = f * c + i * gg
            h = o * jnp.tanh(c)
            return h, c

        z = jnp.zeros((xs[0].shape[0], H), jnp.float32)
        h0, c0, h1, c1 = z, z, z, z
        for xt in xs:
            h0, c0 = cell(xt, h0, c0, wi0, wh0, b0)
            h1, c1 = cell(h0, h1, c1, wi1, wh1, b1)
        return h1

    fd_s = lstm2(gcn_death(dxs, ds_w1, ds_b1, ds_w2, ds_b2), ds_wi, ds_wh, ds_bb)
    fs_s = gcn_st(sxs, ss_w1, ss_b1, ss_w2, ss_b2)
    fd_l = lstm2(gcn_death(dxl, dl_w1, dl_b1, dl_w2, dl_b2), dl_wi, dl_wh, dl_bb)
    fs_l = gcn_st(sxl, sl_w1, sl_b1, sl_w2, sl_b2)
    feat = jnp.concatenate([fd_s, fs_s, fd_l, fs_l], axis=-1)      # [N, 2E]

    # CIS module (cluster-pooled keys/values, scaled dot-product attention)
    spac = _dot(pool, feat)                     # [NC, 2E] == sums/(counts+1)
    v = pvec * spac
    k = _dot(spac, wk) + bk
    qx = _dot(feat, wqx) + bqx
    E2 = k.shape[-1]
    q = qx[:, :E2]
    xm = qx[:, E2:]
    scores = jax.lax.dot_general(
        q, k, dimension_numbers=(((1,), (1,)), ((), ())),
        preferred_element_type=jnp.float32) * (1.0 / math.sqrt(E2))
    scores = scores - jnp.max(scores, axis=-1, keepdims=True)
    e = jnp.exp(scores)
    p_attn = e * pl.reciprocal(jnp.sum(e, axis=-1, keepdims=True), approx=True)
    subj = _dot(p_attn, v)
    feat = xm + _dot(subj, ws) + bs

    # decoder1  TODO(synk): MLP_decoder assumed Linear+ReLU, no act on last layer.
    h = jnp.maximum(_dot(feat, d1w1) + d1b1, 0.0)
    h = jnp.maximum(_dot(h, d1w2) + d1b2, 0.0)
    h = jnp.maximum(_dot(h, d1w3) + d1b3, 0.0)
    o_ref[0] = _dot(h, d1w4) + d1b4


def pallas_decode(params, graph, feat_short, feat_long, spatial_idx):
    """One fused pallas_call for encode(short)+encode(long)+CIS+decoder1."""
    Bx, _, Nn, _ = feat_short.shape
    agg_w = graph["agg_w"]

    def death_input(x):                      # aggre_dy_feat
        d = x[..., :1]
        agg = jnp.einsum('nm,btmf->btnf', agg_w, d)
        return jnp.concatenate([d, agg], axis=-1)          # [B, T, N, 2]

    def st_input(x):                         # aggre_st_feat on time-mean
        s = x[..., 1:].mean(axis=1)
        agg = jnp.einsum('nm,bmf->bnf', agg_w, s)
        return jnp.concatenate([s, agg], axis=-1)          # [B, N, 2*IND]

    dxs = death_input(feat_short)
    sxs = st_input(feat_short)
    dxl = death_input(feat_long)
    sxl = st_input(feat_long)

    onehot = jax.nn.one_hot(spatial_idx, NUM_CLUSTERS, dtype=jnp.float32)  # [B,N,NC]
    counts = onehot.sum(axis=1)                                            # [B,NC]
    pool = jnp.swapaxes(onehot, 1, 2) / (counts[..., None] + 1.0)          # [B,NC,N]
    pvec = (counts / Nn)[..., None]                                        # [B,NC,1]

    def lstm_stack(lstm):
        wi = jnp.stack([lstm[0][0], lstm[1][0]])
        wh = jnp.stack([lstm[0][1], lstm[1][1]])
        bb = jnp.stack([lstm[0][2], lstm[1][2]])
        return [wi, wh, bb]

    def gcn_flat(layers):
        (w1, b1), (w2, b2) = layers
        return [w1, b1, w2, b2]

    wk, bk = params["cis"]["kmap"]
    wq, bq = params["cis"]["qmap"]
    wx, bx = params["cis"]["xmap"]
    ws, bs = params["cis"]["smap"]
    wqx = jnp.concatenate([wq, wx], axis=1)
    bqx = jnp.concatenate([bq, bx], axis=1)

    dec1 = []
    for w, b_ in params["decoder1"]:
        dec1 += [w, b_]

    per_batch = [dxs, sxs, dxl, sxl, pool, pvec]
    shared = ([graph["gcn"]]
              + gcn_flat(params["death_short"]["gcn"])
              + lstm_stack(params["death_short"]["lstm"])
              + gcn_flat(params["st_short"])
              + gcn_flat(params["death_long"]["gcn"])
              + lstm_stack(params["death_long"]["lstm"])
              + gcn_flat(params["st_long"])
              + [wk, bk, wqx, bqx, ws, bs]
              + dec1)

    out_dim = DYDIM + STDIM + 1
    return pl.pallas_call(
        _decode_kernel,
        out_shape=jax.ShapeDtypeStruct((Bx, Nn, out_dim), jnp.float32),
        grid=(Bx,),
        in_specs=([_batch_spec(x) for x in per_batch]
                  + [_shared_spec(x) for x in shared]),
        out_specs=pl.BlockSpec((1, Nn, out_dim), lambda b: (b, 0, 0)),
        compiler_params=pltpu.CompilerParams(dimension_semantics=("parallel",)),
    )(*per_batch, *shared)


# ----------------------------------------------------------------------------
# Fused PDE kernel (one batch item per grid step, all diffusion steps unrolled)
# ----------------------------------------------------------------------------
def _pde_kernel(*refs):
    o_ref = refs[-1]
    it = iter(refs[:-1])
    nxt = lambda: next(it)

    feat0 = nxt()[0]      # [N, C]
    gpx = nxt()[0]        # [N, 1]   grad_x(phi)   (step-invariant, hoisted)
    gpy = nxt()[0]        # [N, 1]
    ax_num = nxt()[0]     # [N, C]   gpx * (mu @ coeff)  (hoisted numerator)
    ay_num = nxt()[0]     # [N, C]
    t_c = nxt()[0]        # [N, E]   folded step-invariant trans_net layer-1 terms
    q_c = nxt()[0]        # [N, E]
    d_c = nxt()[0]        # [N, E/2]
    scat = nxt()[0]       # [N, 25*N] rigid-transport scatter operator

    lap = nxt()[...]; gx = nxt()[...]; gy = nxt()[...]; aggw = nxt()[...]
    coeff_D = nxt()[...]; coeff_MU = nxt()[...]
    t_wf = nxt()[...]; t_wa = nxt()[...]; t_w2 = nxt()[...]; t_b2 = nxt()[...]
    t_w3 = nxt()[...]; t_b3 = nxt()[...]
    q_wf = nxt()[...]; q_wa = nxt()[...]; q_w2 = nxt()[...]; q_b2 = nxt()[...]
    q_w3 = nxt()[...]; q_b3 = nxt()[...]
    d_wf = nxt()[...]; d_w2 = nxt()[...]; d_b2 = nxt()[...]
    d_w3 = nxt()[...]; d_b3 = nxt()[...]; d_w4 = nxt()[...]; d_b4 = nxt()[...]

    def overlap(t, g):
        omin = jnp.maximum(t - 0.5 - (g - 0.5), 0.0) + (g - 0.5)
        omax = (t + 0.5) - jnp.maximum((t + 0.5) - (g + 0.5), 0.0)
        return jnp.maximum(omax - omin, 0.0)

    feat = feat0
    for s in range(DIFFUSE_STEP * PRED_WINDOW):
        last = feat

        # ---- diffusion / advection physics ----
        # TODO(synk): laplace/grad/grad_dot assumed 4-neighbour finite-difference
        # stencils, expressed as [N, N] node-operator matrices.
        J = _dot(lap, feat)
        Fd = _dot(gx, gpx * feat) + _dot(gy, gpy * feat)
        u_diffuse = _dot(J, coeff_D) - _dot(Fd, coeff_MU)

        mass = jnp.where(last == 0.0, 1.0, last)
        inv_mass = pl.reciprocal(mass, approx=True)
        a_x = jnp.clip(ax_num * inv_mass, -2.0, 2.0)
        a_y = jnp.clip(ay_num * inv_mass, -2.0, 2.0)

        # ---- rigid transport: 25-cell overlap areas, ONE [N,25N]x[25N,C] matmul
        ox = [overlap(a_x, float(j)) for j in range(5)]
        oyl = [overlap(a_y, float(j)) * last for j in range(5)]
        rows = [ox[k % 5] * oyl[k // 5] for k in range(EDGE_NUM)]
        u_rigid = _dot(scat, jnp.concatenate(rows, axis=0)) - last

        # ---- trans_net (only the mix-gate output column is used) ----
        agg_feat = _dot(aggw, feat)
        h = jnp.maximum(_dot(feat, t_wf) + _dot(agg_feat, t_wa) + t_c, 0.0)
        h = jnp.maximum(_dot(h, t_w2) + t_b2, 0.0)
        mix = jax.nn.sigmoid(_dot(h, t_w3) + t_b3)            # [N, 1]

        delta_u = mix * u_diffuse + (1.0 - mix) * u_rigid

        # ---- q_net ----
        h = jnp.maximum(_dot(feat, q_wf) + _dot(agg_feat, q_wa) + q_c, 0.0)
        h = jnp.maximum(_dot(h, q_w2) + q_b2, 0.0)
        q0 = _dot(h, q_w3) + q_b3

        feat = last + delta_u + q0

        # ---- decoder2 ----
        h = jnp.maximum(_dot(feat, d_wf) + d_c, 0.0)
        h = jnp.maximum(_dot(h, d_w2) + d_b2, 0.0)
        h = jnp.maximum(_dot(h, d_w3) + d_b3, 0.0)
        final_u = _dot(h, d_w4) + d_b4

        # single packed output slab: [us | mix | q0 | feat]
        o_ref[0, s] = jnp.concatenate([final_u, mix, q0, feat], axis=-1)


def process_param(params):
    ds = DYDIM // 3
    d33 = ds * ds
    coeff_p = params["coeff"]
    m33 = [coeff_p[i * d33:(i + 1) * d33].reshape(ds, ds) for i in range(4)]
    last = 4 * d33
    dd = ds * ds - ds
    mdiag = []
    for i in range(3):
        aij = coeff_p[last + i * dd:last + (i + 1) * dd].reshape(ds - 1, ds)
        m = jnp.concatenate([jnp.ones((ds - 1, 1), jnp.float32), aij], axis=1)
        m = jnp.concatenate([m.reshape(-1), jnp.ones((1,), jnp.float32)])
        mdiag.append(m.reshape(ds, ds))
    z = jnp.zeros((ds, ds), jnp.float32)
    c1 = jnp.concatenate([mdiag[0], z, m33[0]], axis=1)
    c2 = jnp.concatenate([z, mdiag[1], m33[1]], axis=1)
    c3 = jnp.concatenate([m33[2], m33[3], mdiag[2]], axis=1)
    coeff = jnp.maximum(jnp.concatenate([c1, c2, c3], axis=0), 0.0)   # [C, C]
    d_vec = jnp.maximum(
        jnp.concatenate([jnp.zeros((ds,), jnp.float32), params["D"]]), 0.0)
    mu_vec = jnp.maximum(
        jnp.concatenate([params["mu"][:ds], jnp.zeros((ds,), jnp.float32),
                         params["mu"][-ds:]]), 0.0)
    return coeff, d_vec, mu_vec


def pallas_pde(params, graph, phi, feat_dy, feat_st):
    Bx, Nn, C = feat_dy.shape
    S = DIFFUSE_STEP * PRED_WINDOW

    coeff, d_vec, mu_vec = process_param(params)
    coeff_D = d_vec[:, None] * coeff       # folds Dij*J into J @ coeff_D
    coeff_MU = mu_vec[:, None] * coeff     # folds MUij*F into F @ coeff_MU
    mu_coeff = mu_vec @ coeff              # [C], advection numerator row

    lap, gx, gy, aggw = graph["lap"], graph["gx"], graph["gy"], graph["agg_w"]
    phi_col = phi[..., None]
    gpx = jnp.einsum('nm,bmc->bnc', gx, phi_col)
    gpy = jnp.einsum('nm,bmc->bnc', gy, phi_col)
    ax_num = gpx * mu_coeff[None, None, :]
    ay_num = gpy * mu_coeff[None, None, :]
    phi_agg = jnp.concatenate(
        [phi_col, jnp.einsum('nm,bmc->bnc', aggw, phi_col)], axis=-1)      # [B,N,2]
    st_agg = jnp.concatenate(
        [feat_st, jnp.einsum('nm,bmf->bnf', aggw, feat_st)], axis=-1)      # [B,N,2*ST]
    d_row = d_vec[None, :]
    mu_row = mu_vec[None, :]

    # split first-layer weights; fold step-invariant input slices into biases
    (tw1, tb1), (tw2, tb2), (tw3, tb3) = params["trans_net"]
    t_wf = tw1[:C]
    t_wa = tw1[C:2 * C]
    t_c = (phi_agg @ tw1[2 * C:2 * C + 2]
           + (d_row @ tw1[2 * C + 2:3 * C + 2])
           + (mu_row @ tw1[3 * C + 2:4 * C + 2])
           + st_agg @ tw1[4 * C + 2:] + tb1)
    t_w3 = tw3[:, -1:]          # reference only uses trans_out[..., -1:]
    t_b3 = tb3[:, -1:]

    (qw1, qb1), (qw2, qb2), (qw3, qb3) = params["q_net"]
    q_wf = qw1[:C]
    q_wa = qw1[C:2 * C]
    q_c = phi_agg @ qw1[2 * C:2 * C + 2] + st_agg @ qw1[2 * C + 2:] + qb1

    (dw1, db1), (dw2, db2), (dw3, db3), (dw4, db4) = params["decoder2"]
    d_wf = dw1[:C]
    d_c = feat_st @ dw1[C:] + db1

    per_batch = [feat_dy, gpx, gpy, ax_num, ay_num, t_c, q_c, d_c,
                 graph["scat_cat"]]
    shared = [lap, gx, gy, aggw, coeff_D, coeff_MU,
              t_wf, t_wa, tw2, tb2, t_w3, t_b3,
              q_wf, q_wa, qw2, qb2, qw3, qb3,
              d_wf, dw2, db2, dw3, db3, dw4, db4]

    out_dim = 2 + 2 * C
    out = pl.pallas_call(
        _pde_kernel,
        out_shape=jax.ShapeDtypeStruct((Bx, S, Nn, out_dim), jnp.float32),
        grid=(Bx,),
        in_specs=([_batch_spec(x) for x in per_batch]
                  + [_shared_spec(x) for x in shared]),
        out_specs=pl.BlockSpec((1, S, Nn, out_dim), lambda b: (b, 0, 0, 0)),
        compiler_params=pltpu.CompilerParams(dimension_semantics=("parallel",)),
    )(*per_batch, *shared)

    us = jnp.transpose(out[..., 0], (0, 2, 1)).reshape(
        Bx, Nn, PRED_WINDOW, DIFFUSE_STEP)
    mix = jnp.transpose(out[..., 1], (0, 2, 1)).reshape(
        Bx, Nn, PRED_WINDOW, DIFFUSE_STEP)
    q0 = jnp.transpose(out[..., 2:2 + C], (0, 2, 3, 1)).reshape(
        Bx, Nn, C, PRED_WINDOW, DIFFUSE_STEP)
    fdf = jnp.transpose(out[..., 2 + C:], (0, 2, 1, 3)).reshape(
        Bx, Nn, PRED_WINDOW, DIFFUSE_STEP, C)
    return us, mix, q0, fdf


# ----------------------------------------------------------------------------
# Graph node-operator matrices (glue; built once per forward)
# ----------------------------------------------------------------------------
def build_graph_operators(adj4, adj25):
    Bx, Nn, _ = adj25.shape
    dx = dy = 0.5

    # TODO(synk): laplace / grad / grad_dot definitions not provided; assumed
    # 4-neighbour finite-difference stencils expressed as [N, N] node operators.
    rows4 = jnp.broadcast_to(jnp.arange(Nn)[:, None], (Nn, 4))
    lap = (jnp.zeros((Nn, Nn), jnp.float32).at[rows4, adj4[0]].add(1.0)
           - 4.0 * jnp.eye(Nn, dtype=jnp.float32)) / (dx * dy)
    r = jnp.arange(Nn)
    gx = (jnp.zeros((Nn, Nn), jnp.float32)
          .at[r, adj4[0, :, 1]].add(1.0 / (2.0 * dx))
          .at[r, adj4[0, :, 0]].add(-1.0 / (2.0 * dx)))
    gy = (jnp.zeros((Nn, Nn), jnp.float32)
          .at[r, adj4[0, :, 3]].add(1.0 / (2.0 * dy))
          .at[r, adj4[0, :, 2]].add(-1.0 / (2.0 * dy)))

    # aggre_st_feat / aggre_dy_feat neighbour weighting (1, 0.01 x 24) as [N, N]
    rows25 = jnp.broadcast_to(jnp.arange(Nn)[:, None], (Nn, EDGE_NUM))
    w25 = jnp.concatenate([jnp.ones((1,), jnp.float32),
                           jnp.full((EDGE_NUM - 1,), 0.01, jnp.float32)])
    w25b = jnp.broadcast_to(w25[None, :], (Nn, EDGE_NUM))
    agg_w = jnp.zeros((Nn, Nn), jnp.float32).at[rows25, adj25[0]].add(w25b)

    # TODO(synk): GCN aggregation assumed as self + mean of adj25 neighbours.
    gcn_a = (jnp.eye(Nn, dtype=jnp.float32)
             + jnp.zeros((Nn, Nn), jnp.float32).at[rows25, adj25[0]].add(1.0)
             / EDGE_NUM)

    # per-batch 25-cell rigid-transport scatter, concatenated along columns so
    # the whole transport is ONE [N, 25N] x [25N, C] matmul inside the kernel.
    b_idx = jnp.broadcast_to(jnp.arange(Bx)[:, None, None], adj25.shape)
    n_idx = jnp.broadcast_to(jnp.arange(Nn)[None, :, None], adj25.shape)
    k_idx = jnp.broadcast_to(jnp.arange(EDGE_NUM)[None, None, :], adj25.shape)
    scat = jnp.zeros((Bx, EDGE_NUM, Nn, Nn), jnp.float32).at[
        b_idx, k_idx, adj25, n_idx].add(1.0)
    scat_cat = scat.transpose(0, 2, 1, 3).reshape(Bx, Nn, EDGE_NUM * Nn)

    return {"lap": lap, "gx": gx, "gy": gy, "agg_w": agg_w,
            "gcn": gcn_a, "scat_cat": scat_cat}


# ----------------------------------------------------------------------------
# Parameter init (deterministic; f32 everywhere)
# ----------------------------------------------------------------------------
class KeyGen:
    def __init__(self, key):
        self.key = key

    def __call__(self):
        self.key, sub = jax.random.split(self.key)
        return sub


def init_linear(kg, in_dim, out_dim):
    w = jax.random.normal(kg(), (in_dim, out_dim), jnp.float32) / np.sqrt(in_dim)
    b = jax.random.normal(kg(), (1, out_dim), jnp.float32) * 0.01
    return (w, b)


def init_mlp(kg, dims):
    return [init_linear(kg, dims[i], dims[i + 1]) for i in range(len(dims) - 1)]


def init_lstm(kg, in_dim, hidden, layers):
    ps = []
    for l in range(layers):
        cin = in_dim if l == 0 else hidden
        w_ih = jax.random.normal(kg(), (cin, 4 * hidden), jnp.float32) / np.sqrt(cin)
        w_hh = jax.random.normal(kg(), (hidden, 4 * hidden), jnp.float32) / np.sqrt(hidden)
        b = jnp.zeros((1, 4 * hidden), jnp.float32)
        ps.append((w_ih, w_hh, b))
    return ps


def init_params(key):
    kg = KeyGen(key)
    E = EMBEDDIM
    params = {
        "death_short": {"gcn": init_mlp(kg, [2, E, E // 2]),
                        "lstm": init_lstm(kg, E // 2, E // 2, 2)},
        "st_short": init_mlp(kg, [INDIMS * 2, E, E // 2]),
        "death_long": {"gcn": init_mlp(kg, [2, E, E // 2]),
                       "lstm": init_lstm(kg, E // 2, E // 2, 2)},
        "st_long": init_mlp(kg, [INDIMS * 2, E, E // 2]),
        "cis": {"kmap": init_linear(kg, 2 * E, 2 * E),
                "qmap": init_linear(kg, 2 * E, 2 * E),
                "xmap": init_linear(kg, 2 * E, 2 * E),
                "smap": init_linear(kg, 2 * E, 2 * E)},
        "decoder1": init_mlp(kg, [2 * E, E, E // 2, E // 4, DYDIM + STDIM + 1]),
        "trans_net": init_mlp(kg, [DYDIM * 4 + STDIM * 2 + 2, E, E // 2, 25 + 1]),
        "q_net": init_mlp(kg, [DYDIM * 2 + STDIM * 2 + 2, E, E // 2, DYDIM]),
        "decoder2": init_mlp(kg, [DYDIM + STDIM, E // 2, E // 2, E, 1]),
        "D": jnp.ones((DYDIM // 3 * 2,), jnp.float32) * 0.05,
        "mu": jnp.ones((DYDIM // 3 * 2,), jnp.float32) * 0.05,
        "coeff": jnp.ones((DYDIM ** 2 - 2 * (DYDIM // 3) ** 2 - DYDIM,), jnp.float32) * 0.05,
    }
    return params


# ----------------------------------------------------------------------------
# ConflictNet forward
# ----------------------------------------------------------------------------
def conflictnet_forward(params, input_short, adj, input_long, adj25,
                        spatial_idx, sharpness):
    graph = build_graph_operators(adj, adj25)
    Bx = input_short.shape[0]

    # Batch the two decode() passes (phi and phi_next) into one fused launch.
    short_cat = jnp.concatenate([input_short[:, :-1], input_short[:, 1:]], axis=0)
    long_cat = jnp.concatenate([input_long[:, :-DIFFUSE_STEP],
                                input_long[:, DIFFUSE_STEP:]], axis=0)
    sp_cat = jnp.concatenate([spatial_idx[:, 0], spatial_idx[:, 1]], axis=0)

    x = pallas_decode(params, graph, short_cat, long_cat, sp_cat)   # [2B, N, DY+ST+1]
    phi_all = x[..., -1]
    phi = phi_all[:Bx]
    phi_next = phi_all[Bx:]
    feat_dy = x[:Bx, :, :DYDIM]
    feat_st = x[:Bx, :, DYDIM:DYDIM + STDIM]

    us, mix_probs, q0, feat_df = pallas_pde(params, graph, phi, feat_dy, feat_st)
    probs_day = jax.nn.sigmoid(us / sharpness)
    probs_month = 1.0 - jnp.prod(1.0 - probs_day, axis=-1)
    return probs_month, phi, phi_next, probs_day, mix_probs, q0, feat_df


# ----------------------------------------------------------------------------
# Main
# ----------------------------------------------------------------------------
if __name__ == "__main__":
    key = jax.random.PRNGKey(0)
    k_params, k1, k2, k3, k4, k5 = jax.random.split(key, 6)

    params = init_params(k_params)

    input_short = jax.random.normal(k1, (B, T_SHORT, N_NODES, INDIMS + 1), jnp.float32)
    input_long = jax.random.normal(k2, (B, T_LONG, N_NODES, INDIMS + 1), jnp.float32)
    adj = jax.random.randint(k3, (B, N_NODES, 4), 0, N_NODES, dtype=jnp.int32)
    adj25 = jax.random.randint(k4, (B, N_NODES, EDGE_NUM), 0, N_NODES, dtype=jnp.int32)

    spatial_idx_np = np.array(
        jax.random.randint(k5, (B, 2, N_NODES), 0, NUM_CLUSTERS, dtype=jnp.int32))
    spatial_idx_np[..., -1] = NUM_CLUSTERS - 1   # make sure max cluster id is present
    spatial_idx = jnp.asarray(spatial_idx_np)

    sharpness = 1.0

    forward = jax.jit(conflictnet_forward)
    outs = forward(params, input_short, adj, input_long, adj25, spatial_idx, sharpness)
    outs = jax.tree_util.tree_map(jax.block_until_ready, outs)

    probs_month, phi, phi_next, probs_day, mix_probs, q0, feat_df = outs
    assert probs_month.shape == (B, N_NODES, PRED_WINDOW)
    assert phi.shape == (B, N_NODES)
    assert phi_next.shape == (B, N_NODES)
    assert probs_day.shape == (B, N_NODES, PRED_WINDOW, DIFFUSE_STEP)
    assert mix_probs.shape == (B, N_NODES, PRED_WINDOW, DIFFUSE_STEP)
    assert q0.shape == (B, N_NODES, DYDIM, PRED_WINDOW, DIFFUSE_STEP)
    assert feat_df.shape == (B, N_NODES, PRED_WINDOW, DIFFUSE_STEP, DYDIM)
    assert all(bool(jnp.all(jnp.isfinite(o))) for o in
               [probs_month, phi, phi_next, probs_day, mix_probs, q0, feat_df])

    print("KERNEL_OK")
</pallas_src>

<mosaic_0001>
module attributes {stable_mosaic.version = 11 : i64} {
  func.func private @main(%arg0: i32) attributes {dimension_semantics = [#tpu.dimension_semantics<core_parallel>], iteration_bounds = array<i64: 2>, tpu.core_type = #tpu.core_type<sc_scalar_subcore>, window_params = []} {
    return
  }
}

module attributes {stable_mosaic.version = 11 : i64} {
  func.func private @main(%arg0: i32) attributes {dimension_semantics = [#tpu.dimension_semantics<core_parallel>], iteration_bounds = array<i64: 2>, tpu.core_type = #tpu.core_type<sc_scalar_subcore>, window_params = []} {
    return
  }
}

module attributes {stable_mosaic.version = 11 : i64} {
  func.func @_decode_kernel(%arg0: i32, %arg1: memref<1x3x16x2xf32, #tpu.memory_space<vmem>>, %arg2: memref<1x16x10xf32, #tpu.memory_space<vmem>>, %arg3: memref<1x3x16x2xf32, #tpu.memory_space<vmem>>, %arg4: memref<1x16x10xf32, #tpu.memory_space<vmem>>, %arg5: memref<1x4x16xf32, #tpu.memory_space<vmem>>, %arg6: memref<1x4x1xf32, #tpu.memory_space<vmem>>, %arg7: memref<16x16xf32, #tpu.memory_space<vmem>>, %arg8: memref<2x16xf32, #tpu.memory_space<vmem>>, %arg9: memref<1x16xf32, #tpu.memory_space<vmem>>, %arg10: memref<16x8xf32, #tpu.memory_space<vmem>>, %arg11: memref<1x8xf32, #tpu.memory_space<vmem>>, %arg12: memref<2x8x32xf32, #tpu.memory_space<vmem>>, %arg13: memref<2x8x32xf32, #tpu.memory_space<vmem>>, %arg14: memref<2x1x32xf32, #tpu.memory_space<vmem>>, %arg15: memref<10x16xf32, #tpu.memory_space<vmem>>, %arg16: memref<1x16xf32, #tpu.memory_space<vmem>>, %arg17: memref<16x8xf32, #tpu.memory_space<vmem>>, %arg18: memref<1x8xf32, #tpu.memory_space<vmem>>, %arg19: memref<2x16xf32, #tpu.memory_space<vmem>>, %arg20: memref<1x16xf32, #tpu.memory_space<vmem>>, %arg21: memref<16x8xf32, #tpu.memory_space<vmem>>, %arg22: memref<1x8xf32, #tpu.memory_space<vmem>>, %arg23: memref<2x8x32xf32, #tpu.memory_space<vmem>>, %arg24: memref<2x8x32xf32, #tpu.memory_space<vmem>>, %arg25: memref<2x1x32xf32, #tpu.memory_space<vmem>>, %arg26: memref<10x16xf32, #tpu.memory_space<vmem>>, %arg27: memref<1x16xf32, #tpu.memory_space<vmem>>, %arg28: memref<16x8xf32, #tpu.memory_space<vmem>>, %arg29: memref<1x8xf32, #tpu.memory_space<vmem>>, %arg30: memref<32x32xf32, #tpu.memory_space<vmem>>, %arg31: memref<1x32xf32, #tpu.memory_space<vmem>>, %arg32: memref<32x64xf32, #tpu.memory_space<vmem>>, %arg33: memref<1x64xf32, #tpu.memory_space<vmem>>, %arg34: memref<32x32xf32, #tpu.memory_space<vmem>>, %arg35: memref<1x32xf32, #tpu.memory_space<vmem>>, %arg36: memref<32x16xf32, #tpu.memory_space<vmem>>, %arg37: memref<1x16xf32, #tpu.memory_space<vmem>>, %arg38: memref<16x8xf32, #tpu.memory_space<vmem>>, %arg39: memref<1x8xf32, #tpu.memory_space<vmem>>, %arg40: memref<8x4xf32, #tpu.memory_space<vmem>>, %arg41: memref<1x4xf32, #tpu.memory_space<vmem>>, %arg42: memref<4x11xf32, #tpu.memory_space<vmem>>, %arg43: memref<1x11xf32, #tpu.memory_space<vmem>>, %arg44: memref<1x16x11xf32, #tpu.memory_space<vmem>>) attributes {dimension_semantics = [#tpu.dimension_semantics<parallel>], iteration_bounds = array<i64: 4>, scalar_prefetch = 0 : i64, scratch_operands = 0 : i64, tpu.core_type = #tpu.core_type<tc>, window_params = [{transform_indices = @transform_0, window_bounds = array<i64: 1, 3, 16, 2>}, {transform_indices = @transform_1, window_bounds = array<i64: 1, 16, 10>}, {transform_indices = @transform_2, window_bounds = array<i64: 1, 3, 16, 2>}, {transform_indices = @transform_3, window_bounds = array<i64: 1, 16, 10>}, {transform_indices = @transform_4, window_bounds = array<i64: 1, 4, 16>}, {transform_indices = @transform_5, window_bounds = array<i64: 1, 4, 1>}, {pipeline_mode = #tpu.pipeline_mode<synchronous>, transform_indices = @transform_6, window_bounds = array<i64: 16, 16>}, {pipeline_mode = #tpu.pipeline_mode<synchronous>, transform_indices = @transform_7, window_bounds = array<i64: 2, 16>}, {pipeline_mode = #tpu.pipeline_mode<synchronous>, transform_indices = @transform_8, window_bounds = array<i64: 1, 16>}, {pipeline_mode = #tpu.pipeline_mode<synchronous>, transform_indices = @transform_9, window_bounds = array<i64: 16, 8>}, {pipeline_mode = #tpu.pipeline_mode<synchronous>, transform_indices = @transform_10, window_bounds = array<i64: 1, 8>}, {pipeline_mode = #tpu.pipeline_mode<synchronous>, transform_indices = @transform_11, window_bounds = array<i64: 2, 8, 32>}, {pipeline_mode = #tpu.pipeline_mode<synchronous>, transform_indices = @transform_12, window_bounds = array<i64: 2, 8, 32>}, {pipeline_mode = #tpu.pipeline_mode<synchronous>, transform_indices = @transform_13, window_bounds = array<i64: 2, 1, 32>}, {pipeline_mode = #tpu.pipeline_mode<synchronous>, transform_indices = @transform_14, window_bounds = array<i64: 10, 16>}, {pipeline_mode = #tpu.pipeline_mode<synchronous>, transform_indices = @transform_15, window_bounds = array<i64: 1, 16>}, {pipeline_mode = #tpu.pipeline_mode<synchronous>, transform_indices = @transform_16, window_bounds = array<i64: 16, 8>}, {pipeline_mode = #tpu.pipeline_mode<synchronous>, transform_indices = @transform_17, window_bounds = array<i64: 1, 8>}, {pipeline_mode = #tpu.pipeline_mode<synchronous>, transform_indices = @transform_18, window_bounds = array<i64: 2, 16>}, {pipeline_mode = #tpu.pipeline_mode<synchronous>, transform_indices = @transform_19, window_bounds = array<i64: 1, 16>}, {pipeline_mode = #tpu.pipeline_mode<synchronous>, transform_indices = @transform_20, window_bounds = array<i64: 16, 8>}, {pipeline_mode = #tpu.pipeline_mode<synchronous>, transform_indices = @transform_21, window_bounds = array<i64: 1, 8>}, {pipeline_mode = #tpu.pipeline_mode<synchronous>, transform_indices = @transform_22, window_bounds = array<i64: 2, 8, 32>}, {pipeline_mode = #tpu.pipeline_mode<synchronous>, transform_indices = @transform_23, window_bounds = array<i64: 2, 8, 32>}, {pipeline_mode = #tpu.pipeline_mode<synchronous>, transform_indices = @transform_24, window_bounds = array<i64: 2, 1, 32>}, {pipeline_mode = #tpu.pipeline_mode<synchronous>, transform_indices = @transform_25, window_bounds = array<i64: 10, 16>}, {pipeline_mode = #tpu.pipeline_mode<synchronous>, transform_indices = @transform_26, window_bounds = array<i64: 1, 16>}, {pipeline_mode = #tpu.pipeline_mode<synchronous>, transform_indices = @transform_27, window_bounds = array<i64: 16, 8>}, {pipeline_mode = #tpu.pipeline_mode<synchronous>, transform_indices = @transform_28, window_bounds = array<i64: 1, 8>}, {pipeline_mode = #tpu.pipeline_mode<synchronous>, transform_indices = @transform_29, window_bounds = array<i64: 32, 32>}, {pipeline_mode = #tpu.pipeline_mode<synchronous>, transform_indices = @transform_30, window_bounds = array<i64: 1, 32>}, {pipeline_mode = #tpu.pipeline_mode<synchronous>, transform_indices = @transform_31, window_bounds = array<i64: 32, 64>}, {pipeline_mode = #tpu.pipeline_mode<synchronous>, transform_indices = @transform_32, window_bounds = array<i64: 1, 64>}, {pipeline_mode = #tpu.pipeline_mode<synchronous>, transform_indices = @transform_33, window_bounds = array<i64: 32, 32>}, {pipeline_mode = #tpu.pipeline_mode<synchronous>, transform_indices = @transform_34, window_bounds = array<i64: 1, 32>}, {pipeline_mode = #tpu.pipeline_mode<synchronous>, transform_indices = @transform_35, window_bounds = array<i64: 32, 16>}, {pipeline_mode = #tpu.pipeline_mode<synchronous>, transform_indices = @transform_36, window_bounds = array<i64: 1, 16>}, {pipeline_mode = #tpu.pipeline_mode<synchronous>, transform_indices = @transform_37, window_bounds = array<i64: 16, 8>}, {pipeline_mode = #tpu.pipeline_mode<synchronous>, transform_indices = @transform_38, window_bounds = array<i64: 1, 8>}, {pipeline_mode = #tpu.pipeline_mode<synchronous>, transform_indices = @transform_39, window_bounds = array<i64: 8, 4>}, {pipeline_mode = #tpu.pipeline_mode<synchronous>, transform_indices = @transform_40, window_bounds = array<i64: 1, 4>}, {pipeline_mode = #tpu.pipeline_mode<synchronous>, transform_indices = @transform_41, window_bounds = array<i64: 4, 11>}, {pipeline_mode = #tpu.pipeline_mode<synchronous>, transform_indices = @transform_42, window_bounds = array<i64: 1, 11>}, {transform_indices = @transform_43, window_bounds = array<i64: 1, 16, 11>}]} {
    %c0 = arith.constant 0 : index
    %c0_0 = arith.constant 0 : index
    %c0_1 = arith.constant 0 : index
    %c0_2 = arith.constant 0 : index
    %0 = vector.load %arg1[%c0, %c0_0, %c0_1, %c0_2] : memref<1x3x16x2xf32, #tpu.memory_space<vmem>>, vector<1x3x16x2xf32>
    %1 = vector.shape_cast %0 : vector<1x3x16x2xf32> to vector<3x16x2xf32>
    %c0_3 = arith.constant 0 : index
    %c0_4 = arith.constant 0 : index
    %c0_5 = arith.constant 0 : index
    %2 = vector.load %arg2[%c0_3, %c0_4, %c0_5] : memref<1x16x10xf32, #tpu.memory_space<vmem>>, vector<1x16x10xf32>
    %3 = vector.shape_cast %2 : vector<1x16x10xf32> to vector<16x10xf32>
    %c0_6 = arith.constant 0 : index
    %c0_7 = arith.constant 0 : index
    %c0_8 = arith.constant 0 : index
    %c0_9 = arith.constant 0 : index
    %4 = vector.load %arg3[%c0_6, %c0_7, %c0_8, %c0_9] : memref<1x3x16x2xf32, #tpu.memory_space<vmem>>, vector<1x3x16x2xf32>
    %5 = vector.shape_cast %4 : vector<1x3x16x2xf32> to vector<3x16x2xf32>
    %c0_10 = arith.constant 0 : index
    %c0_11 = arith.constant 0 : index
    %c0_12 = arith.constant 0 : index
    %6 = vector.load %arg4[%c0_10, %c0_11, %c0_12] : memref<1x16x10xf32, #tpu.memory_space<vmem>>, vector<1x16x10xf32>
    %7 = vector.shape_cast %6 : vector<1x16x10xf32> to vector<16x10xf32>
    %c0_13 = arith.constant 0 : index
    %c0_14 = arith.constant 0 : index
    %c0_15 = arith.constant 0 : index
    %8 = vector.load %arg5[%c0_13, %c0_14, %c0_15] : memref<1x4x16xf32, #tpu.memory_space<vmem>>, vector<1x4x16xf32>
    %9 = vector.shape_cast %8 : vector<1x4x16xf32> to vector<4x16xf32>
    %c0_16 = arith.constant 0 : index
    %c0_17 = arith.constant 0 : index
    %c0_18 = arith.constant 0 : index
    %10 = vector.load %arg6[%c0_16, %c0_17, %c0_18] : memref<1x4x1xf32, #tpu.memory_space<vmem>>, vector<1x4x1xf32>
    %11 = vector.shape_cast %10 : vector<1x4x1xf32> to vector<4x1xf32>
    %c0_19 = arith.constant 0 : index
    %c0_20 = arith.constant 0 : index
    %12 = vector.load %arg7[%c0_19, %c0_20] : memref<16x16xf32, #tpu.memory_space<vmem>>, vector<16x16xf32>
    %c0_21 = arith.constant 0 : index
    %c0_22 = arith.constant 0 : index
    %13 = vector.load %arg8[%c0_21, %c0_22] : memref<2x16xf32, #tpu.memory_space<vmem>>, vector<2x16xf32>
    %c0_23 = arith.constant 0 : index
    %c0_24 = arith.constant 0 : index
    %14 = vector.load %arg9[%c0_23, %c0_24] : memref<1x16xf32, #tpu.memory_space<vmem>>, vector<1x16xf32>
    %c0_25 = arith.constant 0 : index
    %c0_26 = arith.constant 0 : index
    %15 = vector.load %arg10[%c0_25, %c0_26] : memref<16x8xf32, #tpu.memory_space<vmem>>, vector<16x8xf32>
    %c0_27 = arith.constant 0 : index
    %c0_28 = arith.constant 0 : index
    %16 = vector.load %arg11[%c0_27, %c0_28] : memref<1x8xf32, #tpu.memory_space<vmem>>, vector<1x8xf32>
    %c0_29 = arith.constant 0 : index
    %c0_30 = arith.constant 0 : index
    %c0_31 = arith.constant 0 : index
    %17 = vector.load %arg12[%c0_29, %c0_30, %c0_31] : memref<2x8x32xf32, #tpu.memory_space<vmem>>, vector<2x8x32xf32>
    %c0_32 = arith.constant 0 : index
    %c0_33 = arith.constant 0 : index
    %c0_34 = arith.constant 0 : index
    %18 = vector.load %arg13[%c0_32, %c0_33, %c0_34] : memref<2x8x32xf32, #tpu.memory_space<vmem>>, vector<2x8x32xf32>
    %c0_35 = arith.constant 0 : index
    %c0_36 = arith.constant 0 : index
    %c0_37 = arith.constant 0 : index
    %19 = vector.load %arg14[%c0_35, %c0_36, %c0_37] : memref<2x1x32xf32, #tpu.memory_space<vmem>>, vector<2x1x32xf32>
    %c0_38 = arith.constant 0 : index
    %c0_39 = arith.constant 0 : index
    %20 = vector.load %arg15[%c0_38, %c0_39] : memref<10x16xf32, #tpu.memory_space<vmem>>, vector<10x16xf32>
    %c0_40 = arith.constant 0 : index
    %c0_41 = arith.constant 0 : index
    %21 = vector.load %arg16[%c0_40, %c0_41] : memref<1x16xf32, #tpu.memory_space<vmem>>, vector<1x16xf32>
    %c0_42 = arith.constant 0 : index
    %c0_43 = arith.constant 0 : index
    %22 = vector.load %arg17[%c0_42, %c0_43] : memref<16x8xf32, #tpu.memory_space<vmem>>, vector<16x8xf32>
    %c0_44 = arith.constant 0 : index
    %c0_45 = arith.constant 0 : index
    %23 = vector.load %arg18[%c0_44, %c0_45] : memref<1x8xf32, #tpu.memory_space<vmem>>, vector<1x8xf32>
    %c0_46 = arith.constant 0 : index
    %c0_47 = arith.constant 0 : index
    %24 = vector.load %arg19[%c0_46, %c0_47] : memref<2x16xf32, #tpu.memory_space<vmem>>, vector<2x16xf32>
    %c0_48 = arith.constant 0 : index
    %c0_49 = arith.constant 0 : index
    %25 = vector.load %arg20[%c0_48, %c0_49] : memref<1x16xf32, #tpu.memory_space<vmem>>, vector<1x16xf32>
    %c0_50 = arith.constant 0 : index
    %c0_51 = arith.constant 0 : index
    %26 = vector.load %arg21[%c0_50, %c0_51] : memref<16x8xf32, #tpu.memory_space<vmem>>, vector<16x8xf32>
    %c0_52 = arith.constant 0 : index
    %c0_53 = arith.constant 0 : index
    %27 = vector.load %arg22[%c0_52, %c0_53] : memref<1x8xf32, #tpu.memory_space<vmem>>, vector<1x8xf32>
    %c0_54 = arith.constant 0 : index
    %c0_55 = arith.constant 0 : index
    %c0_56 = arith.constant 0 : index
    %28 = vector.load %arg23[%c0_54, %c0_55, %c0_56] : memref<2x8x32xf32, #tpu.memory_space<vmem>>, vector<2x8x32xf32>
    %c0_57 = arith.constant 0 : index
    %c0_58 = arith.constant 0 : index
    %c0_59 = arith.constant 0 : index
    %29 = vector.load %arg24[%c0_57, %c0_58, %c0_59] : memref<2x8x32xf32, #tpu.memory_space<vmem>>, vector<2x8x32xf32>
    %c0_60 = arith.constant 0 : index
    %c0_61 = arith.constant 0 : index
    %c0_62 = arith.constant 0 : index
    %30 = vector.load %arg25[%c0_60, %c0_61, %c0_62] : memref<2x1x32xf32, #tpu.memory_space<vmem>>, vector<2x1x32xf32>
    %c0_63 = arith.constant 0 : index
    %c0_64 = arith.constant 0 : index
    %31 = vector.load %arg26[%c0_63, %c0_64] : memref<10x16xf32, #tpu.memory_space<vmem>>, vector<10x16xf32>
    %c0_65 = arith.constant 0 : index
    %c0_66 = arith.constant 0 : index
    %32 = vector.load %arg27[%c0_65, %c0_66] : memref<1x16xf32, #tpu.memory_space<vmem>>, vector<1x16xf32>
    %c0_67 = arith.constant 0 : index
    %c0_68 = arith.constant 0 : index
    %33 = vector.load %arg28[%c0_67, %c0_68] : memref<16x8xf32, #tpu.memory_space<vmem>>, vector<16x8xf32>
    %c0_69 = arith.constant 0 : index
    %c0_70 = arith.constant 0 : index
    %34 = vector.load %arg29[%c0_69, %c0_70] : memref<1x8xf32, #tpu.memory_space<vmem>>, vector<1x8xf32>
    %c0_71 = arith.constant 0 : index
    %c0_72 = arith.constant 0 : index
    %35 = vector.load %arg30[%c0_71, %c0_72] : memref<32x32xf32, #tpu.memory_space<vmem>>, vector<32x32xf32>
    %c0_73 = arith.constant 0 : index
    %c0_74 = arith.constant 0 : index
    %36 = vector.load %arg31[%c0_73, %c0_74] : memref<1x32xf32, #tpu.memory_space<vmem>>, vector<1x32xf32>
    %c0_75 = arith.constant 0 : index
    %c0_76 = arith.constant 0 : index
    %37 = vector.load %arg32[%c0_75, %c0_76] : memref<32x64xf32, #tpu.memory_space<vmem>>, vector<32x64xf32>
    %c0_77 = arith.constant 0 : index
    %c0_78 = arith.constant 0 : index
    %38 = vector.load %arg33[%c0_77, %c0_78] : memref<1x64xf32, #tpu.memory_space<vmem>>, vector<1x64xf32>
    %c0_79 = arith.constant 0 : index
    %c0_80 = arith.constant 0 : index
    %39 = vector.load %arg34[%c0_79, %c0_80] : memref<32x32xf32, #tpu.memory_space<vmem>>, vector<32x32xf32>
    %c0_81 = arith.constant 0 : index
    %c0_82 = arith.constant 0 : index
    %40 = vector.load %arg35[%c0_81, %c0_82] : memref<1x32xf32, #tpu.memory_space<vmem>>, vector<1x32xf32>
    %c0_83 = arith.constant 0 : index
    %c0_84 = arith.constant 0 : index
    %41 = vector.load %arg36[%c0_83, %c0_84] : memref<32x16xf32, #tpu.memory_space<vmem>>, vector<32x16xf32>
    %c0_85 = arith.constant 0 : index
    %c0_86 = arith.constant 0 : index
    %42 = vector.load %arg37[%c0_85, %c0_86] : memref<1x16xf32, #tpu.memory_space<vmem>>, vector<1x16xf32>
    %c0_87 = arith.constant 0 : index
    %c0_88 = arith.constant 0 : index
    %43 = vector.load %arg38[%c0_87, %c0_88] : memref<16x8xf32, #tpu.memory_space<vmem>>, vector<16x8xf32>
    %c0_89 = arith.constant 0 : index
    %c0_90 = arith.constant 0 : index
    %44 = vector.load %arg39[%c0_89, %c0_90] : memref<1x8xf32, #tpu.memory_space<vmem>>, vector<1x8xf32>
    %c0_91 = arith.constant 0 : index
    %c0_92 = arith.constant 0 : index
    %45 = vector.load %arg40[%c0_91, %c0_92] : memref<8x4xf32, #tpu.memory_space<vmem>>, vector<8x4xf32>
    %c0_93 = arith.constant 0 : index
    %c0_94 = arith.constant 0 : index
    %46 = vector.load %arg41[%c0_93, %c0_94] : memref<1x4xf32, #tpu.memory_space<vmem>>, vector<1x4xf32>
    %c0_95 = arith.constant 0 : index
    %c0_96 = arith.constant 0 : index
    %47 = vector.load %arg42[%c0_95, %c0_96] : memref<4x11xf32, #tpu.memory_space<vmem>>, vector<4x11xf32>
    %c0_97 = arith.constant 0 : index
    %c0_98 = arith.constant 0 : index
    %48 = vector.load %arg43[%c0_97, %c0_98] : memref<1x11xf32, #tpu.memory_space<vmem>>, vector<1x11xf32>
    %49 = vector.extract_strided_slice %1 {offsets = [0, 0, 0], sizes = [1, 16, 2], strides = [1, 1, 1]} : vector<3x16x2xf32> to vector<1x16x2xf32>
    %50 = vector.shape_cast %49 : vector<1x16x2xf32> to vector<16x2xf32>
    %cst = arith.constant dense<0.000000e+00> : vector<16x2xf32>
    %51 = tpu.matmul %12, %50, %cst {dimension_numbers = #tpu.dot_dimension_numbers<[1], [0], [0], [1], [0, 0, 1, 1], [], []>} : vector<16x16xf32>, vector<16x2xf32>, vector<16x2xf32> -> vector<16x2xf32>
    %cst_99 = arith.constant dense<0.000000e+00> : vector<16x16xf32>
    %52 = tpu.matmul %51, %13, %cst_99 {dimension_numbers = #tpu.dot_dimension_numbers<[1], [0], [0], [1], [0, 0, 1, 1], [], []>} : vector<16x2xf32>, vector<2x16xf32>, vector<16x16xf32> -> vector<16x16xf32>
    %53 = vector.broadcast %14 : vector<1x16xf32> to vector<16x16xf32>
    %54 = arith.addf %52, %53 : vector<16x16xf32>
    %cst_100 = arith.constant 0.000000e+00 : f32
    %55 = vector.broadcast %cst_100 : f32 to vector<16x16xf32>
    %56 = arith.maximumf %54, %55 : vector<16x16xf32>
    %cst_101 = arith.constant dense<0.000000e+00> : vector<16x16xf32>
    %57 = tpu.matmul %12, %56, %cst_101 {dimension_numbers = #tpu.dot_dimension_numbers<[1], [0], [0], [1], [0, 0, 1, 1], [], []>} : vector<16x16xf32>, vector<16x16xf32>, vector<16x16xf32> -> vector<16x16xf32>
    %cst_102 = arith.constant dense<0.000000e+00> : vector<16x8xf32>
    %58 = tpu.matmul %57, %15, %cst_102 {dimension_numbers = #tpu.dot_dimension_numbers<[1], [0], [0], [1], [0, 0, 1, 1], [], []>} : vector<16x16xf32>, vector<16x8xf32>, vector<16x8xf32> -> vector<16x8xf32>
    %59 = vector.broadcast %16 : vector<1x8xf32> to vector<16x8xf32>
    %60 = arith.addf %58, %59 : vector<16x8xf32>
    %cst_103 = arith.constant 0.000000e+00 : f32
    %61 = vector.broadcast %cst_103 : f32 to vector<16x8xf32>
    %62 = arith.maximumf %60, %61 : vector<16x8xf32>
    %63 = vector.extract_strided_slice %1 {offsets = [1, 0, 0], sizes = [1, 16, 2], strides = [1, 1, 1]} : vector<3x16x2xf32> to vector<1x16x2xf32>
    %64 = vector.shape_cast %63 : vector<1x16x2xf32> to vector<16x2xf32>
    %cst_104 = arith.constant dense<0.000000e+00> : vector<16x2xf32>
    %65 = tpu.matmul %12, %64, %cst_104 {dimension_numbers = #tpu.dot_dimension_numbers<[1], [0], [0], [1], [0, 0, 1, 1], [], []>} : vector<16x16xf32>, vector<16x2xf32>, vector<16x2xf32> -> vector<16x2xf32>
    %cst_105 = arith.constant dense<0.000000e+00> : vector<16x16xf32>
    %66 = tpu.matmul %65, %13, %cst_105 {dimension_numbers = #tpu.dot_dimension_numbers<[1], [0], [0], [1], [0, 0, 1, 1], [], []>} : vector<16x2xf32>, vector<2x16xf32>, vector<16x16xf32> -> vector<16x16xf32>
    %67 = vector.broadcast %14 : vector<1x16xf32> to vector<16x16xf32>
    %68 = arith.addf %66, %67 : vector<16x16xf32>
    %cst_106 = arith.constant 0.000000e+00 : f32
    %69 = vector.broadcast %cst_106 : f32 to vector<16x16xf32>
    %70 = arith.maximumf %68, %69 : vector<16x16xf32>
    %cst_107 = arith.constant dense<0.000000e+00> : vector<16x16xf32>
    %71 = tpu.matmul %12, %70, %cst_107 {dimension_numbers = #tpu.dot_dimension_numbers<[1], [0], [0], [1], [0, 0, 1, 1], [], []>} : vector<16x16xf32>, vector<16x16xf32>, vector<16x16xf32> -> vector<16x16xf32>
    %cst_108 = arith.constant dense<0.000000e+00> : vector<16x8xf32>
    %72 = tpu.matmul %71, %15, %cst_108 {dimension_numbers = #tpu.dot_dimension_numbers<[1], [0], [0], [1], [0, 0, 1, 1], [], []>} : vector<16x16xf32>, vector<16x8xf32>, vector<16x8xf32> -> vector<16x8xf32>
    %73 = vector.broadcast %16 : vector<1x8xf32> to vector<16x8xf32>
    %74 = arith.addf %72, %73 : vector<16x8xf32>
    %cst_109 = arith.constant 0.000000e+00 : f32
    %75 = vector.broadcast %cst_109 : f32 to vector<16x8xf32>
    %76 = arith.maximumf %74, %75 : vector<16x8xf32>
    %77 = vector.extract_strided_slice %1 {offsets = [2, 0, 0], sizes = [1, 16, 2], strides = [1, 1, 1]} : vector<3x16x2xf32> to vector<1x16x2xf32>
    %78 = vector.shape_cast %77 : vector<1x16x2xf32> to vector<16x2xf32>
    %cst_110 = arith.constant dense<0.000000e+00> : vector<16x2xf32>
    %79 = tpu.matmul %12, %78, %cst_110 {dimension_numbers = #tpu.dot_dimension_numbers<[1], [0], [0], [1], [0, 0, 1, 1], [], []>} : vector<16x16xf32>, vector<16x2xf32>, vector<16x2xf32> -> vector<16x2xf32>
    %cst_111 = arith.constant dense<0.000000e+00> : vector<16x16xf32>
    %80 = tpu.matmul %79, %13, %cst_111 {dimension_numbers = #tpu.dot_dimension_numbers<[1], [0], [0], [1], [0, 0, 1, 1], [], []>} : vector<16x2xf32>, vector<2x16xf32>, vector<16x16xf32> -> vector<16x16xf32>
    %81 = vector.broadcast %14 : vector<1x16xf32> to vector<16x16xf32>
    %82 = arith.addf %80, %81 : vector<16x16xf32>
    %cst_112 = arith.constant 0.000000e+00 : f32
    %83 = vector.broadcast %cst_112 : f32 to vector<16x16xf32>
    %84 = arith.maximumf %82, %83 : vector<16x16xf32>
    %cst_113 = arith.constant dense<0.000000e+00> : vector<16x16xf32>
    %85 = tpu.matmul %12, %84, %cst_113 {dimension_numbers = #tpu.dot_dimension_numbers<[1], [0], [0], [1], [0, 0, 1, 1], [], []>} : vector<16x16xf32>, vector<16x16xf32>, vector<16x16xf32> -> vector<16x16xf32>
    %cst_114 = arith.constant dense<0.000000e+00> : vector<16x8xf32>
    %86 = tpu.matmul %85, %15, %cst_114 {dimension_numbers = #tpu.dot_dimension_numbers<[1], [0], [0], [1], [0, 0, 1, 1], [], []>} : vector<16x16xf32>, vector<16x8xf32>, vector<16x8xf32> -> vector<16x8xf32>
    %87 = vector.broadcast %16 : vector<1x8xf32> to vector<16x8xf32>
    %88 = arith.addf %86, %87 : vector<16x8xf32>
    %cst_115 = arith.constant 0.000000e+00 : f32
    %89 = vector.broadcast %cst_115 : f32 to vector<16x8xf32>
    %90 = arith.maximumf %88, %89 : vector<16x8xf32>
    %91 = vector.extract_strided_slice %17 {offsets = [0, 0, 0], sizes = [1, 8, 32], strides = [1, 1, 1]} : vector<2x8x32xf32> to vector<1x8x32xf32>
    %92 = vector.shape_cast %91 : vector<1x8x32xf32> to vector<8x32xf32>
    %93 = vector.extract_strided_slice %17 {offsets = [1, 0, 0], sizes = [1, 8, 32], strides = [1, 1, 1]} : vector<2x8x32xf32> to vector<1x8x32xf32>
    %94 = vector.shape_cast %93 : vector<1x8x32xf32> to vector<8x32xf32>
    %95 = vector.extract_strided_slice %18 {offsets = [0, 0, 0], sizes = [1, 8, 32], strides = [1, 1, 1]} : vector<2x8x32xf32> to vector<1x8x32xf32>
    %96 = vector.shape_cast %95 : vector<1x8x32xf32> to vector<8x32xf32>
    %97 = vector.extract_strided_slice %18 {offsets = [1, 0, 0], sizes = [1, 8, 32], strides = [1, 1, 1]} : vector<2x8x32xf32> to vector<1x8x32xf32>
    %98 = vector.shape_cast %97 : vector<1x8x32xf32> to vector<8x32xf32>
    %99 = vector.extract_strided_slice %19 {offsets = [0, 0, 0], sizes = [1, 1, 32], strides = [1, 1, 1]} : vector<2x1x32xf32> to vector<1x1x32xf32>
    %100 = vector.shape_cast %99 : vector<1x1x32xf32> to vector<1x32xf32>
    %101 = vector.extract_strided_slice %19 {offsets = [1, 0, 0], sizes = [1, 1, 32], strides = [1, 1, 1]} : vector<2x1x32xf32> to vector<1x1x32xf32>
    %102 = vector.shape_cast %101 : vector<1x1x32xf32> to vector<1x32xf32>
    %cst_116 = arith.constant 0.000000e+00 : f32
    %103 = vector.broadcast %cst_116 : f32 to vector<16x8xf32>
    %cst_117 = arith.constant dense<0.000000e+00> : vector<16x32xf32>
    %104 = tpu.matmul %62, %92, %cst_117 {dimension_numbers = #tpu.dot_dimension_numbers<[1], [0], [0], [1], [0, 0, 1, 1], [], []>} : vector<16x8xf32>, vector<8x32xf32>, vector<16x32xf32> -> vector<16x32xf32>
    %cst_118 = arith.constant dense<0.000000e+00> : vector<16x32xf32>
    %105 = tpu.matmul %103, %96, %cst_118 {dimension_numbers = #tpu.dot_dimension_numbers<[1], [0], [0], [1], [0, 0, 1, 1], [], []>} : vector<16x8xf32>, vector<8x32xf32>, vector<16x32xf32> -> vector<16x32xf32>
    %106 = arith.addf %104, %105 : vector<16x32xf32>
    %107 = vector.broadcast %100 : vector<1x32xf32> to vector<16x32xf32>
    %108 = arith.addf %106, %107 : vector<16x32xf32>
    %109 = arith.negf %108 : vector<16x32xf32>
    %110 = math.exp %109 : vector<16x32xf32>
    %cst_119 = arith.constant 1.000000e+00 : f32
    %111 = vector.broadcast %cst_119 : f32 to vector<16x32xf32>
    %112 = arith.addf %111, %110 : vector<16x32xf32>
    %113 = arith.divf %111, %112 : vector<16x32xf32>
    %114 = math.tanh %108 : vector<16x32xf32>
    %115 = vector.extract_strided_slice %113 {offsets = [0, 0], sizes = [16, 8], strides = [1, 1]} : vector<16x32xf32> to vector<16x8xf32>
    %116 = vector.extract_strided_slice %113 {offsets = [0, 8], sizes = [16, 8], strides = [1, 1]} : vector<16x32xf32> to vector<16x8xf32>
    %117 = vector.extract_strided_slice %114 {offsets = [0, 16], sizes = [16, 8], strides = [1, 1]} : vector<16x32xf32> to vector<16x8xf32>
    %118 = vector.extract_strided_slice %113 {offsets = [0, 24], sizes = [16, 8], strides = [1, 1]} : vector<16x32xf32> to vector<16x8xf32>
    %119 = arith.mulf %116, %103 : vector<16x8xf32>
    %120 = arith.mulf %115, %117 : vector<16x8xf32>
    %121 = arith.addf %119, %120 : vector<16x8xf32>
    %122 = math.tanh %121 : vector<16x8xf32>
    %123 = arith.mulf %118, %122 : vector<16x8xf32>
    %cst_120 = arith.constant dense<0.000000e+00> : vector<16x32xf32>
    %124 = tpu.matmul %123, %94, %cst_120 {dimension_numbers = #tpu.dot_dimension_numbers<[1], [0], [0], [1], [0, 0, 1, 1], [], []>} : vector<16x8xf32>, vector<8x32xf32>, vector<16x32xf32> -> vector<16x32xf32>
    %cst_121 = arith.constant dense<0.000000e+00> : vector<16x32xf32>
    %125 = tpu.matmul %103, %98, %cst_121 {dimension_numbers = #tpu.dot_dimension_numbers<[1], [0], [0], [1], [0, 0, 1, 1], [], []>} : vector<16x8xf32>, vector<8x32xf32>, vector<16x32xf32> -> vector<16x32xf32>
    %126 = arith.addf %124, %125 : vector<16x32xf32>
    %127 = vector.broadcast %102 : vector<1x32xf32> to vector<16x32xf32>
    %128 = arith.addf %126, %127 : vector<16x32xf32>
    %129 = arith.negf %128 : vector<16x32xf32>
    %130 = math.exp %129 : vector<16x32xf32>
    %cst_122 = arith.constant 1.000000e+00 : f32
    %131 = vector.broadcast %cst_122 : f32 to vector<16x32xf32>
    %132 = arith.addf %131, %130 : vector<16x32xf32>
    %133 = arith.divf %131, %132 : vector<16x32xf32>
    %134 = math.tanh %128 : vector<16x32xf32>
    %135 = vector.extract_strided_slice %133 {offsets = [0, 0], sizes = [16, 8], strides = [1, 1]} : vector<16x32xf32> to vector<16x8xf32>
    %136 = vector.extract_strided_slice %133 {offsets = [0, 8], sizes = [16, 8], strides = [1, 1]} : vector<16x32xf32> to vector<16x8xf32>
    %137 = vector.extract_strided_slice %134 {offsets = [0, 16], sizes = [16, 8], strides = [1, 1]} : vector<16x32xf32> to vector<16x8xf32>
    %138 = vector.extract_strided_slice %133 {offsets = [0, 24], sizes = [16, 8], strides = [1, 1]} : vector<16x32xf32> to vector<16x8xf32>
    %139 = arith.mulf %136, %103 : vector<16x8xf32>
    %140 = arith.mulf %135, %137 : vector<16x8xf32>
    %141 = arith.addf %139, %140 : vector<16x8xf32>
    %142 = math.tanh %141 : vector<16x8xf32>
    %143 = arith.mulf %138, %142 : vector<16x8xf32>
    %cst_123 = arith.constant dense<0.000000e+00> : vector<16x32xf32>
    %144 = tpu.matmul %76, %92, %cst_123 {dimension_numbers = #tpu.dot_dimension_numbers<[1], [0], [0], [1], [0, 0, 1, 1], [], []>} : vector<16x8xf32>, vector<8x32xf32>, vector<16x32xf32> -> vector<16x32xf32>
    %cst_124 = arith.constant dense<0.000000e+00> : vector<16x32xf32>
    %145 = tpu.matmul %123, %96, %cst_124 {dimension_numbers = #tpu.dot_dimension_numbers<[1], [0], [0], [1], [0, 0, 1, 1], [], []>} : vector<16x8xf32>, vector<8x32xf32>, vector<16x32xf32> -> vector<16x32xf32>
    %146 = arith.addf %144, %145 : vector<16x32xf32>
    %147 = vector.broadcast %100 : vector<1x32xf32> to vector<16x32xf32>
    %148 = arith.addf %146, %147 : vector<16x32xf32>
    %149 = arith.negf %148 : vector<16x32xf32>
    %150 = math.exp %149 : vector<16x32xf32>
    %cst_125 = arith.constant 1.000000e+00 : f32
    %151 = vector.broadcast %cst_125 : f32 to vector<16x32xf32>
    %152 = arith.addf %151, %150 : vector<16x32xf32>
    %153 = arith.divf %151, %152 : vector<16x32xf32>
    %154 = math.tanh %148 : vector<16x32xf32>
    %155 = vector.extract_strided_slice %153 {offsets = [0, 0], sizes = [16, 8], strides = [1, 1]} : vector<16x32xf32> to vector<16x8xf32>
    %156 = vector.extract_strided_slice %153 {offsets = [0, 8], sizes = [16, 8], strides = [1, 1]} : vector<16x32xf32> to vector<16x8xf32>
    %157 = vector.extract_strided_slice %154 {offsets = [0, 16], sizes = [16, 8], strides = [1, 1]} : vector<16x32xf32> to vector<16x8xf32>
    %158 = vector.extract_strided_slice %153 {offsets = [0, 24], sizes = [16, 8], strides = [1, 1]} : vector<16x32xf32> to vector<16x8xf32>
    %159 = arith.mulf %156, %121 : vector<16x8xf32>
    %160 = arith.mulf %155, %157 : vector<16x8xf32>
    %161 = arith.addf %159, %160 : vector<16x8xf32>
    %162 = math.tanh %161 : vector<16x8xf32>
    %163 = arith.mulf %158, %162 : vector<16x8xf32>
    %cst_126 = arith.constant dense<0.000000e+00> : vector<16x32xf32>
    %164 = tpu.matmul %163, %94, %cst_126 {dimension_numbers = #tpu.dot_dimension_numbers<[1], [0], [0], [1], [0, 0, 1, 1], [], []>} : vector<16x8xf32>, vector<8x32xf32>, vector<16x32xf32> -> vector<16x32xf32>
    %cst_127 = arith.constant dense<0.000000e+00> : vector<16x32xf32>
    %165 = tpu.matmul %143, %98, %cst_127 {dimension_numbers = #tpu.dot_dimension_numbers<[1], [0], [0], [1], [0, 0, 1, 1], [], []>} : vector<16x8xf32>, vector<8x32xf32>, vector<16x32xf32> -> vector<16x32xf32>
    %166 = arith.addf %164, %165 : vector<16x32xf32>
    %167 = vector.broadcast %102 : vector<1x32xf32> to vector<16x32xf32>
    %168 = arith.addf %166, %167 : vector<16x32xf32>
    %169 = arith.negf %168 : vector<16x32xf32>
    %170 = math.exp %169 : vector<16x32xf32>
    %cst_128 = arith.constant 1.000000e+00 : f32
    %171 = vector.broadcast %cst_128 : f32 to vector<16x32xf32>
    %172 = arith.addf %171, %170 : vector<16x32xf32>
    %173 = arith.divf %171, %172 : vector<16x32xf32>
    %174 = math.tanh %168 : vector<16x32xf32>
    %175 = vector.extract_strided_slice %173 {offsets = [0, 0], sizes = [16, 8], strides = [1, 1]} : vector<16x32xf32> to vector<16x8xf32>
    %176 = vector.extract_strided_slice %173 {offsets = [0, 8], sizes = [16, 8], strides = [1, 1]} : vector<16x32xf32> to vector<16x8xf32>
    %177 = vector.extract_strided_slice %174 {offsets = [0, 16], sizes = [16, 8], strides = [1, 1]} : vector<16x32xf32> to vector<16x8xf32>
    %178 = vector.extract_strided_slice %173 {offsets = [0, 24], sizes = [16, 8], strides = [1, 1]} : vector<16x32xf32> to vector<16x8xf32>
    %179 = arith.mulf %176, %141 : vector<16x8xf32>
    %180 = arith.mulf %175, %177 : vector<16x8xf32>
    %181 = arith.addf %179, %180 : vector<16x8xf32>
    %182 = math.tanh %181 : vector<16x8xf32>
    %183 = arith.mulf %178, %182 : vector<16x8xf32>
    %cst_129 = arith.constant dense<0.000000e+00> : vector<16x32xf32>
    %184 = tpu.matmul %90, %92, %cst_129 {dimension_numbers = #tpu.dot_dimension_numbers<[1], [0], [0], [1], [0, 0, 1, 1], [], []>} : vector<16x8xf32>, vector<8x32xf32>, vector<16x32xf32> -> vector<16x32xf32>
    %cst_130 = arith.constant dense<0.000000e+00> : vector<16x32xf32>
    %185 = tpu.matmul %163, %96, %cst_130 {dimension_numbers = #tpu.dot_dimension_numbers<[1], [0], [0], [1], [0, 0, 1, 1], [], []>} : vector<16x8xf32>, vector<8x32xf32>, vector<16x32xf32> -> vector<16x32xf32>
    %186 = arith.addf %184, %185 : vector<16x32xf32>
    %187 = vector.broadcast %100 : vector<1x32xf32> to vector<16x32xf32>
    %188 = arith.addf %186, %187 : vector<16x32xf32>
    %189 = arith.negf %188 : vector<16x32xf32>
    %190 = math.exp %189 : vector<16x32xf32>
    %cst_131 = arith.constant 1.000000e+00 : f32
    %191 = vector.broadcast %cst_131 : f32 to vector<16x32xf32>
    %192 = arith.addf %191, %190 : vector<16x32xf32>
    %193 = arith.divf %191, %192 : vector<16x32xf32>
    %194 = math.tanh %188 : vector<16x32xf32>
    %195 = vector.extract_strided_slice %193 {offsets = [0, 0], sizes = [16, 8], strides = [1, 1]} : vector<16x32xf32> to vector<16x8xf32>
    %196 = vector.extract_strided_slice %193 {offsets = [0, 8], sizes = [16, 8], strides = [1, 1]} : vector<16x32xf32> to vector<16x8xf32>
    %197 = vector.extract_strided_slice %194 {offsets = [0, 16], sizes = [16, 8], strides = [1, 1]} : vector<16x32xf32> to vector<16x8xf32>
    %198 = vector.extract_strided_slice %193 {offsets = [0, 24], sizes = [16, 8], strides = [1, 1]} : vector<16x32xf32> to vector<16x8xf32>
    %199 = arith.mulf %196, %161 : vector<16x8xf32>
    %200 = arith.mulf %195, %197 : vector<16x8xf32>
    %201 = arith.addf %199, %200 : vector<16x8xf32>
    %202 = math.tanh %201 : vector<16x8xf32>
    %203 = arith.mulf %198, %202 : vector<16x8xf32>
    %cst_132 = arith.constant dense<0.000000e+00> : vector<16x32xf32>
    %204 = tpu.matmul %203, %94, %cst_132 {dimension_numbers = #tpu.dot_dimension_numbers<[1], [0], [0], [1], [0, 0, 1, 1], [], []>} : vector<16x8xf32>, vector<8x32xf32>, vector<16x32xf32> -> vector<16x32xf32>
    %cst_133 = arith.constant dense<0.000000e+00> : vector<16x32xf32>
    %205 = tpu.matmul %183, %98, %cst_133 {dimension_numbers = #tpu.dot_dimension_numbers<[1], [0], [0], [1], [0, 0, 1, 1], [], []>} : vector<16x8xf32>, vector<8x32xf32>, vector<16x32xf32> -> vector<16x32xf32>
    %206 = arith.addf %204, %205 : vector<16x32xf32>
    %207 = vector.broadcast %102 : vector<1x32xf32> to vector<16x32xf32>
    %208 = arith.addf %206, %207 : vector<16x32xf32>
    %209 = arith.negf %208 : vector<16x32xf32>
    %210 = math.exp %209 : vector<16x32xf32>
    %cst_134 = arith.constant 1.000000e+00 : f32
    %211 = vector.broadcast %cst_134 : f32 to vector<16x32xf32>
    %212 = arith.addf %211, %210 : vector<16x32xf32>
    %213 = arith.divf %211, %212 : vector<16x32xf32>
    %214 = math.tanh %208 : vector<16x32xf32>
    %215 = vector.extract_strided_slice %213 {offsets = [0, 0], sizes = [16, 8], strides = [1, 1]} : vector<16x32xf32> to vector<16x8xf32>
    %216 = vector.extract_strided_slice %213 {offsets = [0, 8], sizes = [16, 8], strides = [1, 1]} : vector<16x32xf32> to vector<16x8xf32>
    %217 = vector.extract_strided_slice %214 {offsets = [0, 16], sizes = [16, 8], strides = [1, 1]} : vector<16x32xf32> to vector<16x8xf32>
    %218 = vector.extract_strided_slice %213 {offsets = [0, 24], sizes = [16, 8], strides = [1, 1]} : vector<16x32xf32> to vector<16x8xf32>
    %219 = arith.mulf %216, %181 : vector<16x8xf32>
    %220 = arith.mulf %215, %217 : vector<16x8xf32>
    %221 = arith.addf %219, %220 : vector<16x8xf32>
    %222 = math.tanh %221 : vector<16x8xf32>
    %223 = arith.mulf %218, %222 : vector<16x8xf32>
    %cst_135 = arith.constant dense<0.000000e+00> : vector<16x10xf32>
    %224 = tpu.matmul %12, %3, %cst_135 {dimension_numbers = #tpu.dot_dimension_numbers<[1], [0], [0], [1], [0, 0, 1, 1], [], []>} : vector<16x16xf32>, vector<16x10xf32>, vector<16x10xf32> -> vector<16x10xf32>
    %cst_136 = arith.constant dense<0.000000e+00> : vector<16x16xf32>
    %225 = tpu.matmul %224, %20, %cst_136 {dimension_numbers = #tpu.dot_dimension_numbers<[1], [0], [0], [1], [0, 0, 1, 1], [], []>} : vector<16x10xf32>, vector<10x16xf32>, vector<16x16xf32> -> vector<16x16xf32>
    %226 = vector.broadcast %21 : vector<1x16xf32> to vector<16x16xf32>
    %227 = arith.addf %225, %226 : vector<16x16xf32>
    %cst_137 = arith.constant 0.000000e+00 : f32
    %228 = vector.broadcast %cst_137 : f32 to vector<16x16xf32>
    %229 = arith.maximumf %227, %228 : vector<16x16xf32>
    %cst_138 = arith.constant dense<0.000000e+00> : vector<16x16xf32>
    %230 = tpu.matmul %12, %229, %cst_138 {dimension_numbers = #tpu.dot_dimension_numbers<[1], [0], [0], [1], [0, 0, 1, 1], [], []>} : vector<16x16xf32>, vector<16x16xf32>, vector<16x16xf32> -> vector<16x16xf32>
    %cst_139 = arith.constant dense<0.000000e+00> : vector<16x8xf32>
    %231 = tpu.matmul %230, %22, %cst_139 {dimension_numbers = #tpu.dot_dimension_numbers<[1], [0], [0], [1], [0, 0, 1, 1], [], []>} : vector<16x16xf32>, vector<16x8xf32>, vector<16x8xf32> -> vector<16x8xf32>
    %232 = vector.broadcast %23 : vector<1x8xf32> to vector<16x8xf32>
    %233 = arith.addf %231, %232 : vector<16x8xf32>
    %234 = vector.extract_strided_slice %5 {offsets = [0, 0, 0], sizes = [1, 16, 2], strides = [1, 1, 1]} : vector<3x16x2xf32> to vector<1x16x2xf32>
    %235 = vector.shape_cast %234 : vector<1x16x2xf32> to vector<16x2xf32>
    %cst_140 = arith.constant dense<0.000000e+00> : vector<16x2xf32>
    %236 = tpu.matmul %12, %235, %cst_140 {dimension_numbers = #tpu.dot_dimension_numbers<[1], [0], [0], [1], [0, 0, 1, 1], [], []>} : vector<16x16xf32>, vector<16x2xf32>, vector<16x2xf32> -> vector<16x2xf32>
    %cst_141 = arith.constant dense<0.000000e+00> : vector<16x16xf32>
    %237 = tpu.matmul %236, %24, %cst_141 {dimension_numbers = #tpu.dot_dimension_numbers<[1], [0], [0], [1], [0, 0, 1, 1], [], []>} : vector<16x2xf32>, vector<2x16xf32>, vector<16x16xf32> -> vector<16x16xf32>
    %238 = vector.broadcast %25 : vector<1x16xf32> to vector<16x16xf32>
    %239 = arith.addf %237, %238 : vector<16x16xf32>
    %cst_142 = arith.constant 0.000000e+00 : f32
    %240 = vector.broadcast %cst_142 : f32 to vector<16x16xf32>
    %241 = arith.maximumf %239, %240 : vector<16x16xf32>
    %cst_143 = arith.constant dense<0.000000e+00> : vector<16x16xf32>
    %242 = tpu.matmul %12, %241, %cst_143 {dimension_numbers = #tpu.dot_dimension_numbers<[1], [0], [0], [1], [0, 0, 1, 1], [], []>} : vector<16x16xf32>, vector<16x16xf32>, vector<16x16xf32> -> vector<16x16xf32>
    %cst_144 = arith.constant dense<0.000000e+00> : vector<16x8xf32>
    %243 = tpu.matmul %242, %26, %cst_144 {dimension_numbers = #tpu.dot_dimension_numbers<[1], [0], [0], [1], [0, 0, 1, 1], [], []>} : vector<16x16xf32>, vector<16x8xf32>, vector<16x8xf32> -> vector<16x8xf32>
    %244 = vector.broadcast %27 : vector<1x8xf32> to vector<16x8xf32>
    %245 = arith.addf %243, %244 : vector<16x8xf32>
    %cst_145 = arith.constant 0.000000e+00 : f32
    %246 = vector.broadcast %cst_145 : f32 to vector<16x8xf32>
    %247 = arith.maximumf %245, %246 : vector<16x8xf32>
    %248 = vector.extract_strided_slice %5 {offsets = [1, 0, 0], sizes = [1, 16, 2], strides = [1, 1, 1]} : vector<3x16x2xf32> to vector<1x16x2xf32>
    %249 = vector.shape_cast %248 : vector<1x16x2xf32> to vector<16x2xf32>
    %cst_146 = arith.constant dense<0.000000e+00> : vector<16x2xf32>
    %250 = tpu.matmul %12, %249, %cst_146 {dimension_numbers = #tpu.dot_dimension_numbers<[1], [0], [0], [1], [0, 0, 1, 1], [], []>} : vector<16x16xf32>, vector<16x2xf32>, vector<16x2xf32> -> vector<16x2xf32>
    %cst_147 = arith.constant dense<0.000000e+00> : vector<16x16xf32>
    %251 = tpu.matmul %250, %24, %cst_147 {dimension_numbers = #tpu.dot_dimension_numbers<[1], [0], [0], [1], [0, 0, 1, 1], [], []>} : vector<16x2xf32>, vector<2x16xf32>, vector<16x16xf32> -> vector<16x16xf32>
    %252 = vector.broadcast %25 : vector<1x16xf32> to vector<16x16xf32>
    %253 = arith.addf %251, %252 : vector<16x16xf32>
    %cst_148 = arith.constant 0.000000e+00 : f32
    %254 = vector.broadcast %cst_148 : f32 to vector<16x16xf32>
    %255 = arith.maximumf %253, %254 : vector<16x16xf32>
    %cst_149 = arith.constant dense<0.000000e+00> : vector<16x16xf32>
    %256 = tpu.matmul %12, %255, %cst_149 {dimension_numbers = #tpu.dot_dimension_numbers<[1], [0], [0], [1], [0, 0, 1, 1], [], []>} : vector<16x16xf32>, vector<16x16xf32>, vector<16x16xf32> -> vector<16x16xf32>
    %cst_150 = arith.constant dense<0.000000e+00> : vector<16x8xf32>
    %257 = tpu.matmul %256, %26, %cst_150 {dimension_numbers = #tpu.dot_dimension_numbers<[1], [0], [0], [1], [0, 0, 1, 1], [], []>} : vector<16x16xf32>, vector<16x8xf32>, vector<16x8xf32> -> vector<16x8xf32>
    %258 = vector.broadcast %27 : vector<1x8xf32> to vector<16x8xf32>
    %259 = arith.addf %257, %258 : vector<16x8xf32>
    %cst_151 = arith.constant 0.000000e+00 : f32
    %260 = vector.broadcast %cst_151 : f32 to vector<16x8xf32>
    %261 = arith.maximumf %259, %260 : vector<16x8xf32>
    %262 = vector.extract_strided_slice %5 {offsets = [2, 0, 0], sizes = [1, 16, 2], strides = [1, 1, 1]} : vector<3x16x2xf32> to vector<1x16x2xf32>
    %263 = vector.shape_cast %262 : vector<1x16x2xf32> to vector<16x2xf32>
    %cst_152 = arith.constant dense<0.000000e+00> : vector<16x2xf32>
    %264 = tpu.matmul %12, %263, %cst_152 {dimension_numbers = #tpu.dot_dimension_numbers<[1], [0], [0], [1], [0, 0, 1, 1], [], []>} : vector<16x16xf32>, vector<16x2xf32>, vector<16x2xf32> -> vector<16x2xf32>
    %cst_153 = arith.constant dense<0.000000e+00> : vector<16x16xf32>
    %265 = tpu.matmul %264, %24, %cst_153 {dimension_numbers = #tpu.dot_dimension_numbers<[1], [0], [0], [1], [0, 0, 1, 1], [], []>} : vector<16x2xf32>, vector<2x16xf32>, vector<16x16xf32> -> vector<16x16xf32>
    %266 = vector.broadcast %25 : vector<1x16xf32> to vector<16x16xf32>
    %267 = arith.addf %265, %266 : vector<16x16xf32>
    %cst_154 = arith.constant 0.000000e+00 : f32
    %268 = vector.broadcast %cst_154 : f32 to vector<16x16xf32>
    %269 = arith.maximumf %267, %268 : vector<16x16xf32>
    %cst_155 = arith.constant dense<0.000000e+00> : vector<16x16xf32>
    %270 = tpu.matmul %12, %269, %cst_155 {dimension_numbers = #tpu.dot_dimension_numbers<[1], [0], [0], [1], [0, 0, 1, 1], [], []>} : vector<16x16xf32>, vector<16x16xf32>, vector<16x16xf32> -> vector<16x16xf32>
    %cst_156 = arith.constant dense<0.000000e+00> : vector<16x8xf32>
    %271 = tpu.matmul %270, %26, %cst_156 {dimension_numbers = #tpu.dot_dimension_numbers<[1], [0], [0], [1], [0, 0, 1, 1], [], []>} : vector<16x16xf32>, vector<16x8xf32>, vector<16x8xf32> -> vector<16x8xf32>
    %272 = vector.broadcast %27 : vector<1x8xf32> to vector<16x8xf32>
    %273 = arith.addf %271, %272 : vector<16x8xf32>
    %cst_157 = arith.constant 0.000000e+00 : f32
    %274 = vector.broadcast %cst_157 : f32 to vector<16x8xf32>
    %275 = arith.maximumf %273, %274 : vector<16x8xf32>
    %276 = vector.extract_strided_slice %28 {offsets = [0, 0, 0], sizes = [1, 8, 32], strides = [1, 1, 1]} : vector<2x8x32xf32> to vector<1x8x32xf32>
    %277 = vector.shape_cast %276 : vector<1x8x32xf32> to vector<8x32xf32>
    %278 = vector.extract_strided_slice %28 {offsets = [1, 0, 0], sizes = [1, 8, 32], strides = [1, 1, 1]} : vector<2x8x32xf32> to vector<1x8x32xf32>
    %279 = vector.shape_cast %278 : vector<1x8x32xf32> to vector<8x32xf32>
    %280 = vector.extract_strided_slice %29 {offsets = [0, 0, 0], sizes = [1, 8, 32], strides = [1, 1, 1]} : vector<2x8x32xf32> to vector<1x8x32xf32>
    %281 = vector.shape_cast %280 : vector<1x8x32xf32> to vector<8x32xf32>
    %282 = vector.extract_strided_slice %29 {offsets = [1, 0, 0], sizes = [1, 8, 32], strides = [1, 1, 1]} : vector<2x8x32xf32> to vector<1x8x32xf32>
    %283 = vector.shape_cast %282 : vector<1x8x32xf32> to vector<8x32xf32>
    %284 = vector.extract_strided_slice %30 {offsets = [0, 0, 0], sizes = [1, 1, 32], strides = [1, 1, 1]} : vector<2x1x32xf32> to vector<1x1x32xf32>
    %285 = vector.shape_cast %284 : vector<1x1x32xf32> to vector<1x32xf32>
    %286 = vector.extract_strided_slice %30 {offsets = [1, 0, 0], sizes = [1, 1, 32], strides = [1, 1, 1]} : vector<2x1x32xf32> to vector<1x1x32xf32>
    %287 = vector.shape_cast %286 : vector<1x1x32xf32> to vector<1x32xf32>
    %cst_158 = arith.constant 0.000000e+00 : f32
    %288 = vector.broadcast %cst_158 : f32 to vector<16x8xf32>
    %cst_159 = arith.constant dense<0.000000e+00> : vector<16x32xf32>
    %289 = tpu.matmul %247, %277, %cst_159 {dimension_numbers = #tpu.dot_dimension_numbers<[1], [0], [0], [1], [0, 0, 1, 1], [], []>} : vector<16x8xf32>, vector<8x32xf32>, vector<16x32xf32> -> vector<16x32xf32>
    %cst_160 = arith.constant dense<0.000000e+00> : vector<16x32xf32>
    %290 = tpu.matmul %288, %281, %cst_160 {dimension_numbers = #tpu.dot_dimension_numbers<[1], [0], [0], [1], [0, 0, 1, 1], [], []>} : vector<16x8xf32>, vector<8x32xf32>, vector<16x32xf32> -> vector<16x32xf32>
    %291 = arith.addf %289, %290 : vector<16x32xf32>
    %292 = vector.broadcast %285 : vector<1x32xf32> to vector<16x32xf32>
    %293 = arith.addf %291, %292 : vector<16x32xf32>
    %294 = arith.negf %293 : vector<16x32xf32>
    %295 = math.exp %294 : vector<16x32xf32>
    %cst_161 = arith.constant 1.000000e+00 : f32
    %296 = vector.broadcast %cst_161 : f32 to vector<16x32xf32>
    %297 = arith.addf %296, %295 : vector<16x32xf32>
    %298 = arith.divf %296, %297 : vector<16x32xf32>
    %299 = math.tanh %293 : vector<16x32xf32>
    %300 = vector.extract_strided_slice %298 {offsets = [0, 0], sizes = [16, 8], strides = [1, 1]} : vector<16x32xf32> to vector<16x8xf32>
    %301 = vector.extract_strided_slice %298 {offsets = [0, 8], sizes = [16, 8], strides = [1, 1]} : vector<16x32xf32> to vector<16x8xf32>
    %302 = vector.extract_strided_slice %299 {offsets = [0, 16], sizes = [16, 8], strides = [1, 1]} : vector<16x32xf32> to vector<16x8xf32>
    %303 = vector.extract_strided_slice %298 {offsets = [0, 24], sizes = [16, 8], strides = [1, 1]} : vector<16x32xf32> to vector<16x8xf32>
    %304 = arith.mulf %301, %288 : vector<16x8xf32>
    %305 = arith.mulf %300, %302 : vector<16x8xf32>
    %306 = arith.addf %304, %305 : vector<16x8xf32>
    %307 = math.tanh %306 : vector<16x8xf32>
    %308 = arith.mulf %303, %307 : vector<16x8xf32>
    %cst_162 = arith.constant dense<0.000000e+00> : vector<16x32xf32>
    %309 = tpu.matmul %308, %279, %cst_162 {dimension_numbers = #tpu.dot_dimension_numbers<[1], [0], [0], [1], [0, 0, 1, 1], [], []>} : vector<16x8xf32>, vector<8x32xf32>, vector<16x32xf32> -> vector<16x32xf32>
    %cst_163 = arith.constant dense<0.000000e+00> : vector<16x32xf32>
    %310 = tpu.matmul %288, %283, %cst_163 {dimension_numbers = #tpu.dot_dimension_numbers<[1], [0], [0], [1], [0, 0, 1, 1], [], []>} : vector<16x8xf32>, vector<8x32xf32>, vector<16x32xf32> -> vector<16x32xf32>
    %311 = arith.addf %309, %310 : vector<16x32xf32>
    %312 = vector.broadcast %287 : vector<1x32xf32> to vector<16x32xf32>
    %313 = arith.addf %311, %312 : vector<16x32xf32>
    %314 = arith.negf %313 : vector<16x32xf32>
    %315 = math.exp %314 : vector<16x32xf32>
    %cst_164 = arith.constant 1.000000e+00 : f32
    %316 = vector.broadcast %cst_164 : f32 to vector<16x32xf32>
    %317 = arith.addf %316, %315 : vector<16x32xf32>
    %318 = arith.divf %316, %317 : vector<16x32xf32>
    %319 = math.tanh %313 : vector<16x32xf32>
    %320 = vector.extract_strided_slice %318 {offsets = [0, 0], sizes = [16, 8], strides = [1, 1]} : vector<16x32xf32> to vector<16x8xf32>
    %321 = vector.extract_strided_slice %318 {offsets = [0, 8], sizes = [16, 8], strides = [1, 1]} : vector<16x32xf32> to vector<16x8xf32>
    %322 = vector.extract_strided_slice %319 {offsets = [0, 16], sizes = [16, 8], strides = [1, 1]} : vector<16x32xf32> to vector<16x8xf32>
    %323 = vector.extract_strided_slice %318 {offsets = [0, 24], sizes = [16, 8], strides = [1, 1]} : vector<16x32xf32> to vector<16x8xf32>
    %324 = arith.mulf %321, %288 : vector<16x8xf32>
    %325 = arith.mulf %320, %322 : vector<16x8xf32>
    %326 = arith.addf %324, %325 : vector<16x8xf32>
    %327 = math.tanh %326 : vector<16x8xf32>
    %328 = arith.mulf %323, %327 : vector<16x8xf32>
    %cst_165 = arith.constant dense<0.000000e+00> : vector<16x32xf32>
    %329 = tpu.matmul %261, %277, %cst_165 {dimension_numbers = #tpu.dot_dimension_numbers<[1], [0], [0], [1], [0, 0, 1, 1], [], []>} : vector<16x8xf32>, vector<8x32xf32>, vector<16x32xf32> -> vector<16x32xf32>
    %cst_166 = arith.constant dense<0.000000e+00> : vector<16x32xf32>
    %330 = tpu.matmul %308, %281, %cst_166 {dimension_numbers = #tpu.dot_dimension_numbers<[1], [0], [0], [1], [0, 0, 1, 1], [], []>} : vector<16x8xf32>, vector<8x32xf32>, vector<16x32xf32> -> vector<16x32xf32>
    %331 = arith.addf %329, %330 : vector<16x32xf32>
    %332 = vector.broadcast %285 : vector<1x32xf32> to vector<16x32xf32>
    %333 = arith.addf %331, %332 : vector<16x32xf32>
    %334 = arith.negf %333 : vector<16x32xf32>
    %335 = math.exp %334 : vector<16x32xf32>
    %cst_167 = arith.constant 1.000000e+00 : f32
    %336 = vector.broadcast %cst_167 : f32 to vector<16x32xf32>
    %337 = arith.addf %336, %335 : vector<16x32xf32>
    %338 = arith.divf %336, %337 : vector<16x32xf32>
    %339 = math.tanh %333 : vector<16x32xf32>
    %340 = vector.extract_strided_slice %338 {offsets = [0, 0], sizes = [16, 8], strides = [1, 1]} : vector<16x32xf32> to vector<16x8xf32>
    %341 = vector.extract_strided_slice %338 {offsets = [0, 8], sizes = [16, 8], strides = [1, 1]} : vector<16x32xf32> to vector<16x8xf32>
    %342 = vector.extract_strided_slice %339 {offsets = [0, 16], sizes = [16, 8], strides = [1, 1]} : vector<16x32xf32> to vector<16x8xf32>
    %343 = vector.extract_strided_slice %338 {offsets = [0, 24], sizes = [16, 8], strides = [1, 1]} : vector<16x32xf32> to vector<16x8xf32>
    %344 = arith.mulf %341, %306 : vector<16x8xf32>
    %345 = arith.mulf %340, %342 : vector<16x8xf32>
    %346 = arith.addf %344, %345 : vector<16x8xf32>
    %347 = math.tanh %346 : vector<16x8xf32>
    %348 = arith.mulf %343, %347 : vector<16x8xf32>
    %cst_168 = arith.constant dense<0.000000e+00> : vector<16x32xf32>
    %349 = tpu.matmul %348, %279, %cst_168 {dimension_numbers = #tpu.dot_dimension_numbers<[1], [0], [0], [1], [0, 0, 1, 1], [], []>} : vector<16x8xf32>, vector<8x32xf32>, vector<16x32xf32> -> vector<16x32xf32>
    %cst_169 = arith.constant dense<0.000000e+00> : vector<16x32xf32>
    %350 = tpu.matmul %328, %283, %cst_169 {dimension_numbers = #tpu.dot_dimension_numbers<[1], [0], [0], [1], [0, 0, 1, 1], [], []>} : vector<16x8xf32>, vector<8x32xf32>, vector<16x32xf32> -> vector<16x32xf32>
    %351 = arith.addf %349, %350 : vector<16x32xf32>
    %352 = vector.broadcast %287 : vector<1x32xf32> to vector<16x32xf32>
    %353 = arith.addf %351, %352 : vector<16x32xf32>
    %354 = arith.negf %353 : vector<16x32xf32>
    %355 = math.exp %354 : vector<16x32xf32>
    %cst_170 = arith.constant 1.000000e+00 : f32
    %356 = vector.broadcast %cst_170 : f32 to vector<16x32xf32>
    %357 = arith.addf %356, %355 : vector<16x32xf32>
    %358 = arith.divf %356, %357 : vector<16x32xf32>
    %359 = math.tanh %353 : vector<16x32xf32>
    %360 = vector.extract_strided_slice %358 {offsets = [0, 0], sizes = [16, 8], strides = [1, 1]} : vector<16x32xf32> to vector<16x8xf32>
    %361 = vector.extract_strided_slice %358 {offsets = [0, 8], sizes = [16, 8], strides = [1, 1]} : vector<16x32xf32> to vector<16x8xf32>
    %362 = vector.extract_strided_slice %359 {offsets = [0, 16], sizes = [16, 8], strides = [1, 1]} : vector<16x32xf32> to vector<16x8xf32>
    %363 = vector.extract_strided_slice %358 {offsets = [0, 24], sizes = [16, 8], strides = [1, 1]} : vector<16x32xf32> to vector<16x8xf32>
    %364 = arith.mulf %361, %326 : vector<16x8xf32>
    %365 = arith.mulf %360, %362 : vector<16x8xf32>
    %366 = arith.addf %364, %365 : vector<16x8xf32>
    %367 = math.tanh %366 : vector<16x8xf32>
    %368 = arith.mulf %363, %367 : vector<16x8xf32>
    %cst_171 = arith.constant dense<0.000000e+00> : vector<16x32xf32>
    %369 = tpu.matmul %275, %277, %cst_171 {dimension_numbers = #tpu.dot_dimension_numbers<[1], [0], [0], [1], [0, 0, 1, 1], [], []>} : vector<16x8xf32>, vector<8x32xf32>, vector<16x32xf32> -> vector<16x32xf32>
    %cst_172 = arith.constant dense<0.000000e+00> : vector<16x32xf32>
    %370 = tpu.matmul %348, %281, %cst_172 {dimension_numbers = #tpu.dot_dimension_numbers<[1], [0], [0], [1], [0, 0, 1, 1], [], []>} : vector<16x8xf32>, vector<8x32xf32>, vector<16x32xf32> -> vector<16x32xf32>
    %371 = arith.addf %369, %370 : vector<16x32xf32>
    %372 = vector.broadcast %285 : vector<1x32xf32> to vector<16x32xf32>
    %373 = arith.addf %371, %372 : vector<16x32xf32>
    %374 = arith.negf %373 : vector<16x32xf32>
    %375 = math.exp %374 : vector<16x32xf32>
    %cst_173 = arith.constant 1.000000e+00 : f32
    %376 = vector.broadcast %cst_173 : f32 to vector<16x32xf32>
    %377 = arith.addf %376, %375 : vector<16x32xf32>
    %378 = arith.divf %376, %377 : vector<16x32xf32>
    %379 = math.tanh %373 : vector<16x32xf32>
    %380 = vector.extract_strided_slice %378 {offsets = [0, 0], sizes = [16, 8], strides = [1, 1]} : vector<16x32xf32> to vector<16x8xf32>
    %381 = vector.extract_strided_slice %378 {offsets = [0, 8], sizes = [16, 8], strides = [1, 1]} : vector<16x32xf32> to vector<16x8xf32>
    %382 = vector.extract_strided_slice %379 {offsets = [0, 16], sizes = [16, 8], strides = [1, 1]} : vector<16x32xf32> to vector<16x8xf32>
    %383 = vector.extract_strided_slice %378 {offsets = [0, 24], sizes = [16, 8], strides = [1, 1]} : vector<16x32xf32> to vector<16x8xf32>
    %384 = arith.mulf %381, %346 : vector<16x8xf32>
    %385 = arith.mulf %380, %382 : vector<16x8xf32>
    %386 = arith.addf %384, %385 : vector<16x8xf32>
    %387 = math.tanh %386 : vector<16x8xf32>
    %388 = arith.mulf %383, %387 : vector<16x8xf32>
    %cst_174 = arith.constant dense<0.000000e+00> : vector<16x32xf32>
    %389 = tpu.matmul %388, %279, %cst_174 {dimension_numbers = #tpu.dot_dimension_numbers<[1], [0], [0], [1], [0, 0, 1, 1], [], []>} : vector<16x8xf32>, vector<8x32xf32>, vector<16x32xf32> -> vector<16x32xf32>
    %cst_175 = arith.constant dense<0.000000e+00> : vector<16x32xf32>
    %390 = tpu.matmul %368, %283, %cst_175 {dimension_numbers = #tpu.dot_dimension_numbers<[1], [0], [0], [1], [0, 0, 1, 1], [], []>} : vector<16x8xf32>, vector<8x32xf32>, vector<16x32xf32> -> vector<16x32xf32>
    %391 = arith.addf %389, %390 : vector<16x32xf32>
    %392 = vector.broadcast %287 : vector<1x32xf32> to vector<16x32xf32>
    %393 = arith.addf %391, %392 : vector<16x32xf32>
    %394 = arith.negf %393 : vector<16x32xf32>
    %395 = math.exp %394 : vector<16x32xf32>
    %cst_176 = arith.constant 1.000000e+00 : f32
    %396 = vector.broadcast %cst_176 : f32 to vector<16x32xf32>
    %397 = arith.addf %396, %395 : vector<16x32xf32>
    %398 = arith.divf %396, %397 : vector<16x32xf32>
    %399 = math.tanh %393 : vector<16x32xf32>
    %400 = vector.extract_strided_slice %398 {offsets = [0, 0], sizes = [16, 8], strides = [1, 1]} : vector<16x32xf32> to vector<16x8xf32>
    %401 = vector.extract_strided_slice %398 {offsets = [0, 8], sizes = [16, 8], strides = [1, 1]} : vector<16x32xf32> to vector<16x8xf32>
    %402 = vector.extract_strided_slice %399 {offsets = [0, 16], sizes = [16, 8], strides = [1, 1]} : vector<16x32xf32> to vector<16x8xf32>
    %403 = vector.extract_strided_slice %398 {offsets = [0, 24], sizes = [16, 8], strides = [1, 1]} : vector<16x32xf32> to vector<16x8xf32>
    %404 = arith.mulf %401, %366 : vector<16x8xf32>
    %405 = arith.mulf %400, %402 : vector<16x8xf32>
    %406 = arith.addf %404, %405 : vector<16x8xf32>
    %407 = math.tanh %406 : vector<16x8xf32>
    %408 = arith.mulf %403, %407 : vector<16x8xf32>
    %cst_177 = arith.constant dense<0.000000e+00> : vector<16x10xf32>
    %409 = tpu.matmul %12, %7, %cst_177 {dimension_numbers = #tpu.dot_dimension_numbers<[1], [0], [0], [1], [0, 0, 1, 1], [], []>} : vector<16x16xf32>, vector<16x10xf32>, vector<16x10xf32> -> vector<16x10xf32>
    %cst_178 = arith.constant dense<0.000000e+00> : vector<16x16xf32>
    %410 = tpu.matmul %409, %31, %cst_178 {dimension_numbers = #tpu.dot_dimension_numbers<[1], [0], [0], [1], [0, 0, 1, 1], [], []>} : vector<16x10xf32>, vector<10x16xf32>, vector<16x16xf32> -> vector<16x16xf32>
    %411 = vector.broadcast %32 : vector<1x16xf32> to vector<16x16xf32>
    %412 = arith.addf %410, %411 : vector<16x16xf32>
    %cst_179 = arith.constant 0.000000e+00 : f32
    %413 = vector.broadcast %cst_179 : f32 to vector<16x16xf32>
    %414 = arith.maximumf %412, %413 : vector<16x16xf32>
    %cst_180 = arith.constant dense<0.000000e+00> : vector<16x16xf32>
    %415 = tpu.matmul %12, %414, %cst_180 {dimension_numbers = #tpu.dot_dimension_numbers<[1], [0], [0], [1], [0, 0, 1, 1], [], []>} : vector<16x16xf32>, vector<16x16xf32>, vector<16x16xf32> -> vector<16x16xf32>
    %cst_181 = arith.constant dense<0.000000e+00> : vector<16x8xf32>
    %416 = tpu.matmul %415, %33, %cst_181 {dimension_numbers = #tpu.dot_dimension_numbers<[1], [0], [0], [1], [0, 0, 1, 1], [], []>} : vector<16x16xf32>, vector<16x8xf32>, vector<16x8xf32> -> vector<16x8xf32>
    %417 = vector.broadcast %34 : vector<1x8xf32> to vector<16x8xf32>
    %418 = arith.addf %416, %417 : vector<16x8xf32>
    %419 = tpu.concatenate %223, %233, %408, %418 in 1 : vector<16x8xf32>, vector<16x8xf32>, vector<16x8xf32>, vector<16x8xf32> -> vector<16x32xf32>
    %cst_182 = arith.constant dense<0.000000e+00> : vector<4x32xf32>
    %420 = tpu.matmul %9, %419, %cst_182 {dimension_numbers = #tpu.dot_dimension_numbers<[1], [0], [0], [1], [0, 0, 1, 1], [], []>} : vector<4x16xf32>, vector<16x32xf32>, vector<4x32xf32> -> vector<4x32xf32>
    %421 = vector.broadcast %11 : vector<4x1xf32> to vector<4x32xf32>
    %422 = arith.mulf %421, %420 : vector<4x32xf32>
    %cst_183 = arith.constant dense<0.000000e+00> : vector<4x32xf32>
    %423 = tpu.matmul %420, %35, %cst_183 {dimension_numbers = #tpu.dot_dimension_numbers<[1], [0], [0], [1], [0, 0, 1, 1], [], []>} : vector<4x32xf32>, vector<32x32xf32>, vector<4x32xf32> -> vector<4x32xf32>
    %424 = vector.broadcast %36 : vector<1x32xf32> to vector<4x32xf32>
    %425 = arith.addf %423, %424 : vector<4x32xf32>
    %cst_184 = arith.constant dense<0.000000e+00> : vector<16x64xf32>
    %426 = tpu.matmul %419, %37, %cst_184 {dimension_numbers = #tpu.dot_dimension_numbers<[1], [0], [0], [1], [0, 0, 1, 1], [], []>} : vector<16x32xf32>, vector<32x64xf32>, vector<16x64xf32> -> vector<16x64xf32>
    %427 = vector.broadcast %38 : vector<1x64xf32> to vector<16x64xf32>
    %428 = arith.addf %426, %427 : vector<16x64xf32>
    %429 = vector.extract_strided_slice %428 {offsets = [0, 0], sizes = [16, 32], strides = [1, 1]} : vector<16x64xf32> to vector<16x32xf32>
    %430 = vector.extract_strided_slice %428 {offsets = [0, 32], sizes = [16, 32], strides = [1, 1]} : vector<16x64xf32> to vector<16x32xf32>
    %cst_185 = arith.constant dense<0.000000e+00> : vector<16x4xf32>
    %431 = tpu.matmul %429, %425, %cst_185 {dimension_numbers = #tpu.dot_dimension_numbers<[1], [1], [0], [0], [0, 0, 1, 0], [], []>} : vector<16x32xf32>, vector<4x32xf32>, vector<16x4xf32> -> vector<16x4xf32>
    %cst_186 = arith.constant 0.176776692 : f32
    %432 = vector.broadcast %cst_186 : f32 to vector<16x4xf32>
    %433 = arith.mulf %431, %432 : vector<16x4xf32>
    %cst_187 = arith.constant dense<0xFF800000> : vector<16xf32>
    %434 = vector.multi_reduction <maximumf>, %433, %cst_187 [1] : vector<16x4xf32> to vector<16xf32>
    %435 = vector.shape_cast %434 : vector<16xf32> to vector<16x1xf32>
    %436 = vector.broadcast %435 : vector<16x1xf32> to vector<16x4xf32>
    %437 = arith.subf %433, %436 : vector<16x4xf32>
    %438 = math.exp %437 : vector<16x4xf32>
    %cst_188 = arith.constant dense<0.000000e+00> : vector<16xf32>
    %439 = vector.multi_reduction <add>, %438, %cst_188 [1] : vector<16x4xf32> to vector<16xf32>
    %440 = vector.shape_cast %439 : vector<16xf32> to vector<16x1xf32>
    %441 = tpu.reciprocal %440 {approx = true} : vector<16x1xf32> -> vector<16x1xf32>
    %442 = vector.broadcast %441 : vector<16x1xf32> to vector<16x4xf32>
    %443 = arith.mulf %438, %442 : vector<16x4xf32>
    %cst_189 = arith.constant dense<0.000000e+00> : vector<16x32xf32>
    %444 = tpu.matmul %443, %422, %cst_189 {dimension_numbers = #tpu.dot_dimension_numbers<[1], [0], [0], [1], [0, 0, 1, 1], [], []>} : vector<16x4xf32>, vector<4x32xf32>, vector<16x32xf32> -> vector<16x32xf32>
    %cst_190 = arith.constant dense<0.000000e+00> : vector<16x32xf32>
    %445 = tpu.matmul %444, %39, %cst_190 {dimension_numbers = #tpu.dot_dimension_numbers<[1], [0], [0], [1], [0, 0, 1, 1], [], []>} : vector<16x32xf32>, vector<32x32xf32>, vector<16x32xf32> -> vector<16x32xf32>
    %446 = arith.addf %430, %445 : vector<16x32xf32>
    %447 = vector.broadcast %40 : vector<1x32xf32> to vector<16x32xf32>
    %448 = arith.addf %446, %447 : vector<16x32xf32>
    %cst_191 = arith.constant dense<0.000000e+00> : vector<16x16xf32>
    %449 = tpu.matmul %448, %41, %cst_191 {dimension_numbers = #tpu.dot_dimension_numbers<[1], [0], [0], [1], [0, 0, 1, 1], [], []>} : vector<16x32xf32>, vector<32x16xf32>, vector<16x16xf32> -> vector<16x16xf32>
    %450 = vector.broadcast %42 : vector<1x16xf32> to vector<16x16xf32>
    %451 = arith.addf %449, %450 : vector<16x16xf32>
    %cst_192 = arith.constant 0.000000e+00 : f32
    %452 = vector.broadcast %cst_192 : f32 to vector<16x16xf32>
    %453 = arith.maximumf %451, %452 : vector<16x16xf32>
    %cst_193 = arith.constant dense<0.000000e+00> : vector<16x8xf32>
    %454 = tpu.matmul %453, %43, %cst_193 {dimension_numbers = #tpu.dot_dimension_numbers<[1], [0], [0], [1], [0, 0, 1, 1], [], []>} : vector<16x16xf32>, vector<16x8xf32>, vector<16x8xf32> -> vector<16x8xf32>
    %455 = vector.broadcast %44 : vector<1x8xf32> to vector<16x8xf32>
    %456 = arith.addf %454, %455 : vector<16x8xf32>
    %cst_194 = arith.constant 0.000000e+00 : f32
    %457 = vector.broadcast %cst_194 : f32 to vector<16x8xf32>
    %458 = arith.maximumf %456, %457 : vector<16x8xf32>
    %cst_195 = arith.constant dense<0.000000e+00> : vector<16x4xf32>
    %459 = tpu.matmul %458, %45, %cst_195 {dimension_numbers = #tpu.dot_dimension_numbers<[1], [0], [0], [1], [0, 0, 1, 1], [], []>} : vector<16x8xf32>, vector<8x4xf32>, vector<16x4xf32> -> vector<16x4xf32>
    %460 = vector.broadcast %46 : vector<1x4xf32> to vector<16x4xf32>
    %461 = arith.addf %459, %460 : vector<16x4xf32>
    %cst_196 = arith.constant 0.000000e+00 : f32
    %462 = vector.broadcast %cst_196 : f32 to vector<16x4xf32>
    %463 = arith.maximumf %461, %462 : vector<16x4xf32>
    %cst_197 = arith.constant dense<0.000000e+00> : vector<16x11xf32>
    %464 = tpu.matmul %463, %47, %cst_197 {dimension_numbers = #tpu.dot_dimension_numbers<[1], [0], [0], [1], [0, 0, 1, 1], [], []>} : vector<16x4xf32>, vector<4x11xf32>, vector<16x11xf32> -> vector<16x11xf32>
    %465 = vector.broadcast %48 : vector<1x11xf32> to vector<16x11xf32>
    %466 = arith.addf %464, %465 : vector<16x11xf32>
    %c0_198 = arith.constant 0 : index
    %c0_199 = arith.constant 0 : index
    %c0_200 = arith.constant 0 : index
    %467 = vector.load %arg44[%c0_198, %c0_199, %c0_200] : memref<1x16x11xf32, #tpu.memory_space<vmem>>, vector<1x16x11xf32>
    %468 = vector.shape_cast %467 : vector<1x16x11xf32> to vector<16x11xf32>
    %469 = vector.shape_cast %466 : vector<16x11xf32> to vector<1x16x11xf32>
    tpu.vector_store %arg44[%c0_198, %c0_199, %c0_200], %469 {strides = array<i32>} : memref<1x16x11xf32, #tpu.memory_space<vmem>>, vector<1x16x11xf32>,
    return
  }
  func.func @transform_0(%arg0: i32) -> (i32, i32, i32, i32) {
    %c0_i32 = arith.constant 0 : i32
    %c0_i32_0 = arith.constant 0 : i32
    %c0_i32_1 = arith.constant 0 : i32
    %c0_i32_2 = arith.constant 0 : i32
    return %arg0, %c0_i32, %c0_i32_0, %c0_i32_1 : i32, i32, i32, i32
  }
  func.func @transform_1(%arg0: i32) -> (i32, i32, i32) {
    %c0_i32 = arith.constant 0 : i32
    %c0_i32_0 = arith.constant 0 : i32
    %c0_i32_1 = arith.constant 0 : i32
    return %arg0, %c0_i32, %c0_i32_0 : i32, i32, i32
  }
  func.func @transform_2(%arg0: i32) -> (i32, i32, i32, i32) {
    %c0_i32 = arith.constant 0 : i32
    %c0_i32_0 = arith.constant 0 : i32
    %c0_i32_1 = arith.constant 0 : i32
    %c0_i32_2 = arith.constant 0 : i32
    return %arg0, %c0_i32, %c0_i32_0, %c0_i32_1 : i32, i32, i32, i32
  }
  func.func @transform_3(%arg0: i32) -> (i32, i32, i32) {
    %c0_i32 = arith.constant 0 : i32
    %c0_i32_0 = arith.constant 0 : i32
    %c0_i32_1 = arith.constant 0 : i32
    return %arg0, %c0_i32, %c0_i32_0 : i32, i32, i32
  }
  func.func @transform_4(%arg0: i32) -> (i32, i32, i32) {
    %c0_i32 = arith.constant 0 : i32
    %c0_i32_0 = arith.constant 0 : i32
    %c0_i32_1 = arith.constant 0 : i32
    return %arg0, %c0_i32, %c0_i32_0 : i32, i32, i32
  }
  func.func @transform_5(%arg0: i32) -> (i32, i32, i32) {
    %c0_i32 = arith.constant 0 : i32
    %c0_i32_0 = arith.constant 0 : i32
    %c0_i32_1 = arith.constant 0 : i32
    return %arg0, %c0_i32, %c0_i32_0 : i32, i32, i32
  }
  func.func @transform_6(%arg0: i32) -> (i32, i32) {
    %c0_i32 = arith.constant 0 : i32
    %c0_i32_0 = arith.constant 0 : i32
    %c0_i32_1 = arith.constant 0 : i32
    return %c0_i32, %c0_i32_0 : i32, i32
  }
  func.func @transform_7(%arg0: i32) -> (i32, i32) {
    %c0_i32 = arith.constant 0 : i32
    %c0_i32_0 = arith.constant 0 : i32
    %c0_i32_1 = arith.constant 0 : i32
    return %c0_i32, %c0_i32_0 : i32, i32
  }
  func.func @transform_8(%arg0: i32) -> (i32, i32) {
    %c0_i32 = arith.constant 0 : i32
    %c0_i32_0 = arith.constant 0 : i32
    %c0_i32_1 = arith.constant 0 : i32
    return %c0_i32, %c0_i32_0 : i32, i32
  }
  func.func @transform_9(%arg0: i32) -> (i32, i32) {
    %c0_i32 = arith.constant 0 : i32
    %c0_i32_0 = arith.constant 0 : i32
    %c0_i32_1 = arith.constant 0 : i32
    return %c0_i32, %c0_i32_0 : i32, i32
  }
  func.func @transform_10(%arg0: i32) -> (i32, i32) {
    %c0_i32 = arith.constant 0 : i32
    %c0_i32_0 = arith.constant 0 : i32
    %c0_i32_1 = arith.constant 0 : i32
    return %c0_i32, %c0_i32_0 : i32, i32
  }
  func.func @transform_11(%arg0: i32) -> (i32, i32, i32) {
    %c0_i32 = arith.constant 0 : i32
    %c0_i32_0 = arith.constant 0 : i32
    %c0_i32_1 = arith.constant 0 : i32
    %c0_i32_2 = arith.constant 0 : i32
    return %c0_i32, %c0_i32_0, %c0_i32_1 : i32, i32, i32
  }
  func.func @transform_12(%arg0: i32) -> (i32, i32, i32) {
    %c0_i32 = arith.constant 0 : i32
    %c0_i32_0 = arith.constant 0 : i32
    %c0_i32_1 = arith.constant 0 : i32
    %c0_i32_2 = arith.constant 0 : i32
    return %c0_i32, %c0_i32_0, %c0_i32_1 : i32, i32, i32
  }
  func.func @transform_13(%arg0: i32) -> (i32, i32, i32) {
    %c0_i32 = arith.constant 0 : i32
    %c0_i32_0 = arith.constant 0 : i32
    %c0_i32_1 = arith.constant 0 : i32
    %c0_i32_2 = arith.constant 0 : i32
    return %c0_i32, %c0_i32_0, %c0_i32_1 : i32, i32, i32
  }
  func.func @transform_14(%arg0: i32) -> (i32, i32) {
    %c0_i32 = arith.constant 0 : i32
    %c0_i32_0 = arith.constant 0 : i32
    %c0_i32_1 = arith.constant 0 : i32
    return %c0_i32, %c0_i32_0 : i32, i32
  }
  func.func @transform_15(%arg0: i32) -> (i32, i32) {
    %c0_i32 = arith.constant 0 : i32
    %c0_i32_0 = arith.constant 0 : i32
    %c0_i32_1 = arith.constant 0 : i32
    return %c0_i32, %c0_i32_0 : i32, i32
  }
  func.func @transform_16(%arg0: i32) -> (i32, i32) {
    %c0_i32 = arith.constant 0 : i32
    %c0_i32_0 = arith.constant 0 : i32
    %c0_i32_1 = arith.constant 0 : i32
    return %c0_i32, %c0_i32_0 : i32, i32
  }
  func.func @transform_17(%arg0: i32) -> (i32, i32) {
    %c0_i32 = arith.constant 0 : i32
    %c0_i32_0 = arith.constant 0 : i32
    %c0_i32_1 = arith.constant 0 : i32
    return %c0_i32, %c0_i32_0 : i32, i32
  }
  func.func @transform_18(%arg0: i32) -> (i32, i32) {
    %c0_i32 = arith.constant 0 : i32
    %c0_i32_0 = arith.constant 0 : i32
    %c0_i32_1 = arith.constant 0 : i32
    return %c0_i32, %c0_i32_0 : i32, i32
  }
  func.func @transform_19(%arg0: i32) -> (i32, i32) {
    %c0_i32 = arith.constant 0 : i32
    %c0_i32_0 = arith.constant 0 : i32
    %c0_i32_1 = arith.constant 0 : i32
    return %c0_i32, %c0_i32_0 : i32, i32
  }
  func.func @transform_20(%arg0: i32) -> (i32, i32) {
    %c0_i32 = arith.constant 0 : i32
    %c0_i32_0 = arith.constant 0 : i32
    %c0_i32_1 = arith.constant 0 : i32
    return %c0_i32, %c0_i32_0 : i32, i32
  }
  func.func @transform_21(%arg0: i32) -> (i32, i32) {
    %c0_i32 = arith.constant 0 : i32
    %c0_i32_0 = arith.constant 0 : i32
    %c0_i32_1 = arith.constant 0 : i32
    return %c0_i32, %c0_i32_0 : i32, i32
  }
  func.func @transform_22(%arg0: i32) -> (i32, i32, i32) {
    %c0_i32 = arith.constant 0 : i32
    %c0_i32_0 = arith.constant 0 : i32
    %c0_i32_1 = arith.constant 0 : i32
    %c0_i32_2 = arith.constant 0 : i32
    return %c0_i32, %c0_i32_0, %c0_i32_1 : i32, i32, i32
  }
  func.func @transform_23(%arg0: i32) -> (i32, i32, i32) {
    %c0_i32 = arith.constant 0 : i32
    %c0_i32_0 = arith.constant 0 : i32
    %c0_i32_1 = arith.constant 0 : i32
    %c0_i32_2 = arith.constant 0 : i32
    return %c0_i32, %c0_i32_0, %c0_i32_1 : i32, i32, i32
  }
  func.func @transform_24(%arg0: i32) -> (i32, i32, i32) {
    %c0_i32 = arith.constant 0 : i32
    %c0_i32_0 = arith.constant 0 : i32
    %c0_i32_1 = arith.constant 0 : i32
    %c0_i32_2 = arith.constant 0 : i32
    return %c0_i32, %c0_i32_0, %c0_i32_1 : i32, i32, i32
  }
  func.func @transform_25(%arg0: i32) -> (i32, i32) {
    %c0_i32 = arith.constant 0 : i32
    %c0_i32_0 = arith.constant 0 : i32
    %c0_i32_1 = arith.constant 0 : i32
    return %c0_i32, %c0_i32_0 : i32, i32
  }
  func.func @transform_26(%arg0: i32) -> (i32, i32) {
    %c0_i32 = arith.constant 0 : i32
    %c0_i32_0 = arith.constant 0 : i32
    %c0_i32_1 = arith.constant 0 : i32
    return %c0_i32, %c0_i32_0 : i32, i32
  }
  func.func @transform_27(%arg0: i32) -> (i32, i32) {
    %c0_i32 = arith.constant 0 : i32
    %c0_i32_0 = arith.constant 0 : i32
    %c0_i32_1 = arith.constant 0 : i32
    return %c0_i32, %c0_i32_0 : i32, i32
  }
  func.func @transform_28(%arg0: i32) -> (i32, i32) {
    %c0_i32 = arith.constant 0 : i32
    %c0_i32_0 = arith.constant 0 : i32
    %c0_i32_1 = arith.constant 0 : i32
    return %c0_i32, %c0_i32_0 : i32, i32
  }
  func.func @transform_29(%arg0: i32) -> (i32, i32) {
    %c0_i32 = arith.constant 0 : i32
    %c0_i32_0 = arith.constant 0 : i32
    %c0_i32_1 = arith.constant 0 : i32
    return %c0_i32, %c0_i32_0 : i32, i32
  }
  func.func @transform_30(%arg0: i32) -> (i32, i32) {
    %c0_i32 = arith.constant 0 : i32
    %c0_i32_0 = arith.constant 0 : i32
    %c0_i32_1 = arith.constant 0 : i32
    return %c0_i32, %c0_i32_0 : i32, i32
  }
  func.func @transform_31(%arg0: i32) -> (i32, i32) {
    %c0_i32 = arith.constant 0 : i32
    %c0_i32_0 = arith.constant 0 : i32
    %c0_i32_1 = arith.constant 0 : i32
    return %c0_i32, %c0_i32_0 : i32, i32
  }
  func.func @transform_32(%arg0: i32) -> (i32, i32) {
    %c0_i32 = arith.constant 0 : i32
    %c0_i32_0 = arith.constant 0 : i32
    %c0_i32_1 = arith.constant 0 : i32
    return %c0_i32, %c0_i32_0 : i32, i32
  }
  func.func @transform_33(%arg0: i32) -> (i32, i32) {
    %c0_i32 = arith.constant 0 : i32
    %c0_i32_0 = arith.constant 0 : i32
    %c0_i32_1 = arith.constant 0 : i32
    return %c0_i32, %c0_i32_0 : i32, i32
  }
  func.func @transform_34(%arg0: i32) -> (i32, i32) {
    %c0_i32 = arith.constant 0 : i32
    %c0_i32_0 = arith.constant 0 : i32
    %c0_i32_1 = arith.constant 0 : i32
    return %c0_i32, %c0_i32_0 : i32, i32
  }
  func.func @transform_35(%arg0: i32) -> (i32, i32) {
    %c0_i32 = arith.constant 0 : i32
    %c0_i32_0 = arith.constant 0 : i32
    %c0_i32_1 = arith.constant 0 : i32
    return %c0_i32, %c0_i32_0 : i32, i32
  }
  func.func @transform_36(%arg0: i32) -> (i32, i32) {
    %c0_i32 = arith.constant 0 : i32
    %c0_i32_0 = arith.constant 0 : i32
    %c0_i32_1 = arith.constant 0 : i32
    return %c0_i32, %c0_i32_0 : i32, i32
  }
  func.func @transform_37(%arg0: i32) -> (i32, i32) {
    %c0_i32 = arith.constant 0 : i32
    %c0_i32_0 = arith.constant 0 : i32
    %c0_i32_1 = arith.constant 0 : i32
    return %c0_i32, %c0_i32_0 : i32, i32
  }
  func.func @transform_38(%arg0: i32) -> (i32, i32) {
    %c0_i32 = arith.constant 0 : i32
    %c0_i32_0 = arith.constant 0 : i32
    %c0_i32_1 = arith.constant 0 : i32
    return %c0_i32, %c0_i32_0 : i32, i32
  }
  func.func @transform_39(%arg0: i32) -> (i32, i32) {
    %c0_i32 = arith.constant 0 : i32
    %c0_i32_0 = arith.constant 0 : i32
    %c0_i32_1 = arith.constant 0 : i32
    return %c0_i32, %c0_i32_0 : i32, i32
  }
  func.func @transform_40(%arg0: i32) -> (i32, i32) {
    %c0_i32 = arith.constant 0 : i32
    %c0_i32_0 = arith.constant 0 : i32
    %c0_i32_1 = arith.constant 0 : i32
    return %c0_i32, %c0_i32_0 : i32, i32
  }
  func.func @transform_41(%arg0: i32) -> (i32, i32) {
    %c0_i32 = arith.constant 0 : i32
    %c0_i32_0 = arith.constant 0 : i32
    %c0_i32_1 = arith.constant 0 : i32
    return %c0_i32, %c0_i32_0 : i32, i32
  }
  func.func @transform_42(%arg0: i32) -> (i32, i32) {
    %c0_i32 = arith.constant 0 : i32
    %c0_i32_0 = arith.constant 0 : i32
    %c0_i32_1 = arith.constant 0 : i32
    return %c0_i32, %c0_i32_0 : i32, i32
  }
  func.func @transform_43(%arg0: i32) -> (i32, i32, i32) {
    %c0_i32 = arith.constant 0 : i32
    %c0_i32_0 = arith.constant 0 : i32
    %c0_i32_1 = arith.constant 0 : i32
    return %arg0, %c0_i32, %c0_i32_0 : i32, i32, i32
  }
}

module attributes {stable_mosaic.version = 11 : i64} {
  func.func @_pde_kernel(%arg0: i32, %arg1: memref<1x16x6xf32, #tpu.memory_space<vmem>>, %arg2: memref<1x16x1xf32, #tpu.memory_space<vmem>>, %arg3: memref<1x16x1xf32, #tpu.memory_space<vmem>>, %arg4: memref<1x16x6xf32, #tpu.memory_space<vmem>>, %arg5: memref<1x16x6xf32, #tpu.memory_space<vmem>>, %arg6: memref<1x16x16xf32, #tpu.memory_space<vmem>>, %arg7: memref<1x16x16xf32, #tpu.memory_space<vmem>>, %arg8: memref<1x16x8xf32, #tpu.memory_space<vmem>>, %arg9: memref<1x16x400xf32, #tpu.memory_space<vmem>>, %arg10: memref<16x16xf32, #tpu.memory_space<vmem>>, %arg11: memref<16x16xf32, #tpu.memory_space<vmem>>, %arg12: memref<16x16xf32, #tpu.memory_space<vmem>>, %arg13: memref<16x16xf32, #tpu.memory_space<vmem>>, %arg14: memref<6x6xf32, #tpu.memory_space<vmem>>, %arg15: memref<6x6xf32, #tpu.memory_space<vmem>>, %arg16: memref<6x16xf32, #tpu.memory_space<vmem>>, %arg17: memref<6x16xf32, #tpu.memory_space<vmem>>, %arg18: memref<16x8xf32, #tpu.memory_space<vmem>>, %arg19: memref<1x8xf32, #tpu.memory_space<vmem>>, %arg20: memref<8x1xf32, #tpu.memory_space<vmem>>, %arg21: memref<1x1xf32, #tpu.memory_space<vmem>>, %arg22: memref<6x16xf32, #tpu.memory_space<vmem>>, %arg23: memref<6x16xf32, #tpu.memory_space<vmem>>, %arg24: memref<16x8xf32, #tpu.memory_space<vmem>>, %arg25: memref<1x8xf32, #tpu.memory_space<vmem>>, %arg26: memref<8x6xf32, #tpu.memory_space<vmem>>, %arg27: memref<1x6xf32, #tpu.memory_space<vmem>>, %arg28: memref<6x8xf32, #tpu.memory_space<vmem>>, %arg29: memref<8x8xf32, #tpu.memory_space<vmem>>, %arg30: memref<1x8xf32, #tpu.memory_space<vmem>>, %arg31: memref<8x16xf32, #tpu.memory_space<vmem>>, %arg32: memref<1x16xf32, #tpu.memory_space<vmem>>, %arg33: memref<16x1xf32, #tpu.memory_space<vmem>>, %arg34: memref<1x1xf32, #tpu.memory_space<vmem>>, %arg35: memref<1x3x16x14xf32, #tpu.memory_space<vmem>>) attributes {dimension_semantics = [#tpu.dimension_semantics<parallel>], iteration_bounds = array<i64: 2>, scalar_prefetch = 0 : i64, scratch_operands = 0 : i64, tpu.core_type = #tpu.core_type<tc>, window_params = [{transform_indices = @transform_0, window_bounds = array<i64: 1, 16, 6>}, {transform_indices = @transform_1, window_bounds = array<i64: 1, 16, 1>}, {transform_indices = @transform_2, window_bounds = array<i64: 1, 16, 1>}, {transform_indices = @transform_3, window_bounds = array<i64: 1, 16, 6>}, {transform_indices = @transform_4, window_bounds = array<i64: 1, 16, 6>}, {transform_indices = @transform_5, window_bounds = array<i64: 1, 16, 16>}, {transform_indices = @transform_6, window_bounds = array<i64: 1, 16, 16>}, {transform_indices = @transform_7, window_bounds = array<i64: 1, 16, 8>}, {transform_indices = @transform_8, window_bounds = array<i64: 1, 16, 400>}, {pipeline_mode = #tpu.pipeline_mode<synchronous>, transform_indices = @transform_9, window_bounds = array<i64: 16, 16>}, {pipeline_mode = #tpu.pipeline_mode<synchronous>, transform_indices = @transform_10, window_bounds = array<i64: 16, 16>}, {pipeline_mode = #tpu.pipeline_mode<synchronous>, transform_indices = @transform_11, window_bounds = array<i64: 16, 16>}, {pipeline_mode = #tpu.pipeline_mode<synchronous>, transform_indices = @transform_12, window_bounds = array<i64: 16, 16>}, {pipeline_mode = #tpu.pipeline_mode<synchronous>, transform_indices = @transform_13, window_bounds = array<i64: 6, 6>}, {pipeline_mode = #tpu.pipeline_mode<synchronous>, transform_indices = @transform_14, window_bounds = array<i64: 6, 6>}, {pipeline_mode = #tpu.pipeline_mode<synchronous>, transform_indices = @transform_15, window_bounds = array<i64: 6, 16>}, {pipeline_mode = #tpu.pipeline_mode<synchronous>, transform_indices = @transform_16, window_bounds = array<i64: 6, 16>}, {pipeline_mode = #tpu.pipeline_mode<synchronous>, transform_indices = @transform_17, window_bounds = array<i64: 16, 8>}, {pipeline_mode = #tpu.pipeline_mode<synchronous>, transform_indices = @transform_18, window_bounds = array<i64: 1, 8>}, {pipeline_mode = #tpu.pipeline_mode<synchronous>, transform_indices = @transform_19, window_bounds = array<i64: 8, 1>}, {pipeline_mode = #tpu.pipeline_mode<synchronous>, transform_indices = @transform_20, window_bounds = array<i64: 1, 1>}, {pipeline_mode = #tpu.pipeline_mode<synchronous>, transform_indices = @transform_21, window_bounds = array<i64: 6, 16>}, {pipeline_mode = #tpu.pipeline_mode<synchronous>, transform_indices = @transform_22, window_bounds = array<i64: 6, 16>}, {pipeline_mode = #tpu.pipeline_mode<synchronous>, transform_indices = @transform_23, window_bounds = array<i64: 16, 8>}, {pipeline_mode = #tpu.pipeline_mode<synchronous>, transform_indices = @transform_24, window_bounds = array<i64: 1, 8>}, {pipeline_mode = #tpu.pipeline_mode<synchronous>, transform_indices = @transform_25, window_bounds = array<i64: 8, 6>}, {pipeline_mode = #tpu.pipeline_mode<synchronous>, transform_indices = @transform_26, window_bounds = array<i64: 1, 6>}, {pipeline_mode = #tpu.pipeline_mode<synchronous>, transform_indices = @transform_27, window_bounds = array<i64: 6, 8>}, {pipeline_mode = #tpu.pipeline_mode<synchronous>, transform_indices = @transform_28, window_bounds = array<i64: 8, 8>}, {pipeline_mode = #tpu.pipeline_mode<synchronous>, transform_indices = @transform_29, window_bounds = array<i64: 1, 8>}, {pipeline_mode = #tpu.pipeline_mode<synchronous>, transform_indices = @transform_30, window_bounds = array<i64: 8, 16>}, {pipeline_mode = #tpu.pipeline_mode<synchronous>, transform_indices = @transform_31, window_bounds = array<i64: 1, 16>}, {pipeline_mode = #tpu.pipeline_mode<synchronous>, transform_indices = @transform_32, window_bounds = array<i64: 16, 1>}, {pipeline_mode = #tpu.pipeline_mode<synchronous>, transform_indices = @transform_33, window_bounds = array<i64: 1, 1>}, {transform_indices = @transform_34, window_bounds = array<i64: 1, 3, 16, 14>}]} {
    %c0 = arith.constant 0 : index
    %c0_0 = arith.constant 0 : index
    %c0_1 = arith.constant 0 : index
    %0 = vector.load %arg1[%c0, %c0_0, %c0_1] : memref<1x16x6xf32, #tpu.memory_space<vmem>>, vector<1x16x6xf32>
    %1 = vector.shape_cast %0 : vector<1x16x6xf32> to vector<16x6xf32>
    %c0_2 = arith.constant 0 : index
    %c0_3 = arith.constant 0 : index
    %c0_4 = arith.constant 0 : index
    %2 = vector.load %arg2[%c0_2, %c0_3, %c0_4] : memref<1x16x1xf32, #tpu.memory_space<vmem>>, vector<1x16x1xf32>
    %3 = vector.shape_cast %2 : vector<1x16x1xf32> to vector<16x1xf32>
    %c0_5 = arith.constant 0 : index
    %c0_6 = arith.constant 0 : index
    %c0_7 = arith.constant 0 : index
    %4 = vector.load %arg3[%c0_5, %c0_6, %c0_7] : memref<1x16x1xf32, #tpu.memory_space<vmem>>, vector<1x16x1xf32>
    %5 = vector.shape_cast %4 : vector<1x16x1xf32> to vector<16x1xf32>
    %c0_8 = arith.constant 0 : index
    %c0_9 = arith.constant 0 : index
    %c0_10 = arith.constant 0 : index
    %6 = vector.load %arg4[%c0_8, %c0_9, %c0_10] : memref<1x16x6xf32, #tpu.memory_space<vmem>>, vector<1x16x6xf32>
    %7 = vector.shape_cast %6 : vector<1x16x6xf32> to vector<16x6xf32>
    %c0_11 = arith.constant 0 : index
    %c0_12 = arith.constant 0 : index
    %c0_13 = arith.constant 0 : index
    %8 = vector.load %arg5[%c0_11, %c0_12, %c0_13] : memref<1x16x6xf32, #tpu.memory_space<vmem>>, vector<1x16x6xf32>
    %9 = vector.shape_cast %8 : vector<1x16x6xf32> to vector<16x6xf32>
    %c0_14 = arith.constant 0 : index
    %c0_15 = arith.constant 0 : index
    %c0_16 = arith.constant 0 : index
    %10 = vector.load %arg6[%c0_14, %c0_15, %c0_16] : memref<1x16x16xf32, #tpu.memory_space<vmem>>, vector<1x16x16xf32>
    %11 = vector.shape_cast %10 : vector<1x16x16xf32> to vector<16x16xf32>
    %c0_17 = arith.constant 0 : index
    %c0_18 = arith.constant 0 : index
    %c0_19 = arith.constant 0 : index
    %12 = vector.load %arg7[%c0_17, %c0_18, %c0_19] : memref<1x16x16xf32, #tpu.memory_space<vmem>>, vector<1x16x16xf32>
    %13 = vector.shape_cast %12 : vector<1x16x16xf32> to vector<16x16xf32>
    %c0_20 = arith.constant 0 : index
    %c0_21 = arith.constant 0 : index
    %c0_22 = arith.constant 0 : index
    %14 = vector.load %arg8[%c0_20, %c0_21, %c0_22] : memref<1x16x8xf32, #tpu.memory_space<vmem>>, vector<1x16x8xf32>
    %15 = vector.shape_cast %14 : vector<1x16x8xf32> to vector<16x8xf32>
    %c0_23 = arith.constant 0 : index
    %c0_24 = arith.constant 0 : index
    %c0_25 = arith.constant 0 : index
    %16 = vector.load %arg9[%c0_23, %c0_24, %c0_25] : memref<1x16x400xf32, #tpu.memory_space<vmem>>, vector<1x16x400xf32>
    %17 = vector.shape_cast %16 : vector<1x16x400xf32> to vector<16x400xf32>
    %c0_26 = arith.constant 0 : index
    %c0_27 = arith.constant 0 : index
    %18 = vector.load %arg10[%c0_26, %c0_27] : memref<16x16xf32, #tpu.memory_space<vmem>>, vector<16x16xf32>
    %c0_28 = arith.constant 0 : index
    %c0_29 = arith.constant 0 : index
    %19 = vector.load %arg11[%c0_28, %c0_29] : memref<16x16xf32, #tpu.memory_space<vmem>>, vector<16x16xf32>
    %c0_30 = arith.constant 0 : index
    %c0_31 = arith.constant 0 : index
    %20 = vector.load %arg12[%c0_30, %c0_31] : memref<16x16xf32, #tpu.memory_space<vmem>>, vector<16x16xf32>
    %c0_32 = arith.constant 0 : index
    %c0_33 = arith.constant 0 : index
    %21 = vector.load %arg13[%c0_32, %c0_33] : memref<16x16xf32, #tpu.memory_space<vmem>>, vector<16x16xf32>
    %c0_34 = arith.constant 0 : index
    %c0_35 = arith.constant 0 : index
    %22 = vector.load %arg14[%c0_34, %c0_35] : memref<6x6xf32, #tpu.memory_space<vmem>>, vector<6x6xf32>
    %c0_36 = arith.constant 0 : index
    %c0_37 = arith.constant 0 : index
    %23 = vector.load %arg15[%c0_36, %c0_37] : memref<6x6xf32, #tpu.memory_space<vmem>>, vector<6x6xf32>
    %c0_38 = arith.constant 0 : index
    %c0_39 = arith.constant 0 : index
    %24 = vector.load %arg16[%c0_38, %c0_39] : memref<6x16xf32, #tpu.memory_space<vmem>>, vector<6x16xf32>
    %c0_40 = arith.constant 0 : index
    %c0_41 = arith.constant 0 : index
    %25 = vector.load %arg17[%c0_40, %c0_41] : memref<6x16xf32, #tpu.memory_space<vmem>>, vector<6x16xf32>
    %c0_42 = arith.constant 0 : index
    %c0_43 = arith.constant 0 : index
    %26 = vector.load %arg18[%c0_42, %c0_43] : memref<16x8xf32, #tpu.memory_space<vmem>>, vector<16x8xf32>
    %c0_44 = arith.constant 0 : index
    %c0_45 = arith.constant 0 : index
    %27 = vector.load %arg19[%c0_44, %c0_45] : memref<1x8xf32, #tpu.memory_space<vmem>>, vector<1x8xf32>
    %c0_46 = arith.constant 0 : index
    %c0_47 = arith.constant 0 : index
    %28 = vector.load %arg20[%c0_46, %c0_47] : memref<8x1xf32, #tpu.memory_space<vmem>>, vector<8x1xf32>
    %c0_48 = arith.constant 0 : index
    %c0_49 = arith.constant 0 : index
    %29 = vector.load %arg21[%c0_48, %c0_49] : memref<1x1xf32, #tpu.memory_space<vmem>>, vector<1x1xf32>
    %c0_50 = arith.constant 0 : index
    %c0_51 = arith.constant 0 : index
    %30 = vector.load %arg22[%c0_50, %c0_51] : memref<6x16xf32, #tpu.memory_space<vmem>>, vector<6x16xf32>
    %c0_52 = arith.constant 0 : index
    %c0_53 = arith.constant 0 : index
    %31 = vector.load %arg23[%c0_52, %c0_53] : memref<6x16xf32, #tpu.memory_space<vmem>>, vector<6x16xf32>
    %c0_54 = arith.constant 0 : index
    %c0_55 = arith.constant 0 : index
    %32 = vector.load %arg24[%c0_54, %c0_55] : memref<16x8xf32, #tpu.memory_space<vmem>>, vector<16x8xf32>
    %c0_56 = arith.constant 0 : index
    %c0_57 = arith.constant 0 : index
    %33 = vector.load %arg25[%c0_56, %c0_57] : memref<1x8xf32, #tpu.memory_space<vmem>>, vector<1x8xf32>
    %c0_58 = arith.constant 0 : index
    %c0_59 = arith.constant 0 : index
    %34 = vector.load %arg26[%c0_58, %c0_59] : memref<8x6xf32, #tpu.memory_space<vmem>>, vector<8x6xf32>
    %c0_60 = arith.constant 0 : index
    %c0_61 = arith.constant 0 : index
    %35 = vector.load %arg27[%c0_60, %c0_61] : memref<1x6xf32, #tpu.memory_space<vmem>>, vector<1x6xf32>
    %c0_62 = arith.constant 0 : index
    %c0_63 = arith.constant 0 : index
    %36 = vector.load %arg28[%c0_62, %c0_63] : memref<6x8xf32, #tpu.memory_space<vmem>>, vector<6x8xf32>
    %c0_64 = arith.constant 0 : index
    %c0_65 = arith.constant 0 : index
    %37 = vector.load %arg29[%c0_64, %c0_65] : memref<8x8xf32, #tpu.memory_space<vmem>>, vector<8x8xf32>
    %c0_66 = arith.constant 0 : index
    %c0_67 = arith.constant 0 : index
    %38 = vector.load %arg30[%c0_66, %c0_67] : memref<1x8xf32, #tpu.memory_space<vmem>>, vector<1x8xf32>
    %c0_68 = arith.constant 0 : index
    %c0_69 = arith.constant 0 : index
    %39 = vector.load %arg31[%c0_68, %c0_69] : memref<8x16xf32, #tpu.memory_space<vmem>>, vector<8x16xf32>
    %c0_70 = arith.constant 0 : index
    %c0_71 = arith.constant 0 : index
    %40 = vector.load %arg32[%c0_70, %c0_71] : memref<1x16xf32, #tpu.memory_space<vmem>>, vector<1x16xf32>
    %c0_72 = arith.constant 0 : index
    %c0_73 = arith.constant 0 : index
    %41 = vector.load %arg33[%c0_72, %c0_73] : memref<16x1xf32, #tpu.memory_space<vmem>>, vector<16x1xf32>
    %c0_74 = arith.constant 0 : index
    %c0_75 = arith.constant 0 : index
    %42 = vector.load %arg34[%c0_74, %c0_75] : memref<1x1xf32, #tpu.memory_space<vmem>>, vector<1x1xf32>
    %cst = arith.constant dense<0.000000e+00> : vector<16x6xf32>
    %43 = tpu.matmul %18, %1, %cst {dimension_numbers = #tpu.dot_dimension_numbers<[1], [0], [0], [1], [0, 0, 1, 1], [], []>} : vector<16x16xf32>, vector<16x6xf32>, vector<16x6xf32> -> vector<16x6xf32>
    %44 = vector.broadcast %3 : vector<16x1xf32> to vector<16x6xf32>
    %45 = arith.mulf %44, %1 : vector<16x6xf32>
    %cst_76 = arith.constant dense<0.000000e+00> : vector<16x6xf32>
    %46 = tpu.matmul %19, %45, %cst_76 {dimension_numbers = #tpu.dot_dimension_numbers<[1], [0], [0], [1], [0, 0, 1, 1], [], []>} : vector<16x16xf32>, vector<16x6xf32>, vector<16x6xf32> -> vector<16x6xf32>
    %47 = vector.broadcast %5 : vector<16x1xf32> to vector<16x6xf32>
    %48 = arith.mulf %47, %1 : vector<16x6xf32>
    %cst_77 = arith.constant dense<0.000000e+00> : vector<16x6xf32>
    %49 = tpu.matmul %20, %48, %cst_77 {dimension_numbers = #tpu.dot_dimension_numbers<[1], [0], [0], [1], [0, 0, 1, 1], [], []>} : vector<16x16xf32>, vector<16x6xf32>, vector<16x6xf32> -> vector<16x6xf32>
    %50 = arith.addf %46, %49 : vector<16x6xf32>
    %cst_78 = arith.constant dense<0.000000e+00> : vector<16x6xf32>
    %51 = tpu.matmul %43, %22, %cst_78 {dimension_numbers = #tpu.dot_dimension_numbers<[1], [0], [0], [1], [0, 0, 1, 1], [], []>} : vector<16x6xf32>, vector<6x6xf32>, vector<16x6xf32> -> vector<16x6xf32>
    %cst_79 = arith.constant dense<0.000000e+00> : vector<16x6xf32>
    %52 = tpu.matmul %50, %23, %cst_79 {dimension_numbers = #tpu.dot_dimension_numbers<[1], [0], [0], [1], [0, 0, 1, 1], [], []>} : vector<16x6xf32>, vector<6x6xf32>, vector<16x6xf32> -> vector<16x6xf32>
    %53 = arith.subf %51, %52 : vector<16x6xf32>
    %cst_80 = arith.constant 0.000000e+00 : f32
    %54 = vector.broadcast %cst_80 : f32 to vector<16x6xf32>
    %55 = arith.cmpf oeq, %1, %54 : vector<16x6xf32>
    %cst_81 = arith.constant 1.000000e+00 : f32
    %56 = vector.broadcast %cst_81 : f32 to vector<16x6xf32>
    %57 = arith.select %55, %56, %1 : vector<16x6xi1>, vector<16x6xf32>
    %58 = tpu.reciprocal %57 {approx = true} : vector<16x6xf32> -> vector<16x6xf32>
    %59 = arith.mulf %7, %58 : vector<16x6xf32>
    %cst_82 = arith.constant -2.000000e+00 : f32
    %cst_83 = arith.constant 2.000000e+00 : f32
    %60 = vector.broadcast %cst_82 : f32 to vector<16x6xf32>
    %61 = arith.maximumf %60, %59 : vector<16x6xf32>
    %62 = vector.broadcast %cst_83 : f32 to vector<16x6xf32>
    %63 = arith.minimumf %62, %61 : vector<16x6xf32>
    %64 = arith.mulf %9, %58 : vector<16x6xf32>
    %cst_84 = arith.constant -2.000000e+00 : f32
    %cst_85 = arith.constant 2.000000e+00 : f32
    %65 = vector.broadcast %cst_84 : f32 to vector<16x6xf32>
    %66 = arith.maximumf %65, %64 : vector<16x6xf32>
    %67 = vector.broadcast %cst_85 : f32 to vector<16x6xf32>
    %68 = arith.minimumf %67, %66 : vector<16x6xf32>
    %cst_86 = arith.constant 5.000000e-01 : f32
    %69 = vector.broadcast %cst_86 : f32 to vector<16x6xf32>
    %70 = arith.subf %63, %69 : vector<16x6xf32>
    %cst_87 = arith.constant -5.000000e-01 : f32
    %71 = vector.broadcast %cst_87 : f32 to vector<16x6xf32>
    %72 = arith.subf %70, %71 : vector<16x6xf32>
    %cst_88 = arith.constant 0.000000e+00 : f32
    %73 = vector.broadcast %cst_88 : f32 to vector<16x6xf32>
    %74 = arith.maximumf %72, %73 : vector<16x6xf32>
    %cst_89 = arith.constant -5.000000e-01 : f32
    %75 = vector.broadcast %cst_89 : f32 to vector<16x6xf32>
    %76 = arith.addf %74, %75 : vector<16x6xf32>
    %cst_90 = arith.constant 5.000000e-01 : f32
    %77 = vector.broadcast %cst_90 : f32 to vector<16x6xf32>
    %78 = arith.addf %63, %77 : vector<16x6xf32>
    %cst_91 = arith.constant 5.000000e-01 : f32
    %79 = vector.broadcast %cst_91 : f32 to vector<16x6xf32>
    %80 = arith.addf %63, %79 : vector<16x6xf32>
    %cst_92 = arith.constant 5.000000e-01 : f32
    %81 = vector.broadcast %cst_92 : f32 to vector<16x6xf32>
    %82 = arith.subf %80, %81 : vector<16x6xf32>
    %cst_93 = arith.constant 0.000000e+00 : f32
    %83 = vector.broadcast %cst_93 : f32 to vector<16x6xf32>
    %84 = arith.maximumf %82, %83 : vector<16x6xf32>
    %85 = arith.subf %78, %84 : vector<16x6xf32>
    %86 = arith.subf %85, %76 : vector<16x6xf32>
    %cst_94 = arith.constant 0.000000e+00 : f32
    %87 = vector.broadcast %cst_94 : f32 to vector<16x6xf32>
    %88 = arith.maximumf %86, %87 : vector<16x6xf32>
    %cst_95 = arith.constant 5.000000e-01 : f32
    %89 = vector.broadcast %cst_95 : f32 to vector<16x6xf32>
    %90 = arith.subf %63, %89 : vector<16x6xf32>
    %cst_96 = arith.constant 5.000000e-01 : f32
    %91 = vector.broadcast %cst_96 : f32 to vector<16x6xf32>
    %92 = arith.subf %90, %91 : vector<16x6xf32>
    %cst_97 = arith.constant 0.000000e+00 : f32
    %93 = vector.broadcast %cst_97 : f32 to vector<16x6xf32>
    %94 = arith.maximumf %92, %93 : vector<16x6xf32>
    %cst_98 = arith.constant 5.000000e-01 : f32
    %95 = vector.broadcast %cst_98 : f32 to vector<16x6xf32>
    %96 = arith.addf %94, %95 : vector<16x6xf32>
    %cst_99 = arith.constant 5.000000e-01 : f32
    %97 = vector.broadcast %cst_99 : f32 to vector<16x6xf32>
    %98 = arith.addf %63, %97 : vector<16x6xf32>
    %cst_100 = arith.constant 5.000000e-01 : f32
    %99 = vector.broadcast %cst_100 : f32 to vector<16x6xf32>
    %100 = arith.addf %63, %99 : vector<16x6xf32>
    %cst_101 = arith.constant 1.500000e+00 : f32
    %101 = vector.broadcast %cst_101 : f32 to vector<16x6xf32>
    %102 = arith.subf %100, %101 : vector<16x6xf32>
    %cst_102 = arith.constant 0.000000e+00 : f32
    %103 = vector.broadcast %cst_102 : f32 to vector<16x6xf32>
    %104 = arith.maximumf %102, %103 : vector<16x6xf32>
    %105 = arith.subf %98, %104 : vector<16x6xf32>
    %106 = arith.subf %105, %96 : vector<16x6xf32>
    %cst_103 = arith.constant 0.000000e+00 : f32
    %107 = vector.broadcast %cst_103 : f32 to vector<16x6xf32>
    %108 = arith.maximumf %106, %107 : vector<16x6xf32>
    %cst_104 = arith.constant 5.000000e-01 : f32
    %109 = vector.broadcast %cst_104 : f32 to vector<16x6xf32>
    %110 = arith.subf %63, %109 : vector<16x6xf32>
    %cst_105 = arith.constant 1.500000e+00 : f32
    %111 = vector.broadcast %cst_105 : f32 to vector<16x6xf32>
    %112 = arith.subf %110, %111 : vector<16x6xf32>
    %cst_106 = arith.constant 0.000000e+00 : f32
    %113 = vector.broadcast %cst_106 : f32 to vector<16x6xf32>
    %114 = arith.maximumf %112, %113 : vector<16x6xf32>
    %cst_107 = arith.constant 1.500000e+00 : f32
    %115 = vector.broadcast %cst_107 : f32 to vector<16x6xf32>
    %116 = arith.addf %114, %115 : vector<16x6xf32>
    %cst_108 = arith.constant 5.000000e-01 : f32
    %117 = vector.broadcast %cst_108 : f32 to vector<16x6xf32>
    %118 = arith.addf %63, %117 : vector<16x6xf32>
    %cst_109 = arith.constant 5.000000e-01 : f32
    %119 = vector.broadcast %cst_109 : f32 to vector<16x6xf32>
    %120 = arith.addf %63, %119 : vector<16x6xf32>
    %cst_110 = arith.constant 2.500000e+00 : f32
    %121 = vector.broadcast %cst_110 : f32 to vector<16x6xf32>
    %122 = arith.subf %120, %121 : vector<16x6xf32>
    %cst_111 = arith.constant 0.000000e+00 : f32
    %123 = vector.broadcast %cst_111 : f32 to vector<16x6xf32>
    %124 = arith.maximumf %122, %123 : vector<16x6xf32>
    %125 = arith.subf %118, %124 : vector<16x6xf32>
    %126 = arith.subf %125, %116 : vector<16x6xf32>
    %cst_112 = arith.constant 0.000000e+00 : f32
    %127 = vector.broadcast %cst_112 : f32 to vector<16x6xf32>
    %128 = arith.maximumf %126, %127 : vector<16x6xf32>
    %cst_113 = arith.constant 5.000000e-01 : f32
    %129 = vector.broadcast %cst_113 : f32 to vector<16x6xf32>
    %130 = arith.subf %63, %129 : vector<16x6xf32>
    %cst_114 = arith.constant 2.500000e+00 : f32
    %131 = vector.broadcast %cst_114 : f32 to vector<16x6xf32>
    %132 = arith.subf %130, %131 : vector<16x6xf32>
    %cst_115 = arith.constant 0.000000e+00 : f32
    %133 = vector.broadcast %cst_115 : f32 to vector<16x6xf32>
    %134 = arith.maximumf %132, %133 : vector<16x6xf32>
    %cst_116 = arith.constant 2.500000e+00 : f32
    %135 = vector.broadcast %cst_116 : f32 to vector<16x6xf32>
    %136 = arith.addf %134, %135 : vector<16x6xf32>
    %cst_117 = arith.constant 5.000000e-01 : f32
    %137 = vector.broadcast %cst_117 : f32 to vector<16x6xf32>
    %138 = arith.addf %63, %137 : vector<16x6xf32>
    %cst_118 = arith.constant 5.000000e-01 : f32
    %139 = vector.broadcast %cst_118 : f32 to vector<16x6xf32>
    %140 = arith.addf %63, %139 : vector<16x6xf32>
    %cst_119 = arith.constant 3.500000e+00 : f32
    %141 = vector.broadcast %cst_119 : f32 to vector<16x6xf32>
    %142 = arith.subf %140, %141 : vector<16x6xf32>
    %cst_120 = arith.constant 0.000000e+00 : f32
    %143 = vector.broadcast %cst_120 : f32 to vector<16x6xf32>
    %144 = arith.maximumf %142, %143 : vector<16x6xf32>
    %145 = arith.subf %138, %144 : vector<16x6xf32>
    %146 = arith.subf %145, %136 : vector<16x6xf32>
    %cst_121 = arith.constant 0.000000e+00 : f32
    %147 = vector.broadcast %cst_121 : f32 to vector<16x6xf32>
    %148 = arith.maximumf %146, %147 : vector<16x6xf32>
    %cst_122 = arith.constant 5.000000e-01 : f32
    %149 = vector.broadcast %cst_122 : f32 to vector<16x6xf32>
    %150 = arith.subf %63, %149 : vector<16x6xf32>
    %cst_123 = arith.constant 3.500000e+00 : f32
    %151 = vector.broadcast %cst_123 : f32 to vector<16x6xf32>
    %152 = arith.subf %150, %151 : vector<16x6xf32>
    %cst_124 = arith.constant 0.000000e+00 : f32
    %153 = vector.broadcast %cst_124 : f32 to vector<16x6xf32>
    %154 = arith.maximumf %152, %153 : vector<16x6xf32>
    %cst_125 = arith.constant 3.500000e+00 : f32
    %155 = vector.broadcast %cst_125 : f32 to vector<16x6xf32>
    %156 = arith.addf %154, %155 : vector<16x6xf32>
    %cst_126 = arith.constant 5.000000e-01 : f32
    %157 = vector.broadcast %cst_126 : f32 to vector<16x6xf32>
    %158 = arith.addf %63, %157 : vector<16x6xf32>
    %cst_127 = arith.constant 5.000000e-01 : f32
    %159 = vector.broadcast %cst_127 : f32 to vector<16x6xf32>
    %160 = arith.addf %63, %159 : vector<16x6xf32>
    %cst_128 = arith.constant 4.500000e+00 : f32
    %161 = vector.broadcast %cst_128 : f32 to vector<16x6xf32>
    %162 = arith.subf %160, %161 : vector<16x6xf32>
    %cst_129 = arith.constant 0.000000e+00 : f32
    %163 = vector.broadcast %cst_129 : f32 to vector<16x6xf32>
    %164 = arith.maximumf %162, %163 : vector<16x6xf32>
    %165 = arith.subf %158, %164 : vector<16x6xf32>
    %166 = arith.subf %165, %156 : vector<16x6xf32>
    %cst_130 = arith.constant 0.000000e+00 : f32
    %167 = vector.broadcast %cst_130 : f32 to vector<16x6xf32>
    %168 = arith.maximumf %166, %167 : vector<16x6xf32>
    %cst_131 = arith.constant 5.000000e-01 : f32
    %169 = vector.broadcast %cst_131 : f32 to vector<16x6xf32>
    %170 = arith.subf %68, %169 : vector<16x6xf32>
    %cst_132 = arith.constant -5.000000e-01 : f32
    %171 = vector.broadcast %cst_132 : f32 to vector<16x6xf32>
    %172 = arith.subf %170, %171 : vector<16x6xf32>
    %cst_133 = arith.constant 0.000000e+00 : f32
    %173 = vector.broadcast %cst_133 : f32 to vector<16x6xf32>
    %174 = arith.maximumf %172, %173 : vector<16x6xf32>
    %cst_134 = arith.constant -5.000000e-01 : f32
    %175 = vector.broadcast %cst_134 : f32 to vector<16x6xf32>
    %176 = arith.addf %174, %175 : vector<16x6xf32>
    %cst_135 = arith.constant 5.000000e-01 : f32
    %177 = vector.broadcast %cst_135 : f32 to vector<16x6xf32>
    %178 = arith.addf %68, %177 : vector<16x6xf32>
    %cst_136 = arith.constant 5.000000e-01 : f32
    %179 = vector.broadcast %cst_136 : f32 to vector<16x6xf32>
    %180 = arith.addf %68, %179 : vector<16x6xf32>
    %cst_137 = arith.constant 5.000000e-01 : f32
    %181 = vector.broadcast %cst_137 : f32 to vector<16x6xf32>
    %182 = arith.subf %180, %181 : vector<16x6xf32>
    %cst_138 = arith.constant 0.000000e+00 : f32
    %183 = vector.broadcast %cst_138 : f32 to vector<16x6xf32>
    %184 = arith.maximumf %182, %183 : vector<16x6xf32>
    %185 = arith.subf %178, %184 : vector<16x6xf32>
    %186 = arith.subf %185, %176 : vector<16x6xf32>
    %cst_139 = arith.constant 0.000000e+00 : f32
    %187 = vector.broadcast %cst_139 : f32 to vector<16x6xf32>
    %188 = arith.maximumf %186, %187 : vector<16x6xf32>
    %189 = arith.mulf %188, %1 : vector<16x6xf32>
    %cst_140 = arith.constant 5.000000e-01 : f32
    %190 = vector.broadcast %cst_140 : f32 to vector<16x6xf32>
    %191 = arith.subf %68, %190 : vector<16x6xf32>
    %cst_141 = arith.constant 5.000000e-01 : f32
    %192 = vector.broadcast %cst_141 : f32 to vector<16x6xf32>
    %193 = arith.subf %191, %192 : vector<16x6xf32>
    %cst_142 = arith.constant 0.000000e+00 : f32
    %194 = vector.broadcast %cst_142 : f32 to vector<16x6xf32>
    %195 = arith.maximumf %193, %194 : vector<16x6xf32>
    %cst_143 = arith.constant 5.000000e-01 : f32
    %196 = vector.broadcast %cst_143 : f32 to vector<16x6xf32>
    %197 = arith.addf %195, %196 : vector<16x6xf32>
    %cst_144 = arith.constant 5.000000e-01 : f32
    %198 = vector.broadcast %cst_144 : f32 to vector<16x6xf32>
    %199 = arith.addf %68, %198 : vector<16x6xf32>
    %cst_145 = arith.constant 5.000000e-01 : f32
    %200 = vector.broadcast %cst_145 : f32 to vector<16x6xf32>
    %201 = arith.addf %68, %200 : vector<16x6xf32>
    %cst_146 = arith.constant 1.500000e+00 : f32
    %202 = vector.broadcast %cst_146 : f32 to vector<16x6xf32>
    %203 = arith.subf %201, %202 : vector<16x6xf32>
    %cst_147 = arith.constant 0.000000e+00 : f32
    %204 = vector.broadcast %cst_147 : f32 to vector<16x6xf32>
    %205 = arith.maximumf %203, %204 : vector<16x6xf32>
    %206 = arith.subf %199, %205 : vector<16x6xf32>
    %207 = arith.subf %206, %197 : vector<16x6xf32>
    %cst_148 = arith.constant 0.000000e+00 : f32
    %208 = vector.broadcast %cst_148 : f32 to vector<16x6xf32>
    %209 = arith.maximumf %207, %208 : vector<16x6xf32>
    %210 = arith.mulf %209, %1 : vector<16x6xf32>
    %cst_149 = arith.constant 5.000000e-01 : f32
    %211 = vector.broadcast %cst_149 : f32 to vector<16x6xf32>
    %212 = arith.subf %68, %211 : vector<16x6xf32>
    %cst_150 = arith.constant 1.500000e+00 : f32
    %213 = vector.broadcast %cst_150 : f32 to vector<16x6xf32>
    %214 = arith.subf %212, %213 : vector<16x6xf32>
    %cst_151 = arith.constant 0.000000e+00 : f32
    %215 = vector.broadcast %cst_151 : f32 to vector<16x6xf32>
    %216 = arith.maximumf %214, %215 : vector<16x6xf32>
    %cst_152 = arith.constant 1.500000e+00 : f32
    %217 = vector.broadcast %cst_152 : f32 to vector<16x6xf32>
    %218 = arith.addf %216, %217 : vector<16x6xf32>
    %cst_153 = arith.constant 5.000000e-01 : f32
    %219 = vector.broadcast %cst_153 : f32 to vector<16x6xf32>
    %220 = arith.addf %68, %219 : vector<16x6xf32>
    %cst_154 = arith.constant 5.000000e-01 : f32
    %221 = vector.broadcast %cst_154 : f32 to vector<16x6xf32>
    %222 = arith.addf %68, %221 : vector<16x6xf32>
    %cst_155 = arith.constant 2.500000e+00 : f32
    %223 = vector.broadcast %cst_155 : f32 to vector<16x6xf32>
    %224 = arith.subf %222, %223 : vector<16x6xf32>
    %cst_156 = arith.constant 0.000000e+00 : f32
    %225 = vector.broadcast %cst_156 : f32 to vector<16x6xf32>
    %226 = arith.maximumf %224, %225 : vector<16x6xf32>
    %227 = arith.subf %220, %226 : vector<16x6xf32>
    %228 = arith.subf %227, %218 : vector<16x6xf32>
    %cst_157 = arith.constant 0.000000e+00 : f32
    %229 = vector.broadcast %cst_157 : f32 to vector<16x6xf32>
    %230 = arith.maximumf %228, %229 : vector<16x6xf32>
    %231 = arith.mulf %230, %1 : vector<16x6xf32>
    %cst_158 = arith.constant 5.000000e-01 : f32
    %232 = vector.broadcast %cst_158 : f32 to vector<16x6xf32>
    %233 = arith.subf %68, %232 : vector<16x6xf32>
    %cst_159 = arith.constant 2.500000e+00 : f32
    %234 = vector.broadcast %cst_159 : f32 to vector<16x6xf32>
    %235 = arith.subf %233, %234 : vector<16x6xf32>
    %cst_160 = arith.constant 0.000000e+00 : f32
    %236 = vector.broadcast %cst_160 : f32 to vector<16x6xf32>
    %237 = arith.maximumf %235, %236 : vector<16x6xf32>
    %cst_161 = arith.constant 2.500000e+00 : f32
    %238 = vector.broadcast %cst_161 : f32 to vector<16x6xf32>
    %239 = arith.addf %237, %238 : vector<16x6xf32>
    %cst_162 = arith.constant 5.000000e-01 : f32
    %240 = vector.broadcast %cst_162 : f32 to vector<16x6xf32>
    %241 = arith.addf %68, %240 : vector<16x6xf32>
    %cst_163 = arith.constant 5.000000e-01 : f32
    %242 = vector.broadcast %cst_163 : f32 to vector<16x6xf32>
    %243 = arith.addf %68, %242 : vector<16x6xf32>
    %cst_164 = arith.constant 3.500000e+00 : f32
    %244 = vector.broadcast %cst_164 : f32 to vector<16x6xf32>
    %245 = arith.subf %243, %244 : vector<16x6xf32>
    %cst_165 = arith.constant 0.000000e+00 : f32
    %246 = vector.broadcast %cst_165 : f32 to vector<16x6xf32>
    %247 = arith.maximumf %245, %246 : vector<16x6xf32>
    %248 = arith.subf %241, %247 : vector<16x6xf32>
    %249 = arith.subf %248, %239 : vector<16x6xf32>
    %cst_166 = arith.constant 0.000000e+00 : f32
    %250 = vector.broadcast %cst_166 : f32 to vector<16x6xf32>
    %251 = arith.maximumf %249, %250 : vector<16x6xf32>
    %252 = arith.mulf %251, %1 : vector<16x6xf32>
    %cst_167 = arith.constant 5.000000e-01 : f32
    %253 = vector.broadcast %cst_167 : f32 to vector<16x6xf32>
    %254 = arith.subf %68, %253 : vector<16x6xf32>
    %cst_168 = arith.constant 3.500000e+00 : f32
    %255 = vector.broadcast %cst_168 : f32 to vector<16x6xf32>
    %256 = arith.subf %254, %255 : vector<16x6xf32>
    %cst_169 = arith.constant 0.000000e+00 : f32
    %257 = vector.broadcast %cst_169 : f32 to vector<16x6xf32>
    %258 = arith.maximumf %256, %257 : vector<16x6xf32>
    %cst_170 = arith.constant 3.500000e+00 : f32
    %259 = vector.broadcast %cst_170 : f32 to vector<16x6xf32>
    %260 = arith.addf %258, %259 : vector<16x6xf32>
    %cst_171 = arith.constant 5.000000e-01 : f32
    %261 = vector.broadcast %cst_171 : f32 to vector<16x6xf32>
    %262 = arith.addf %68, %261 : vector<16x6xf32>
    %cst_172 = arith.constant 5.000000e-01 : f32
    %263 = vector.broadcast %cst_172 : f32 to vector<16x6xf32>
    %264 = arith.addf %68, %263 : vector<16x6xf32>
    %cst_173 = arith.constant 4.500000e+00 : f32
    %265 = vector.broadcast %cst_173 : f32 to vector<16x6xf32>
    %266 = arith.subf %264, %265 : vector<16x6xf32>
    %cst_174 = arith.constant 0.000000e+00 : f32
    %267 = vector.broadcast %cst_174 : f32 to vector<16x6xf32>
    %268 = arith.maximumf %266, %267 : vector<16x6xf32>
    %269 = arith.subf %262, %268 : vector<16x6xf32>
    %270 = arith.subf %269, %260 : vector<16x6xf32>
    %cst_175 = arith.constant 0.000000e+00 : f32
    %271 = vector.broadcast %cst_175 : f32 to vector<16x6xf32>
    %272 = arith.maximumf %270, %271 : vector<16x6xf32>
    %273 = arith.mulf %272, %1 : vector<16x6xf32>
    %274 = arith.mulf %88, %189 : vector<16x6xf32>
    %275 = arith.mulf %108, %189 : vector<16x6xf32>
    %276 = arith.mulf %128, %189 : vector<16x6xf32>
    %277 = arith.mulf %148, %189 : vector<16x6xf32>
    %278 = arith.mulf %168, %189 : vector<16x6xf32>
    %279 = arith.mulf %88, %210 : vector<16x6xf32>
    %280 = arith.mulf %108, %210 : vector<16x6xf32>
    %281 = arith.mulf %128, %210 : vector<16x6xf32>
    %282 = arith.mulf %148, %210 : vector<16x6xf32>
    %283 = arith.mulf %168, %210 : vector<16x6xf32>
    %284 = arith.mulf %88, %231 : vector<16x6xf32>
    %285 = arith.mulf %108, %231 : vector<16x6xf32>
    %286 = arith.mulf %128, %231 : vector<16x6xf32>
    %287 = arith.mulf %148, %231 : vector<16x6xf32>
    %288 = arith.mulf %168, %231 : vector<16x6xf32>
    %289 = arith.mulf %88, %252 : vector<16x6xf32>
    %290 = arith.mulf %108, %252 : vector<16x6xf32>
    %291 = arith.mulf %128, %252 : vector<16x6xf32>
    %292 = arith.mulf %148, %252 : vector<16x6xf32>
    %293 = arith.mulf %168, %252 : vector<16x6xf32>
    %294 = arith.mulf %88, %273 : vector<16x6xf32>
    %295 = arith.mulf %108, %273 : vector<16x6xf32>
    %296 = arith.mulf %128, %273 : vector<16x6xf32>
    %297 = arith.mulf %148, %273 : vector<16x6xf32>
    %298 = arith.mulf %168, %273 : vector<16x6xf32>
    %299 = tpu.concatenate %274, %275, %276, %277, %278, %279, %280, %281, %282, %283, %284, %285, %286, %287, %288, %289 in 0 : vector<16x6xf32>, vector<16x6xf32>, vector<16x6xf32>, vector<16x6xf32>, vector<16x6xf32>, vector<16x6xf32>, vector<16x6xf32>, vector<16x6xf32>, vector<16x6xf32>, vector<16x6xf32>, vector<16x6xf32>, vector<16x6xf32>, vector<16x6xf32>, vector<16x6xf32>, vector<16x6xf32>, vector<16x6xf32> -> vector<256x6xf32>
    %300 = tpu.concatenate %290, %291, %292, %293, %294, %295, %296, %297, %298 in 0 : vector<16x6xf32>, vector<16x6xf32>, vector<16x6xf32>, vector<16x6xf32>, vector<16x6xf32>, vector<16x6xf32>, vector<16x6xf32>, vector<16x6xf32>, vector<16x6xf32> -> vector<144x6xf32>
    %301 = tpu.concatenate %299, %300 in 0 : vector<256x6xf32>, vector<144x6xf32> -> vector<400x6xf32>
    %cst_176 = arith.constant dense<0.000000e+00> : vector<16x6xf32>
    %302 = tpu.matmul %17, %301, %cst_176 {dimension_numbers = #tpu.dot_dimension_numbers<[1], [0], [0], [1], [0, 0, 1, 1], [], []>} : vector<16x400xf32>, vector<400x6xf32>, vector<16x6xf32> -> vector<16x6xf32>
    %303 = arith.subf %302, %1 : vector<16x6xf32>
    %cst_177 = arith.constant dense<0.000000e+00> : vector<16x6xf32>
    %304 = tpu.matmul %21, %1, %cst_177 {dimension_numbers = #tpu.dot_dimension_numbers<[1], [0], [0], [1], [0, 0, 1, 1], [], []>} : vector<16x16xf32>, vector<16x6xf32>, vector<16x6xf32> -> vector<16x6xf32>
    %cst_178 = arith.constant dense<0.000000e+00> : vector<16x16xf32>
    %305 = tpu.matmul %1, %24, %cst_178 {dimension_numbers = #tpu.dot_dimension_numbers<[1], [0], [0], [1], [0, 0, 1, 1], [], []>} : vector<16x6xf32>, vector<6x16xf32>, vector<16x16xf32> -> vector<16x16xf32>
    %cst_179 = arith.constant dense<0.000000e+00> : vector<16x16xf32>
    %306 = tpu.matmul %304, %25, %cst_179 {dimension_numbers = #tpu.dot_dimension_numbers<[1], [0], [0], [1], [0, 0, 1, 1], [], []>} : vector<16x6xf32>, vector<6x16xf32>, vector<16x16xf32> -> vector<16x16xf32>
    %307 = arith.addf %305, %306 : vector<16x16xf32>
    %308 = arith.addf %307, %11 : vector<16x16xf32>
    %cst_180 = arith.constant 0.000000e+00 : f32
    %309 = vector.broadcast %cst_180 : f32 to vector<16x16xf32>
    %310 = arith.maximumf %308, %309 : vector<16x16xf32>
    %cst_181 = arith.constant dense<0.000000e+00> : vector<16x8xf32>
    %311 = tpu.matmul %310, %26, %cst_181 {dimension_numbers = #tpu.dot_dimension_numbers<[1], [0], [0], [1], [0, 0, 1, 1], [], []>} : vector<16x16xf32>, vector<16x8xf32>, vector<16x8xf32> -> vector<16x8xf32>
    %312 = vector.broadcast %27 : vector<1x8xf32> to vector<16x8xf32>
    %313 = arith.addf %311, %312 : vector<16x8xf32>
    %cst_182 = arith.constant 0.000000e+00 : f32
    %314 = vector.broadcast %cst_182 : f32 to vector<16x8xf32>
    %315 = arith.maximumf %313, %314 : vector<16x8xf32>
    %cst_183 = arith.constant dense<0.000000e+00> : vector<16x1xf32>
    %316 = tpu.matmul %315, %28, %cst_183 {dimension_numbers = #tpu.dot_dimension_numbers<[1], [0], [0], [1], [0, 0, 1, 1], [], []>} : vector<16x8xf32>, vector<8x1xf32>, vector<16x1xf32> -> vector<16x1xf32>
    %317 = vector.broadcast %29 : vector<1x1xf32> to vector<16x1xf32>
    %318 = arith.addf %316, %317 : vector<16x1xf32>
    %319 = arith.negf %318 : vector<16x1xf32>
    %320 = math.exp %319 : vector<16x1xf32>
    %cst_184 = arith.constant 1.000000e+00 : f32
    %321 = vector.broadcast %cst_184 : f32 to vector<16x1xf32>
    %322 = arith.addf %321, %320 : vector<16x1xf32>
    %323 = arith.divf %321, %322 : vector<16x1xf32>
    %324 = vector.broadcast %323 : vector<16x1xf32> to vector<16x6xf32>
    %325 = arith.mulf %324, %53 : vector<16x6xf32>
    %cst_185 = arith.constant 1.000000e+00 : f32
    %326 = vector.broadcast %cst_185 : f32 to vector<16x1xf32>
    %327 = arith.subf %326, %323 : vector<16x1xf32>
    %328 = vector.broadcast %327 : vector<16x1xf32> to vector<16x6xf32>
    %329 = arith.mulf %328, %303 : vector<16x6xf32>
    %330 = arith.addf %325, %329 : vector<16x6xf32>
    %cst_186 = arith.constant dense<0.000000e+00> : vector<16x16xf32>
    %331 = tpu.matmul %1, %30, %cst_186 {dimension_numbers = #tpu.dot_dimension_numbers<[1], [0], [0], [1], [0, 0, 1, 1], [], []>} : vector<16x6xf32>, vector<6x16xf32>, vector<16x16xf32> -> vector<16x16xf32>
    %cst_187 = arith.constant dense<0.000000e+00> : vector<16x16xf32>
    %332 = tpu.matmul %304, %31, %cst_187 {dimension_numbers = #tpu.dot_dimension_numbers<[1], [0], [0], [1], [0, 0, 1, 1], [], []>} : vector<16x6xf32>, vector<6x16xf32>, vector<16x16xf32> -> vector<16x16xf32>
    %333 = arith.addf %331, %332 : vector<16x16xf32>
    %334 = arith.addf %333, %13 : vector<16x16xf32>
    %cst_188 = arith.constant 0.000000e+00 : f32
    %335 = vector.broadcast %cst_188 : f32 to vector<16x16xf32>
    %336 = arith.maximumf %334, %335 : vector<16x16xf32>
    %cst_189 = arith.constant dense<0.000000e+00> : vector<16x8xf32>
    %337 = tpu.matmul %336, %32, %cst_189 {dimension_numbers = #tpu.dot_dimension_numbers<[1], [0], [0], [1], [0, 0, 1, 1], [], []>} : vector<16x16xf32>, vector<16x8xf32>, vector<16x8xf32> -> vector<16x8xf32>
    %338 = vector.broadcast %33 : vector<1x8xf32> to vector<16x8xf32>
    %339 = arith.addf %337, %338 : vector<16x8xf32>
    %cst_190 = arith.constant 0.000000e+00 : f32
    %340 = vector.broadcast %cst_190 : f32 to vector<16x8xf32>
    %341 = arith.maximumf %339, %340 : vector<16x8xf32>
    %cst_191 = arith.constant dense<0.000000e+00> : vector<16x6xf32>
    %342 = tpu.matmul %341, %34, %cst_191 {dimension_numbers = #tpu.dot_dimension_numbers<[1], [0], [0], [1], [0, 0, 1, 1], [], []>} : vector<16x8xf32>, vector<8x6xf32>, vector<16x6xf32> -> vector<16x6xf32>
    %343 = vector.broadcast %35 : vector<1x6xf32> to vector<16x6xf32>
    %344 = arith.addf %342, %343 : vector<16x6xf32>
    %345 = arith.addf %1, %330 : vector<16x6xf32>
    %346 = arith.addf %345, %344 : vector<16x6xf32>
    %cst_192 = arith.constant dense<0.000000e+00> : vector<16x8xf32>
    %347 = tpu.matmul %346, %36, %cst_192 {dimension_numbers = #tpu.dot_dimension_numbers<[1], [0], [0], [1], [0, 0, 1, 1], [], []>} : vector<16x6xf32>, vector<6x8xf32>, vector<16x8xf32> -> vector<16x8xf32>
    %348 = arith.addf %347, %15 : vector<16x8xf32>
    %cst_193 = arith.constant 0.000000e+00 : f32
    %349 = vector.broadcast %cst_193 : f32 to vector<16x8xf32>
    %350 = arith.maximumf %348, %349 : vector<16x8xf32>
    %cst_194 = arith.constant dense<0.000000e+00> : vector<16x8xf32>
    %351 = tpu.matmul %350, %37, %cst_194 {dimension_numbers = #tpu.dot_dimension_numbers<[1], [0], [0], [1], [0, 0, 1, 1], [], []>} : vector<16x8xf32>, vector<8x8xf32>, vector<16x8xf32> -> vector<16x8xf32>
    %352 = vector.broadcast %38 : vector<1x8xf32> to vector<16x8xf32>
    %353 = arith.addf %351, %352 : vector<16x8xf32>
    %cst_195 = arith.constant 0.000000e+00 : f32
    %354 = vector.broadcast %cst_195 : f32 to vector<16x8xf32>
    %355 = arith.maximumf %353, %354 : vector<16x8xf32>
    %cst_196 = arith.constant dense<0.000000e+00> : vector<16x16xf32>
    %356 = tpu.matmul %355, %39, %cst_196 {dimension_numbers = #tpu.dot_dimension_numbers<[1], [0], [0], [1], [0, 0, 1, 1], [], []>} : vector<16x8xf32>, vector<8x16xf32>, vector<16x16xf32> -> vector<16x16xf32>
    %357 = vector.broadcast %40 : vector<1x16xf32> to vector<16x16xf32>
    %358 = arith.addf %356, %357 : vector<16x16xf32>
    %cst_197 = arith.constant 0.000000e+00 : f32
    %359 = vector.broadcast %cst_197 : f32 to vector<16x16xf32>
    %360 = arith.maximumf %358, %359 : vector<16x16xf32>
    %cst_198 = arith.constant dense<0.000000e+00> : vector<16x1xf32>
    %361 = tpu.matmul %360, %41, %cst_198 {dimension_numbers = #tpu.dot_dimension_numbers<[1], [0], [0], [1], [0, 0, 1, 1], [], []>} : vector<16x16xf32>, vector<16x1xf32>, vector<16x1xf32> -> vector<16x1xf32>
    %362 = vector.broadcast %42 : vector<1x1xf32> to vector<16x1xf32>
    %363 = arith.addf %361, %362 : vector<16x1xf32>
    %364 = tpu.concatenate %363, %323, %344, %346 in 1 : vector<16x1xf32>, vector<16x1xf32>, vector<16x6xf32>, vector<16x6xf32> -> vector<16x14xf32>
    %c0_199 = arith.constant 0 : index
    %c0_200 = arith.constant 0 : index
    %c0_201 = arith.constant 0 : index
    %c0_202 = arith.constant 0 : index
    %365 = vector.load %arg35[%c0_199, %c0_200, %c0_201, %c0_202] : memref<1x3x16x14xf32, #tpu.memory_space<vmem>>, vector<1x1x16x14xf32>
    %366 = vector.shape_cast %365 : vector<1x1x16x14xf32> to vector<16x14xf32>
    %367 = vector.shape_cast %364 : vector<16x14xf32> to vector<1x1x16x14xf32>
    tpu.vector_store %arg35[%c0_199, %c0_200, %c0_201, %c0_202], %367 {strides = array<i32>} : memref<1x3x16x14xf32, #tpu.memory_space<vmem>>, vector<1x1x16x14xf32>,
    %cst_203 = arith.constant dense<0.000000e+00> : vector<16x6xf32>
    %368 = tpu.matmul %18, %346, %cst_203 {dimension_numbers = #tpu.dot_dimension_numbers<[1], [0], [0], [1], [0, 0, 1, 1], [], []>} : vector<16x16xf32>, vector<16x6xf32>, vector<16x6xf32> -> vector<16x6xf32>
    %369 = vector.broadcast %3 : vector<16x1xf32> to vector<16x6xf32>
    %370 = arith.mulf %369, %346 : vector<16x6xf32>
    %cst_204 = arith.constant dense<0.000000e+00> : vector<16x6xf32>
    %371 = tpu.matmul %19, %370, %cst_204 {dimension_numbers = #tpu.dot_dimension_numbers<[1], [0], [0], [1], [0, 0, 1, 1], [], []>} : vector<16x16xf32>, vector<16x6xf32>, vector<16x6xf32> -> vector<16x6xf32>
    %372 = vector.broadcast %5 : vector<16x1xf32> to vector<16x6xf32>
    %373 = arith.mulf %372, %346 : vector<16x6xf32>
    %cst_205 = arith.constant dense<0.000000e+00> : vector<16x6xf32>
    %374 = tpu.matmul %20, %373, %cst_205 {dimension_numbers = #tpu.dot_dimension_numbers<[1], [0], [0], [1], [0, 0, 1, 1], [], []>} : vector<16x16xf32>, vector<16x6xf32>, vector<16x6xf32> -> vector<16x6xf32>
    %375 = arith.addf %371, %374 : vector<16x6xf32>
    %cst_206 = arith.constant dense<0.000000e+00> : vector<16x6xf32>
    %376 = tpu.matmul %368, %22, %cst_206 {dimension_numbers = #tpu.dot_dimension_numbers<[1], [0], [0], [1], [0, 0, 1, 1], [], []>} : vector<16x6xf32>, vector<6x6xf32>, vector<16x6xf32> -> vector<16x6xf32>
    %cst_207 = arith.constant dense<0.000000e+00> : vector<16x6xf32>
    %377 = tpu.matmul %375, %23, %cst_207 {dimension_numbers = #tpu.dot_dimension_numbers<[1], [0], [0], [1], [0, 0, 1, 1], [], []>} : vector<16x6xf32>, vector<6x6xf32>, vector<16x6xf32> -> vector<16x6xf32>
    %378 = arith.subf %376, %377 : vector<16x6xf32>
    %cst_208 = arith.constant 0.000000e+00 : f32
    %379 = vector.broadcast %cst_208 : f32 to vector<16x6xf32>
    %380 = arith.cmpf oeq, %346, %379 : vector<16x6xf32>
    %cst_209 = arith.constant 1.000000e+00 : f32
    %381 = vector.broadcast %cst_209 : f32 to vector<16x6xf32>
    %382 = arith.select %380, %381, %346 : vector<16x6xi1>, vector<16x6xf32>
    %383 = tpu.reciprocal %382 {approx = true} : vector<16x6xf32> -> vector<16x6xf32>
    %384 = arith.mulf %7, %383 : vector<16x6xf32>
    %cst_210 = arith.constant -2.000000e+00 : f32
    %cst_211 = arith.constant 2.000000e+00 : f32
    %385 = vector.broadcast %cst_210 : f32 to vector<16x6xf32>
    %386 = arith.maximumf %385, %384 : vector<16x6xf32>
    %387 = vector.broadcast %cst_211 : f32 to vector<16x6xf32>
    %388 = arith.minimumf %387, %386 : vector<16x6xf32>
    %389 = arith.mulf %9, %383 : vector<16x6xf32>
    %cst_212 = arith.constant -2.000000e+00 : f32
    %cst_213 = arith.constant 2.000000e+00 : f32
    %390 = vector.broadcast %cst_212 : f32 to vector<16x6xf32>
    %391 = arith.maximumf %390, %389 : vector<16x6xf32>
    %392 = vector.broadcast %cst_213 : f32 to vector<16x6xf32>
    %393 = arith.minimumf %392, %391 : vector<16x6xf32>
    %cst_214 = arith.constant 5.000000e-01 : f32
    %394 = vector.broadcast %cst_214 : f32 to vector<16x6xf32>
    %395 = arith.subf %388, %394 : vector<16x6xf32>
    %cst_215 = arith.constant -5.000000e-01 : f32
    %396 = vector.broadcast %cst_215 : f32 to vector<16x6xf32>
    %397 = arith.subf %395, %396 : vector<16x6xf32>
    %cst_216 = arith.constant 0.000000e+00 : f32
    %398 = vector.broadcast %cst_216 : f32 to vector<16x6xf32>
    %399 = arith.maximumf %397, %398 : vector<16x6xf32>
    %cst_217 = arith.constant -5.000000e-01 : f32
    %400 = vector.broadcast %cst_217 : f32 to vector<16x6xf32>
    %401 = arith.addf %399, %400 : vector<16x6xf32>
    %cst_218 = arith.constant 5.000000e-01 : f32
    %402 = vector.broadcast %cst_218 : f32 to vector<16x6xf32>
    %403 = arith.addf %388, %402 : vector<16x6xf32>
    %cst_219 = arith.constant 5.000000e-01 : f32
    %404 = vector.broadcast %cst_219 : f32 to vector<16x6xf32>
    %405 = arith.addf %388, %404 : vector<16x6xf32>
    %cst_220 = arith.constant 5.000000e-01 : f32
    %406 = vector.broadcast %cst_220 : f32 to vector<16x6xf32>
    %407 = arith.subf %405, %406 : vector<16x6xf32>
    %cst_221 = arith.constant 0.000000e+00 : f32
    %408 = vector.broadcast %cst_221 : f32 to vector<16x6xf32>
    %409 = arith.maximumf %407, %408 : vector<16x6xf32>
    %410 = arith.subf %403, %409 : vector<16x6xf32>
    %411 = arith.subf %410, %401 : vector<16x6xf32>
    %cst_222 = arith.constant 0.000000e+00 : f32
    %412 = vector.broadcast %cst_222 : f32 to vector<16x6xf32>
    %413 = arith.maximumf %411, %412 : vector<16x6xf32>
    %cst_223 = arith.constant 5.000000e-01 : f32
    %414 = vector.broadcast %cst_223 : f32 to vector<16x6xf32>
    %415 = arith.subf %388, %414 : vector<16x6xf32>
    %cst_224 = arith.constant 5.000000e-01 : f32
    %416 = vector.broadcast %cst_224 : f32 to vector<16x6xf32>
    %417 = arith.subf %415, %416 : vector<16x6xf32>
    %cst_225 = arith.constant 0.000000e+00 : f32
    %418 = vector.broadcast %cst_225 : f32 to vector<16x6xf32>
    %419 = arith.maximumf %417, %418 : vector<16x6xf32>
    %cst_226 = arith.constant 5.000000e-01 : f32
    %420 = vector.broadcast %cst_226 : f32 to vector<16x6xf32>
    %421 = arith.addf %419, %420 : vector<16x6xf32>
    %cst_227 = arith.constant 5.000000e-01 : f32
    %422 = vector.broadcast %cst_227 : f32 to vector<16x6xf32>
    %423 = arith.addf %388, %422 : vector<16x6xf32>
    %cst_228 = arith.constant 5.000000e-01 : f32
    %424 = vector.broadcast %cst_228 : f32 to vector<16x6xf32>
    %425 = arith.addf %388, %424 : vector<16x6xf32>
    %cst_229 = arith.constant 1.500000e+00 : f32
    %426 = vector.broadcast %cst_229 : f32 to vector<16x6xf32>
    %427 = arith.subf %425, %426 : vector<16x6xf32>
    %cst_230 = arith.constant 0.000000e+00 : f32
    %428 = vector.broadcast %cst_230 : f32 to vector<16x6xf32>
    %429 = arith.maximumf %427, %428 : vector<16x6xf32>
    %430 = arith.subf %423, %429 : vector<16x6xf32>
    %431 = arith.subf %430, %421 : vector<16x6xf32>
    %cst_231 = arith.constant 0.000000e+00 : f32
    %432 = vector.broadcast %cst_231 : f32 to vector<16x6xf32>
    %433 = arith.maximumf %431, %432 : vector<16x6xf32>
    %cst_232 = arith.constant 5.000000e-01 : f32
    %434 = vector.broadcast %cst_232 : f32 to vector<16x6xf32>
    %435 = arith.subf %388, %434 : vector<16x6xf32>
    %cst_233 = arith.constant 1.500000e+00 : f32
    %436 = vector.broadcast %cst_233 : f32 to vector<16x6xf32>
    %437 = arith.subf %435, %436 : vector<16x6xf32>
    %cst_234 = arith.constant 0.000000e+00 : f32
    %438 = vector.broadcast %cst_234 : f32 to vector<16x6xf32>
    %439 = arith.maximumf %437, %438 : vector<16x6xf32>
    %cst_235 = arith.constant 1.500000e+00 : f32
    %440 = vector.broadcast %cst_235 : f32 to vector<16x6xf32>
    %441 = arith.addf %439, %440 : vector<16x6xf32>
    %cst_236 = arith.constant 5.000000e-01 : f32
    %442 = vector.broadcast %cst_236 : f32 to vector<16x6xf32>
    %443 = arith.addf %388, %442 : vector<16x6xf32>
    %cst_237 = arith.constant 5.000000e-01 : f32
    %444 = vector.broadcast %cst_237 : f32 to vector<16x6xf32>
    %445 = arith.addf %388, %444 : vector<16x6xf32>
    %cst_238 = arith.constant 2.500000e+00 : f32
    %446 = vector.broadcast %cst_238 : f32 to vector<16x6xf32>
    %447 = arith.subf %445, %446 : vector<16x6xf32>
    %cst_239 = arith.constant 0.000000e+00 : f32
    %448 = vector.broadcast %cst_239 : f32 to vector<16x6xf32>
    %449 = arith.maximumf %447, %448 : vector<16x6xf32>
    %450 = arith.subf %443, %449 : vector<16x6xf32>
    %451 = arith.subf %450, %441 : vector<16x6xf32>
    %cst_240 = arith.constant 0.000000e+00 : f32
    %452 = vector.broadcast %cst_240 : f32 to vector<16x6xf32>
    %453 = arith.maximumf %451, %452 : vector<16x6xf32>
    %cst_241 = arith.constant 5.000000e-01 : f32
    %454 = vector.broadcast %cst_241 : f32 to vector<16x6xf32>
    %455 = arith.subf %388, %454 : vector<16x6xf32>
    %cst_242 = arith.constant 2.500000e+00 : f32
    %456 = vector.broadcast %cst_242 : f32 to vector<16x6xf32>
    %457 = arith.subf %455, %456 : vector<16x6xf32>
    %cst_243 = arith.constant 0.000000e+00 : f32
    %458 = vector.broadcast %cst_243 : f32 to vector<16x6xf32>
    %459 = arith.maximumf %457, %458 : vector<16x6xf32>
    %cst_244 = arith.constant 2.500000e+00 : f32
    %460 = vector.broadcast %cst_244 : f32 to vector<16x6xf32>
    %461 = arith.addf %459, %460 : vector<16x6xf32>
    %cst_245 = arith.constant 5.000000e-01 : f32
    %462 = vector.broadcast %cst_245 : f32 to vector<16x6xf32>
    %463 = arith.addf %388, %462 : vector<16x6xf32>
    %cst_246 = arith.constant 5.000000e-01 : f32
    %464 = vector.broadcast %cst_246 : f32 to vector<16x6xf32>
    %465 = arith.addf %388, %464 : vector<16x6xf32>
    %cst_247 = arith.constant 3.500000e+00 : f32
    %466 = vector.broadcast %cst_247 : f32 to vector<16x6xf32>
    %467 = arith.subf %465, %466 : vector<16x6xf32>
    %cst_248 = arith.constant 0.000000e+00 : f32
    %468 = vector.broadcast %cst_248 : f32 to vector<16x6xf32>
    %469 = arith.maximumf %467, %468 : vector<16x6xf32>
    %470 = arith.subf %463, %469 : vector<16x6xf32>
    %471 = arith.subf %470, %461 : vector<16x6xf32>
    %cst_249 = arith.constant 0.000000e+00 : f32
    %472 = vector.broadcast %cst_249 : f32 to vector<16x6xf32>
    %473 = arith.maximumf %471, %472 : vector<16x6xf32>
    %cst_250 = arith.constant 5.000000e-01 : f32
    %474 = vector.broadcast %cst_250 : f32 to vector<16x6xf32>
    %475 = arith.subf %388, %474 : vector<16x6xf32>
    %cst_251 = arith.constant 3.500000e+00 : f32
    %476 = vector.broadcast %cst_251 : f32 to vector<16x6xf32>
    %477 = arith.subf %475, %476 : vector<16x6xf32>
    %cst_252 = arith.constant 0.000000e+00 : f32
    %478 = vector.broadcast %cst_252 : f32 to vector<16x6xf32>
    %479 = arith.maximumf %477, %478 : vector<16x6xf32>
    %cst_253 = arith.constant 3.500000e+00 : f32
    %480 = vector.broadcast %cst_253 : f32 to vector<16x6xf32>
    %481 = arith.addf %479, %480 : vector<16x6xf32>
    %cst_254 = arith.constant 5.000000e-01 : f32
    %482 = vector.broadcast %cst_254 : f32 to vector<16x6xf32>
    %483 = arith.addf %388, %482 : vector<16x6xf32>
    %cst_255 = arith.constant 5.000000e-01 : f32
    %484 = vector.broadcast %cst_255 : f32 to vector<16x6xf32>
    %485 = arith.addf %388, %484 : vector<16x6xf32>
    %cst_256 = arith.constant 4.500000e+00 : f32
    %486 = vector.broadcast %cst_256 : f32 to vector<16x6xf32>
    %487 = arith.subf %485, %486 : vector<16x6xf32>
    %cst_257 = arith.constant 0.000000e+00 : f32
    %488 = vector.broadcast %cst_257 : f32 to vector<16x6xf32>
    %489 = arith.maximumf %487, %488 : vector<16x6xf32>
    %490 = arith.subf %483, %489 : vector<16x6xf32>
    %491 = arith.subf %490, %481 : vector<16x6xf32>
    %cst_258 = arith.constant 0.000000e+00 : f32
    %492 = vector.broadcast %cst_258 : f32 to vector<16x6xf32>
    %493 = arith.maximumf %491, %492 : vector<16x6xf32>
    %cst_259 = arith.constant 5.000000e-01 : f32
    %494 = vector.broadcast %cst_259 : f32 to vector<16x6xf32>
    %495 = arith.subf %393, %494 : vector<16x6xf32>
    %cst_260 = arith.constant -5.000000e-01 : f32
    %496 = vector.broadcast %cst_260 : f32 to vector<16x6xf32>
    %497 = arith.subf %495, %496 : vector<16x6xf32>
    %cst_261 = arith.constant 0.000000e+00 : f32
    %498 = vector.broadcast %cst_261 : f32 to vector<16x6xf32>
    %499 = arith.maximumf %497, %498 : vector<16x6xf32>
    %cst_262 = arith.constant -5.000000e-01 : f32
    %500 = vector.broadcast %cst_262 : f32 to vector<16x6xf32>
    %501 = arith.addf %499, %500 : vector<16x6xf32>
    %cst_263 = arith.constant 5.000000e-01 : f32
    %502 = vector.broadcast %cst_263 : f32 to vector<16x6xf32>
    %503 = arith.addf %393, %502 : vector<16x6xf32>
    %cst_264 = arith.constant 5.000000e-01 : f32
    %504 = vector.broadcast %cst_264 : f32 to vector<16x6xf32>
    %505 = arith.addf %393, %504 : vector<16x6xf32>
    %cst_265 = arith.constant 5.000000e-01 : f32
    %506 = vector.broadcast %cst_265 : f32 to vector<16x6xf32>
    %507 = arith.subf %505, %506 : vector<16x6xf32>
    %cst_266 = arith.constant 0.000000e+00 : f32
    %508 = vector.broadcast %cst_266 : f32 to vector<16x6xf32>
    %509 = arith.maximumf %507, %508 : vector<16x6xf32>
    %510 = arith.subf %503, %509 : vector<16x6xf32>
    %511 = arith.subf %510, %501 : vector<16x6xf32>
    %cst_267 = arith.constant 0.000000e+00 : f32
    %512 = vector.broadcast %cst_267 : f32 to vector<16x6xf32>
    %513 = arith.maximumf %511, %512 : vector<16x6xf32>
    %514 = arith.mulf %513, %346 : vector<16x6xf32>
    %cst_268 = arith.constant 5.000000e-01 : f32
    %515 = vector.broadcast %cst_268 : f32 to vector<16x6xf32>
    %516 = arith.subf %393, %515 : vector<16x6xf32>
    %cst_269 = arith.constant 5.000000e-01 : f32
    %517 = vector.broadcast %cst_269 : f32 to vector<16x6xf32>
    %518 = arith.subf %516, %517 : vector<16x6xf32>
    %cst_270 = arith.constant 0.000000e+00 : f32
    %519 = vector.broadcast %cst_270 : f32 to vector<16x6xf32>
    %520 = arith.maximumf %518, %519 : vector<16x6xf32>
    %cst_271 = arith.constant 5.000000e-01 : f32
    %521 = vector.broadcast %cst_271 : f32 to vector<16x6xf32>
    %522 = arith.addf %520, %521 : vector<16x6xf32>
    %cst_272 = arith.constant 5.000000e-01 : f32
    %523 = vector.broadcast %cst_272 : f32 to vector<16x6xf32>
    %524 = arith.addf %393, %523 : vector<16x6xf32>
    %cst_273 = arith.constant 5.000000e-01 : f32
    %525 = vector.broadcast %cst_273 : f32 to vector<16x6xf32>
    %526 = arith.addf %393, %525 : vector<16x6xf32>
    %cst_274 = arith.constant 1.500000e+00 : f32
    %527 = vector.broadcast %cst_274 : f32 to vector<16x6xf32>
    %528 = arith.subf %526, %527 : vector<16x6xf32>
    %cst_275 = arith.constant 0.000000e+00 : f32
    %529 = vector.broadcast %cst_275 : f32 to vector<16x6xf32>
    %530 = arith.maximumf %528, %529 : vector<16x6xf32>
    %531 = arith.subf %524, %530 : vector<16x6xf32>
    %532 = arith.subf %531, %522 : vector<16x6xf32>
    %cst_276 = arith.constant 0.000000e+00 : f32
    %533 = vector.broadcast %cst_276 : f32 to vector<16x6xf32>
    %534 = arith.maximumf %532, %533 : vector<16x6xf32>
    %535 = arith.mulf %534, %346 : vector<16x6xf32>
    %cst_277 = arith.constant 5.000000e-01 : f32
    %536 = vector.broadcast %cst_277 : f32 to vector<16x6xf32>
    %537 = arith.subf %393, %536 : vector<16x6xf32>
    %cst_278 = arith.constant 1.500000e+00 : f32
    %538 = vector.broadcast %cst_278 : f32 to vector<16x6xf32>
    %539 = arith.subf %537, %538 : vector<16x6xf32>
    %cst_279 = arith.constant 0.000000e+00 : f32
    %540 = vector.broadcast %cst_279 : f32 to vector<16x6xf32>
    %541 = arith.maximumf %539, %540 : vector<16x6xf32>
    %cst_280 = arith.constant 1.500000e+00 : f32
    %542 = vector.broadcast %cst_280 : f32 to vector<16x6xf32>
    %543 = arith.addf %541, %542 : vector<16x6xf32>
    %cst_281 = arith.constant 5.000000e-01 : f32
    %544 = vector.broadcast %cst_281 : f32 to vector<16x6xf32>
    %545 = arith.addf %393, %544 : vector<16x6xf32>
    %cst_282 = arith.constant 5.000000e-01 : f32
    %546 = vector.broadcast %cst_282 : f32 to vector<16x6xf32>
    %547 = arith.addf %393, %546 : vector<16x6xf32>
    %cst_283 = arith.constant 2.500000e+00 : f32
    %548 = vector.broadcast %cst_283 : f32 to vector<16x6xf32>
    %549 = arith.subf %547, %548 : vector<16x6xf32>
    %cst_284 = arith.constant 0.000000e+00 : f32
    %550 = vector.broadcast %cst_284 : f32 to vector<16x6xf32>
    %551 = arith.maximumf %549, %550 : vector<16x6xf32>
    %552 = arith.subf %545, %551 : vector<16x6xf32>
    %553 = arith.subf %552, %543 : vector<16x6xf32>
    %cst_285 = arith.constant 0.000000e+00 : f32
    %554 = vector.broadcast %cst_285 : f32 to vector<16x6xf32>
    %555 = arith.maximumf %553, %554 : vector<16x6xf32>
    %556 = arith.mulf %555, %346 : vector<16x6xf32>
    %cst_286 = arith.constant 5.000000e-01 : f32
    %557 = vector.broadcast %cst_286 : f32 to vector<16x6xf32>
    %558 = arith.subf %393, %557 : vector<16x6xf32>
    %cst_287 = arith.constant 2.500000e+00 : f32
    %559 = vector.broadcast %cst_287 : f32 to vector<16x6xf32>
    %560 = arith.subf %558, %559 : vector<16x6xf32>
    %cst_288 = arith.constant 0.000000e+00 : f32
    %561 = vector.broadcast %cst_288 : f32 to vector<16x6xf32>
    %562 = arith.maximumf %560, %561 : vector<16x6xf32>
    %cst_289 = arith.constant 2.500000e+00 : f32
    %563 = vector.broadcast %cst_289 : f32 to vector<16x6xf32>
    %564 = arith.addf %562, %563 : vector<16x6xf32>
    %cst_290 = arith.constant 5.000000e-01 : f32
    %565 = vector.broadcast %cst_290 : f32 to vector<16x6xf32>
    %566 = arith.addf %393, %565 : vector<16x6xf32>
    %cst_291 = arith.constant 5.000000e-01 : f32
    %567 = vector.broadcast %cst_291 : f32 to vector<16x6xf32>
    %568 = arith.addf %393, %567 : vector<16x6xf32>
    %cst_292 = arith.constant 3.500000e+00 : f32
    %569 = vector.broadcast %cst_292 : f32 to vector<16x6xf32>
    %570 = arith.subf %568, %569 : vector<16x6xf32>
    %cst_293 = arith.constant 0.000000e+00 : f32
    %571 = vector.broadcast %cst_293 : f32 to vector<16x6xf32>
    %572 = arith.maximumf %570, %571 : vector<16x6xf32>
    %573 = arith.subf %566, %572 : vector<16x6xf32>
    %574 = arith.subf %573, %564 : vector<16x6xf32>
    %cst_294 = arith.constant 0.000000e+00 : f32
    %575 = vector.broadcast %cst_294 : f32 to vector<16x6xf32>
    %576 = arith.maximumf %574, %575 : vector<16x6xf32>
    %577 = arith.mulf %576, %346 : vector<16x6xf32>
    %cst_295 = arith.constant 5.000000e-01 : f32
    %578 = vector.broadcast %cst_295 : f32 to vector<16x6xf32>
    %579 = arith.subf %393, %578 : vector<16x6xf32>
    %cst_296 = arith.constant 3.500000e+00 : f32
    %580 = vector.broadcast %cst_296 : f32 to vector<16x6xf32>
    %581 = arith.subf %579, %580 : vector<16x6xf32>
    %cst_297 = arith.constant 0.000000e+00 : f32
    %582 = vector.broadcast %cst_297 : f32 to vector<16x6xf32>
    %583 = arith.maximumf %581, %582 : vector<16x6xf32>
    %cst_298 = arith.constant 3.500000e+00 : f32
    %584 = vector.broadcast %cst_298 : f32 to vector<16x6xf32>
    %585 = arith.addf %583, %584 : vector<16x6xf32>
    %cst_299 = arith.constant 5.000000e-01 : f32
    %586 = vector.broadcast %cst_299 : f32 to vector<16x6xf32>
    %587 = arith.addf %393, %586 : vector<16x6xf32>
    %cst_300 = arith.constant 5.000000e-01 : f32
    %588 = vector.broadcast %cst_300 : f32 to vector<16x6xf32>
    %589 = arith.addf %393, %588 : vector<16x6xf32>
    %cst_301 = arith.constant 4.500000e+00 : f32
    %590 = vector.broadcast %cst_301 : f32 to vector<16x6xf32>
    %591 = arith.subf %589, %590 : vector<16x6xf32>
    %cst_302 = arith.constant 0.000000e+00 : f32
    %592 = vector.broadcast %cst_302 : f32 to vector<16x6xf32>
    %593 = arith.maximumf %591, %592 : vector<16x6xf32>
    %594 = arith.subf %587, %593 : vector<16x6xf32>
    %595 = arith.subf %594, %585 : vector<16x6xf32>
    %cst_303 = arith.constant 0.000000e+00 : f32
    %596 = vector.broadcast %cst_303 : f32 to vector<16x6xf32>
    %597 = arith.maximumf %595, %596 : vector<16x6xf32>
    %598 = arith.mulf %597, %346 : vector<16x6xf32>
    %599 = arith.mulf %413, %514 : vector<16x6xf32>
    %600 = arith.mulf %433, %514 : vector<16x6xf32>
    %601 = arith.mulf %453, %514 : vector<16x6xf32>
    %602 = arith.mulf %473, %514 : vector<16x6xf32>
    %603 = arith.mulf %493, %514 : vector<16x6xf32>
    %604 = arith.mulf %413, %535 : vector<16x6xf32>
    %605 = arith.mulf %433, %535 : vector<16x6xf32>
    %606 = arith.mulf %453, %535 : vector<16x6xf32>
    %607 = arith.mulf %473, %535 : vector<16x6xf32>
    %608 = arith.mulf %493, %535 : vector<16x6xf32>
    %609 = arith.mulf %413, %556 : vector<16x6xf32>
    %610 = arith.mulf %433, %556 : vector<16x6xf32>
    %611 = arith.mulf %453, %556 : vector<16x6xf32>
    %612 = arith.mulf %473, %556 : vector<16x6xf32>
    %613 = arith.mulf %493, %556 : vector<16x6xf32>
    %614 = arith.mulf %413, %577 : vector<16x6xf32>
    %615 = arith.mulf %433, %577 : vector<16x6xf32>
    %616 = arith.mulf %453, %577 : vector<16x6xf32>
    %617 = arith.mulf %473, %577 : vector<16x6xf32>
    %618 = arith.mulf %493, %577 : vector<16x6xf32>
    %619 = arith.mulf %413, %598 : vector<16x6xf32>
    %620 = arith.mulf %433, %598 : vector<16x6xf32>
    %621 = arith.mulf %453, %598 : vector<16x6xf32>
    %622 = arith.mulf %473, %598 : vector<16x6xf32>
    %623 = arith.mulf %493, %598 : vector<16x6xf32>
    %624 = tpu.concatenate %599, %600, %601, %602, %603, %604, %605, %606, %607, %608, %609, %610, %611, %612, %613, %614 in 0 : vector<16x6xf32>, vector<16x6xf32>, vector<16x6xf32>, vector<16x6xf32>, vector<16x6xf32>, vector<16x6xf32>, vector<16x6xf32>, vector<16x6xf32>, vector<16x6xf32>, vector<16x6xf32>, vector<16x6xf32>, vector<16x6xf32>, vector<16x6xf32>, vector<16x6xf32>, vector<16x6xf32>, vector<16x6xf32> -> vector<256x6xf32>
    %625 = tpu.concatenate %615, %616, %617, %618, %619, %620, %621, %622, %623 in 0 : vector<16x6xf32>, vector<16x6xf32>, vector<16x6xf32>, vector<16x6xf32>, vector<16x6xf32>, vector<16x6xf32>, vector<16x6xf32>, vector<16x6xf32>, vector<16x6xf32> -> vector<144x6xf32>
    %626 = tpu.concatenate %624, %625 in 0 : vector<256x6xf32>, vector<144x6xf32> -> vector<400x6xf32>
    %cst_304 = arith.constant dense<0.000000e+00> : vector<16x6xf32>
    %627 = tpu.matmul %17, %626, %cst_304 {dimension_numbers = #tpu.dot_dimension_numbers<[1], [0], [0], [1], [0, 0, 1, 1], [], []>} : vector<16x400xf32>, vector<400x6xf32>, vector<16x6xf32> -> vector<16x6xf32>
    %628 = arith.subf %627, %346 : vector<16x6xf32>
    %cst_305 = arith.constant dense<0.000000e+00> : vector<16x6xf32>
    %629 = tpu.matmul %21, %346, %cst_305 {dimension_numbers = #tpu.dot_dimension_numbers<[1], [0], [0], [1], [0, 0, 1, 1], [], []>} : vector<16x16xf32>, vector<16x6xf32>, vector<16x6xf32> -> vector<16x6xf32>
    %cst_306 = arith.constant dense<0.000000e+00> : vector<16x16xf32>
    %630 = tpu.matmul %346, %24, %cst_306 {dimension_numbers = #tpu.dot_dimension_numbers<[1], [0], [0], [1], [0, 0, 1, 1], [], []>} : vector<16x6xf32>, vector<6x16xf32>, vector<16x16xf32> -> vector<16x16xf32>
    %cst_307 = arith.constant dense<0.000000e+00> : vector<16x16xf32>
    %631 = tpu.matmul %629, %25, %cst_307 {dimension_numbers = #tpu.dot_dimension_numbers<[1], [0], [0], [1], [0, 0, 1, 1], [], []>} : vector<16x6xf32>, vector<6x16xf32>, vector<16x16xf32> -> vector<16x16xf32>
    %632 = arith.addf %630, %631 : vector<16x16xf32>
    %633 = arith.addf %632, %11 : vector<16x16xf32>
    %cst_308 = arith.constant 0.000000e+00 : f32
    %634 = vector.broadcast %cst_308 : f32 to vector<16x16xf32>
    %635 = arith.maximumf %633, %634 : vector<16x16xf32>
    %cst_309 = arith.constant dense<0.000000e+00> : vector<16x8xf32>
    %636 = tpu.matmul %635, %26, %cst_309 {dimension_numbers = #tpu.dot_dimension_numbers<[1], [0], [0], [1], [0, 0, 1, 1], [], []>} : vector<16x16xf32>, vector<16x8xf32>, vector<16x8xf32> -> vector<16x8xf32>
    %637 = vector.broadcast %27 : vector<1x8xf32> to vector<16x8xf32>
    %638 = arith.addf %636, %637 : vector<16x8xf32>
    %cst_310 = arith.constant 0.000000e+00 : f32
    %639 = vector.broadcast %cst_310 : f32 to vector<16x8xf32>
    %640 = arith.maximumf %638, %639 : vector<16x8xf32>
    %cst_311 = arith.constant dense<0.000000e+00> : vector<16x1xf32>
    %641 = tpu.matmul %640, %28, %cst_311 {dimension_numbers = #tpu.dot_dimension_numbers<[1], [0], [0], [1], [0, 0, 1, 1], [], []>} : vector<16x8xf32>, vector<8x1xf32>, vector<16x1xf32> -> vector<16x1xf32>
    %642 = vector.broadcast %29 : vector<1x1xf32> to vector<16x1xf32>
    %643 = arith.addf %641, %642 : vector<16x1xf32>
    %644 = arith.negf %643 : vector<16x1xf32>
    %645 = math.exp %644 : vector<16x1xf32>
    %cst_312 = arith.constant 1.000000e+00 : f32
    %646 = vector.broadcast %cst_312 : f32 to vector<16x1xf32>
    %647 = arith.addf %646, %645 : vector<16x1xf32>
    %648 = arith.divf %646, %647 : vector<16x1xf32>
    %649 = vector.broadcast %648 : vector<16x1xf32> to vector<16x6xf32>
    %650 = arith.mulf %649, %378 : vector<16x6xf32>
    %cst_313 = arith.constant 1.000000e+00 : f32
    %651 = vector.broadcast %cst_313 : f32 to vector<16x1xf32>
    %652 = arith.subf %651, %648 : vector<16x1xf32>
    %653 = vector.broadcast %652 : vector<16x1xf32> to vector<16x6xf32>
    %654 = arith.mulf %653, %628 : vector<16x6xf32>
    %655 = arith.addf %650, %654 : vector<16x6xf32>
    %cst_314 = arith.constant dense<0.000000e+00> : vector<16x16xf32>
    %656 = tpu.matmul %346, %30, %cst_314 {dimension_numbers = #tpu.dot_dimension_numbers<[1], [0], [0], [1], [0, 0, 1, 1], [], []>} : vector<16x6xf32>, vector<6x16xf32>, vector<16x16xf32> -> vector<16x16xf32>
    %cst_315 = arith.constant dense<0.000000e+00> : vector<16x16xf32>
    %657 = tpu.matmul %629, %31, %cst_315 {dimension_numbers = #tpu.dot_dimension_numbers<[1], [0], [0], [1], [0, 0, 1, 1], [], []>} : vector<16x6xf32>, vector<6x16xf32>, vector<16x16xf32> -> vector<16x16xf32>
    %658 = arith.addf %656, %657 : vector<16x16xf32>
    %659 = arith.addf %658, %13 : vector<16x16xf32>
    %cst_316 = arith.constant 0.000000e+00 : f32
    %660 = vector.broadcast %cst_316 : f32 to vector<16x16xf32>
    %661 = arith.maximumf %659, %660 : vector<16x16xf32>
    %cst_317 = arith.constant dense<0.000000e+00> : vector<16x8xf32>
    %662 = tpu.matmul %661, %32, %cst_317 {dimension_numbers = #tpu.dot_dimension_numbers<[1], [0], [0], [1], [0, 0, 1, 1], [], []>} : vector<16x16xf32>, vector<16x8xf32>, vector<16x8xf32> -> vector<16x8xf32>
    %663 = vector.broadcast %33 : vector<1x8xf32> to vector<16x8xf32>
    %664 = arith.addf %662, %663 : vector<16x8xf32>
    %cst_318 = arith.constant 0.000000e+00 : f32
    %665 = vector.broadcast %cst_318 : f32 to vector<16x8xf32>
    %666 = arith.maximumf %664, %665 : vector<16x8xf32>
    %cst_319 = arith.constant dense<0.000000e+00> : vector<16x6xf32>
    %667 = tpu.matmul %666, %34, %cst_319 {dimension_numbers = #tpu.dot_dimension_numbers<[1], [0], [0], [1], [0, 0, 1, 1], [], []>} : vector<16x8xf32>, vector<8x6xf32>, vector<16x6xf32> -> vector<16x6xf32>
    %668 = vector.broadcast %35 : vector<1x6xf32> to vector<16x6xf32>
    %669 = arith.addf %667, %668 : vector<16x6xf32>
    %670 = arith.addf %346, %655 : vector<16x6xf32>
    %671 = arith.addf %670, %669 : vector<16x6xf32>
    %cst_320 = arith.constant dense<0.000000e+00> : vector<16x8xf32>
    %672 = tpu.matmul %671, %36, %cst_320 {dimension_numbers = #tpu.dot_dimension_numbers<[1], [0], [0], [1], [0, 0, 1, 1], [], []>} : vector<16x6xf32>, vector<6x8xf32>, vector<16x8xf32> -> vector<16x8xf32>
    %673 = arith.addf %672, %15 : vector<16x8xf32>
    %cst_321 = arith.constant 0.000000e+00 : f32
    %674 = vector.broadcast %cst_321 : f32 to vector<16x8xf32>
    %675 = arith.maximumf %673, %674 : vector<16x8xf32>
    %cst_322 = arith.constant dense<0.000000e+00> : vector<16x8xf32>
    %676 = tpu.matmul %675, %37, %cst_322 {dimension_numbers = #tpu.dot_dimension_numbers<[1], [0], [0], [1], [0, 0, 1, 1], [], []>} : vector<16x8xf32>, vector<8x8xf32>, vector<16x8xf32> -> vector<16x8xf32>
    %677 = vector.broadcast %38 : vector<1x8xf32> to vector<16x8xf32>
    %678 = arith.addf %676, %677 : vector<16x8xf32>
    %cst_323 = arith.constant 0.000000e+00 : f32
    %679 = vector.broadcast %cst_323 : f32 to vector<16x8xf32>
    %680 = arith.maximumf %678, %679 : vector<16x8xf32>
    %cst_324 = arith.constant dense<0.000000e+00> : vector<16x16xf32>
    %681 = tpu.matmul %680, %39, %cst_324 {dimension_numbers = #tpu.dot_dimension_numbers<[1], [0], [0], [1], [0, 0, 1, 1], [], []>} : vector<16x8xf32>, vector<8x16xf32>, vector<16x16xf32> -> vector<16x16xf32>
    %682 = vector.broadcast %40 : vector<1x16xf32> to vector<16x16xf32>
    %683 = arith.addf %681, %682 : vector<16x16xf32>
    %cst_325 = arith.constant 0.000000e+00 : f32
    %684 = vector.broadcast %cst_325 : f32 to vector<16x16xf32>
    %685 = arith.maximumf %683, %684 : vector<16x16xf32>
    %cst_326 = arith.constant dense<0.000000e+00> : vector<16x1xf32>
    %686 = tpu.matmul %685, %41, %cst_326 {dimension_numbers = #tpu.dot_dimension_numbers<[1], [0], [0], [1], [0, 0, 1, 1], [], []>} : vector<16x16xf32>, vector<16x1xf32>, vector<16x1xf32> -> vector<16x1xf32>
    %687 = vector.broadcast %42 : vector<1x1xf32> to vector<16x1xf32>
    %688 = arith.addf %686, %687 : vector<16x1xf32>
    %689 = tpu.concatenate %688, %648, %669, %671 in 1 : vector<16x1xf32>, vector<16x1xf32>, vector<16x6xf32>, vector<16x6xf32> -> vector<16x14xf32>
    %c0_327 = arith.constant 0 : index
    %c1 = arith.constant 1 : index
    %c0_328 = arith.constant 0 : index
    %c0_329 = arith.constant 0 : index
    %690 = vector.load %arg35[%c0_327, %c1, %c0_328, %c0_329] : memref<1x3x16x14xf32, #tpu.memory_space<vmem>>, vector<1x1x16x14xf32>
    %691 = vector.shape_cast %690 : vector<1x1x16x14xf32> to vector<16x14xf32>
    %692 = vector.shape_cast %689 : vector<16x14xf32> to vector<1x1x16x14xf32>
    tpu.vector_store %arg35[%c0_327, %c1, %c0_328, %c0_329], %692 {strides = array<i32>} : memref<1x3x16x14xf32, #tpu.memory_space<vmem>>, vector<1x1x16x14xf32>,
    %cst_330 = arith.constant dense<0.000000e+00> : vector<16x6xf32>
    %693 = tpu.matmul %18, %671, %cst_330 {dimension_numbers = #tpu.dot_dimension_numbers<[1], [0], [0], [1], [0, 0, 1, 1], [], []>} : vector<16x16xf32>, vector<16x6xf32>, vector<16x6xf32> -> vector<16x6xf32>
    %694 = vector.broadcast %3 : vector<16x1xf32> to vector<16x6xf32>
    %695 = arith.mulf %694, %671 : vector<16x6xf32>
    %cst_331 = arith.constant dense<0.000000e+00> : vector<16x6xf32>
    %696 = tpu.matmul %19, %695, %cst_331 {dimension_numbers = #tpu.dot_dimension_numbers<[1], [0], [0], [1], [0, 0, 1, 1], [], []>} : vector<16x16xf32>, vector<16x6xf32>, vector<16x6xf32> -> vector<16x6xf32>
    %697 = vector.broadcast %5 : vector<16x1xf32> to vector<16x6xf32>
    %698 = arith.mulf %697, %671 : vector<16x6xf32>
    %cst_332 = arith.constant dense<0.000000e+00> : vector<16x6xf32>
    %699 = tpu.matmul %20, %698, %cst_332 {dimension_numbers = #tpu.dot_dimension_numbers<[1], [0], [0], [1], [0, 0, 1, 1], [], []>} : vector<16x16xf32>, vector<16x6xf32>, vector<16x6xf32> -> vector<16x6xf32>
    %700 = arith.addf %696, %699 : vector<16x6xf32>
    %cst_333 = arith.constant dense<0.000000e+00> : vector<16x6xf32>
    %701 = tpu.matmul %693, %22, %cst_333 {dimension_numbers = #tpu.dot_dimension_numbers<[1], [0], [0], [1], [0, 0, 1, 1], [], []>} : vector<16x6xf32>, vector<6x6xf32>, vector<16x6xf32> -> vector<16x6xf32>
    %cst_334 = arith.constant dense<0.000000e+00> : vector<16x6xf32>
    %702 = tpu.matmul %700, %23, %cst_334 {dimension_numbers = #tpu.dot_dimension_numbers<[1], [0], [0], [1], [0, 0, 1, 1], [], []>} : vector<16x6xf32>, vector<6x6xf32>, vector<16x6xf32> -> vector<16x6xf32>
    %703 = arith.subf %701, %702 : vector<16x6xf32>
    %cst_335 = arith.constant 0.000000e+00 : f32
    %704 = vector.broadcast %cst_335 : f32 to vector<16x6xf32>
    %705 = arith.cmpf oeq, %671, %704 : vector<16x6xf32>
    %cst_336 = arith.constant 1.000000e+00 : f32
    %706 = vector.broadcast %cst_336 : f32 to vector<16x6xf32>
    %707 = arith.select %705, %706, %671 : vector<16x6xi1>, vector<16x6xf32>
    %708 = tpu.reciprocal %707 {approx = true} : vector<16x6xf32> -> vector<16x6xf32>
    %709 = arith.mulf %7, %708 : vector<16x6xf32>
    %cst_337 = arith.constant -2.000000e+00 : f32
    %cst_338 = arith.constant 2.000000e+00 : f32
    %710 = vector.broadcast %cst_337 : f32 to vector<16x6xf32>
    %711 = arith.maximumf %710, %709 : vector<16x6xf32>
    %712 = vector.broadcast %cst_338 : f32 to vector<16x6xf32>
    %713 = arith.minimumf %712, %711 : vector<16x6xf32>
    %714 = arith.mulf %9, %708 : vector<16x6xf32>
    %cst_339 = arith.constant -2.000000e+00 : f32
    %cst_340 = arith.constant 2.000000e+00 : f32
    %715 = vector.broadcast %cst_339 : f32 to vector<16x6xf32>
    %716 = arith.maximumf %715, %714 : vector<16x6xf32>
    %717 = vector.broadcast %cst_340 : f32 to vector<16x6xf32>
    %718 = arith.minimumf %717, %716 : vector<16x6xf32>
    %cst_341 = arith.constant 5.000000e-01 : f32
    %719 = vector.broadcast %cst_341 : f32 to vector<16x6xf32>
    %720 = arith.subf %713, %719 : vector<16x6xf32>
    %cst_342 = arith.constant -5.000000e-01 : f32
    %721 = vector.broadcast %cst_342 : f32 to vector<16x6xf32>
    %722 = arith.subf %720, %721 : vector<16x6xf32>
    %cst_343 = arith.constant 0.000000e+00 : f32
    %723 = vector.broadcast %cst_343 : f32 to vector<16x6xf32>
    %724 = arith.maximumf %722, %723 : vector<16x6xf32>
    %cst_344 = arith.constant -5.000000e-01 : f32
    %725 = vector.broadcast %cst_344 : f32 to vector<16x6xf32>
    %726 = arith.addf %724, %725 : vector<16x6xf32>
    %cst_345 = arith.constant 5.000000e-01 : f32
    %727 = vector.broadcast %cst_345 : f32 to vector<16x6xf32>
    %728 = arith.addf %713, %727 : vector<16x6xf32>
    %cst_346 = arith.constant 5.000000e-01 : f32
    %729 = vector.broadcast %cst_346 : f32 to vector<16x6xf32>
    %730 = arith.addf %713, %729 : vector<16x6xf32>
    %cst_347 = arith.constant 5.000000e-01 : f32
    %731 = vector.broadcast %cst_347 : f32 to vector<16x6xf32>
    %732 = arith.subf %730, %731 : vector<16x6xf32>
    %cst_348 = arith.constant 0.000000e+00 : f32
    %733 = vector.broadcast %cst_348 : f32 to vector<16x6xf32>
    %734 = arith.maximumf %732, %733 : vector<16x6xf32>
    %735 = arith.subf %728, %734 : vector<16x6xf32>
    %736 = arith.subf %735, %726 : vector<16x6xf32>
    %cst_349 = arith.constant 0.000000e+00 : f32
    %737 = vector.broadcast %cst_349 : f32 to vector<16x6xf32>
    %738 = arith.maximumf %736, %737 : vector<16x6xf32>
    %cst_350 = arith.constant 5.000000e-01 : f32
    %739 = vector.broadcast %cst_350 : f32 to vector<16x6xf32>
    %740 = arith.subf %713, %739 : vector<16x6xf32>
    %cst_351 = arith.constant 5.000000e-01 : f32
    %741 = vector.broadcast %cst_351 : f32 to vector<16x6xf32>
    %742 = arith.subf %740, %741 : vector<16x6xf32>
    %cst_352 = arith.constant 0.000000e+00 : f32
    %743 = vector.broadcast %cst_352 : f32 to vector<16x6xf32>
    %744 = arith.maximumf %742, %743 : vector<16x6xf32>
    %cst_353 = arith.constant 5.000000e-01 : f32
    %745 = vector.broadcast %cst_353 : f32 to vector<16x6xf32>
    %746 = arith.addf %744, %745 : vector<16x6xf32>
    %cst_354 = arith.constant 5.000000e-01 : f32
    %747 = vector.broadcast %cst_354 : f32 to vector<16x6xf32>
    %748 = arith.addf %713, %747 : vector<16x6xf32>
    %cst_355 = arith.constant 5.000000e-01 : f32
    %749 = vector.broadcast %cst_355 : f32 to vector<16x6xf32>
    %750 = arith.addf %713, %749 : vector<16x6xf32>
    %cst_356 = arith.constant 1.500000e+00 : f32
    %751 = vector.broadcast %cst_356 : f32 to vector<16x6xf32>
    %752 = arith.subf %750, %751 : vector<16x6xf32>
    %cst_357 = arith.constant 0.000000e+00 : f32
    %753 = vector.broadcast %cst_357 : f32 to vector<16x6xf32>
    %754 = arith.maximumf %752, %753 : vector<16x6xf32>
    %755 = arith.subf %748, %754 : vector<16x6xf32>
    %756 = arith.subf %755, %746 : vector<16x6xf32>
    %cst_358 = arith.constant 0.000000e+00 : f32
    %757 = vector.broadcast %cst_358 : f32 to vector<16x6xf32>
    %758 = arith.maximumf %756, %757 : vector<16x6xf32>
    %cst_359 = arith.constant 5.000000e-01 : f32
    %759 = vector.broadcast %cst_359 : f32 to vector<16x6xf32>
    %760 = arith.subf %713, %759 : vector<16x6xf32>
    %cst_360 = arith.constant 1.500000e+00 : f32
    %761 = vector.broadcast %cst_360 : f32 to vector<16x6xf32>
    %762 = arith.subf %760, %761 : vector<16x6xf32>
    %cst_361 = arith.constant 0.000000e+00 : f32
    %763 = vector.broadcast %cst_361 : f32 to vector<16x6xf32>
    %764 = arith.maximumf %762, %763 : vector<16x6xf32>
    %cst_362 = arith.constant 1.500000e+00 : f32
    %765 = vector.broadcast %cst_362 : f32 to vector<16x6xf32>
    %766 = arith.addf %764, %765 : vector<16x6xf32>
    %cst_363 = arith.constant 5.000000e-01 : f32
    %767 = vector.broadcast %cst_363 : f32 to vector<16x6xf32>
    %768 = arith.addf %713, %767 : vector<16x6xf32>
    %cst_364 = arith.constant 5.000000e-01 : f32
    %769 = vector.broadcast %cst_364 : f32 to vector<16x6xf32>
    %770 = arith.addf %713, %769 : vector<16x6xf32>
    %cst_365 = arith.constant 2.500000e+00 : f32
    %771 = vector.broadcast %cst_365 : f32 to vector<16x6xf32>
    %772 = arith.subf %770, %771 : vector<16x6xf32>
    %cst_366 = arith.constant 0.000000e+00 : f32
    %773 = vector.broadcast %cst_366 : f32 to vector<16x6xf32>
    %774 = arith.maximumf %772, %773 : vector<16x6xf32>
    %775 = arith.subf %768, %774 : vector<16x6xf32>
    %776 = arith.subf %775, %766 : vector<16x6xf32>
    %cst_367 = arith.constant 0.000000e+00 : f32
    %777 = vector.broadcast %cst_367 : f32 to vector<16x6xf32>
    %778 = arith.maximumf %776, %777 : vector<16x6xf32>
    %cst_368 = arith.constant 5.000000e-01 : f32
    %779 = vector.broadcast %cst_368 : f32 to vector<16x6xf32>
    %780 = arith.subf %713, %779 : vector<16x6xf32>
    %cst_369 = arith.constant 2.500000e+00 : f32
    %781 = vector.broadcast %cst_369 : f32 to vector<16x6xf32>
    %782 = arith.subf %780, %781 : vector<16x6xf32>
    %cst_370 = arith.constant 0.000000e+00 : f32
    %783 = vector.broadcast %cst_370 : f32 to vector<16x6xf32>
    %784 = arith.maximumf %782, %783 : vector<16x6xf32>
    %cst_371 = arith.constant 2.500000e+00 : f32
    %785 = vector.broadcast %cst_371 : f32 to vector<16x6xf32>
    %786 = arith.addf %784, %785 : vector<16x6xf32>
    %cst_372 = arith.constant 5.000000e-01 : f32
    %787 = vector.broadcast %cst_372 : f32 to vector<16x6xf32>
    %788 = arith.addf %713, %787 : vector<16x6xf32>
    %cst_373 = arith.constant 5.000000e-01 : f32
    %789 = vector.broadcast %cst_373 : f32 to vector<16x6xf32>
    %790 = arith.addf %713, %789 : vector<16x6xf32>
    %cst_374 = arith.constant 3.500000e+00 : f32
    %791 = vector.broadcast %cst_374 : f32 to vector<16x6xf32>
    %792 = arith.subf %790, %791 : vector<16x6xf32>
    %cst_375 = arith.constant 0.000000e+00 : f32
    %793 = vector.broadcast %cst_375 : f32 to vector<16x6xf32>
    %794 = arith.maximumf %792, %793 : vector<16x6xf32>
    %795 = arith.subf %788, %794 : vector<16x6xf32>
    %796 = arith.subf %795, %786 : vector<16x6xf32>
    %cst_376 = arith.constant 0.000000e+00 : f32
    %797 = vector.broadcast %cst_376 : f32 to vector<16x6xf32>
    %798 = arith.maximumf %796, %797 : vector<16x6xf32>
    %cst_377 = arith.constant 5.000000e-01 : f32
    %799 = vector.broadcast %cst_377 : f32 to vector<16x6xf32>
    %800 = arith.subf %713, %799 : vector<16x6xf32>
    %cst_378 = arith.constant 3.500000e+00 : f32
    %801 = vector.broadcast %cst_378 : f32 to vector<16x6xf32>
    %802 = arith.subf %800, %801 : vector<16x6xf32>
    %cst_379 = arith.constant 0.000000e+00 : f32
    %803 = vector.broadcast %cst_379 : f32 to vector<16x6xf32>
    %804 = arith.maximumf %802, %803 : vector<16x6xf32>
    %cst_380 = arith.constant 3.500000e+00 : f32
    %805 = vector.broadcast %cst_380 : f32 to vector<16x6xf32>
    %806 = arith.addf %804, %805 : vector<16x6xf32>
    %cst_381 = arith.constant 5.000000e-01 : f32
    %807 = vector.broadcast %cst_381 : f32 to vector<16x6xf32>
    %808 = arith.addf %713, %807 : vector<16x6xf32>
    %cst_382 = arith.constant 5.000000e-01 : f32
    %809 = vector.broadcast %cst_382 : f32 to vector<16x6xf32>
    %810 = arith.addf %713, %809 : vector<16x6xf32>
    %cst_383 = arith.constant 4.500000e+00 : f32
    %811 = vector.broadcast %cst_383 : f32 to vector<16x6xf32>
    %812 = arith.subf %810, %811 : vector<16x6xf32>
    %cst_384 = arith.constant 0.000000e+00 : f32
    %813 = vector.broadcast %cst_384 : f32 to vector<16x6xf32>
    %814 = arith.maximumf %812, %813 : vector<16x6xf32>
    %815 = arith.subf %808, %814 : vector<16x6xf32>
    %816 = arith.subf %815, %806 : vector<16x6xf32>
    %cst_385 = arith.constant 0.000000e+00 : f32
    %817 = vector.broadcast %cst_385 : f32 to vector<16x6xf32>
    %818 = arith.maximumf %816, %817 : vector<16x6xf32>
    %cst_386 = arith.constant 5.000000e-01 : f32
    %819 = vector.broadcast %cst_386 : f32 to vector<16x6xf32>
    %820 = arith.subf %718, %819 : vector<16x6xf32>
    %cst_387 = arith.constant -5.000000e-01 : f32
    %821 = vector.broadcast %cst_387 : f32 to vector<16x6xf32>
    %822 = arith.subf %820, %821 : vector<16x6xf32>
    %cst_388 = arith.constant 0.000000e+00 : f32
    %823 = vector.broadcast %cst_388 : f32 to vector<16x6xf32>
    %824 = arith.maximumf %822, %823 : vector<16x6xf32>
    %cst_389 = arith.constant -5.000000e-01 : f32
    %825 = vector.broadcast %cst_389 : f32 to vector<16x6xf32>
    %826 = arith.addf %824, %825 : vector<16x6xf32>
    %cst_390 = arith.constant 5.000000e-01 : f32
    %827 = vector.broadcast %cst_390 : f32 to vector<16x6xf32>
    %828 = arith.addf %718, %827 : vector<16x6xf32>
    %cst_391 = arith.constant 5.000000e-01 : f32
    %829 = vector.broadcast %cst_391 : f32 to vector<16x6xf32>
    %830 = arith.addf %718, %829 : vector<16x6xf32>
    %cst_392 = arith.constant 5.000000e-01 : f32
    %831 = vector.broadcast %cst_392 : f32 to vector<16x6xf32>
    %832 = arith.subf %830, %831 : vector<16x6xf32>
    %cst_393 = arith.constant 0.000000e+00 : f32
    %833 = vector.broadcast %cst_393 : f32 to vector<16x6xf32>
    %834 = arith.maximumf %832, %833 : vector<16x6xf32>
    %835 = arith.subf %828, %834 : vector<16x6xf32>
    %836 = arith.subf %835, %826 : vector<16x6xf32>
    %cst_394 = arith.constant 0.000000e+00 : f32
    %837 = vector.broadcast %cst_394 : f32 to vector<16x6xf32>
    %838 = arith.maximumf %836, %837 : vector<16x6xf32>
    %839 = arith.mulf %838, %671 : vector<16x6xf32>
    %cst_395 = arith.constant 5.000000e-01 : f32
    %840 = vector.broadcast %cst_395 : f32 to vector<16x6xf32>
    %841 = arith.subf %718, %840 : vector<16x6xf32>
    %cst_396 = arith.constant 5.000000e-01 : f32
    %842 = vector.broadcast %cst_396 : f32 to vector<16x6xf32>
    %843 = arith.subf %841, %842 : vector<16x6xf32>
    %cst_397 = arith.constant 0.000000e+00 : f32
    %844 = vector.broadcast %cst_397 : f32 to vector<16x6xf32>
    %845 = arith.maximumf %843, %844 : vector<16x6xf32>
    %cst_398 = arith.constant 5.000000e-01 : f32
    %846 = vector.broadcast %cst_398 : f32 to vector<16x6xf32>
    %847 = arith.addf %845, %846 : vector<16x6xf32>
    %cst_399 = arith.constant 5.000000e-01 : f32
    %848 = vector.broadcast %cst_399 : f32 to vector<16x6xf32>
    %849 = arith.addf %718, %848 : vector<16x6xf32>
    %cst_400 = arith.constant 5.000000e-01 : f32
    %850 = vector.broadcast %cst_400 : f32 to vector<16x6xf32>
    %851 = arith.addf %718, %850 : vector<16x6xf32>
    %cst_401 = arith.constant 1.500000e+00 : f32
    %852 = vector.broadcast %cst_401 : f32 to vector<16x6xf32>
    %853 = arith.subf %851, %852 : vector<16x6xf32>
    %cst_402 = arith.constant 0.000000e+00 : f32
    %854 = vector.broadcast %cst_402 : f32 to vector<16x6xf32>
    %855 = arith.maximumf %853, %854 : vector<16x6xf32>
    %856 = arith.subf %849, %855 : vector<16x6xf32>
    %857 = arith.subf %856, %847 : vector<16x6xf32>
    %cst_403 = arith.constant 0.000000e+00 : f32
    %858 = vector.broadcast %cst_403 : f32 to vector<16x6xf32>
    %859 = arith.maximumf %857, %858 : vector<16x6xf32>
    %860 = arith.mulf %859, %671 : vector<16x6xf32>
    %cst_404 = arith.constant 5.000000e-01 : f32
    %861 = vector.broadcast %cst_404 : f32 to vector<16x6xf32>
    %862 = arith.subf %718, %861 : vector<16x6xf32>
    %cst_405 = arith.constant 1.500000e+00 : f32
    %863 = vector.broadcast %cst_405 : f32 to vector<16x6xf32>
    %864 = arith.subf %862, %863 : vector<16x6xf32>
    %cst_406 = arith.constant 0.000000e+00 : f32
    %865 = vector.broadcast %cst_406 : f32 to vector<16x6xf32>
    %866 = arith.maximumf %864, %865 : vector<16x6xf32>
    %cst_407 = arith.constant 1.500000e+00 : f32
    %867 = vector.broadcast %cst_407 : f32 to vector<16x6xf32>
    %868 = arith.addf %866, %867 : vector<16x6xf32>
    %cst_408 = arith.constant 5.000000e-01 : f32
    %869 = vector.broadcast %cst_408 : f32 to vector<16x6xf32>
    %870 = arith.addf %718, %869 : vector<16x6xf32>
    %cst_409 = arith.constant 5.000000e-01 : f32
    %871 = vector.broadcast %cst_409 : f32 to vector<16x6xf32>
    %872 = arith.addf %718, %871 : vector<16x6xf32>
    %cst_410 = arith.constant 2.500000e+00 : f32
    %873 = vector.broadcast %cst_410 : f32 to vector<16x6xf32>
    %874 = arith.subf %872, %873 : vector<16x6xf32>
    %cst_411 = arith.constant 0.000000e+00 : f32
    %875 = vector.broadcast %cst_411 : f32 to vector<16x6xf32>
    %876 = arith.maximumf %874, %875 : vector<16x6xf32>
    %877 = arith.subf %870, %876 : vector<16x6xf32>
    %878 = arith.subf %877, %868 : vector<16x6xf32>
    %cst_412 = arith.constant 0.000000e+00 : f32
    %879 = vector.broadcast %cst_412 : f32 to vector<16x6xf32>
    %880 = arith.maximumf %878, %879 : vector<16x6xf32>
    %881 = arith.mulf %880, %671 : vector<16x6xf32>
    %cst_413 = arith.constant 5.000000e-01 : f32
    %882 = vector.broadcast %cst_413 : f32 to vector<16x6xf32>
    %883 = arith.subf %718, %882 : vector<16x6xf32>
    %cst_414 = arith.constant 2.500000e+00 : f32
    %884 = vector.broadcast %cst_414 : f32 to vector<16x6xf32>
    %885 = arith.subf %883, %884 : vector<16x6xf32>
    %cst_415 = arith.constant 0.000000e+00 : f32
    %886 = vector.broadcast %cst_415 : f32 to vector<16x6xf32>
    %887 = arith.maximumf %885, %886 : vector<16x6xf32>
    %cst_416 = arith.constant 2.500000e+00 : f32
    %888 = vector.broadcast %cst_416 : f32 to vector<16x6xf32>
    %889 = arith.addf %887, %888 : vector<16x6xf32>
    %cst_417 = arith.constant 5.000000e-01 : f32
    %890 = vector.broadcast %cst_417 : f32 to vector<16x6xf32>
    %891 = arith.addf %718, %890 : vector<16x6xf32>
    %cst_418 = arith.constant 5.000000e-01 : f32
    %892 = vector.broadcast %cst_418 : f32 to vector<16x6xf32>
    %893 = arith.addf %718, %892 : vector<16x6xf32>
    %cst_419 = arith.constant 3.500000e+00 : f32
    %894 = vector.broadcast %cst_419 : f32 to vector<16x6xf32>
    %895 = arith.subf %893, %894 : vector<16x6xf32>
    %cst_420 = arith.constant 0.000000e+00 : f32
    %896 = vector.broadcast %cst_420 : f32 to vector<16x6xf32>
    %897 = arith.maximumf %895, %896 : vector<16x6xf32>
    %898 = arith.subf %891, %897 : vector<16x6xf32>
    %899 = arith.subf %898, %889 : vector<16x6xf32>
    %cst_421 = arith.constant 0.000000e+00 : f32
    %900 = vector.broadcast %cst_421 : f32 to vector<16x6xf32>
    %901 = arith.maximumf %899, %900 : vector<16x6xf32>
    %902 = arith.mulf %901, %671 : vector<16x6xf32>
    %cst_422 = arith.constant 5.000000e-01 : f32
    %903 = vector.broadcast %cst_422 : f32 to vector<16x6xf32>
    %904 = arith.subf %718, %903 : vector<16x6xf32>
    %cst_423 = arith.constant 3.500000e+00 : f32
    %905 = vector.broadcast %cst_423 : f32 to vector<16x6xf32>
    %906 = arith.subf %904, %905 : vector<16x6xf32>
    %cst_424 = arith.constant 0.000000e+00 : f32
    %907 = vector.broadcast %cst_424 : f32 to vector<16x6xf32>
    %908 = arith.maximumf %906, %907 : vector<16x6xf32>
    %cst_425 = arith.constant 3.500000e+00 : f32
    %909 = vector.broadcast %cst_425 : f32 to vector<16x6xf32>
    %910 = arith.addf %908, %909 : vector<16x6xf32>
    %cst_426 = arith.constant 5.000000e-01 : f32
    %911 = vector.broadcast %cst_426 : f32 to vector<16x6xf32>
    %912 = arith.addf %718, %911 : vector<16x6xf32>
    %cst_427 = arith.constant 5.000000e-01 : f32
    %913 = vector.broadcast %cst_427 : f32 to vector<16x6xf32>
    %914 = arith.addf %718, %913 : vector<16x6xf32>
    %cst_428 = arith.constant 4.500000e+00 : f32
    %915 = vector.broadcast %cst_428 : f32 to vector<16x6xf32>
    %916 = arith.subf %914, %915 : vector<16x6xf32>
    %cst_429 = arith.constant 0.000000e+00 : f32
    %917 = vector.broadcast %cst_429 : f32 to vector<16x6xf32>
    %918 = arith.maximumf %916, %917 : vector<16x6xf32>
    %919 = arith.subf %912, %918 : vector<16x6xf32>
    %920 = arith.subf %919, %910 : vector<16x6xf32>
    %cst_430 = arith.constant 0.000000e+00 : f32
    %921 = vector.broadcast %cst_430 : f32 to vector<16x6xf32>
    %922 = arith.maximumf %920, %921 : vector<16x6xf32>
    %923 = arith.mulf %922, %671 : vector<16x6xf32>
    %924 = arith.mulf %738, %839 : vector<16x6xf32>
    %925 = arith.mulf %758, %839 : vector<16x6xf32>
    %926 = arith.mulf %778, %839 : vector<16x6xf32>
    %927 = arith.mulf %798, %839 : vector<16x6xf32>
    %928 = arith.mulf %818, %839 : vector<16x6xf32>
    %929 = arith.mulf %738, %860 : vector<16x6xf32>
    %930 = arith.mulf %758, %860 : vector<16x6xf32>
    %931 = arith.mulf %778, %860 : vector<16x6xf32>
    %932 = arith.mulf %798, %860 : vector<16x6xf32>
    %933 = arith.mulf %818, %860 : vector<16x6xf32>
    %934 = arith.mulf %738, %881 : vector<16x6xf32>
    %935 = arith.mulf %758, %881 : vector<16x6xf32>
    %936 = arith.mulf %778, %881 : vector<16x6xf32>
    %937 = arith.mulf %798, %881 : vector<16x6xf32>
    %938 = arith.mulf %818, %881 : vector<16x6xf32>
    %939 = arith.mulf %738, %902 : vector<16x6xf32>
    %940 = arith.mulf %758, %902 : vector<16x6xf32>
    %941 = arith.mulf %778, %902 : vector<16x6xf32>
    %942 = arith.mulf %798, %902 : vector<16x6xf32>
    %943 = arith.mulf %818, %902 : vector<16x6xf32>
    %944 = arith.mulf %738, %923 : vector<16x6xf32>
    %945 = arith.mulf %758, %923 : vector<16x6xf32>
    %946 = arith.mulf %778, %923 : vector<16x6xf32>
    %947 = arith.mulf %798, %923 : vector<16x6xf32>
    %948 = arith.mulf %818, %923 : vector<16x6xf32>
    %949 = tpu.concatenate %924, %925, %926, %927, %928, %929, %930, %931, %932, %933, %934, %935, %936, %937, %938, %939 in 0 : vector<16x6xf32>, vector<16x6xf32>, vector<16x6xf32>, vector<16x6xf32>, vector<16x6xf32>, vector<16x6xf32>, vector<16x6xf32>, vector<16x6xf32>, vector<16x6xf32>, vector<16x6xf32>, vector<16x6xf32>, vector<16x6xf32>, vector<16x6xf32>, vector<16x6xf32>, vector<16x6xf32>, vector<16x6xf32> -> vector<256x6xf32>
    %950 = tpu.concatenate %940, %941, %942, %943, %944, %945, %946, %947, %948 in 0 : vector<16x6xf32>, vector<16x6xf32>, vector<16x6xf32>, vector<16x6xf32>, vector<16x6xf32>, vector<16x6xf32>, vector<16x6xf32>, vector<16x6xf32>, vector<16x6xf32> -> vector<144x6xf32>
    %951 = tpu.concatenate %949, %950 in 0 : vector<256x6xf32>, vector<144x6xf32> -> vector<400x6xf32>
    %cst_431 = arith.constant dense<0.000000e+00> : vector<16x6xf32>
    %952 = tpu.matmul %17, %951, %cst_431 {dimension_numbers = #tpu.dot_dimension_numbers<[1], [0], [0], [1], [0, 0, 1, 1], [], []>} : vector<16x400xf32>, vector<400x6xf32>, vector<16x6xf32> -> vector<16x6xf32>
    %953 = arith.subf %952, %671 : vector<16x6xf32>
    %cst_432 = arith.constant dense<0.000000e+00> : vector<16x6xf32>
    %954 = tpu.matmul %21, %671, %cst_432 {dimension_numbers = #tpu.dot_dimension_numbers<[1], [0], [0], [1], [0, 0, 1, 1], [], []>} : vector<16x16xf32>, vector<16x6xf32>, vector<16x6xf32> -> vector<16x6xf32>
    %cst_433 = arith.constant dense<0.000000e+00> : vector<16x16xf32>
    %955 = tpu.matmul %671, %24, %cst_433 {dimension_numbers = #tpu.dot_dimension_numbers<[1], [0], [0], [1], [0, 0, 1, 1], [], []>} : vector<16x6xf32>, vector<6x16xf32>, vector<16x16xf32> -> vector<16x16xf32>
    %cst_434 = arith.constant dense<0.000000e+00> : vector<16x16xf32>
    %956 = tpu.matmul %954, %25, %cst_434 {dimension_numbers = #tpu.dot_dimension_numbers<[1], [0], [0], [1], [0, 0, 1, 1], [], []>} : vector<16x6xf32>, vector<6x16xf32>, vector<16x16xf32> -> vector<16x16xf32>
    %957 = arith.addf %955, %956 : vector<16x16xf32>
    %958 = arith.addf %957, %11 : vector<16x16xf32>
    %cst_435 = arith.constant 0.000000e+00 : f32
    %959 = vector.broadcast %cst_435 : f32 to vector<16x16xf32>
    %960 = arith.maximumf %958, %959 : vector<16x16xf32>
    %cst_436 = arith.constant dense<0.000000e+00> : vector<16x8xf32>
    %961 = tpu.matmul %960, %26, %cst_436 {dimension_numbers = #tpu.dot_dimension_numbers<[1], [0], [0], [1], [0, 0, 1, 1], [], []>} : vector<16x16xf32>, vector<16x8xf32>, vector<16x8xf32> -> vector<16x8xf32>
    %962 = vector.broadcast %27 : vector<1x8xf32> to vector<16x8xf32>
    %963 = arith.addf %961, %962 : vector<16x8xf32>
    %cst_437 = arith.constant 0.000000e+00 : f32
    %964 = vector.broadcast %cst_437 : f32 to vector<16x8xf32>
    %965 = arith.maximumf %963, %964 : vector<16x8xf32>
    %cst_438 = arith.constant dense<0.000000e+00> : vector<16x1xf32>
    %966 = tpu.matmul %965, %28, %cst_438 {dimension_numbers = #tpu.dot_dimension_numbers<[1], [0], [0], [1], [0, 0, 1, 1], [], []>} : vector<16x8xf32>, vector<8x1xf32>, vector<16x1xf32> -> vector<16x1xf32>
    %967 = vector.broadcast %29 : vector<1x1xf32> to vector<16x1xf32>
    %968 = arith.addf %966, %967 : vector<16x1xf32>
    %969 = arith.negf %968 : vector<16x1xf32>
    %970 = math.exp %969 : vector<16x1xf32>
    %cst_439 = arith.constant 1.000000e+00 : f32
    %971 = vector.broadcast %cst_439 : f32 to vector<16x1xf32>
    %972 = arith.addf %971, %970 : vector<16x1xf32>
    %973 = arith.divf %971, %972 : vector<16x1xf32>
    %974 = vector.broadcast %973 : vector<16x1xf32> to vector<16x6xf32>
    %975 = arith.mulf %974, %703 : vector<16x6xf32>
    %cst_440 = arith.constant 1.000000e+00 : f32
    %976 = vector.broadcast %cst_440 : f32 to vector<16x1xf32>
    %977 = arith.subf %976, %973 : vector<16x1xf32>
    %978 = vector.broadcast %977 : vector<16x1xf32> to vector<16x6xf32>
    %979 = arith.mulf %978, %953 : vector<16x6xf32>
    %980 = arith.addf %975, %979 : vector<16x6xf32>
    %cst_441 = arith.constant dense<0.000000e+00> : vector<16x16xf32>
    %981 = tpu.matmul %671, %30, %cst_441 {dimension_numbers = #tpu.dot_dimension_numbers<[1], [0], [0], [1], [0, 0, 1, 1], [], []>} : vector<16x6xf32>, vector<6x16xf32>, vector<16x16xf32> -> vector<16x16xf32>
    %cst_442 = arith.constant dense<0.000000e+00> : vector<16x16xf32>
    %982 = tpu.matmul %954, %31, %cst_442 {dimension_numbers = #tpu.dot_dimension_numbers<[1], [0], [0], [1], [0, 0, 1, 1], [], []>} : vector<16x6xf32>, vector<6x16xf32>, vector<16x16xf32> -> vector<16x16xf32>
    %983 = arith.addf %981, %982 : vector<16x16xf32>
    %984 = arith.addf %983, %13 : vector<16x16xf32>
    %cst_443 = arith.constant 0.000000e+00 : f32
    %985 = vector.broadcast %cst_443 : f32 to vector<16x16xf32>
    %986 = arith.maximumf %984, %985 : vector<16x16xf32>
    %cst_444 = arith.constant dense<0.000000e+00> : vector<16x8xf32>
    %987 = tpu.matmul %986, %32, %cst_444 {dimension_numbers = #tpu.dot_dimension_numbers<[1], [0], [0], [1], [0, 0, 1, 1], [], []>} : vector<16x16xf32>, vector<16x8xf32>, vector<16x8xf32> -> vector<16x8xf32>
    %988 = vector.broadcast %33 : vector<1x8xf32> to vector<16x8xf32>
    %989 = arith.addf %987, %988 : vector<16x8xf32>
    %cst_445 = arith.constant 0.000000e+00 : f32
    %990 = vector.broadcast %cst_445 : f32 to vector<16x8xf32>
    %991 = arith.maximumf %989, %990 : vector<16x8xf32>
    %cst_446 = arith.constant dense<0.000000e+00> : vector<16x6xf32>
    %992 = tpu.matmul %991, %34, %cst_446 {dimension_numbers = #tpu.dot_dimension_numbers<[1], [0], [0], [1], [0, 0, 1, 1], [], []>} : vector<16x8xf32>, vector<8x6xf32>, vector<16x6xf32> -> vector<16x6xf32>
    %993 = vector.broadcast %35 : vector<1x6xf32> to vector<16x6xf32>
    %994 = arith.addf %992, %993 : vector<16x6xf32>
    %995 = arith.addf %671, %980 : vector<16x6xf32>
    %996 = arith.addf %995, %994 : vector<16x6xf32>
    %cst_447 = arith.constant dense<0.000000e+00> : vector<16x8xf32>
    %997 = tpu.matmul %996, %36, %cst_447 {dimension_numbers = #tpu.dot_dimension_numbers<[1], [0], [0], [1], [0, 0, 1, 1], [], []>} : vector<16x6xf32>, vector<6x8xf32>, vector<16x8xf32> -> vector<16x8xf32>
    %998 = arith.addf %997, %15 : vector<16x8xf32>
    %cst_448 = arith.constant 0.000000e+00 : f32
    %999 = vector.broadcast %cst_448 : f32 to vector<16x8xf32>
    %1000 = arith.maximumf %998, %999 : vector<16x8xf32>
    %cst_449 = arith.constant dense<0.000000e+00> : vector<16x8xf32>
    %1001 = tpu.matmul %1000, %37, %cst_449 {dimension_numbers = #tpu.dot_dimension_numbers<[1], [0], [0], [1], [0, 0, 1, 1], [], []>} : vector<16x8xf32>, vector<8x8xf32>, vector<16x8xf32> -> vector<16x8xf32>
    %1002 = vector.broadcast %38 : vector<1x8xf32> to vector<16x8xf32>
    %1003 = arith.addf %1001, %1002 : vector<16x8xf32>
    %cst_450 = arith.constant 0.000000e+00 : f32
    %1004 = vector.broadcast %cst_450 : f32 to vector<16x8xf32>
    %1005 = arith.maximumf %1003, %1004 : vector<16x8xf32>
    %cst_451 = arith.constant dense<0.000000e+00> : vector<16x16xf32>
    %1006 = tpu.matmul %1005, %39, %cst_451 {dimension_numbers = #tpu.dot_dimension_numbers<[1], [0], [0], [1], [0, 0, 1, 1], [], []>} : vector<16x8xf32>, vector<8x16xf32>, vector<16x16xf32> -> vector<16x16xf32>
    %1007 = vector.broadcast %40 : vector<1x16xf32> to vector<16x16xf32>
    %1008 = arith.addf %1006, %1007 : vector<16x16xf32>
    %cst_452 = arith.constant 0.000000e+00 : f32
    %1009 = vector.broadcast %cst_452 : f32 to vector<16x16xf32>
    %1010 = arith.maximumf %1008, %1009 : vector<16x16xf32>
    %cst_453 = arith.constant dense<0.000000e+00> : vector<16x1xf32>
    %1011 = tpu.matmul %1010, %41, %cst_453 {dimension_numbers = #tpu.dot_dimension_numbers<[1], [0], [0], [1], [0, 0, 1, 1], [], []>} : vector<16x16xf32>, vector<16x1xf32>, vector<16x1xf32> -> vector<16x1xf32>
    %1012 = vector.broadcast %42 : vector<1x1xf32> to vector<16x1xf32>
    %1013 = arith.addf %1011, %1012 : vector<16x1xf32>
    %1014 = tpu.concatenate %1013, %973, %994, %996 in 1 : vector<16x1xf32>, vector<16x1xf32>, vector<16x6xf32>, vector<16x6xf32> -> vector<16x14xf32>
    %c0_454 = arith.constant 0 : index
    %c2 = arith.constant 2 : index
    %c0_455 = arith.constant 0 : index
    %c0_456 = arith.constant 0 : index
    %1015 = vector.load %arg35[%c0_454, %c2, %c0_455, %c0_456] : memref<1x3x16x14xf32, #tpu.memory_space<vmem>>, vector<1x1x16x14xf32>
    %1016 = vector.shape_cast %1015 : vector<1x1x16x14xf32> to vector<16x14xf32>
    %1017 = vector.shape_cast %1014 : vector<16x14xf32> to vector<1x1x16x14xf32>
    tpu.vector_store %arg35[%c0_454, %c2, %c0_455, %c0_456], %1017 {strides = array<i32>} : memref<1x3x16x14xf32, #tpu.memory_space<vmem>>, vector<1x1x16x14xf32>,
    return
  }
  func.func @transform_0(%arg0: i32) -> (i32, i32, i32) {
    %c0_i32 = arith.constant 0 : i32
    %c0_i32_0 = arith.constant 0 : i32
    %c0_i32_1 = arith.constant 0 : i32
    return %arg0, %c0_i32, %c0_i32_0 : i32, i32, i32
  }
  func.func @transform_1(%arg0: i32) -> (i32, i32, i32) {
    %c0_i32 = arith.constant 0 : i32
    %c0_i32_0 = arith.constant 0 : i32
    %c0_i32_1 = arith.constant 0 : i32
    return %arg0, %c0_i32, %c0_i32_0 : i32, i32, i32
  }
  func.func @transform_2(%arg0: i32) -> (i32, i32, i32) {
    %c0_i32 = arith.constant 0 : i32
    %c0_i32_0 = arith.constant 0 : i32
    %c0_i32_1 = arith.constant 0 : i32
    return %arg0, %c0_i32, %c0_i32_0 : i32, i32, i32
  }
  func.func @transform_3(%arg0: i32) -> (i32, i32, i32) {
    %c0_i32 = arith.constant 0 : i32
    %c0_i32_0 = arith.constant 0 : i32
    %c0_i32_1 = arith.constant 0 : i32
    return %arg0, %c0_i32, %c0_i32_0 : i32, i32, i32
  }
  func.func @transform_4(%arg0: i32) -> (i32, i32, i32) {
    %c0_i32 = arith.constant 0 : i32
    %c0_i32_0 = arith.constant 0 : i32
    %c0_i32_1 = arith.constant 0 : i32
    return %arg0, %c0_i32, %c0_i32_0 : i32, i32, i32
  }
  func.func @transform_5(%arg0: i32) -> (i32, i32, i32) {
    %c0_i32 = arith.constant 0 : i32
    %c0_i32_0 = arith.constant 0 : i32
    %c0_i32_1 = arith.constant 0 : i32
    return %arg0, %c0_i32, %c0_i32_0 : i32, i32, i32
  }
  func.func @transform_6(%arg0: i32) -> (i32, i32, i32) {
    %c0_i32 = arith.constant 0 : i32
    %c0_i32_0 = arith.constant 0 : i32
    %c0_i32_1 = arith.constant 0 : i32
    return %arg0, %c0_i32, %c0_i32_0 : i32, i32, i32
  }
  func.func @transform_7(%arg0: i32) -> (i32, i32, i32) {
    %c0_i32 = arith.constant 0 : i32
    %c0_i32_0 = arith.constant 0 : i32
    %c0_i32_1 = arith.constant 0 : i32
    return %arg0, %c0_i32, %c0_i32_0 : i32, i32, i32
  }
  func.func @transform_8(%arg0: i32) -> (i32, i32, i32) {
    %c0_i32 = arith.constant 0 : i32
    %c0_i32_0 = arith.constant 0 : i32
    %c0_i32_1 = arith.constant 0 : i32
    return %arg0, %c0_i32, %c0_i32_0 : i32, i32, i32
  }
  func.func @transform_9(%arg0: i32) -> (i32, i32) {
    %c0_i32 = arith.constant 0 : i32
    %c0_i32_0 = arith.constant 0 : i32
    %c0_i32_1 = arith.constant 0 : i32
    return %c0_i32, %c0_i32_0 : i32, i32
  }
  func.func @transform_10(%arg0: i32) -> (i32, i32) {
    %c0_i32 = arith.constant 0 : i32
    %c0_i32_0 = arith.constant 0 : i32
    %c0_i32_1 = arith.constant 0 : i32
    return %c0_i32, %c0_i32_0 : i32, i32
  }
  func.func @transform_11(%arg0: i32) -> (i32, i32) {
    %c0_i32 = arith.constant 0 : i32
    %c0_i32_0 = arith.constant 0 : i32
    %c0_i32_1 = arith.constant 0 : i32
    return %c0_i32, %c0_i32_0 : i32, i32
  }
  func.func @transform_12(%arg0: i32) -> (i32, i32) {
    %c0_i32 = arith.constant 0 : i32
    %c0_i32_0 = arith.constant 0 : i32
    %c0_i32_1 = arith.constant 0 : i32
    return %c0_i32, %c0_i32_0 : i32, i32
  }
  func.func @transform_13(%arg0: i32) -> (i32, i32) {
    %c0_i32 = arith.constant 0 : i32
    %c0_i32_0 = arith.constant 0 : i32
    %c0_i32_1 = arith.constant 0 : i32
    return %c0_i32, %c0_i32_0 : i32, i32
  }
  func.func @transform_14(%arg0: i32) -> (i32, i32) {
    %c0_i32 = arith.constant 0 : i32
    %c0_i32_0 = arith.constant 0 : i32
    %c0_i32_1 = arith.constant 0 : i32
    return %c0_i32, %c0_i32_0 : i32, i32
  }
  func.func @transform_15(%arg0: i32) -> (i32, i32) {
    %c0_i32 = arith.constant 0 : i32
    %c0_i32_0 = arith.constant 0 : i32
    %c0_i32_1 = arith.constant 0 : i32
    return %c0_i32, %c0_i32_0 : i32, i32
  }
  func.func @transform_16(%arg0: i32) -> (i32, i32) {
    %c0_i32 = arith.constant 0 : i32
    %c0_i32_0 = arith.constant 0 : i32
    %c0_i32_1 = arith.constant 0 : i32
    return %c0_i32, %c0_i32_0 : i32, i32
  }
  func.func @transform_17(%arg0: i32) -> (i32, i32) {
    %c0_i32 = arith.constant 0 : i32
    %c0_i32_0 = arith.constant 0 : i32
    %c0_i32_1 = arith.constant 0 : i32
    return %c0_i32, %c0_i32_0 : i32, i32
  }
  func.func @transform_18(%arg0: i32) -> (i32, i32) {
    %c0_i32 = arith.constant 0 : i32
    %c0_i32_0 = arith.constant 0 : i32
    %c0_i32_1 = arith.constant 0 : i32
    return %c0_i32, %c0_i32_0 : i32, i32
  }
  func.func @transform_19(%arg0: i32) -> (i32, i32) {
    %c0_i32 = arith.constant 0 : i32
    %c0_i32_0 = arith.constant 0 : i32
    %c0_i32_1 = arith.constant 0 : i32
    return %c0_i32, %c0_i32_0 : i32, i32
  }
  func.func @transform_20(%arg0: i32) -> (i32, i32) {
    %c0_i32 = arith.constant 0 : i32
    %c0_i32_0 = arith.constant 0 : i32
    %c0_i32_1 = arith.constant 0 : i32
    return %c0_i32, %c0_i32_0 : i32, i32
  }
  func.func @transform_21(%arg0: i32) -> (i32, i32) {
    %c0_i32 = arith.constant 0 : i32
    %c0_i32_0 = arith.constant 0 : i32
    %c0_i32_1 = arith.constant 0 : i32
    return %c0_i32, %c0_i32_0 : i32, i32
  }
  func.func @transform_22(%arg0: i32) -> (i32, i32) {
    %c0_i32 = arith.constant 0 : i32
    %c0_i32_0 = arith.constant 0 : i32
    %c0_i32_1 = arith.constant 0 : i32
    return %c0_i32, %c0_i32_0 : i32, i32
  }
  func.func @transform_23(%arg0: i32) -> (i32, i32) {
    %c0_i32 = arith.constant 0 : i32
    %c0_i32_0 = arith.constant 0 : i32
    %c0_i32_1 = arith.constant 0 : i32
    return %c0_i32, %c0_i32_0 : i32, i32
  }
  func.func @transform_24(%arg0: i32) -> (i32, i32) {
    %c0_i32 = arith.constant 0 : i32
    %c0_i32_0 = arith.constant 0 : i32
    %c0_i32_1 = arith.constant 0 : i32
    return %c0_i32, %c0_i32_0 : i32, i32
  }
  func.func @transform_25(%arg0: i32) -> (i32, i32) {
    %c0_i32 = arith.constant 0 : i32
    %c0_i32_0 = arith.constant 0 : i32
    %c0_i32_1 = arith.constant 0 : i32
    return %c0_i32, %c0_i32_0 : i32, i32
  }
  func.func @transform_26(%arg0: i32) -> (i32, i32) {
    %c0_i32 = arith.constant 0 : i32
    %c0_i32_0 = arith.constant 0 : i32
    %c0_i32_1 = arith.constant 0 : i32
    return %c0_i32, %c0_i32_0 : i32, i32
  }
  func.func @transform_27(%arg0: i32) -> (i32, i32) {
    %c0_i32 = arith.constant 0 : i32
    %c0_i32_0 = arith.constant 0 : i32
    %c0_i32_1 = arith.constant 0 : i32
    return %c0_i32, %c0_i32_0 : i32, i32
  }
  func.func @transform_28(%arg0: i32) -> (i32, i32) {
    %c0_i32 = arith.constant 0 : i32
    %c0_i32_0 = arith.constant 0 : i32
    %c0_i32_1 = arith.constant 0 : i32
    return %c0_i32, %c0_i32_0 : i32, i32
  }
  func.func @transform_29(%arg0: i32) -> (i32, i32) {
    %c0_i32 = arith.constant 0 : i32
    %c0_i32_0 = arith.constant 0 : i32
    %c0_i32_1 = arith.constant 0 : i32
    return %c0_i32, %c0_i32_0 : i32, i32
  }
  func.func @transform_30(%arg0: i32) -> (i32, i32) {
    %c0_i32 = arith.constant 0 : i32
    %c0_i32_0 = arith.constant 0 : i32
    %c0_i32_1 = arith.constant 0 : i32
    return %c0_i32, %c0_i32_0 : i32, i32
  }
  func.func @transform_31(%arg0: i32) -> (i32, i32) {
    %c0_i32 = arith.constant 0 : i32
    %c0_i32_0 = arith.constant 0 : i32
    %c0_i32_1 = arith.constant 0 : i32
    return %c0_i32, %c0_i32_0 : i32, i32
  }
  func.func @transform_32(%arg0: i32) -> (i32, i32) {
    %c0_i32 = arith.constant 0 : i32
    %c0_i32_0 = arith.constant 0 : i32
    %c0_i32_1 = arith.constant 0 : i32
    return %c0_i32, %c0_i32_0 : i32, i32
  }
  func.func @transform_33(%arg0: i32) -> (i32, i32) {
    %c0_i32 = arith.constant 0 : i32
    %c0_i32_0 = arith.constant 0 : i32
    %c0_i32_1 = arith.constant 0 : i32
    return %c0_i32, %c0_i32_0 : i32, i32
  }
  func.func @transform_34(%arg0: i32) -> (i32, i32, i32, i32) {
    %c0_i32 = arith.constant 0 : i32
    %c0_i32_0 = arith.constant 0 : i32
    %c0_i32_1 = arith.constant 0 : i32
    %c0_i32_2 = arith.constant 0 : i32
    return %arg0, %c0_i32, %c0_i32_0, %c0_i32_1 : i32, i32, i32, i32
  }
}

</mosaic_0001>

<bundles_post_ra>
// kernel: conflictnet_forward.3
= control target key start
LH: loop header
LB: loop body
LE: loop exit
PB: predicated region body
PF: predicated region fallthrough
CT: control target
= control target key end

     0   :  { %s8671_s6 = smov 1   ;;  %s8672_s10 = smov 2   ;;  %s10484_s0 = inlined_call_operand.smem [shape: u32[35], index: -1, kind: input, shape index: {}] }
   0x1   :  { %s8718_s5 = sld [smem:[%s10484_s0]]   ;;  %s8673_s14 = smov 3  }
   0x2   :  { %s8723_s9 = sld [smem:[%s10484_s0 + %s8671_s6]]   ;;  %s8674_s18 = smov 4  }
   0x3   :  { %s8728_s13 = sld [smem:[%s10484_s0 + %s8672_s10]]   ;;  %s8675_s22 = smov 5  }
   0x4   :  { %s8733_s17 = sld [smem:[%s10484_s0 + %s8673_s14]]   ;;  %s8676_s26 = smov 6  }
   0x5   :  { %s8738_s21 = sld [smem:[%s10484_s0 + %s8674_s18]]   ;;  %s8677_s30 = smov 7  }
   0x6   :  { %s8743_s25 = sld [smem:[%s10484_s0 + %s8675_s22]]   ;;  %s8678_s4 = smov 8  }
   0x7   :  { %10576 = sst [smem:[#allocation4_spill]] %s8718_s5  ;;  %s8679_s10 = smov 9  }
   0x8   :  { %10577 = sst [smem:[#allocation5_spill]] %s8723_s9  ;;  %s8680_s15 = smov 10  }
   0x9   :  { %10578 = sst [smem:[#allocation6_spill]] %s8728_s13  ;;  %s8681_s20 = smov 11  }
   0xa   :  { %10579 = sst [smem:[#allocation7_spill]] %s8733_s17  ;;  %s8683_s1 = smov 13  }
   0xb   :  { %10580 = sst [smem:[#allocation8_spill]] %s8738_s21  ;;  %s8684_s7 = smov 14  }
   0xc   :  { %10581 = sst [smem:[#allocation9_spill]] %s8743_s25  ;;  %s8686_s22 = smov 16  }
   0xd   :  { %s8748_s29 = sld [smem:[%s10484_s0 + %s8676_s26]]   ;;  %s8682_s26 = smov 12  }
   0xe   :  { %s8753_s3 = sld [smem:[%s10484_s0 + %s8677_s30]]   ;;  %s8687_s28 = smov 17  }
   0xf   :  { %s8758_s8 = sld [smem:[%s10484_s0 + %s8678_s4]]   ;;  %s8693_s16 = smov 23  }
  0x10   :  { %s8763_s14 = sld [smem:[%s10484_s0 + %s8679_s10]]   ;;  %s8692_s10 = smov 22  }
  0x11   :  { %s8768_s19 = sld [smem:[%s10484_s0 + %s8680_s15]]   ;;  %s8685_s15 = smov 15  }
  0x12   :  { %s8773_s24 = sld [smem:[%s10484_s0 + %s8681_s20]]   ;;  %s8694_s23 = smov 24  }
  0x13   :  { %10582 = sst [smem:[#allocation10_spill]] %s8748_s29 }
  0x14   :  { %10583 = sst [smem:[#allocation11_spill]] %s8753_s3 }
  0x15   :  { %10584 = sst [smem:[#allocation12_spill]] %s8758_s8 }
  0x16   :  { %s8778_s30 = sld [smem:[%s10484_s0 + %s8682_s26]]  }
  0x17   :  { %s8783_s6 = sld [smem:[%s10484_s0 + %s8683_s1]]   ;;  %s8691_s1 = smov 21  }
  0x18   :  { %s8788_s12 = sld [smem:[%s10484_s0 + %s8684_s7]]   ;;  %s8688_s7 = smov 18  }
  0x19   :  { %s8793_s20 = sld [smem:[%s10484_s0 + %s8685_s15]]   ;;  %s8689_s15 = smov 19  }
  0x1a   :  { %s8798_s27 = sld [smem:[%s10484_s0 + %s8686_s22]]   ;;  %s8690_s22 = smov 20  }
  0x1b   :  { %s8803_s4 = sld [smem:[%s10484_s0 + %s8687_s28]]   ;;  %s8699_s28 = smov 29  }
  0x1c   :  { %s8808_s3 = sld [smem:[%s10484_s0 + %s8688_s7]]  }
  0x1d   :  { %s8813_s29 = sld [smem:[%s10484_s0 + %s8689_s15]]  }
  0x1e   :  { %s7291_s25 = sld [smem:[%s10484_s0 + %s8690_s22]]  }
  0x1f   :  { %10585 = sst [smem:[#allocation13_spill]] %s8793_s20 }
  0x20   :  { %s8836_s20 = sld [smem:[%s10484_s0 + %s8694_s23]]   ;;  %s8698_s23 = smov 28  }
  0x21   :  { %10586 = sst [smem:[#allocation14_spill]] %s8803_s4 }
  0x22   :  { %10587 = sst [smem:[#allocation15_spill]] %s8808_s3 }
  0x23   :  { %10588 = sst [smem:[#allocation16_spill]] %s8813_s29 }
  0x24   :  { %s8821_s4 = sld [smem:[%s10484_s0 + %s8691_s1]]   ;;  %s8695_s1 = smov 25   ;;  %v74_v0 = vstv %s7291_s25 }
  0x25   :  { %s8826_s3 = sld [smem:[%s10484_s0 + %s8692_s10]]   ;;  %s8696_s10 = smov 26   ;;  %75 = vst [vmem:[#allocation2] sm:$0x1] %v74_v0 }
  0x26   :  { %s8831_s29 = sld [smem:[%s10484_s0 + %s8693_s16]]   ;;  %s8697_s16 = smov 27  }
  0x27   :  { %10592 = sst [smem:[#allocation20_spill]] %s8836_s20  ;;  %s8700_s25 = smov 30  }
  0x28   :  { %s8851_s22 = sld [smem:[%s10484_s0 + %s8697_s16]]   ;;  %s8701_s16 = smov 31  }
  0x29   :  { %s8866_s15 = sld [smem:[%s10484_s0 + %s8700_s25]]   ;;  %s8702_s20 = smov 32  }
  0x2a   :  { %10589 = sst [smem:[#allocation17_spill]] %s8821_s4  ;;  %s8704_s25 = smov 33  }
  0x2b   :  { %10590 = sst [smem:[#allocation18_spill]] %s8826_s3 }
  0x2c   :  { %10591 = sst [smem:[#allocation19_spill]] %s8831_s29 }
  0x2d   :  { %s8841_s4 = sld [smem:[%s10484_s0 + %s8695_s1]]  }
  0x2e   :  { %s8846_s3 = sld [smem:[%s10484_s0 + %s8696_s10]]  }
  0x2f   :  { %10595 = sst [smem:[#allocation23_spill]] %s8851_s22 }
  0x30   :  { %s8856_s1 = sld [smem:[%s10484_s0 + %s8698_s23]]  }
  0x31   :  { %s8861_s10 = sld [smem:[%s10484_s0 + %s8699_s28]]  }
  0x32   :  { %10598 = sst [smem:[#allocation26_spill]] %s8866_s15 }
  0x33   :  { %10593 = sst [smem:[#allocation21_spill]] %s8841_s4  ;;  %s8703_s4 = smov 34  }
  0x34   :  { %10594 = sst [smem:[#allocation22_spill]] %s8846_s3  ;;  %s8886_s3 = smov 0  }
  0x35   :  { %s8871_s22 = sld [smem:[%s10484_s0 + %s8701_s16]]  }
  0x36   :  { %10596 = sst [smem:[#allocation24_spill]] %s8856_s1 }
  0x37   :  { %10597 = sst [smem:[#allocation25_spill]] %s8861_s10 }
  0x38   :  { %s8876_s1 = sld [smem:[%s10484_s0 + %s8702_s20]]  }
  0x39   :  { %s8881_s10 = sld [smem:[%s10484_s0 + %s8703_s4]]  }
  0x3a   :  { %s7304_s15 = sld [smem:[%s10484_s0 + %s8704_s25]]  }
  0x3f   :  { %10599 = sst [smem:[#allocation27_spill]] %s8881_s10 }
  0x40   :  { %v76_v1 = vstv %s7304_s15 }
  0x41   :  { %77 = vst [vmem:[#allocation3] sm:$0x1] %v76_v1 }
  0x42 LB: > { %s10600_s29 = sld [smem:[#allocation19_spill]]  ;;  %10601 = sst [smem:[#allocation28_spill]] %s8669_s3  ;;  %s8669_s3 = sphi %s8886_s3, %s83_s3  }
  0x43   : > { %s7306_s16 = sadd.s32 4294967295, %s8669_s3   ;;  %p7310_p0 = scmp.ge.s32.totalorder %s8669_s3, 1 }
  0x44   : > { %p1031_p1 = scmp.lt.s32.totalorder %s8669_s3, 3 }
  0x46   : > { %p1032_p2 = pnand %p7310_p0, %p1031_p1 }
  0x48   : > { %1035 = sbr.rel (%p1032_p2) target bundleno = 5854 (0x16de), region = 156 }
  0x4f   : > { %p1157_p3 = scmp.lt.s32.totalorder %s7306_s16, 1  ;;  %s10602_s13 = sld [smem:[#allocation6_spill]]  ;;  %v8705_v2 = vmov 0   ;;  %v1235_v9 = vld [vmem:[%s8773_s24] sm:$0xff]  ;;  %vm1263_vm0 = vcmask 130048   ;;  %v1232_v12 = vld [vmem:[%s8763_s14 + $0x8] sm:$0xff] }
  0x50   : > { %s10603_s9 = sld [smem:[#allocation5_spill]]  ;;  %s10604_s5 = sld [smem:[#allocation4_spill]]  ;;  %8574 = vset.pattern.permute.xlu1 %v8705_v2  ;;  %8573 = vset.pattern.permute.xlu0 %v8705_v2  ;;  %v1231_v11 = vld [vmem:[%s8763_s14] sm:$0xff]  ;;  %vm1538_vm3 = vcmask 1045504   ;;  %vm1531_vm4 = vcmask 48128   ;;  %vm2455_vm5 = vcmask 64512  }
  0x51   : > { %s10766_s16 = smov (!%p1157_p3, %s7306_s16), 1  ;;  %s10605_s21 = sld [smem:[#allocation8_spill]]  ;;  %7945 = vmatprep.mubr.msk.f32.mxu1 %vm1263_vm0, %v1235_v9  ;;  %7938 = vmatprep.mubr.msk.f32.mxu0 %vm1263_vm0, %v1231_v11  ;;  %v1239_v49 = vld [vmem:[%s8783_s6] sm:$0x3f]  ;;  %vm3288_vm10 = vcmask 7168   ;;  %vm3291_vm11 = vcmask 15360  }
  0x52   : > { %s8897_s0 = sshll.u32 %s10766_s16, 4  ;;  %s10606_s17 = sld [smem:[#allocation7_spill]]  ;;  %vm3296_vm12 = vcmask 113664  }
  0x53   : > { %s10611_s8 = sld [smem:[#allocation12_spill]]  ;;  %s7636_s4 = sshll.u32 %s10766_s16, 6 }
  0x54   : > { %s10612_s2 = sld [smem:[#allocation13_spill]]  ;;  %s10613_s25 = sld [smem:[#allocation18_spill]] }
  0x55   : > { %s1171_s15 = scalar_lea.vmem %s10602_s13, %s8897_s0  ;;  %s10614_s7 = sld [smem:[#allocation17_spill]] }
  0x56   : > { %v1211_v3 = vld [vmem:[%s1171_s15] sm:$0xff]  ;;  %s1166_s18 = scalar_lea.vmem %s10603_s9, %s8897_s0  ;;  %v1212_v5 = vld [vmem:[%s1171_s15 + $0x8] sm:$0xff]  ;;  %s8905_s20 = scalar_lea.vmem %s10604_s5, %s8897_s0 }
  0x57   : > { %1359 = vperm.xlu0 %8573, %v1211_v3   ;;  %v1209_v4 = vld [vmem:[%s1166_s18] sm:$0xff]  ;;  %v1210_v6 = vld [vmem:[%s1166_s18 + $0x8] sm:$0xff]  ;;  %s8931_s23 = scalar_lea.vmem %s10605_s21, %s8897_s0  ;;  %s10615_s11 = sld [smem:[#allocation14_spill]] }
  0x58   : > { %1347 = vperm.xlu1 %8574, %v1209_v4   ;;  %v8908_v7 = vld [vmem:[%s8905_s20] sm:$0xff]  ;;  %v8911_v8 = vld [vmem:[%s8905_s20 + $0x8] sm:$0xff]  ;;  %s8935_s26 = scalar_lea.vmem %s10606_s17, %s8897_s0  ;;  %s10616_s15 = sld [smem:[#allocation9_spill]] }
  0x59   : > { %v8916_v10 = vpack.c.bf16 %v8911_v8, %v8908_v7  ;;  %vm1703_vm1 = vcmp.eq.f32.partialorder %v8908_v7, 0.0  ;;  %vm1704_vm2 = vcmp.eq.f32.partialorder %v8911_v8, 0.0  ;;  %v1215_v16 = vld [vmem:[%s8931_s23] sm:$0xff]  ;;  %v1216_v18 = vld [vmem:[%s8931_s23 + $0x8] sm:$0xff]  ;;  %s9090_s28 = scalar_lea.vmem %s10611_s8, %s7636_s4  ;;  %s10618_s18 = sld [smem:[#allocation16_spill]] }
  0x5a   : > { %v1705_v13 = vsel %vm1703_vm1, 1.0, %v8908_v7  ;;  %v1706_v14 = vsel %vm1704_vm2, 1.0, %v8911_v8  ;;  %v1213_v19 = vld [vmem:[%s8935_s26] sm:$0xff]  ;;  %v1214_v21 = vld [vmem:[%s8935_s26 + $0x8] sm:$0xff]  ;;  %s10619_s5 = sld [smem:[#allocation10_spill]]  ;;  %s10620_s8 = sld [smem:[#allocation15_spill]] }
  0x5b   : > { %1364 = vperm.xlu0 %8573, %v1212_v5   ;;  %8247 = vmatprep.subr.bf16.mxu0 %v8916_v10  ;;  %8575 = vrcp.f32 %v1705_v13  ;;  %s10623_s9 = sld [smem:[#allocation21_spill]]  ;;  %s10626_s13 = sld [smem:[#allocation26_spill]] }
  0x5c   : > { %1352 = vperm.xlu1 %8574, %v1210_v6   ;;  %8249 = vmatpush3.bf16.msra.mxu0 %v8916_v10  ;;  %8577 = vrcp.f32 %v1706_v14  ;;  %s10630_s17 = sld [smem:[#allocation22_spill]]  ;;  %s10637_s21 = sld [smem:[#allocation11_spill]] }
  0x5d   : > { %7955 = vmatprep.subr.msk.mxu0 %vm1538_vm3, %v1239_v49  ;;  %s10640_s3 = sld [smem:[#allocation25_spill]] }
  0x5e   : > { %s9275_s4 = scalar_lea.vmem %s10616_s15, %s8897_s0 }
  0x5f   : > { %7939 = vmatmul.mubr.msk.f32.vlgmr.msra.gmra.mrb[0].mxu0 %vm1263_vm0, %v1232_v12 }
  0x60   : > { %7956 = vmatpush3.msk.msra.mxu0 %vm1538_vm3, %v1239_v49  ;;  %s9293_s15 = scalar_lea.vmem %s10619_s5, %s8897_s0  ;;  %s10625_s5 = sld [smem:[#allocation23_spill]] }
  0x63   : > { %s10641_s10 = smov %s10640_s3 }
  0x65   : > { %v8576_v15 = vpop.eup %8575 }
  0x66   : > { %v8578_v17 = vpop.eup %8577  ;;  %v1715_v20 = vmul.f32 %v8576_v15, %v1215_v16  ;;  %v1709_v23 = vmul.f32 %v8576_v15, %v1213_v19 }
  0x67   : > { %v1716_v22 = vmul.f32 %v8578_v17, %v1216_v18  ;;  %v1710_v24 = vmul.f32 %v8578_v17, %v1214_v21 }
  0x68   : > { %v7344_v25 = vclamps-f32 %v1715_v20, 2.0  ;;  %v7342_v27 = vclamps-f32 %v1709_v23, 2.0 }
  0x69   : > { %v7345_v26 = vclamps-f32 %v1716_v22, 2.0  ;;  %v7343_v29 = vclamps-f32 %v1710_v24, 2.0 }
  0x6a   : > { %v8941_v28 = vadd.f32 0.5, %v7344_v25  ;;  %v8943_v30 = vadd.f32 -0.5, %v7344_v25  ;;  %v8949_v33 = vadd.f32 -0.5, %v7342_v27  ;;  %v8951_v34 = vadd.f32 0.5, %v7342_v27 }
  0x6b   : > { %v8945_v31 = vadd.f32 0.5, %v7345_v26  ;;  %v8947_v32 = vadd.f32 -0.5, %v7345_v26  ;;  %v8953_v35 = vadd.f32 -0.5, %v7343_v29  ;;  %v8955_v36 = vadd.f32 0.5, %v7343_v29 }
  0x6c   : > { %v7374_v37 = vadd.f32 -0.5, %v8943_v30  ;;  %v7376_v38 = vadd.f32 -1.5, %v8941_v28  ;;  %v7360_v41 = vadd.f32 -2.5, %v8949_v33  ;;  %v7362_v42 = vadd.f32 -3.5, %v8951_v34 }
  0x6d   : > { %v7375_v39 = vadd.f32 -0.5, %v8947_v32  ;;  %v7377_v40 = vadd.f32 -1.5, %v8945_v31  ;;  %v7361_v43 = vadd.f32 -2.5, %v8953_v35  ;;  %v7363_v44 = vadd.f32 -3.5, %v8955_v36 }
  0x6e   : > { %v1829_v45 = vmax.f32 %v7374_v37, 0.0  ;;  %v1835_v46 = vmax.f32 %v7376_v38, 0.0  ;;  %v1775_v50 = vmax.f32 %v7360_v41, 0.0  ;;  %v1781_v51 = vmax.f32 %v7362_v42, 0.0 }
  0x6f   : > { %v1830_v47 = vmax.f32 %v7375_v39, 0.0  ;;  %v1836_v48 = vmax.f32 %v7377_v40, 0.0  ;;  %v1776_v52 = vmax.f32 %v7361_v43, 0.0  ;;  %v1782_v53 = vmax.f32 %v7363_v44, 0.0 }
  0x70   : > { %v1831_v54 = vadd.f32 0.5, %v1829_v45  ;;  %v1837_v55 = vsub.f32 %v8941_v28, %v1835_v46  ;;  %v1777_v58 = vadd.f32 2.5, %v1775_v50  ;;  %v1783_v60 = vsub.f32 %v8951_v34, %v1781_v51 }
  0x71   : > { %v1832_v56 = vadd.f32 0.5, %v1830_v47  ;;  %v1838_v57 = vsub.f32 %v8945_v31, %v1836_v48  ;;  %v1778_v59 = vadd.f32 2.5, %v1776_v52  ;;  %v1784_v61 = vsub.f32 %v8955_v36, %v1782_v53 }
  0x72   : > { %v1839_v62 = vsub.f32 %v1837_v55, %v1831_v54  ;;  %v7348_v0 = vadd.f32 0.5, %v8949_v33  ;;  %v7350_v1 = vadd.f32 -0.5, %v8951_v34  ;;  %v7349_v2 = vadd.f32 0.5, %v8953_v35 }
  0x73   : > { %v1840_v63 = vsub.f32 %v1838_v57, %v1832_v56  ;;  %v1785_v3 = vsub.f32 %v1783_v60, %v1777_v58  ;;  %v1786_v4 = vsub.f32 %v1784_v61, %v1778_v59  ;;  %v7351_v6 = vadd.f32 -0.5, %v8955_v36 }
  0x74   : > { %v1841_v5 = vmax.f32 %v1839_v62, 0.0  ;;  %v1725_v11 = vmax.f32 %v7348_v0, 0.0  ;;  %v1733_v12 = vmax.f32 %v7350_v1, 0.0  ;;  %v7370_v13 = vadd.f32 0.5, %v8943_v30 }
  0x75   : > { %v1842_v9 = vmax.f32 %v1840_v63, 0.0  ;;  %v7371_v14 = vadd.f32 0.5, %v8947_v32  ;;  %v7372_v15 = vadd.f32 -0.5, %v8941_v28  ;;  %v1726_v16 = vmax.f32 %v7349_v2, 0.0 }
  0x76   : > { %v7373_v17 = vadd.f32 -0.5, %v8945_v31  ;;  %v8980_v18 = vmax.f32 %v1785_v3, 0.0  ;;  %v8982_v19 = vmax.f32 %v1786_v4, 0.0  ;;  %v8985_v20 = vmul.f32 %v1841_v5, %v8908_v7 }
  0x77   : > { %v1734_v21 = vmax.f32 %v7351_v6, 0.0  ;;  %v8988_v22 = vmul.f32 %v1842_v9, %v8911_v8  ;;  %v1727_v23 = vadd.f32 -0.5, %v1725_v11  ;;  %v1735_v24 = vsub.f32 %v8951_v34, %v1733_v12 }
  0x78   : > { %v1809_v25 = vmax.f32 %v7370_v13, 0.0  ;;  %v1810_v26 = vmax.f32 %v7371_v14, 0.0  ;;  %v1817_v27 = vmax.f32 %v7372_v15, 0.0  ;;  %v8991_v29 = vadd.f32 -0.5, %v1726_v16 }
  0x79   : > { %v1818_v37 = vmax.f32 %v7373_v17, 0.0  ;;  %v7364_v38 = vadd.f32 -3.5, %v8949_v33  ;;  %v8996_v39 = vmul.f32 %v8985_v20, %v8980_v18  ;;  %v8999_v40 = vsub.f32 %v8955_v36, %v1734_v21 }
  0x7a   : > { %v7365_v41 = vadd.f32 -3.5, %v8953_v35  ;;  %v7366_v42 = vadd.f32 -4.5, %v8951_v34  ;;  %v9005_v43 = vmul.f32 %v8988_v22, %v8982_v19  ;;  %v1737_v44 = vsub.f32 %v1735_v24, %v1727_v23 }
  0x7b   : > { %v1811_v45 = vadd.f32 -0.5, %v1809_v25  ;;  %v7367_v46 = vadd.f32 -4.5, %v8955_v36  ;;  %v1812_v47 = vadd.f32 -0.5, %v1810_v26  ;;  %v1819_v48 = vsub.f32 %v8941_v28, %v1817_v27 }
  0x7c   : > { %v7378_v49 = vadd.f32 -1.5, %v8943_v30  ;;  %v7379_v50 = vadd.f32 -1.5, %v8947_v32  ;;  %v1820_v51 = vsub.f32 %v8945_v31, %v1818_v37  ;;  %v1791_v52 = vmax.f32 %v7364_v38, 0.0 }
  0x7d   : > { %v7380_v53 = vadd.f32 -2.5, %v8941_v28  ;;  %v7381_v54 = vadd.f32 -2.5, %v8945_v31  ;;  %v1792_v55 = vmax.f32 %v7365_v41, 0.0  ;;  %v1797_v56 = vmax.f32 %v7366_v42, 0.0 }
  0x7e   : > { %v7352_v57 = vadd.f32 -0.5, %v8949_v33  ;;  %v7353_v58 = vadd.f32 -0.5, %v8953_v35  ;;  %v1738_v59 = vsub.f32 %v8999_v40, %v8991_v29  ;;  %v1798_v60 = vmax.f32 %v7367_v46, 0.0 }
  0x7f   : > { %v7354_v61 = vadd.f32 -1.5, %v8951_v34  ;;  %v7355_v62 = vadd.f32 -1.5, %v8955_v36  ;;  %v9020_v63 = vmax.f32 %v1737_v44, 0.0  ;;  %v1821_v0 = vsub.f32 %v1819_v48, %v1811_v45 }
  0x80   : > { %v1847_v1 = vmax.f32 %v7378_v49, 0.0  ;;  %v1848_v2 = vmax.f32 %v7379_v50, 0.0  ;;  %v1822_v3 = vsub.f32 %v1820_v51, %v1812_v47  ;;  %v1793_v4 = vadd.f32 3.5, %v1791_v52 }
  0x81   : > { %v1853_v5 = vmax.f32 %v7380_v53, 0.0  ;;  %v1854_v6 = vmax.f32 %v7381_v54, 0.0  ;;  %v1794_v9 = vadd.f32 3.5, %v1792_v55  ;;  %v1799_v11 = vsub.f32 %v8951_v34, %v1797_v56 }
  0x82   : > { %v1743_v12 = vmax.f32 %v7352_v57, 0.0  ;;  %v1744_v13 = vmax.f32 %v7353_v58, 0.0  ;;  %v1800_v15 = vsub.f32 %v8955_v36, %v1798_v60  ;;  %v1749_v16 = vmax.f32 %v7354_v61, 0.0 }
  0x83   : > { %v1750_v17 = vmax.f32 %v7355_v62, 0.0  ;;  %v7356_v21 = vadd.f32 -1.5, %v8949_v33  ;;  %v1823_v23 = vmax.f32 %v1821_v0, 0.0  ;;  %v1849_v24 = vadd.f32 1.5, %v1847_v1 }
  0x84   : > { %v1850_v25 = vadd.f32 1.5, %v1848_v2  ;;  %v7358_v26 = vadd.f32 -2.5, %v8951_v34  ;;  %v1855_v29 = vsub.f32 %v8941_v28, %v1853_v5  ;;  %v1856_v37 = vsub.f32 %v8945_v31, %v1854_v6 }
  0x85   : > { %v7357_v38 = vadd.f32 -1.5, %v8953_v35  ;;  %v7359_v40 = vadd.f32 -2.5, %v8955_v36  ;;  %v1824_v41 = vmax.f32 %v1822_v3, 0.0  ;;  %v1801_v42 = vsub.f32 %v1799_v11, %v1793_v4 }
  0x86   : > { %v1745_v44 = vadd.f32 0.5, %v1743_v12  ;;  %v1746_v45 = vadd.f32 0.5, %v1744_v13  ;;  %v1802_v46 = vsub.f32 %v1800_v15, %v1794_v9  ;;  %v1751_v47 = vsub.f32 %v8951_v34, %v1749_v16  ;;  %v1233_v16 = vld [vmem:[%s8768_s19] sm:$0xff] }
  0x87   : > { %v1752_v48 = vsub.f32 %v8955_v36, %v1750_v17  ;;  %v1759_v49 = vmax.f32 %v7356_v21, 0.0  ;;  %v1765_v52 = vmax.f32 %v7358_v26, 0.0  ;;  %v1857_v54 = vsub.f32 %v1855_v29, %v1849_v24 }
  0x88   : > { %v1858_v55 = vsub.f32 %v1856_v37, %v1850_v25  ;;  %v1760_v56 = vmax.f32 %v7357_v38, 0.0  ;;  %v1766_v57 = vmax.f32 %v7359_v40, 0.0  ;;  %v9048_v61 = vmax.f32 %v1738_v59, 0.0  ;;  %v1236_v59 = vld [vmem:[%s8773_s24 + $0x8] sm:$0xff] }
  0x89   : > { %v9051_v62 = vmul.f32 %v1823_v23, %v8908_v7  ;;  %v9054_v0 = vmul.f32 %v1824_v41, %v8911_v8  ;;  %v9056_v1 = vmax.f32 %v1801_v42, 0.0  ;;  %v9058_v2 = vmax.f32 %v1802_v46, 0.0 }
  0x8a   : > { %v1753_v3 = vsub.f32 %v1751_v47, %v1745_v44  ;;  %v1754_v5 = vsub.f32 %v1752_v48, %v1746_v45  ;;  %v1761_v6 = vadd.f32 1.5, %v1759_v49  ;;  %v1767_v9 = vsub.f32 %v8951_v34, %v1765_v52  ;;  %v1234_v47 = vld [vmem:[%s8768_s19 + $0x8] sm:$0xff] }
  0x8b   : > { %v1859_v11 = vmax.f32 %v1857_v54, 0.0  ;;  %v1860_v12 = vmax.f32 %v1858_v55, 0.0  ;;  %v1762_v13 = vadd.f32 1.5, %v1760_v56  ;;  %v1768_v15 = vsub.f32 %v8955_v36, %v1766_v57  ;;  %v1224_v56 = vld [vmem:[%s9090_s28 + $0x8] sm:$0xff] }
  0x8c   : > { %v8258_v17 = vpack.c.bf16 %v9005_v43, %v8996_v39  ;;  %v1899_v21 = vmul.f32 %v9051_v62, %v9020_v63  ;;  %v1900_v23 = vmul.f32 %v9054_v0, %v9048_v61  ;;  %v1917_v34 = vmul.f32 %v8985_v20, %v9056_v1 }
  0x8d   : > { %v1918_v36 = vmul.f32 %v8988_v22, %v9058_v2  ;;  %v9075_v24 = vmax.f32 %v1753_v3, 0.0  ;;  %v9077_v25 = vmax.f32 %v1754_v5, 0.0  ;;  %v1769_v39 = vsub.f32 %v1767_v9, %v1761_v6 }
  0x8e   : > { %v1861_v43 = vmul.f32 %v1859_v11, %v8908_v7  ;;  %v9083_v26 = vmul.f32 %v1860_v12, %v8911_v8  ;;  %v1770_v29 = vsub.f32 %v1768_v15, %v1762_v13  ;;  %v7382_v37 = vadd.f32 -2.5, %v8943_v30 }
  0x8f   : > { %v7383_v38 = vadd.f32 -2.5, %v8947_v32  ;;  %v7384_v40 = vadd.f32 -3.5, %v8941_v28  ;;  %v7385_v41 = vadd.f32 -3.5, %v8945_v31  ;;  %v8260_v42 = vpack.c.bf16 %v1900_v23, %v1899_v21 }
  0x90   : > { %v1901_v44 = vmul.f32 %v9051_v62, %v9075_v24  ;;  %v1902_v45 = vmul.f32 %v9054_v0, %v9077_v25  ;;  %v9096_v46 = vmax.f32 %v1769_v39, 0.0  ;;  %v8262_v48 = vpack.c.bf16 %v1918_v36, %v1917_v34 }
  0x91   : > { %v1919_v49 = vmul.f32 %v1861_v43, %v9020_v63  ;;  %v1866_v52 = vmax.f32 %v7383_v38, 0.0  ;;  %v1871_v54 = vmax.f32 %v7384_v40, 0.0  ;;  %v1872_v55 = vmax.f32 %v7385_v41, 0.0 }
  0x92   : > { %v8264_v57 = vpack.c.bf16 %v1902_v45, %v1901_v44  ;;  %v1922_v5 = vmul.f32 %v9083_v26, %v9077_v25  ;;  %v1905_v13 = vmul.f32 %v9051_v62, %v8980_v18  ;;  %v1906_v15 = vmul.f32 %v9054_v0, %v8982_v19 }
  0x93   : > { %v1868_v9 = vadd.f32 2.5, %v1866_v52  ;;  %v1874_v11 = vsub.f32 %v8945_v31, %v1872_v55  ;;  %v1907_v39 = vmul.f32 %v9051_v62, %v9056_v1  ;;  %v1926_v40 = vmul.f32 %v9083_v26, %v8982_v19 }
  0x94   : > { %v8272_v36 = vpack.c.bf16 %v1906_v15, %v1905_v13  ;;  %v1909_v45 = vmul.f32 %v8985_v20, %v9020_v63  ;;  %v1911_v52 = vmul.f32 %v8985_v20, %v9075_v24  ;;  %v9177_v13 = vld [vmem:[%s10612_s2] sm:$0x3f]  ;;  %v7386_v15 = vadd.f32 -3.5, %v8943_v30 }
  0x95   : > { %v1876_v34 = vsub.f32 %v1874_v11, %v1868_v9  ;;  %v9166_v11 = vld [vmem:[%s8788_s12] sm:$0x3f] }
  0x96   : > { %7960 = vmatprep.subr.msk.mxu0 %vm1538_vm3, %v9166_v11 }
  0xd6   : > { %v9023_v14 = vpop.permute.xlu0 %1359 }
  0xd7   : > { %10607 = vst [vmem:[#allocation29_spill] sm:$0xff] %v9023_v14  ;;  %v9028_v27 = vpop.permute.xlu1 %1347  ;;  %v1367_v35 = vmul.f32 %v9023_v14, %v8908_v7 }
  0xd8   : > { %10608 = vst [vmem:[#allocation30_spill] sm:$0xff] %v9028_v27  ;;  %v1355_v50 = vmul.f32 %v9028_v27, %v8908_v7 }
  0xda   : > { %v9034_v33 = vpop.permute.xlu0 %1364 }
  0xdb   : > { %10609 = vst [vmem:[#allocation31_spill] sm:$0xff] %v9034_v33  ;;  %v1368_v51 = vmul.f32 %v9034_v33, %v8911_v8  ;;  %v9044_v53 = vpop.permute.xlu1 %1352 }
  0xdc   : > { %10610 = vst [vmem:[#allocation32_spill] sm:$0xff] %v9044_v53  ;;  %v1356_v58 = vmul.f32 %v9044_v53, %v8911_v8 }
  0xdd   : > { %v8250_v60 = vpack.c.bf16 %v1368_v51, %v1367_v35  ;;  %v9102_v35 = vmax.f32 %v1770_v29, 0.0  ;;  %v1865_v51 = vmax.f32 %v7382_v37, 0.0  ;;  %v1908_v29 = vmul.f32 %v9054_v0, %v9058_v2 }
  0xde   : > { %v8254_v4 = vpack.c.bf16 %v1356_v58, %v1355_v50  ;;  %v1920_v50 = vmul.f32 %v9083_v26, %v9048_v61  ;;  %v1903_v58 = vmul.f32 %v9051_v62, %v9096_v46  ;;  %v1925_v37 = vmul.f32 %v1861_v43, %v8980_v18 }
  0xdf   : > { %8251 = vmatprep.subr.bf16.mxu1 %v8250_v60  ;;  %v1867_v6 = vadd.f32 2.5, %v1865_v51  ;;  %v1924_v21 = vmul.f32 %v9083_v26, %v9102_v35  ;;  %v8276_v44 = vpack.c.bf16 %v1908_v29, %v1907_v39  ;;  %v1910_v62 = vmul.f32 %v8988_v22, %v9048_v61 }
  0xe0   : > { %8253 = vmatpush3.bf16.msra.mxu1 %v8250_v60  ;;  %v1921_v60 = vmul.f32 %v1861_v43, %v9075_v24  ;;  %v8266_v3 = vpack.c.bf16 %v1920_v50, %v1919_v49 }
  0xe1   : > { %8255 = vmatprep.subr.bf16.mxu1 %v8254_v4  ;;  %v8280_v51 = vpack.c.bf16 %v1910_v62, %v1909_v45 }
  0xe3   : > { %7946 = vmatmul.mubr.msk.f32.vlgmr.msra.gmra.mrb[0].mxu1 %vm1263_vm0, %v1236_v59  ;;  %v1873_v59 = vsub.f32 %v8941_v28, %v1871_v54 }
  0xe4   : > { %8257 = vmatpush3.bf16.msra.mxu1 %v8254_v4  ;;  %7952 = vmatprep.mubr.msk.f32.mxu1 %vm1263_vm0, %v1233_v16  ;;  %v1904_v4 = vmul.f32 %v9054_v0, %v9102_v35  ;;  %v1923_v16 = vmul.f32 %v1861_v43, %v9096_v46  ;;  %v8278_v0 = vpack.c.bf16 %v1926_v40, %v1925_v37 }
  0xe5   : > { %8259 = vmatprep.subr.bf16.mxu1 %v8258_v17  ;;  %v8270_v17 = vpack.c.bf16 %v1922_v5, %v1921_v60  ;;  %v1875_v23 = vsub.f32 %v1873_v59, %v1867_v6  ;;  %v1228_v5 = vld [vmem:[%s9090_s28 + $0x28] sm:$0xff]  ;;  %v1237_v6 = vld [vmem:[%s8778_s30] sm:$0xff] }
  0xe6   : > { %v8268_v12 = vpack.c.bf16 %v1904_v4, %v1903_v58  ;;  %v8274_v38 = vpack.c.bf16 %v1924_v21, %v1923_v16  ;;  %v1914_v58 = vmul.f32 %v8988_v22, %v9102_v35  ;;  %v1223_v4 = vld [vmem:[%s9090_s28] sm:$0xff]  ;;  %v7387_v16 = vadd.f32 -3.5, %v8947_v32 }
  0xe7   : > { %v1877_v41 = vmax.f32 %v1875_v23, 0.0  ;;  %v7389_v21 = vadd.f32 -4.5, %v8945_v31  ;;  %v1883_v23 = vmax.f32 %v7386_v15, 0.0 }
  0xe9   : > { %v9137_v49 = vmul.f32 %v1877_v41, %v8908_v7  ;;  %v1890_v39 = vmax.f32 %v7389_v21, 0.0 }
  0xeb   : > { %7953 = vmatmul.mubr.msk.f32.vlgmr.msra.gmra.mrb[0].mxu1 %vm1263_vm0, %v1234_v47  ;;  %v1927_v47 = vmul.f32 %v1861_v43, %v9056_v1  ;;  %v1912_v43 = vmul.f32 %v8988_v22, %v9077_v25  ;;  %v1238_v22 = vld [vmem:[%s8778_s30 + $0x8] sm:$0xff]  ;;  %v1931_v29 = vmul.f32 %v9137_v49, %v9075_v24  ;;  %v1892_v32 = vsub.f32 %v8945_v31, %v1890_v39  ;;  %v1243_v39 = vld [vmem:[%s10615_s11] sm:$0xff] }
  0xec   : > { %8261 = vmatpush3.bf16.msra.mxu1 %v8260_v42  ;;  %2019 = vmatprep.mubr.f32.mxu1 %v1224_v56  ;;  %v1878_v42 = vmax.f32 %v1876_v34, 0.0  ;;  %v1884_v34 = vmax.f32 %v7387_v16, 0.0  ;;  %v1230_v16 = vld [vmem:[%s9090_s28 + $0x38] sm:$0xff] }
  0xed   : > { %8263 = vmatprep.subr.bf16.mxu1 %v8262_v48  ;;  %v1928_v48 = vmul.f32 %v9083_v26, %v9058_v2  ;;  %v1929_v26 = vmul.f32 %v9137_v49, %v9020_v63  ;;  %v8284_v56 = vpack.c.bf16 %v1912_v43, %v1911_v52 }
  0xee   : > { %v9140_v50 = vmul.f32 %v1878_v42, %v8911_v8  ;;  %v1886_v40 = vadd.f32 3.5, %v1884_v34  ;;  %v1248_v34 = vld [vmem:[%s10614_s7] sm:$0x3f] }
  0xef   : > { %v8282_v54 = vpack.c.bf16 %v1928_v48, %v1927_v47  ;;  %v1226_v48 = vld [vmem:[%s9090_s28 + $0x18] sm:$0xff] }
  0xf0   : > { %8265 = vmatpush3.bf16.msra.mxu1 %v8264_v57  ;;  %v1930_v55 = vmul.f32 %v9140_v50, %v9048_v61  ;;  %v1913_v57 = vmul.f32 %v8985_v20, %v9096_v46  ;;  %v1227_v20 = vld [vmem:[%s9090_s28 + $0x20] sm:$0xff]  ;;  %v1932_v37 = vmul.f32 %v9140_v50, %v9077_v25  ;;  %v1934_v45 = vmul.f32 %v9140_v50, %v9102_v35 }
  0xf1   : > { %8267 = vmatprep.subr.bf16.mxu1 %v8266_v3  ;;  %v1894_v47 = vsub.f32 %v1892_v32, %v1886_v40  ;;  %v1936_v31 = vmul.f32 %v9140_v50, %v8982_v19 }
  0xf2   : > { %v8286_v60 = vpack.c.bf16 %v1930_v55, %v1929_v26  ;;  %v8288_v3 = vpack.c.bf16 %v1914_v58, %v1913_v57  ;;  %v8291_v41 = vpack.c.bf16 %v1932_v37, %v1931_v29  ;;  %v1937_v26 = vmul.f32 %v9137_v49, %v9056_v1  ;;  %v1244_v29 = vld [vmem:[%s10615_s11 + $0x8] sm:$0xff]  ;;  %s10624_s11 = sld [smem:[#allocation20_spill]] }
  0xf3   : > { %v1896_v43 = vmax.f32 %v1894_v47, 0.0  ;;  %v1938_v55 = vmul.f32 %v9140_v50, %v9058_v2  ;;  %v9257_v37 = vpack.c.bf16 %v1244_v29, %v1243_v39  ;;  %v1218_v47 = vld [vmem:[%s9275_s4 + $0x8] sm:$0xff] }
  0xf4   : > { %8269 = vmatpush3.bf16.msra.mxu1 %v8268_v12  ;;  %v1242_v12 = vld [vmem:[%s8798_s27] sm:$0x3f] }
  0xf5   : > { %8271 = vmatprep.subr.bf16.mxu1 %v8270_v17  ;;  %v7388_v17 = vadd.f32 -4.5, %v8941_v28  ;;  %v1898_v57 = vmul.f32 %v1896_v43, %v8911_v8  ;;  %v8300_v58 = vpack.c.bf16 %v1938_v55, %v1937_v26  ;;  %10617 = vst [vmem:[#allocation33_spill] sm:$0xff] %v9257_v37  ;;  %v9282_v55 = vld [vmem:[%s10618_s18] sm:$0xff] }
  0xf6   : > { %10621 = vst [vmem:[#allocation34_spill] sm:$0xff] %v9282_v55 }
  0xf7   : > { %v1942_v50 = vmul.f32 %v1898_v57, %v9077_v25 }
  0xf8   : > { %8273 = vmatpush3.bf16.msra.mxu1 %v8272_v36  ;;  %v1889_v36 = vmax.f32 %v7388_v17, 0.0  ;;  %v1229_v17 = vld [vmem:[%s9090_s28 + $0x30] sm:$0xff] }
  0xf9   : > { %8275 = vmatprep.subr.bf16.mxu1 %v8274_v38  ;;  %v1885_v38 = vadd.f32 3.5, %v1883_v23  ;;  %v1249_v23 = vld [vmem:[%s10613_s25] sm:$0x3f] }
  0xfa   : > { %v1891_v30 = vsub.f32 %v8941_v28, %v1889_v36  ;;  %v1935_v28 = vmul.f32 %v9137_v49, %v8980_v18 }
  0xfc   : > { %8277 = vmatpush3.bf16.msra.mxu1 %v8276_v44  ;;  %v1933_v44 = vmul.f32 %v9137_v49, %v9096_v46  ;;  %v1893_v62 = vsub.f32 %v1891_v30, %v1885_v38 }
  0xfd   : > { %8279 = vmatprep.subr.bf16.mxu1 %v8278_v0 }
  0xfe   : > { %v1895_v52 = vmax.f32 %v1893_v62, 0.0 }
 0x100   : > { %8281 = vmatpush3.bf16.msra.mxu1 %v8280_v51  ;;  %v8294_v51 = vpack.c.bf16 %v1934_v45, %v1933_v44 }
 0x101   : > { %8283 = vmatprep.subr.bf16.mxu1 %v8282_v54  ;;  %v8297_v54 = vpack.c.bf16 %v1936_v31, %v1935_v28 }
 0x104   : > { %8285 = vmatpush3.bf16.msra.mxu1 %v8284_v56  ;;  %v1897_v56 = vmul.f32 %v1895_v52, %v8908_v7 }
 0x105   : > { %8287 = vmatprep.subr.bf16.mxu1 %v8286_v60 }
 0x106   : > { %v1939_v60 = vmul.f32 %v1897_v56, %v9020_v63  ;;  %v1941_v49 = vmul.f32 %v1897_v56, %v9075_v24  ;;  %v1947_v25 = vmul.f32 %v1897_v56, %v9056_v1 }
 0x108   : > { %8289 = vmatpush3.bf16.msra.mxu1 %v8288_v3  ;;  %v1940_v3 = vmul.f32 %v1898_v57, %v9048_v61  ;;  %v1945_v61 = vmul.f32 %v1897_v56, %v8980_v18 }
 0x109   : > { %8318 = vmatprep.subr.bf16.mxu1 %v8916_v10 }
 0x10b   : > { %2020 = vmatmul.mubr.f32.vlgmr.msra.gmra.mrb[2].mxu1 %v1223_v4  ;;  %v8303_v4 = vpack.c.bf16 %v1940_v3, %v1939_v60  ;;  %v7400_v60 = vld [vmem:[%s10620_s8] ss:$0 sm:$0xff] }
 0x10c   : > { %8320 = vmatpush3.bf16.msra.mxu1 %v8916_v10  ;;  %2024 = vmatprep.mubr.f32.mxu1 %v1228_v5  ;;  %v10499_v10 = vmov 0.0|0.0   ;;  %v8306_v5 = vpack.c.bf16 %v1942_v50, %v1941_v49  ;;  %v1219_v3 = vld [vmem:[%s9293_s15] sm:$0xff] }
 0x10d   : > { %7972 = vmatprep.subr.msk.mxu1 %vm1538_vm3, %v1242_v12 }
 0x10f   : > { %2025 = vmatmul.mubr.f32.gmra.mrb[4].mxu1 %v1227_v20  ;;  %v1943_v20 = vmul.f32 %v1897_v56, %v9096_v46  ;;  %v1948_v46 = vmul.f32 %v1898_v57, %v9058_v2  ;;  %v1250_v56 = vld [vmem:[%s10600_s29] sm:$0xff] }
 0x110   : > { %7969 = vmatprep.mubr.msk.f32.mxu1 %vm1263_vm0, %v1237_v6  ;;  %v1944_v6 = vmul.f32 %v1898_v57, %v9102_v35 }
 0x112   : > { %v8309_v63 = vpack.c.bf16 %v1944_v6, %v1943_v20 }
 0x113   : > { %7970 = vmatmul.mubr.msk.f32.vlgmr.msra.gmra.mrb[6].mxu1 %vm1263_vm0, %v1238_v22  ;;  %v1946_v22 = vmul.f32 %v1898_v57, %v8982_v19  ;;  %v1251_v57 = vld [vmem:[%s10600_s29 + $0x8] sm:$0xff]  ;;  %s9542_s29 = scalar_lea.vmem %s10637_s21, %s8897_s0  ;;  %s8707_s21 = smov 1  }
 0x114   : > { %7973 = vmatpush3.msk.msra.mxu1 %vm1538_vm3, %v1242_v12  ;;  %v1225_v12 = vld [vmem:[%s9090_s28 + $0x10] sm:$0xff]  ;;  %s8709_s0 = smov 8  }
 0x115   : > { %7977 = vmatprep.subr.msk.mxu1 %vm1538_vm3, %v9177_v13  ;;  %v8312_v24 = vpack.c.bf16 %v1946_v22, %v1945_v61 }
 0x132   : > { %v7940_v9 = vpop.f32.mrb[0].mxu0 }
 0x133   : > { %v1336_v59 = vpop.f32.mrb[1].mxu0 }
 0x134   : > { %7957 = vmatprep.mubr.msk.f32.mxu0 %vm1531_vm4, %v1336_v59 }
 0x135   : > { %7958 = vmatmul.mubr.msk.f32.vlgmr.msra.gmra.mrb[2].mxu0 %vm1531_vm4, %v7940_v9  ;;  %v8315_v9 = vpack.c.bf16 %v1948_v46, %v1947_v25  ;;  %v1253_v46 = vld [vmem:[%s10623_s9] sm:$0xff] }
 0x136   : > { %7961 = vmatpush3.msk.msra.mxu0 %vm1538_vm3, %v9166_v11 }
 0x137   : > { %8290 = vmatprep.subr.bf16.mxu0 %v10499_v10 }
 0x1be   : > { %v7954_v42 = vpop.f32.mrb[0].mxu1 }
 0x1bf   : > { %v1522_v0 = vpop.f32.mrb[1].mxu1 }
 0x1c0   : > { %7962 = vmatprep.mubr.msk.f32.mxu0 %vm1531_vm4, %v1522_v0  ;;  %v1217_v0 = vld [vmem:[%s9275_s4] sm:$0xff] }
 0x1c1   : > { %7963 = vmatmul.mubr.msk.f32.vlgmr.msra.gmra.mrb[4].mxu0 %vm1531_vm4, %v7954_v42 }
 0x1c2   : > { %8292 = vmatpush1.bf16.msra.mxu0 %v8291_v41  ;;  %7390 = vmatprep.mubr.msk.f32.mxu0 %vm1263_vm0, %v1226_v48 }
 0x1c3   : > { %8293 = vmatprep.subr.bf16.mxu0 %v10499_v10 }
 0x1c6   : > { %8295 = vmatpush1.bf16.msra.mxu0 %v8294_v51 }
 0x1c7   : > { %8296 = vmatprep.subr.bf16.mxu0 %v10499_v10 }
 0x1ca   : > { %8298 = vmatpush1.bf16.msra.mxu0 %v8297_v54 }
 0x1cb   : > { %8299 = vmatprep.subr.bf16.mxu0 %v10499_v10 }
 0x1ce   : > { %8301 = vmatpush1.bf16.msra.mxu0 %v8300_v58  ;;  %v9287_v58 = vpack.c.bf16 %v1251_v57, %v1250_v56  ;;  %v8611_v57 = vld [vmem:[%s8905_s20 + $0x8] sm:$0xff] }
 0x1cf   : > { %8302 = vmatprep.subr.bf16.mxu0 %v10499_v10 }
 0x1d0   : > { %10622 = vst [vmem:[#allocation35_spill] sm:$0xff] %v9287_v58 }
 0x1d2   : > { %8304 = vmatpush1.bf16.msra.mxu0 %v8303_v4 }
 0x1d3   : > { %8305 = vmatprep.subr.bf16.mxu0 %v10499_v10 }
 0x1d6   : > { %8307 = vmatpush1.bf16.msra.mxu0 %v8306_v5  ;;  %v1220_v5 = vld [vmem:[%s9293_s15 + $0x8] sm:$0xff] }
 0x1d7   : > { %8308 = vmatprep.subr.bf16.mxu0 %v10499_v10 }
 0x1da   : > { %8310 = vmatpush1.bf16.msra.mxu0 %v8309_v63 }
 0x1db   : > { %8311 = vmatprep.subr.bf16.mxu0 %v10499_v10 }
 0x1de   : > { %v7687_v35 = vpop.f32.mrb[2].mxu1  ;;  %8313 = vmatpush1.bf16.msra.mxu0 %v8312_v24 }
 0x1df   : > { %v7688_v18 = vpop.f32.mrb[3].mxu1  ;;  %8314 = vmatprep.subr.bf16.mxu0 %v10499_v10 }
 0x1e0   : > { %v7689_v19 = vadd.f32 %v7688_v18, %v7687_v35  ;;  %v7403_v35 = vld [vmem:[#allocation2] ss:$0 sm:$0xff] }
 0x1e2   : > { %v7690_v59 = vpop.f32.mrb[4].mxu1  ;;  %8316 = vmatpush1.bf16.msra.mxu0 %v8315_v9 }
 0x1e3   : > { %v7691_v15 = vpop.f32.mrb[5].mxu1  ;;  %8322 = vmatprep.subr.bf16.mxu0 %v9257_v37 }
 0x1e4   : > { %v7692_v1 = vadd.f32 %v7691_v15, %v7690_v59 }
 0x1e5   : > { %2095 = vmatmul.mubr.f32.vlgmr.msra.gmra.mrb[6].mxu0 %v1225_v12  ;;  %v7414_v12 = vld [vmem:[%s10624_s11] ss:$0 sm:$0xff] }
 0x1e6   : > { %v7971_v2 = vpop.f32.mrb[6].mxu1  ;;  %7391 = vmatprep.mubr.msk.f32.mxu0 %vm1263_vm0, %v1230_v16  ;;  %8324 = vmatpush3.bf16.msra.mxu0 %v9257_v37 }
 0x1e7   : > { %v2179_v21 = vpop.f32.mrb[7].mxu1  ;;  %7989 = vmatprep.subr.mxu0 %v9282_v55 }
 0x1e8   : > { %7974 = vmatprep.mubr.msk.f32.mxu1 %vm1531_vm4, %v2179_v21 }
 0x1e9   : > { %2100 = vmatmul.mubr.f32.gmra.mrb[8].mxu0 %v1229_v17  ;;  %7975 = vmatmul.mubr.msk.f32.vlgmr.msra.gmra.mrb[8].mxu1 %vm1531_vm4, %v7971_v2 }
 0x1ea   : > { %7978 = vmatpush3.msk.msra.mxu1 %vm1538_vm3, %v9177_v13  ;;  %7979 = vmatprep.mubr.msk.f32.mxu1 %vm1531_vm4, %v8908_v7 }
 0x1eb   : > { %7994 = vmatprep.subr.msk.mxu1 %vm1538_vm3, %v1249_v23 }
 0x1f1   : > { %7980 = vmatmul.mubr.msk.f32.vlgmr.msra.gmra.mrb[8].mxu1 %vm1531_vm4, %v8911_v8 }
 0x1f2   : > { %7996 = vmatprep.mubr.msk.f32.mxu1 %vm1531_vm4, %v2179_v21  ;;  %7995 = vmatpush3.msk.msra.mxu1 %vm1538_vm3, %v1249_v23 }
 0x1f3   : > { %7999 = vmatprep.subr.msk.mxu1 %vm1538_vm3, %v1248_v34 }
 0x1f5   : > { %7997 = vmatmul.mubr.msk.f32.vlgmr.msra.gmra.mrb[10].mxu1 %vm1531_vm4, %v7971_v2 }
 0x1f6   : > { %8000 = vmatpush3.msk.msra.mxu1 %vm1538_vm3, %v1248_v34  ;;  %8001 = vmatprep.mubr.msk.f32.mxu1 %vm1531_vm4, %v8908_v7 }
 0x1fd   : > { %8002 = vmatmul.mubr.msk.f32.vlgmr.msra.gmra.mrb[10].mxu1 %vm1531_vm4, %v8911_v8 }
 0x208   : > { %v9251_v13 = vpop.f32.mrb[2].mxu0 }
 0x209   : > { %v9253_v36 = vpop.f32.mrb[3].mxu0 }
 0x294   : > { %v9261_v38 = vpop.f32.mrb[4].mxu0 }
 0x295   : > { %v1702_v40 = vsub.f32 %v9251_v13, %v9261_v38  ;;  %v9265_v8 = vpop.f32.mrb[5].mxu0 }
 0x296   : > { %v1701_v30 = vsub.f32 %v9253_v36, %v9265_v8 }
 0x2b8   : > { %v2096_v32 = vpop.f32.mrb[6].mxu0 }
 0x2b9   : > { %v9269_v41 = vadd.f32 %v7689_v19, %v2096_v32  ;;  %v2098_v42 = vpop.f32.mrb[7].mxu0 }
 0x2bc   : > { %v2101_v44 = vpop.f32.mrb[8].mxu0 }
 0x2bd   : > { %v9271_v45 = vadd.f32 %v7692_v1, %v2101_v44  ;;  %v2103_v62 = vpop.f32.mrb[9].mxu0 }
 0x2c4   : > { %v7981_v48 = vpop.f32.mrb[8].mxu1 }
 0x2c5   : > { %v2357_v28 = vadd.f32 %v7981_v48, %v1218_v47  ;;  %v2347_v31 = vpop.f32.mrb[9].mxu1  ;;  %v9316_v48 = vld [vmem:[%s10625_s5] sm:$0x3f] }
 0x2c6   : > { %v2356_v51 = vadd.f32 %v2347_v31, %v1217_v0  ;;  %10629 = vst [vmem:[#allocation38_spill] sm:$0xff] %v9316_v48  ;;  %8016 = vmatprep.subr.msk.mxu1 %vm1538_vm3, %v9316_v48 }
 0x2c7   : > { %v2359_v43 = vmax.f32 %v2357_v28, 0.0  ;;  %8017 = vmatpush3.msk.msra.mxu1 %vm1538_vm3, %v9316_v48  ;;  %v9323_v28 = vld [vmem:[%s10626_s13] sm:$0xff] }
 0x2c8   : > { %v2358_v52 = vmax.f32 %v2356_v51, 0.0  ;;  %10631 = vst [vmem:[#allocation39_spill] sm:$0xff] %v9323_v28  ;;  %8026 = vmatprep.subr.mxu1 %v9323_v28  ;;  %v2105_v51 = vsub.f32 %v9269_v41, %v8908_v7  ;;  %v7417_v7 = vld [vmem:[%s10630_s17] ss:$0 sm:$0xff] }
 0x2ca   : > { %7986 = vmatprep.mubr.msk.f32.mxu0 %vm1263_vm0, %v2358_v52 }
 0x2cb   : > { %7987 = vmatmul.mubr.msk.f32.vlgmr.msra.gmra.mrb[10].mxu0 %vm1263_vm0, %v2359_v43 }
 0x2cc   : > { %7990 = vmatpush3.msra.mxu0 %v9282_v55 }
 0x2cd   : > { %8326 = vmatprep.subr.bf16.mxu0 %v9287_v58 }
 0x2d0   : > { %v8003_v54 = vpop.f32.mrb[10].mxu1 }
 0x2d1   : > { %v2724_v26 = vpop.f32.mrb[11].mxu1  ;;  %v2734_v61 = vadd.f32 %v8003_v54, %v1220_v5 }
 0x2d2   : > { %v2733_v20 = vadd.f32 %v2724_v26, %v1219_v3 }
 0x2d3   : > { %v2736_v25 = vmax.f32 %v2734_v61, 0.0 }
 0x2d4   : > { %v2735_v24 = vmax.f32 %v2733_v20, 0.0  ;;  %v8612_v20 = vld [vmem:[%s8905_s20] sm:$0xff]  ;;  %s10636_s20 = sld [smem:[#allocation24_spill]] }
 0x39e   : > { %v7988_v4 = vpop.f32.mrb[10].mxu0 }
 0x39f   : > { %v2444_v49 = vadd.f32 %v7988_v4, %v7400_v60  ;;  %v2438_v50 = vpop.f32.mrb[11].mxu0 }
 0x3a0   : > { %v2439_v6 = vadd.f32 %v7400_v60, %v2438_v50  ;;  %v2106_v60 = vsub.f32 %v9271_v45, %v8611_v57 }
 0x3a1   : > { %v2448_v22 = vmax.f32 %v2444_v49, 0.0 }
 0x3a2   : > { %v2447_v63 = vmax.f32 %v2439_v6, 0.0 }
 0x3a4   : > { %7991 = vmatprep.mubr.msk.f32.mxu0 %vm2455_vm5, %v2447_v63 }
 0x3a5   : > { %7992 = vmatmul.mubr.msk.f32.vlgmr.msra.gmra.mrb[12].mxu0 %vm2455_vm5, %v2448_v22 }
 0x3a6   : > { %8328 = vmatpush3.bf16.msra.mxu0 %v9287_v58  ;;  %8008 = vmatprep.mubr.msk.f32.mxu0 %vm1263_vm0, %v2735_v24  ;;  %v8613_v24 = vld [vmem:[%s8935_s26] sm:$0xff] }
 0x3a7   : > { %8011 = vmatprep.subr.mxu0 %v1253_v46 }
 0x3a9   : > { %8009 = vmatmul.mubr.msk.f32.vlgmr.msra.gmra.mrb[14].mxu0 %vm1263_vm0, %v2736_v25 }
 0x3aa   : > { %8012 = vmatpush3.msra.mxu0 %v1253_v46  ;;  %v8614_v46 = vld [vmem:[%s8935_s26 + $0x8] sm:$0xff] }
 0x478   : > { %v7993_v9 = vpop.f32.mrb[12].mxu0 }
 0x479   : > { %v2534_v18 = vadd.f32 %v7993_v9, %v7403_v35  ;;  %v2528_v19 = vpop.f32.mrb[13].mxu0 }
 0x47a   : > { %v2529_v59 = vadd.f32 %v7403_v35, %v2528_v19 }
 0x47b   : > { %v7407_v15 = vmul.f32 -1.442695, %v2534_v18 }
 0x47c   : > { %v7406_v16 = vmul.f32 -1.442695, %v2529_v59  ;;  %v8010_v1 = vpop.f32.mrb[14].mxu0 }
 0x47d   : > { %8579 = vpow2.f32 %v7407_v15  ;;  %v2821_v2 = vadd.f32 %v8010_v1, %v7414_v12  ;;  %v2815_v17 = vpop.f32.mrb[15].mxu0 }
 0x47e   : > { %8581 = vpow2.f32 %v7406_v16  ;;  %v2816_v21 = vadd.f32 %v7414_v12, %v2815_v17 }
 0x47f   : > { %v2825_v34 = vmax.f32 %v2821_v2, 0.0 }
 0x480   : > { %v2824_v23 = vmax.f32 %v2816_v21, 0.0 }
 0x482   : > { %8013 = vmatprep.mubr.msk.f32.mxu0 %vm2455_vm5, %v2824_v23 }
 0x483   : > { %8014 = vmatmul.mubr.msk.f32.vlgmr.msra.gmra.mrb[16].mxu0 %vm2455_vm5, %v2825_v34  ;;  %v8615_v34 = vld [vmem:[%s8931_s23] sm:$0xff] }
 0x487   : > { %v8580_v39 = vpop.eup %8579 }
 0x488   : > { %v8582_v29 = vpop.eup %8581  ;;  %v2544_v32 = vadd.f32 1.0, %v8580_v39 }
 0x489   : > { %v2543_v42 = vadd.f32 1.0, %v8582_v29  ;;  %v8616_v29 = vld [vmem:[%s8931_s23 + $0x8] sm:$0xff] }
 0x48b   : > { %8583 = vrcp.f32 %v2543_v42 }
 0x48c   : > { %8585 = vrcp.f32 %v2544_v32 }
 0x495   : > { %v9307_v44 = vpop.eup %8583 }
 0x496   : > { %10627 = vst [vmem:[#allocation36_spill] sm:$0xff] %v9307_v44  ;;  %2551 = vperm.xlu0 %8573, %v9307_v44   ;;  %v2561_v62 = vsub.f32 1.0, %v9307_v44  ;;  %v9311_v47 = vpop.eup %8585 }
 0x497   : > { %10628 = vst [vmem:[#allocation37_spill] sm:$0xff] %v9311_v47  ;;  %v2562_v0 = vsub.f32 1.0, %v9311_v47 }
 0x498   : > { %2565 = vperm.xlu1 %8574, %v2561_v62  }
 0x49a   : > { %2556 = vperm.xlu0 %8573, %v9311_v47  }
 0x49c   : > { %2570 = vperm.xlu1 %8574, %v2562_v0  }
 0x515   : > { %v2552_v31 = vpop.permute.xlu0 %2551 }
 0x516   : > { %v2559_v43 = vmul.f32 %v2552_v31, %v1701_v30 }
 0x517   : > { %v2566_v52 = vpop.permute.xlu1 %2565 }
 0x518   : > { %v2573_v54 = vmul.f32 %v2566_v52, %v2105_v51 }
 0x519   : > { %v2557_v26 = vpop.permute.xlu0 %2556 }
 0x51a   : > { %v2575_v56 = vadd.f32 %v2573_v54, %v2559_v43  ;;  %v2560_v4 = vmul.f32 %v2557_v26, %v1702_v40 }
 0x51b   : > { %v2571_v3 = vpop.permute.xlu1 %2570 }
 0x51c   : > { %v2574_v49 = vmul.f32 %v2571_v3, %v2106_v60  ;;  %v2913_v6 = vadd.f32 %v8612_v20, %v2575_v56 }
 0x51e   : > { %v2576_v50 = vadd.f32 %v2574_v49, %v2560_v4 }
 0x520   : > { %v2914_v36 = vadd.f32 %v8611_v57, %v2576_v50 }
 0x556   : > { %v8015_v41 = vpop.f32.mrb[16].mxu0 }
 0x557   : > { %v9337_v5 = vadd.f32 %v8015_v41, %v7417_v7  ;;  %v2904_v8 = vpop.f32.mrb[17].mxu0 }
 0x558   : > { %v9339_v30 = vadd.f32 %v7417_v7, %v2904_v8 }
 0x559   : > { %10632 = vst [vmem:[#allocation40_spill] sm:$0xff] %v9337_v5  ;;  %v9343_v45 = vadd.f32 %v2914_v36, %v9337_v5 }
 0x55a   : > { %10633 = vst [vmem:[#allocation41_spill] sm:$0xff] %v9339_v30  ;;  %v9346_v63 = vadd.f32 %v2913_v6, %v9339_v30 }
 0x55b   : > { %10634 = vst [vmem:[#allocation42_spill] sm:$0xff] %v9343_v45  ;;  %vm3693_vm7 = vcmp.eq.f32.partialorder %v9343_v45, 0.0 }
 0x55c   : > { %10635 = vst [vmem:[#allocation43_spill] sm:$0xff] %v9346_v63  ;;  %8018 = vmatprep.mubr.msk.f32.mxu1 %vm1531_vm4, %v9346_v63  ;;  %v9352_v13 = vpack.c.bf16 %v9343_v45, %v9346_v63  ;;  %vm3692_vm6 = vcmp.eq.f32.partialorder %v9346_v63, 0.0  ;;  %v3695_v40 = vsel %vm3693_vm7, 1.0, %v9343_v45 }
 0x55d   : > { %8019 = vmatmul.mubr.msk.f32.vlgmr.msra.gmra.mrb[12].mxu1 %vm1531_vm4, %v9343_v45  ;;  %v3694_v38 = vsel %vm3692_vm6, 1.0, %v9346_v63 }
 0x55e   : > { %8027 = vmatpush3.msra.mxu1 %v9323_v28  ;;  %8587 = vrcp.f32 %v3694_v38  ;;  %v9604_v28 = vld [vmem:[%s8871_s22] ss:$0 sm:$0xff] }
 0x55f   : > { %8334 = vmatprep.subr.bf16.mxu1 %v9352_v13  ;;  %8589 = vrcp.f32 %v3695_v40 }
 0x568   : > { %v8588_v61 = vpop.eup %8587 }
 0x569   : > { %v8590_v22 = vpop.eup %8589  ;;  %v3698_v25 = vmul.f32 %v8613_v24, %v8588_v61  ;;  %v3704_v39 = vmul.f32 %v8615_v34, %v8588_v61 }
 0x56a   : > { %v3699_v35 = vmul.f32 %v8614_v46, %v8590_v22  ;;  %v3705_v32 = vmul.f32 %v8616_v29, %v8590_v22 }
 0x56b   : > { %v7444_v9 = vclamps-f32 %v3698_v25, 2.0  ;;  %v7446_v51 = vclamps-f32 %v3704_v39, 2.0 }
 0x56c   : > { %v7445_v18 = vclamps-f32 %v3699_v35, 2.0  ;;  %v7447_v52 = vclamps-f32 %v3705_v32, 2.0 }
 0x56d   : > { %v7448_v19 = vadd.f32 -0.5, %v7444_v9  ;;  %v9364_v59 = vadd.f32 0.5, %v7444_v9  ;;  %v9374_v56 = vadd.f32 -0.5, %v7446_v51  ;;  %v9376_v57 = vadd.f32 0.5, %v7446_v51 }
 0x56e   : > { %v7449_v12 = vadd.f32 -0.5, %v7445_v18  ;;  %v9366_v15 = vadd.f32 0.5, %v7445_v18  ;;  %v9378_v49 = vadd.f32 -0.5, %v7447_v52  ;;  %v9384_v36 = vadd.f32 0.5, %v7447_v52 }
 0x56f   : > { %v7462_v16 = vadd.f32 -2.5, %v7448_v19  ;;  %v7464_v1 = vadd.f32 -3.5, %v9364_v59  ;;  %v7450_v60 = vadd.f32 0.5, %v7448_v19  ;;  %v7452_v50 = vadd.f32 -0.5, %v9364_v59 }
 0x570   : > { %v7463_v2 = vadd.f32 -2.5, %v7449_v12  ;;  %v7465_v17 = vadd.f32 -3.5, %v9366_v15  ;;  %v7451_v3 = vadd.f32 0.5, %v7449_v12  ;;  %v7453_v7 = vadd.f32 -0.5, %v9366_v15 }
 0x571   : > { %v3764_v21 = vmax.f32 %v7462_v16, 0.0  ;;  %v3770_v23 = vmax.f32 %v7464_v1, 0.0  ;;  %v7466_v8 = vadd.f32 -3.5, %v7448_v19  ;;  %v7467_v20 = vadd.f32 -3.5, %v7449_v12 }
 0x572   : > { %v3765_v42 = vmax.f32 %v7463_v2, 0.0  ;;  %v3771_v62 = vmax.f32 %v7465_v17, 0.0  ;;  %v7468_v6 = vadd.f32 -4.5, %v9364_v59  ;;  %v7469_v38 = vadd.f32 -4.5, %v9366_v15 }
 0x573   : > { %v3766_v0 = vadd.f32 2.5, %v3764_v21  ;;  %v3772_v31 = vsub.f32 %v9364_v59, %v3770_v23  ;;  %v7454_v40 = vadd.f32 -0.5, %v7448_v19  ;;  %v7455_v61 = vadd.f32 -0.5, %v7449_v12 }
 0x574   : > { %v3767_v43 = vadd.f32 2.5, %v3765_v42  ;;  %v3773_v54 = vsub.f32 %v9366_v15, %v3771_v62  ;;  %v3714_v22 = vmax.f32 %v7450_v60, 0.0  ;;  %v3715_v24 = vmax.f32 %v7451_v3, 0.0 }
 0x575   : > { %v3774_v26 = vsub.f32 %v3772_v31, %v3766_v0  ;;  %v7456_v25 = vadd.f32 -1.5, %v9364_v59  ;;  %v7457_v46 = vadd.f32 -1.5, %v9366_v15  ;;  %v3722_v9 = vmax.f32 %v7452_v50, 0.0 }
 0x576   : > { %v3775_v4 = vsub.f32 %v3773_v54, %v3767_v43  ;;  %v3723_v18 = vmax.f32 %v7453_v7, 0.0  ;;  %v7458_v16 = vadd.f32 -1.5, %v7448_v19  ;;  %v3780_v1 = vmax.f32 %v7466_v8, 0.0 }
 0x577   : > { %v9382_v41 = vmax.f32 %v3774_v26, 0.0  ;;  %v3781_v2 = vmax.f32 %v7467_v20, 0.0  ;;  %v7459_v17 = vadd.f32 -1.5, %v7449_v12  ;;  %v7460_v21 = vadd.f32 -2.5, %v9364_v59 }
 0x578   : > { %v9390_v35 = vmax.f32 %v3775_v4, 0.0  ;;  %v3786_v23 = vmax.f32 %v7468_v6, 0.0  ;;  %v3787_v34 = vmax.f32 %v7469_v38, 0.0  ;;  %v3732_v39 = vmax.f32 %v7454_v40, 0.0 }
 0x579   : > { %v3733_v29 = vmax.f32 %v7455_v61, 0.0  ;;  %v9393_v32 = vadd.f32 -0.5, %v3714_v22  ;;  %v3738_v42 = vmax.f32 %v7456_v25, 0.0  ;;  %v3739_v62 = vmax.f32 %v7457_v46, 0.0 }
 0x57a   : > { %v7461_v0 = vadd.f32 -2.5, %v9366_v15  ;;  %v9396_v31 = vadd.f32 -0.5, %v3715_v24  ;;  %v9399_v51 = vsub.f32 %v9364_v59, %v3722_v9  ;;  %v9402_v19 = vsub.f32 %v9366_v15, %v3723_v18 }
 0x57b   : > { %v3748_v12 = vmax.f32 %v7458_v16, 0.0  ;;  %v3782_v52 = vadd.f32 3.5, %v3780_v1  ;;  %v3783_v43 = vadd.f32 3.5, %v3781_v2  ;;  %v3749_v54 = vmax.f32 %v7459_v17, 0.0 }
 0x57c   : > { %v3754_v26 = vmax.f32 %v7460_v21, 0.0  ;;  %v3788_v60 = vsub.f32 %v9364_v59, %v3786_v23  ;;  %v3789_v3 = vsub.f32 %v9366_v15, %v3787_v34  ;;  %v3734_v4 = vadd.f32 0.5, %v3732_v39 }
 0x57d   : > { %v3735_v50 = vadd.f32 0.5, %v3733_v29  ;;  %v3740_v7 = vsub.f32 %v9364_v59, %v3738_v42  ;;  %v3741_v8 = vsub.f32 %v9366_v15, %v3739_v62  ;;  %v3755_v20 = vmax.f32 %v7461_v0, 0.0 }
 0x57e   : > { %v7484_v6 = vadd.f32 -2.5, %v9374_v56  ;;  %v3750_v38 = vadd.f32 1.5, %v3748_v12  ;;  %v7485_v40 = vadd.f32 -2.5, %v9378_v49  ;;  %v7486_v61 = vadd.f32 -3.5, %v9376_v57 }
 0x57f   : > { %v7487_v22 = vadd.f32 -3.5, %v9384_v36  ;;  %v3751_v24 = vadd.f32 1.5, %v3749_v54  ;;  %v3756_v25 = vsub.f32 %v9364_v59, %v3754_v26  ;;  %v7488_v9 = vadd.f32 -3.5, %v9374_v56 }
 0x580   : > { %v3854_v46 = vmax.f32 %v7484_v6, 0.0  ;;  %v3855_v18 = vmax.f32 %v7485_v40, 0.0  ;;  %v3860_v16 = vmax.f32 %v7486_v61, 0.0  ;;  %v7489_v2 = vadd.f32 -3.5, %v9378_v49 }
 0x581   : > { %v3861_v1 = vmax.f32 %v7487_v22, 0.0  ;;  %v3757_v17 = vsub.f32 %v9366_v15, %v3755_v20  ;;  %v3872_v23 = vmax.f32 %v7488_v9, 0.0  ;;  %v7490_v34 = vadd.f32 -4.5, %v9376_v57 }
 0x582   : > { %v3856_v21 = vadd.f32 2.5, %v3854_v46  ;;  %v3857_v39 = vadd.f32 2.5, %v3855_v18  ;;  %v3862_v29 = vsub.f32 %v9376_v57, %v3860_v16  ;;  %v3873_v59 = vmax.f32 %v7489_v2, 0.0 }
 0x583   : > { %v3863_v42 = vsub.f32 %v9384_v36, %v3861_v1  ;;  %v3742_v62 = vsub.f32 %v3740_v7, %v3734_v4  ;;  %v3874_v0 = vadd.f32 3.5, %v3872_v23  ;;  %v7491_v12 = vadd.f32 -4.5, %v9384_v36 }
 0x584   : > { %v3878_v54 = vmax.f32 %v7490_v34, 0.0  ;;  %v3743_v26 = vsub.f32 %v3741_v8, %v3735_v50  ;;  %v3758_v6 = vsub.f32 %v3756_v25, %v3750_v38  ;;  %v3864_v40 = vsub.f32 %v3862_v29, %v3856_v21 }
 0x585   : > { %v3865_v61 = vsub.f32 %v3863_v42, %v3857_v39  ;;  %v3759_v15 = vsub.f32 %v3757_v17, %v3751_v24  ;;  %v3875_v20 = vadd.f32 3.5, %v3873_v59  ;;  %v3879_v22 = vmax.f32 %v7491_v12, 0.0 }
 0x586   : > { %v3880_v46 = vsub.f32 %v9376_v57, %v3878_v54  ;;  %v3790_v9 = vsub.f32 %v3788_v60, %v3782_v52  ;;  %v3791_v18 = vsub.f32 %v3789_v3, %v3783_v43  ;;  %v3866_v16 = vmax.f32 %v3864_v40, 0.0 }
 0x587   : > { %v3867_v10 = vmax.f32 %v3865_v61, 0.0  ;;  %v3726_v4 = vsub.f32 %v9399_v51, %v9393_v32  ;;  %v3727_v7 = vsub.f32 %v9402_v19, %v9396_v31  ;;  %v3881_v50 = vsub.f32 %v9384_v36, %v3879_v22 }
 0x588   : > { %v3882_v8 = vsub.f32 %v3880_v46, %v3874_v0  ;;  %v9426_v38 = vmax.f32 %v3742_v62, 0.0  ;;  %v9428_v24 = vmax.f32 %v3743_v26, 0.0  ;;  %v9431_v25 = vmul.f32 %v3866_v16, %v9346_v63 }
 0x589   : > { %v9434_v52 = vmul.f32 %v3867_v10, %v9343_v45  ;;  %v9436_v43 = vmax.f32 %v3758_v6, 0.0  ;;  %v9438_v60 = vmax.f32 %v3759_v15, 0.0  ;;  %v3883_v32 = vsub.f32 %v3881_v50, %v3875_v20 }
 0x58a   : > { %v3884_v51 = vmax.f32 %v3882_v8, 0.0  ;;  %v9440_v31 = vmax.f32 %v3790_v9, 0.0  ;;  %v9442_v19 = vmax.f32 %v3791_v18, 0.0  ;;  %v9446_v3 = vmul.f32 %v9431_v25, %v9426_v38  ;;  %v9545_v8 = vld [vmem:[%s9542_s29 + $0x8] sm:$0xff] }
 0x58b   : > { %v9450_v1 = vmul.f32 %v9434_v52, %v9428_v24  ;;  %v9454_v10 = vmul.f32 %v9431_v25, %v9436_v43  ;;  %v9458_v2 = vmul.f32 %v9434_v52, %v9438_v60  ;;  %v9462_v17 = vmul.f32 %v9431_v25, %v9382_v41  ;;  %10642 = vst [vmem:[#allocation46_spill] sm:$0xff] %v9545_v8 }
 0x58c   : > { %v9466_v21 = vmul.f32 %v9434_v52, %v9390_v35  ;;  %v9468_v23 = vmax.f32 %v3726_v4, 0.0  ;;  %v9474_v39 = vmul.f32 %v9431_v25, %v9440_v31  ;;  %v9478_v29 = vmul.f32 %v9434_v52, %v9442_v19 }
 0x58d   : > { %v3885_v62 = vmax.f32 %v3883_v32, 0.0  ;;  %v3886_v0 = vmul.f32 %v3884_v51, %v9346_v63  ;;  %v9485_v12 = vmax.f32 %v3727_v7, 0.0  ;;  %v9531_v51 = vld [vmem:[%s10636_s20] sm:$0xff]  ;;  %v3377_v54 = vmul.f32 %v9343_v45, %v9034_v33 }
 0x58e   : > { %10638 = vst [vmem:[#allocation44_spill] sm:$0xff] %v9531_v51  ;;  %8021 = vmatprep.subr.mxu0 %v9531_v51  ;;  %v9548_v32 = vld [vmem:[%s9542_s29] sm:$0xff]  ;;  %v7473_v33 = vadd.f32 0.5, %v9378_v49 }
 0x58f   : > { %v3887_v26 = vmul.f32 %v3885_v62, %v9343_v45  ;;  %v9491_v6 = vmul.f32 %v3886_v0, %v9468_v23  ;;  %v9494_v40 = vmul.f32 %v3886_v0, %v9426_v38  ;;  %v9497_v61 = vmul.f32 %v3886_v0, %v9436_v43  ;;  %v1260_v62 = vld [vmem:[%s8876_s1] sm:$0xff]  ;;  %8022 = vmatpush3.msra.mxu0 %v9531_v51 }
 0x590   : > { %v9500_v15 = vmul.f32 %v3886_v0, %v9382_v41  ;;  %v9503_v20 = vmul.f32 %v3886_v0, %v9440_v31  ;;  %v1261_v0 = vld [vmem:[%s8876_s1 + $0x8] sm:$0xff]  ;;  %10643 = vst [vmem:[#allocation47_spill] sm:$0xff] %v9548_v32 }
 0x591   : > { %v9506_v22 = vmul.f32 %v3887_v26, %v9485_v12  ;;  %v9509_v46 = vmul.f32 %v3887_v26, %v9428_v24  ;;  %v9512_v9 = vmul.f32 %v3887_v26, %v9438_v60  ;;  %v9515_v18 = vmul.f32 %v3887_v26, %v9390_v35 }
 0x592   : > { %v9518_v16 = vmul.f32 %v3887_v26, %v9442_v19  ;;  %v9536_v26 = vpack.c.bf16 %v1261_v0, %v1260_v62  ;;  %v3376_v0 = vmul.f32 %v9346_v63, %v9023_v14  ;;  %v7474_v14 = vadd.f32 -0.5, %v9376_v57 }
 0x594   : > { %10639 = vst [vmem:[#allocation45_spill] sm:$0xff] %v9536_v26  ;;  %8330 = vmatprep.subr.bf16.mxu0 %v9536_v26  ;;  %v9558_v34 = vpack.c.bf16 %v3377_v54, %v3376_v0  ;;  %v9576_v54 = vld [vmem:[%s8783_s6] sm:$0x3f]  ;;  %v9581_v0 = vld [vmem:[%s8763_s14 + $0x8] sm:$0xff] }
 0x595   : > { %10646 = vst [vmem:[#allocation50_spill] sm:$0xff] %v9576_v54  ;;  %10647 = vst [vmem:[#allocation51_spill] sm:$0xff] %v9581_v0 }
 0x630   : > { %v8020_v50 = vpop.f32.mrb[12].mxu1 }
 0x631   : > { %v2998_v7 = vadd.f32 %v8020_v50, %v9545_v8  ;;  %v2992_v4 = vpop.f32.mrb[13].mxu1 }
 0x632   : > { %v2993_v62 = vadd.f32 %v2992_v4, %v9548_v32  ;;  %v9563_v4 = vld [vmem:[%s10640_s3] ss:$0 sm:$0xff]  ;;  %v7475_v32 = vadd.f32 -0.5, %v9384_v36  ;;  %s8708_s3 = smov 2  }
 0x633   : > { %v3002_v42 = vmax.f32 %v2998_v7, 0.0  ;;  %10644 = vst [vmem:[#allocation48_spill] sm:$0xff] %v9563_v4 }
 0x634   : > { %v3001_v59 = vmax.f32 %v2993_v62, 0.0 }
 0x636   : > { %8023 = vmatprep.mubr.msk.f32.mxu0 %vm2455_vm5, %v3001_v59 }
 0x637   : > { %8024 = vmatmul.mubr.msk.f32.vlgmr.msra.gmra.mrb[18].mxu0 %vm2455_vm5, %v3002_v42  ;;  %v9571_v42 = vld [vmem:[%s8763_s14] sm:$0xff] }
 0x638   : > { %8332 = vmatpush3.bf16.msra.mxu0 %v9536_v26  ;;  %10645 = vst [vmem:[#allocation49_spill] sm:$0xff] %v9571_v42  ;;  %v7483_v26 = vadd.f32 -2.5, %v9384_v36 }
 0x639   : > { %8338 = vmatprep.subr.bf16.mxu0 %v9558_v34 }
 0x70a   : > { %v8025_v50 = vpop.f32.mrb[18].mxu0 }
 0x70b   : > { %v3087_v5 = vadd.f32 %v8025_v50, %v9563_v4  ;;  %v3081_v62 = vpop.f32.mrb[19].mxu0  ;;  %v7478_v50 = vadd.f32 -1.5, %v9376_v57 }
 0x70c   : > { %v3082_v7 = vadd.f32 %v9563_v4, %v3081_v62  ;;  %v7479_v62 = vadd.f32 -1.5, %v9384_v36 }
 0x70d   : > { %v3091_v59 = vmax.f32 %v3087_v5, 0.0  ;;  %v7476_v5 = vadd.f32 -0.5, %v9374_v56  ;;  %v3824_v47 = vmax.f32 %v7478_v50, 0.0  ;;  %v3799_v50 = vmax.f32 %v7473_v33, 0.0 }
 0x70e   : > { %v3090_v30 = vmax.f32 %v3082_v7, 0.0  ;;  %v3825_v44 = vmax.f32 %v7479_v62, 0.0  ;;  %v3806_v62 = vmax.f32 %v7474_v14, 0.0 }
 0x70f   : > { %v3818_v7 = vmax.f32 %v7476_v5, 0.0  ;;  %v3826_v4 = vsub.f32 %v9376_v57, %v3824_v47  ;;  %v7481_v47 = vadd.f32 -1.5, %v9378_v49  ;;  %v3801_v55 = vadd.f32 -0.5, %v3799_v50 }
 0x710   : > { %8028 = vmatprep.mubr.msk.f32.mxu1 %vm2455_vm5, %v3090_v30  ;;  %v7477_v30 = vadd.f32 -0.5, %v9378_v49 }
 0x711   : > { %8029 = vmatmul.mubr.msk.f32.vlgmr.msra.gmra.mrb[14].mxu1 %vm2455_vm5, %v3091_v59 }
 0x712   : > { %8336 = vmatpush3.bf16.msra.mxu1 %v9352_v13  ;;  %8042 = vmatprep.mubr.msk.f32.mxu1 %vm1263_vm0, %v9571_v42  ;;  %v3819_v59 = vmax.f32 %v7477_v30, 0.0  ;;  %v3820_v42 = vadd.f32 0.5, %v3818_v7  ;;  %v3807_v7 = vmax.f32 %v7475_v32, 0.0  ;;  %v3837_v32 = vmax.f32 %v7481_v47, 0.0 }
 0x713   : > { %8059 = vmatprep.subr.msk.mxu1 %vm1538_vm3, %v9576_v54 }
 0x714   : > { %v3828_v8 = vsub.f32 %v3826_v4, %v3820_v42  ;;  %v3808_v4 = vsub.f32 %v9376_v57, %v3806_v62  ;;  %v3809_v33 = vsub.f32 %v9384_v36, %v3807_v7 }
 0x715   : > { %8043 = vmatmul.mubr.msk.f32.vlgmr.msra.gmra.mrb[16].mxu1 %vm1263_vm0, %v9581_v0  ;;  %v3821_v0 = vadd.f32 0.5, %v3819_v59  ;;  %v7480_v59 = vadd.f32 -1.5, %v9374_v56 }
 0x716   : > { %8060 = vmatpush3.msk.msra.mxu1 %vm1538_vm3, %v9576_v54  ;;  %v3827_v54 = vsub.f32 %v9384_v36, %v3825_v44  ;;  %v7482_v44 = vadd.f32 -2.5, %v9376_v57  ;;  %v3830_v51 = vmax.f32 %v3828_v8, 0.0  ;;  %v3374_v8 = vmul.f32 %v9346_v63, %v9028_v27 }
 0x717   : > { %8064 = vmatprep.subr.msk.mxu1 %vm1538_vm3, %v9166_v11  ;;  %v7472_v11 = vadd.f32 0.5, %v9374_v56  ;;  %v3836_v14 = vmax.f32 %v7480_v59, 0.0  ;;  %v3843_v56 = vmax.f32 %v7483_v26, 0.0  ;;  %v3811_v26 = vsub.f32 %v3809_v33, %v3801_v55  ;;  %v9637_v33 = vld [vmem:[%s8773_s24 + $0x8] sm:$0xff] }
 0x718   : > { %v3829_v5 = vsub.f32 %v3827_v54, %v3821_v0  ;;  %v3842_v42 = vmax.f32 %v7482_v44, 0.0  ;;  %v3839_v59 = vadd.f32 1.5, %v3837_v32 }
 0x719   : > { %v3798_v30 = vmax.f32 %v7472_v11, 0.0  ;;  %v3375_v11 = vmul.f32 %v9343_v45, %v9044_v53  ;;  %v3838_v7 = vadd.f32 1.5, %v3836_v14  ;;  %v3845_v44 = vsub.f32 %v9384_v36, %v3843_v56  ;;  %v9630_v36 = vld [vmem:[%s8773_s24] sm:$0xff] }
 0x71a   : > { %v3831_v58 = vmax.f32 %v3829_v5, 0.0  ;;  %v9614_v5 = vmul.f32 %v3830_v51, %v9346_v63  ;;  %v3844_v47 = vsub.f32 %v9376_v57, %v3842_v42 }
 0x71b   : > { %v3800_v48 = vadd.f32 -0.5, %v3798_v30  ;;  %v8341_v51 = vpack.c.bf16 %v3375_v11, %v3374_v8  ;;  %v3847_v57 = vsub.f32 %v3845_v44, %v3839_v59  ;;  %v9657_v59 = vld [vmem:[%s8768_s19 + $0x8] sm:$0xff] }
 0x71c   : > { %v9618_v50 = vmul.f32 %v3831_v58, %v9343_v45  ;;  %v3904_v55 = vmul.f32 %v9614_v5, %v9382_v41 }
 0x71d   : > { %v3810_v62 = vsub.f32 %v3808_v4, %v3800_v48  ;;  %v3846_v48 = vsub.f32 %v3844_v47, %v3838_v7  ;;  %v3849_v42 = vmax.f32 %v3847_v57, 0.0 }
 0x71e   : > { %v3905_v58 = vmul.f32 %v9618_v50, %v9390_v35  ;;  %v3907_v8 = vmul.f32 %v9618_v50, %v9442_v19 }
 0x71f   : > { %v3812_v53 = vmax.f32 %v3810_v62, 0.0  ;;  %v3848_v32 = vmax.f32 %v3846_v48, 0.0 }
 0x720   : > { %v8345_v14 = vpack.c.bf16 %v3905_v58, %v3904_v55 }
 0x721   : > { %v3814_v4 = vmul.f32 %v3812_v53, %v9346_v63  ;;  %v3850_v11 = vmul.f32 %v3848_v32, %v9346_v63 }
 0x723   : > { %v3888_v53 = vmul.f32 %v3814_v4, %v9468_v23  ;;  %v3908_v44 = vmul.f32 %v3850_v11, %v9468_v23  ;;  %v3892_v55 = vmul.f32 %v3814_v4, %v9436_v43  ;;  %v3910_v57 = vmul.f32 %v3850_v11, %v9426_v38 }
 0x7e4   : > { %v8030_v54 = vpop.f32.mrb[14].mxu1 }
 0x7e5   : > { %v3176_v49 = vadd.f32 %v8030_v54, %v9604_v28  ;;  %v3170_v0 = vpop.f32.mrb[15].mxu1 }
 0x7e6   : > { %v3171_v30 = vadd.f32 %v9604_v28, %v3170_v0  ;;  %v3813_v0 = vmax.f32 %v3811_v26, 0.0  ;;  %v3890_v26 = vmul.f32 %v3814_v4, %v9426_v38 }
 0x7e7   : > { %v3180_v27 = vmax.f32 %v3176_v49, 0.0  ;;  %v3906_v49 = vmul.f32 %v9614_v5, %v9440_v31 }
 0x7e8   : > { %v3179_v54 = vmax.f32 %v3171_v30, 0.0  ;;  %v3851_v30 = vmul.f32 %v3849_v42, %v9343_v45  ;;  %v3894_v42 = vmul.f32 %v3814_v4, %v9382_v41 }
 0x7e9   : > { %v8349_v47 = vpack.c.bf16 %v3907_v8, %v3906_v49  ;;  %v3912_v49 = vmul.f32 %v3850_v11, %v9436_v43 }
 0x7ea   : > { %8035 = vmatprep.mubr.msk.f32.mxu0 %vm1263_vm0, %v3179_v54  ;;  %v3909_v54 = vmul.f32 %v3851_v30, %v9485_v12  ;;  %v3913_v8 = vmul.f32 %v3851_v30, %v9438_v60 }
 0x7eb   : > { %8036 = vmatmul.mubr.msk.f32.vlgmr.msra.gmra.mrb[20].mxu0 %vm1263_vm0, %v3180_v27  ;;  %v3815_v27 = vmul.f32 %v3813_v0, %v9343_v45 }
 0x7ec   : > { %8340 = vmatpush3.bf16.msra.mxu0 %v9558_v34  ;;  %8049 = vmatprep.mubr.msk.f32.mxu0 %vm1263_vm0, %v9630_v36  ;;  %v9642_v34 = vld [vmem:[%s8768_s19] sm:$0xff]  ;;  %v8353_v48 = vpack.c.bf16 %v3909_v54, %v3908_v44  ;;  %v3914_v44 = vmul.f32 %v3850_v11, %v9382_v41  ;;  %v3915_v54 = vmul.f32 %v3851_v30, %v9390_v35 }
 0x7ed   : > { %8342 = vmatprep.subr.bf16.mxu0 %v8341_v51  ;;  %v3889_v56 = vmul.f32 %v3815_v27, %v9485_v12  ;;  %v3891_v7 = vmul.f32 %v3815_v27, %v9428_v24  ;;  %v3893_v58 = vmul.f32 %v3815_v27, %v9438_v60  ;;  %v3900_v41 = vmul.f32 %v9614_v5, %v9426_v38 }
 0x7ee   : > { %v3902_v38 = vmul.f32 %v9614_v5, %v9436_v43  ;;  %v9704_v43 = vld [vmem:[%s9090_s28 + $0x28] sm:$0xff] }
 0x7ef   : > { %8050 = vmatmul.mubr.msk.f32.vlgmr.msra.gmra.mrb[22].mxu0 %vm1263_vm0, %v9637_v33  ;;  %v8347_v62 = vpack.c.bf16 %v3889_v56, %v3888_v53  ;;  %v8351_v0 = vpack.c.bf16 %v3891_v7, %v3890_v26  ;;  %v8355_v32 = vpack.c.bf16 %v3893_v58, %v3892_v55  ;;  %v3895_v53 = vmul.f32 %v3815_v27, %v9390_v35 }
 0x7f0   : > { %8344 = vmatpush3.bf16.msra.mxu0 %v8341_v51  ;;  %8056 = vmatprep.mubr.msk.f32.mxu0 %vm1263_vm0, %v9642_v34  ;;  %v9664_v51 = vld [vmem:[%s9090_s28 + $0x8] sm:$0xff]  ;;  %v3896_v26 = vmul.f32 %v3814_v4, %v9440_v31  ;;  %v3897_v7 = vmul.f32 %v3815_v27, %v9442_v19  ;;  %v3898_v55 = vmul.f32 %v9614_v5, %v9468_v23  ;;  %v9729_v5 = vld [vmem:[%s10612_s2] sm:$0x3f] }
 0x7f1   : > { %8346 = vmatprep.subr.bf16.mxu0 %v8345_v14  ;;  %v3911_v14 = vmul.f32 %v3851_v30, %v9428_v24  ;;  %v3899_v58 = vmul.f32 %v9618_v50, %v9485_v12  ;;  %v3917_v4 = vmul.f32 %v3851_v30, %v9442_v19  ;;  %v3901_v35 = vmul.f32 %v9618_v50, %v9428_v24 }
 0x7f2   : > { %10648 = vst [vmem:[#allocation52_spill] sm:$0xff] %v9729_v5 }
 0x7f3   : > { %v8357_v56 = vpack.c.bf16 %v3911_v14, %v3910_v57  ;;  %v3916_v57 = vmul.f32 %v3850_v11, %v9440_v31  ;;  %v8367_v27 = vpack.c.bf16 %v3899_v58, %v3898_v55  ;;  %v3919_v31 = vmul.f32 %v9434_v52, %v9485_v12  ;;  %v9699_v52 = vld [vmem:[%s9090_s28] sm:$0xff]  ;;  %v10668_v55 = vld [vmem:[#allocation38_spill] sm:$0xff]  ;;  %v10669_v58 = vld [vmem:[#allocation39_spill] sm:$0xff] }
 0x7f4   : > { %v8371_v19 = vpack.c.bf16 %v3901_v35, %v3900_v41  ;;  %v3903_v11 = vmul.f32 %v9618_v50, %v9438_v60  ;;  %v9708_v60 = vld [vmem:[%s8798_s27] sm:$0x3f]  ;;  %v8044_v50 = vpop.f32.mrb[16].mxu1 }
 0x7f5   : > { %v8369_v14 = vpack.c.bf16 %v3917_v4, %v3916_v57  ;;  %v9717_v12 = vld [vmem:[%s8778_s30] sm:$0xff]  ;;  %v3365_v30 = vpop.f32.mrb[17].mxu1 }
 0x7f6   : > { %8061 = vmatprep.mubr.msk.f32.mxu1 %vm1531_vm4, %v3365_v30 }
 0x7f7   : > { %8057 = vmatmul.mubr.msk.f32.vlgmr.msra.gmra.mrb[22].mxu0 %vm1263_vm0, %v9657_v59  ;;  %8062 = vmatmul.mubr.msk.f32.vlgmr.msra.gmra.mrb[18].mxu1 %vm1531_vm4, %v8044_v50 }
 0x7f8   : > { %8348 = vmatpush3.bf16.msra.mxu0 %v8347_v62  ;;  %4002 = vmatprep.mubr.f32.mxu0 %v9664_v51  ;;  %v8359_v62 = vpack.c.bf16 %v3895_v53, %v3894_v42  ;;  %v9736_v42 = vld [vmem:[%s8788_s12] sm:$0x3f]  ;;  %v10649_v53 = vmov 0.0|0.0  }
 0x7f9   : > { %8350 = vmatprep.subr.bf16.mxu0 %v8349_v47  ;;  %v8361_v47 = vpack.c.bf16 %v3913_v8, %v3912_v49  ;;  %8065 = vmatpush3.msk.msra.mxu1 %vm1538_vm3, %v9736_v42 }
 0x7fa   : > { %8377 = vmatprep.subr.bf16.mxu1 %v10649_v53 }
 0x7fc   : > { %8352 = vmatpush3.bf16.msra.mxu0 %v8351_v0  ;;  %v8363_v0 = vpack.c.bf16 %v3897_v7, %v3896_v26  ;;  %v10652_v26 = vpack.c.bf16 %v9450_v1, %v9446_v3  ;;  %v9751_v7 = vld [vmem:[%s9090_s28 + $0x18] sm:$0xff]  ;;  %v10656_v3 = vpack.c.bf16 %v9478_v29, %v9474_v39  ;;  %v10657_v1 = vpack.c.bf16 %v9506_v22, %v9491_v6 }
 0x7fd   : > { %8354 = vmatprep.subr.bf16.mxu0 %v8353_v48  ;;  %v8365_v48 = vpack.c.bf16 %v3915_v54, %v3914_v44  ;;  %10653 = vst [vmem:[#allocation55_spill] sm:$0xff] %v9751_v7  ;;  %v10655_v44 = vpack.c.bf16 %v9466_v21, %v9462_v17  ;;  %v10660_v21 = vpack.c.bf16 %v9515_v18, %v9500_v15  ;;  %v10664_v18 = vld [vmem:[#allocation34_spill] sm:$0xff]  ;;  %v9810_v54 = vld [vmem:[%s10613_s25] sm:$0x3f] }
 0x7fe   : > { %10666 = vst [vmem:[#allocation58_spill] sm:$0xff] %v9810_v54 }
 0x800   : > { %8356 = vmatpush3.bf16.msra.mxu0 %v8355_v32  ;;  %v3918_v32 = vmul.f32 %v9431_v25, %v9468_v23  ;;  %v8375_v25 = vpack.c.bf16 %v3903_v11, %v3902_v38  ;;  %v9713_v23 = vld [vmem:[%s9090_s28 + $0x20] sm:$0xff] }
 0x801   : > { %8358 = vmatprep.subr.bf16.mxu0 %v8357_v56 }
 0x802   : > { %v8373_v24 = vpack.c.bf16 %v3919_v31, %v3918_v32 }
 0x804   : > { %8360 = vmatpush3.bf16.msra.mxu0 %v8359_v62 }
 0x805   : > { %8362 = vmatprep.subr.bf16.mxu0 %v8361_v47  ;;  %v10654_v47 = vpack.c.bf16 %v9458_v2, %v9454_v10  ;;  %v10658_v10 = vpack.c.bf16 %v9509_v46, %v9494_v40  ;;  %v10659_v2 = vpack.c.bf16 %v9512_v9, %v9497_v61  ;;  %v10661_v40 = vpack.c.bf16 %v9518_v16, %v9503_v20  ;;  %v9789_v46 = vld [vmem:[%s9090_s28 + $0x10] sm:$0xff]  ;;  %v9793_v9 = vld [vmem:[%s9090_s28 + $0x38] sm:$0xff] }
 0x806   : > { %10662 = vst [vmem:[#allocation56_spill] sm:$0xff] %v9789_v46  ;;  %10663 = vst [vmem:[#allocation57_spill] sm:$0xff] %v9793_v9  ;;  %v9801_v16 = vld [vmem:[%s9090_s28 + $0x30] sm:$0xff] }
 0x807   : > { %10665 = vst [vmem:[#allocation34_spill] sm:$0xff] %v9801_v16 }
 0x808   : > { %8364 = vmatpush3.bf16.msra.mxu0 %v8363_v0  ;;  %v9820_v0 = vld [vmem:[%s10614_s7] sm:$0x3f] }
 0x809   : > { %8366 = vmatprep.subr.bf16.mxu0 %v8365_v48  ;;  %10667 = vst [vmem:[#allocation59_spill] sm:$0xff] %v9820_v0 }
 0x80c   : > { %8368 = vmatpush3.bf16.msra.mxu0 %v8367_v27 }
 0x80d   : > { %8370 = vmatprep.subr.bf16.mxu0 %v8369_v14 }
 0x810   : > { %8372 = vmatpush3.bf16.msra.mxu0 %v8371_v19 }
 0x811   : > { %8374 = vmatprep.subr.bf16.mxu0 %v8373_v24 }
 0x814   : > { %8376 = vmatpush3.bf16.msra.mxu0 %v8375_v25  ;;  %v9853_v25 = vld [vmem:[%s9275_s4 + $0x8] sm:$0xff] }
 0x815   : > { %8405 = vmatprep.subr.bf16.mxu0 %v9352_v13  ;;  %10670 = vst [vmem:[#allocation38_spill] sm:$0xff] %v9853_v25 }
 0x817   : > { %4003 = vmatmul.mubr.f32.vlgmr.msra.gmra.mrb[24].mxu0 %v9699_v52 }
 0x818   : > { %8407 = vmatpush3.bf16.msra.mxu0 %v9352_v13  ;;  %4007 = vmatprep.mubr.f32.mxu0 %v9704_v43  ;;  %v9722_v13 = vld [vmem:[%s8778_s30 + $0x8] sm:$0xff] }
 0x819   : > { %8076 = vmatprep.subr.msk.mxu0 %vm1538_vm3, %v9708_v60 }
 0x81b   : > { %4008 = vmatmul.mubr.f32.gmra.mrb[26].mxu0 %v9713_v23 }
 0x81c   : > { %8073 = vmatprep.mubr.msk.f32.mxu0 %vm1263_vm0, %v9717_v12 }
 0x81f   : > { %8074 = vmatmul.mubr.msk.f32.vlgmr.msra.gmra.mrb[28].mxu0 %vm1263_vm0, %v9722_v13 }
 0x820   : > { %8077 = vmatpush3.msk.msra.mxu0 %vm1538_vm3, %v9708_v60 }
 0x821   : > { %8081 = vmatprep.subr.msk.mxu0 %vm1538_vm3, %v9729_v5 }
 0x8be   : > { %v9741_v56 = vpop.f32.mrb[20].mxu0 }
 0x8bf   : > { %10650 = vst [vmem:[#allocation53_spill] sm:$0xff] %v9741_v56  ;;  %v9743_v49 = vpop.f32.mrb[21].mxu0  ;;  %v8653_v56 = vld [vmem:[%s8931_s23 + $0x8] sm:$0xff] }
 0x8c0   : > { %10651 = vst [vmem:[#allocation54_spill] sm:$0xff] %v9743_v49 }
 0x8ca   : > { %v8058_v8 = vpop.f32.mrb[22].mxu0  ;;  %v9836_v48 = vpop.f32.mrb[18].mxu1 }
 0x8cb   : > { %v3519_v62 = vpop.f32.mrb[23].mxu0  ;;  %v9838_v57 = vpop.f32.mrb[19].mxu1 }
 0x8cc   : > { %8066 = vmatprep.mubr.msk.f32.mxu1 %vm1531_vm4, %v3519_v62 }
 0x8cd   : > { %8067 = vmatmul.mubr.msk.f32.vlgmr.msra.gmra.mrb[20].mxu1 %vm1531_vm4, %v8058_v8  ;;  %v9857_v8 = vld [vmem:[%s9275_s4] sm:$0xff] }
 0x8ce   : > { %8379 = vmatpush1.bf16.msra.mxu1 %v10652_v26  ;;  %7492 = vmatprep.mubr.msk.f32.mxu1 %vm1263_vm0, %v9751_v7  ;;  %10671 = vst [vmem:[#allocation39_spill] sm:$0xff] %v9857_v8 }
 0x8cf   : > { %8380 = vmatprep.subr.bf16.mxu1 %v10649_v53 }
 0x8d2   : > { %8382 = vmatpush1.bf16.msra.mxu1 %v10654_v47 }
 0x8d3   : > { %8383 = vmatprep.subr.bf16.mxu1 %v10649_v53 }
 0x8d6   : > { %8385 = vmatpush1.bf16.msra.mxu1 %v10655_v44  ;;  %v9863_v44 = vld [vmem:[%s10618_s18] sm:$0xff] }
 0x8d7   : > { %8386 = vmatprep.subr.bf16.mxu1 %v10649_v53  ;;  %10672 = vst [vmem:[#allocation60_spill] sm:$0xff] %v9863_v44 }
 0x8da   : > { %8388 = vmatpush1.bf16.msra.mxu1 %v10656_v3  ;;  %v10673_v3 = vld [vmem:[#allocation35_spill] sm:$0xff] }
 0x8db   : > { %8389 = vmatprep.subr.bf16.mxu1 %v10649_v53 }
 0x8de   : > { %8391 = vmatpush1.bf16.msra.mxu1 %v10657_v1 }
 0x8df   : > { %8392 = vmatprep.subr.bf16.mxu1 %v10649_v53 }
 0x8e2   : > { %8394 = vmatpush1.bf16.msra.mxu1 %v10658_v10 }
 0x8e3   : > { %8395 = vmatprep.subr.bf16.mxu1 %v10649_v53 }
 0x8e6   : > { %8397 = vmatpush1.bf16.msra.mxu1 %v10659_v2 }
 0x8e7   : > { %8398 = vmatprep.subr.bf16.mxu1 %v10649_v53 }
 0x8ea   : > { %v7786_v17 = vpop.f32.mrb[24].mxu0  ;;  %8400 = vmatpush1.bf16.msra.mxu1 %v10660_v21 }
 0x8eb   : > { %v7787_v39 = vpop.f32.mrb[25].mxu0  ;;  %8401 = vmatprep.subr.bf16.mxu1 %v10649_v53 }
 0x8ec   : > { %v7788_v29 = vadd.f32 %v7787_v39, %v7786_v17  ;;  %v9868_v17 = vld [vmem:[%s10620_s8] ss:$0 sm:$0xff] }
 0x8ed   : > { %10674 = vst [vmem:[#allocation61_spill] sm:$0xff] %v9868_v17 }
 0x8ee   : > { %v7789_v6 = vpop.f32.mrb[26].mxu0  ;;  %8403 = vmatpush1.bf16.msra.mxu1 %v10661_v40 }
 0x8ef   : > { %v7790_v61 = vpop.f32.mrb[27].mxu0  ;;  %8409 = vmatprep.subr.bf16.mxu1 %v9257_v37 }
 0x8f0   : > { %v7791_v22 = vadd.f32 %v7790_v61, %v7789_v6 }
 0x8f1   : > { %4078 = vmatmul.mubr.f32.vlgmr.msra.gmra.mrb[22].mxu1 %v9789_v46 }
 0x8f2   : > { %v8075_v15 = vpop.f32.mrb[28].mxu0  ;;  %7493 = vmatprep.mubr.msk.f32.mxu1 %vm1263_vm0, %v9793_v9  ;;  %8411 = vmatpush3.bf16.msra.mxu1 %v9257_v37 }
 0x8f3   : > { %v4156_v20 = vpop.f32.mrb[29].mxu0  ;;  %8093 = vmatprep.subr.mxu1 %v10664_v18 }
 0x8f4   : > { %8078 = vmatprep.mubr.msk.f32.mxu0 %vm1531_vm4, %v4156_v20 }
 0x8f5   : > { %4083 = vmatmul.mubr.f32.gmra.mrb[24].mxu1 %v9801_v16  ;;  %8079 = vmatmul.mubr.msk.f32.vlgmr.msra.gmra.mrb[30].mxu0 %vm1531_vm4, %v8075_v15 }
 0x8f6   : > { %8082 = vmatpush3.msk.msra.mxu0 %vm1538_vm3, %v9729_v5  ;;  %8083 = vmatprep.mubr.msk.f32.mxu0 %vm1531_vm4, %v9346_v63 }
 0x8f7   : > { %8098 = vmatprep.subr.msk.mxu0 %vm1538_vm3, %v9810_v54 }
 0x8fd   : > { %8084 = vmatmul.mubr.msk.f32.vlgmr.msra.gmra.mrb[30].mxu0 %vm1531_vm4, %v9343_v45 }
 0x8fe   : > { %8100 = vmatprep.mubr.msk.f32.mxu0 %vm1531_vm4, %v4156_v20  ;;  %8099 = vmatpush3.msk.msra.mxu0 %vm1538_vm3, %v9810_v54 }
 0x8ff   : > { %8103 = vmatprep.subr.msk.mxu0 %vm1538_vm3, %v9820_v0 }
 0x901   : > { %8101 = vmatmul.mubr.msk.f32.vlgmr.msra.gmra.mrb[32].mxu0 %vm1531_vm4, %v8075_v15 }
 0x902   : > { %8105 = vmatprep.mubr.msk.f32.mxu0 %vm1531_vm4, %v9346_v63  ;;  %8104 = vmatpush3.msk.msra.mxu0 %vm1538_vm3, %v9820_v0 }
 0x903   : > { %8120 = vmatprep.subr.msk.mxu0 %vm1538_vm3, %v10668_v55 }
 0x909   : > { %8106 = vmatmul.mubr.msk.f32.vlgmr.msra.gmra.mrb[32].mxu0 %vm1531_vm4, %v9343_v45 }
 0x90a   : > { %8121 = vmatpush3.msk.msra.mxu0 %vm1538_vm3, %v10668_v55 }
 0x90b   : > { %8130 = vmatprep.subr.mxu0 %v10669_v58  ;;  %v9885_v58 = vld [vmem:[%s10623_s9] sm:$0xff] }
 0x90c   : > { %10677 = vst [vmem:[#allocation64_spill] sm:$0xff] %v9885_v58 }
 0x9a0   : > { %v9840_v4 = vpop.f32.mrb[20].mxu1 }
 0x9a1   : > { %v3691_v27 = vsub.f32 %v9836_v48, %v9840_v4  ;;  %v9844_v41 = vpop.f32.mrb[21].mxu1 }
 0x9a2   : > { %v3690_v35 = vsub.f32 %v9838_v57, %v9844_v41 }
 0x9c4   : > { %v4079_v14 = vpop.f32.mrb[22].mxu1 }
 0x9c5   : > { %v9848_v32 = vadd.f32 %v7788_v29, %v4079_v14  ;;  %v4081_v31 = vpop.f32.mrb[23].mxu1  ;;  %v9872_v29 = vld [vmem:[%s9293_s15] sm:$0xff] }
 0x9c6   : > { %10675 = vst [vmem:[#allocation62_spill] sm:$0xff] %v9872_v29  ;;  %v10678_v14 = vld [vmem:[#allocation44_spill] sm:$0xff] }
 0x9c8   : > { %v4084_v19 = vpop.f32.mrb[24].mxu1 }
 0x9c9   : > { %v9850_v38 = vadd.f32 %v7791_v22, %v4084_v19  ;;  %v4086_v11 = vpop.f32.mrb[25].mxu1  ;;  %v9877_v22 = vld [vmem:[%s9293_s15 + $0x8] sm:$0xff]  ;;  %v9891_v19 = vld [vmem:[#allocation2] ss:$0 sm:$0xff] }
 0x9ca   : > { %10676 = vst [vmem:[#allocation63_spill] sm:$0xff] %v9877_v22  ;;  %10679 = vst [vmem:[#allocation44_spill] sm:$0xff] %v9891_v19 }
 0x9d0   : > { %v8085_v24 = vpop.f32.mrb[30].mxu0 }
 0x9d1   : > { %v4322_v50 = vadd.f32 %v9853_v25, %v8085_v24  ;;  %v4312_v30 = vpop.f32.mrb[31].mxu0 }
 0x9d2   : > { %v4321_v62 = vadd.f32 %v9857_v8, %v4312_v30 }
 0x9d3   : > { %v4324_v47 = vmax.f32 %v4322_v50, 0.0 }
 0x9d4   : > { %v4323_v26 = vmax.f32 %v4321_v62, 0.0 }
 0x9d6   : > { %8090 = vmatprep.mubr.msk.f32.mxu1 %vm1263_vm0, %v4323_v26 }
 0x9d7   : > { %8091 = vmatmul.mubr.msk.f32.vlgmr.msra.gmra.mrb[26].mxu1 %vm1263_vm0, %v4324_v47  ;;  %v9896_v47 = vld [vmem:[%s10624_s11] ss:$0 sm:$0xff] }
 0x9d8   : > { %8094 = vmatpush3.msra.mxu1 %v9863_v44  ;;  %10680 = vst [vmem:[#allocation65_spill] sm:$0xff] %v9896_v47 }
 0x9d9   : > { %8413 = vmatprep.subr.bf16.mxu1 %v10673_v3 }
 0x9dc   : > { %v8107_v1 = vpop.f32.mrb[32].mxu0 }
 0x9dd   : > { %v4670_v10 = vpop.f32.mrb[33].mxu0  ;;  %v4680_v15 = vadd.f32 %v9877_v22, %v8107_v1 }
 0x9de   : > { %v4679_v6 = vadd.f32 %v9872_v29, %v4670_v10 }
 0x9df   : > { %v4682_v55 = vmax.f32 %v4680_v15, 0.0 }
 0x9e0   : > { %v4681_v18 = vmax.f32 %v4679_v6, 0.0  ;;  %v10681_v6 = vld [vmem:[#allocation45_spill] sm:$0xff] }
 0xaaa   : > { %v8092_v2 = vpop.f32.mrb[26].mxu1 }
 0xaab   : > { %v4403_v21 = vadd.f32 %v9868_v17, %v8092_v2  ;;  %v4397_v39 = vpop.f32.mrb[27].mxu1 }
 0xaac   : > { %v4398_v40 = vadd.f32 %v9868_v17, %v4397_v39 }
 0xaad   : > { %v4407_v20 = vmax.f32 %v4403_v21, 0.0 }
 0xaae   : > { %v4406_v61 = vmax.f32 %v4398_v40, 0.0 }
 0xab0   : > { %8095 = vmatprep.mubr.msk.f32.mxu1 %vm2455_vm5, %v4406_v61 }
 0xab1   : > { %8096 = vmatmul.mubr.msk.f32.vlgmr.msra.gmra.mrb[28].mxu1 %vm2455_vm5, %v4407_v20 }
 0xab2   : > { %8415 = vmatpush3.bf16.msra.mxu1 %v10673_v3  ;;  %8112 = vmatprep.mubr.msk.f32.mxu1 %vm1263_vm0, %v4681_v18 }
 0xab3   : > { %8115 = vmatprep.subr.mxu1 %v9885_v58 }
 0xab5   : > { %8113 = vmatmul.mubr.msk.f32.vlgmr.msra.gmra.mrb[30].mxu1 %vm1263_vm0, %v4682_v55 }
 0xab6   : > { %8116 = vmatpush3.msra.mxu1 %v9885_v58 }
 0xab7   : > { %8125 = vmatprep.subr.mxu1 %v10678_v14 }
 0xb84   : > { %v8097_v31 = vpop.f32.mrb[28].mxu1 }
 0xb85   : > { %v4486_v11 = vadd.f32 %v9891_v19, %v8097_v31  ;;  %v4480_v24 = vpop.f32.mrb[29].mxu1 }
 0xb86   : > { %v4481_v50 = vadd.f32 %v9891_v19, %v4480_v24  ;;  %v4088_v24 = vsub.f32 %v9848_v32, %v9346_v63 }
 0xb87   : > { %v7507_v30 = vmul.f32 -1.442695, %v4486_v11 }
 0xb88   : > { %v7506_v62 = vmul.f32 -1.442695, %v4481_v50  ;;  %v8114_v26 = vpop.f32.mrb[30].mxu1 }
 0xb89   : > { %8591 = vpow2.f32 %v7507_v30  ;;  %v4761_v1 = vadd.f32 %v9896_v47, %v8114_v26  ;;  %v4755_v10 = vpop.f32.mrb[31].mxu1 }
 0xb8a   : > { %8593 = vpow2.f32 %v7506_v62  ;;  %v4756_v2 = vadd.f32 %v9896_v47, %v4755_v10  ;;  %v4089_v10 = vsub.f32 %v9850_v38, %v9343_v45 }
 0xb8b   : > { %v4765_v39 = vmax.f32 %v4761_v1, 0.0 }
 0xb8c   : > { %v4764_v21 = vmax.f32 %v4756_v2, 0.0 }
 0xb8e   : > { %8117 = vmatprep.mubr.msk.f32.mxu1 %vm2455_vm5, %v4764_v21 }
 0xb8f   : > { %8118 = vmatmul.mubr.msk.f32.vlgmr.msra.gmra.mrb[32].mxu1 %vm2455_vm5, %v4765_v39 }
 0xb90   : > { %8126 = vmatpush3.msra.mxu1 %v10678_v14 }
 0xb91   : > { %8417 = vmatprep.subr.bf16.mxu1 %v10681_v6 }
 0xb93   : > { %v8592_v40 = vpop.eup %8591 }
 0xb94   : > { %v8594_v61 = vpop.eup %8593  ;;  %v4496_v15 = vadd.f32 1.0, %v8592_v40 }
 0xb95   : > { %v4495_v20 = vadd.f32 1.0, %v8594_v61  ;;  %v8648_v61 = vld [vmem:[%s10630_s17] ss:$0 sm:$0xff] }
 0xb97   : > { %8595 = vrcp.f32 %v4495_v20 }
 0xb98   : > { %8597 = vrcp.f32 %v4496_v15 }
 0xba1   : > { %v9904_v18 = vpop.eup %8595 }
 0xba2   : > { %10682 = vst [vmem:[#allocation66_spill] sm:$0xff] %v9904_v18  ;;  %4503 = vperm.xlu0 %8573, %v9904_v18   ;;  %v4513_v55 = vsub.f32 1.0, %v9904_v18  ;;  %v9908_v31 = vpop.eup %8597 }
 0xba3   : > { %10683 = vst [vmem:[#allocation67_spill] sm:$0xff] %v9908_v31  ;;  %v4514_v14 = vsub.f32 1.0, %v9908_v31 }
 0xba4   : > { %4517 = vperm.xlu1 %8574, %v4513_v55  }
 0xba6   : > { %4508 = vperm.xlu0 %8573, %v9908_v31  }
 0xba8   : > { %4522 = vperm.xlu1 %8574, %v4514_v14  }
 0xc21   : > { %v4504_v11 = vpop.permute.xlu0 %4503 }
 0xc22   : > { %v4511_v30 = vmul.f32 %v4504_v11, %v3690_v35 }
 0xc23   : > { %v4518_v50 = vpop.permute.xlu1 %4517 }
 0xc24   : > { %v4525_v62 = vmul.f32 %v4518_v50, %v4088_v24  ;;  %v8650_v50 = vld [vmem:[%s8935_s26] sm:$0xff] }
 0xc25   : > { %v4509_v26 = vpop.permute.xlu0 %4508 }
 0xc26   : > { %v4527_v1 = vadd.f32 %v4525_v62, %v4511_v30  ;;  %v4512_v21 = vmul.f32 %v4509_v26, %v3691_v27  ;;  %v9944_v27 = vld [vmem:[%s10626_s13] sm:$0xff]  ;;  %v8651_v62 = vld [vmem:[%s8935_s26 + $0x8] sm:$0xff]  ;;  %s8525_s26 = smul.u32 48, %s10766_s16 }
 0xc27   : > { %v4523_v2 = vpop.permute.xlu1 %4522  ;;  %10686 = vst [vmem:[#allocation70_spill] sm:$0xff] %v9944_v27 }
 0xc28   : > { %v4526_v39 = vmul.f32 %v4523_v2, %v4089_v10  ;;  %v4847_v20 = vadd.f32 %v4527_v1, %v9346_v63 }
 0xc2a   : > { %v4528_v40 = vadd.f32 %v4526_v39, %v4512_v21 }
 0xc2c   : > { %v4848_v57 = vadd.f32 %v4528_v40, %v9343_v45 }
 0xc62   : > { %v8119_v32 = vpop.f32.mrb[32].mxu1 }
 0xc63   : > { %v9923_v15 = vadd.f32 %v8648_v61, %v8119_v32  ;;  %v4838_v41 = vpop.f32.mrb[33].mxu1 }
 0xc64   : > { %v9926_v35 = vadd.f32 %v8648_v61, %v4838_v41 }
 0xc65   : > { %10684 = vst [vmem:[#allocation68_spill] sm:$0xff] %v9923_v15  ;;  %v9930_v38 = vadd.f32 %v4848_v57, %v9923_v15 }
 0xc66   : > { %10685 = vst [vmem:[#allocation69_spill] sm:$0xff] %v9926_v35  ;;  %v9933_v48 = vadd.f32 %v4847_v20, %v9926_v35 }
 0xc67   : > { %vm5604_vm9 = vcmp.eq.f32.partialorder %v9930_v38, 0.0 }
 0xc68   : > { %8122 = vmatprep.mubr.msk.f32.mxu0 %vm1531_vm4, %v9933_v48  ;;  %v9939_v4 = vpack.c.bf16 %v9930_v38, %v9933_v48  ;;  %vm5603_vm8 = vcmp.eq.f32.partialorder %v9933_v48, 0.0  ;;  %v5606_v14 = vsel %vm5604_vm9, 1.0, %v9930_v38 }
 0xc69   : > { %8123 = vmatmul.mubr.msk.f32.vlgmr.msra.gmra.mrb[34].mxu0 %vm1531_vm4, %v9930_v38  ;;  %v5605_v55 = vsel %vm5603_vm8, 1.0, %v9933_v48 }
 0xc6a   : > { %8131 = vmatpush3.msra.mxu0 %v9944_v27  ;;  %8599 = vrcp.f32 %v5605_v55 }
 0xc6b   : > { %8421 = vmatprep.subr.bf16.mxu0 %v9939_v4  ;;  %8601 = vrcp.f32 %v5606_v14  ;;  %v8652_v14 = vld [vmem:[%s8931_s23] sm:$0xff]  ;;  %s10761_s23 = sld [smem:[#allocation27_spill]] }
 0xc71   : > { %s10420_s28 = scalar_lea.vmem %s10761_s23, %s8525_s26 }
 0xc74   : > { %v8600_v11 = vpop.eup %8599 }
 0xc75   : > { %v8602_v24 = vpop.eup %8601  ;;  %v5609_v30 = vmul.f32 %v8650_v50, %v8600_v11  ;;  %v5615_v50 = vmul.f32 %v8652_v14, %v8600_v11 }
 0xc76   : > { %v5610_v26 = vmul.f32 %v8651_v62, %v8602_v24  ;;  %v5616_v62 = vmul.f32 %v8653_v56, %v8602_v24 }
 0xc77   : > { %v7541_v1 = vclamps-f32 %v5609_v30, 2.0  ;;  %v7543_v45 = vclamps-f32 %v5615_v50, 2.0 }
 0xc78   : > { %v7542_v10 = vclamps-f32 %v5610_v26, 2.0 }
 0xc79   : > { %v7545_v2 = vadd.f32 -0.5, %v7541_v1  ;;  %v9954_v21 = vadd.f32 0.5, %v7541_v1  ;;  %v9964_v31 = vadd.f32 -0.5, %v7543_v45  ;;  %v9966_v18 = vadd.f32 0.5, %v7543_v45 }
 0xc7a   : > { %v7546_v39 = vadd.f32 -0.5, %v7542_v10  ;;  %v9956_v40 = vadd.f32 0.5, %v7542_v10  ;;  %v7544_v10 = vclamps-f32 %v5616_v62, 2.0 }
 0xc7b   : > { %v7559_v32 = vadd.f32 -2.5, %v7545_v2  ;;  %v7561_v61 = vadd.f32 -3.5, %v9954_v21  ;;  %v7549_v56 = vadd.f32 -0.5, %v9954_v21  ;;  %v7551_v50 = vadd.f32 -0.5, %v7545_v2 }
 0xc7c   : > { %v7560_v57 = vadd.f32 -2.5, %v7546_v39  ;;  %v7562_v41 = vadd.f32 -3.5, %v9956_v40  ;;  %v9968_v14 = vadd.f32 -0.5, %v7544_v10  ;;  %v7550_v24 = vadd.f32 -0.5, %v9956_v40 }
 0xc7d   : > { %v5675_v20 = vmax.f32 %v7559_v32, 0.0  ;;  %v5681_v55 = vmax.f32 %v7561_v61, 0.0  ;;  %v7547_v32 = vadd.f32 0.5, %v7545_v2  ;;  %v7548_v61 = vadd.f32 0.5, %v7546_v39 }
 0xc7e   : > { %v5676_v30 = vmax.f32 %v7560_v57, 0.0  ;;  %v5682_v26 = vmax.f32 %v7562_v41, 0.0  ;;  %v9974_v41 = vadd.f32 0.5, %v7544_v10  ;;  %v7566_v45 = vadd.f32 -4.5, %v9956_v40 }
 0xc7f   : > { %v5677_v49 = vadd.f32 2.5, %v5675_v20  ;;  %v5683_v1 = vsub.f32 %v9954_v21, %v5681_v55  ;;  %v7563_v20 = vadd.f32 -3.5, %v7545_v2  ;;  %v7564_v55 = vadd.f32 -3.5, %v7546_v39 }
 0xc80   : > { %v5678_v63 = vadd.f32 2.5, %v5676_v30  ;;  %v5684_v15 = vsub.f32 %v9956_v40, %v5682_v26  ;;  %v7552_v62 = vadd.f32 -0.5, %v7546_v39  ;;  %v5625_v30 = vmax.f32 %v7547_v32, 0.0 }
 0xc81   : > { %v5685_v35 = vsub.f32 %v5683_v1, %v5677_v49  ;;  %v7565_v49 = vadd.f32 -4.5, %v9954_v21  ;;  %v7554_v26 = vadd.f32 -1.5, %v9956_v40  ;;  %v5634_v47 = vmax.f32 %v7550_v24, 0.0 }
 0xc82   : > { %v5686_v11 = vsub.f32 %v5684_v15, %v5678_v63  ;;  %v5626_v63 = vmax.f32 %v7548_v61, 0.0  ;;  %v7553_v15 = vadd.f32 -1.5, %v9954_v21  ;;  %v7555_v10 = vadd.f32 -1.5, %v7545_v2 }
 0xc83   : > { %v9972_v57 = vmax.f32 %v5685_v35, 0.0  ;;  %v5633_v35 = vmax.f32 %v7549_v56, 0.0  ;;  %v5691_v19 = vmax.f32 %v7563_v20, 0.0  ;;  %v5692_v58 = vmax.f32 %v7564_v55, 0.0 }
 0xc84   : > { %v9980_v1 = vmax.f32 %v5686_v11, 0.0  ;;  %v7556_v22 = vadd.f32 -1.5, %v7546_v39  ;;  %v7557_v29 = vadd.f32 -2.5, %v9954_v21  ;;  %v5697_v17 = vmax.f32 %v7565_v49, 0.0 }
 0xc85   : > { %v5698_v3 = vmax.f32 %v7566_v45, 0.0  ;;  %v5643_v8 = vmax.f32 %v7551_v50, 0.0  ;;  %v5644_v25 = vmax.f32 %v7552_v62, 0.0  ;;  %v9983_v32 = vadd.f32 -0.5, %v5625_v30 }
 0xc86   : > { %v5649_v61 = vmax.f32 %v7553_v15, 0.0  ;;  %v5650_v27 = vmax.f32 %v7554_v26, 0.0  ;;  %v7558_v0 = vadd.f32 -2.5, %v9956_v40  ;;  %v9986_v11 = vadd.f32 -0.5, %v5626_v63 }
 0xc87   : > { %v9989_v56 = vsub.f32 %v9954_v21, %v5633_v35  ;;  %v9992_v2 = vsub.f32 %v9956_v40, %v5634_v47  ;;  %v5659_v39 = vmax.f32 %v7555_v10, 0.0  ;;  %v5693_v24 = vadd.f32 3.5, %v5691_v19 }
 0xc88   : > { %v5694_v20 = vadd.f32 3.5, %v5692_v58  ;;  %v5660_v55 = vmax.f32 %v7556_v22, 0.0  ;;  %v5665_v49 = vmax.f32 %v7557_v29, 0.0  ;;  %v5699_v45 = vsub.f32 %v9954_v21, %v5697_v17 }
 0xc89   : > { %v5700_v50 = vsub.f32 %v9956_v40, %v5698_v3  ;;  %v5645_v62 = vadd.f32 0.5, %v5643_v8  ;;  %v5646_v30 = vadd.f32 0.5, %v5644_v25  ;;  %v5651_v63 = vsub.f32 %v9954_v21, %v5649_v61 }
 0xc8a   : > { %v5652_v15 = vsub.f32 %v9956_v40, %v5650_v27  ;;  %v5666_v26 = vmax.f32 %v7558_v0, 0.0  ;;  %v7581_v35 = vadd.f32 -2.5, %v9964_v31  ;;  %v5661_v47 = vadd.f32 1.5, %v5659_v39 }
 0xc8b   : > { %v7582_v10 = vadd.f32 -2.5, %v9968_v14  ;;  %v7583_v58 = vadd.f32 -3.5, %v9966_v18  ;;  %v7584_v29 = vadd.f32 -3.5, %v9974_v41  ;;  %v5662_v22 = vadd.f32 1.5, %v5660_v55 }
 0xc8c   : > { %v5667_v17 = vsub.f32 %v9954_v21, %v5665_v49  ;;  %v5765_v3 = vmax.f32 %v7581_v35, 0.0  ;;  %v7585_v25 = vadd.f32 -3.5, %v9964_v31  ;;  %v7586_v0 = vadd.f32 -3.5, %v9968_v14 }
 0xc8d   : > { %v5766_v8 = vmax.f32 %v7582_v10, 0.0  ;;  %v5771_v19 = vmax.f32 %v7583_v58, 0.0  ;;  %v5772_v61 = vmax.f32 %v7584_v29, 0.0  ;;  %v5668_v27 = vsub.f32 %v9956_v40, %v5666_v26 }
 0xc8e   : > { %v5767_v39 = vadd.f32 2.5, %v5765_v3  ;;  %v5783_v54 = vmax.f32 %v7585_v25, 0.0  ;;  %v7587_v16 = vadd.f32 -4.5, %v9966_v18  ;;  %v5784_v21 = vmax.f32 %v7586_v0, 0.0 }
 0xc8f   : > { %v5768_v44 = vadd.f32 2.5, %v5766_v8  ;;  %v5773_v9 = vsub.f32 %v9966_v18, %v5771_v19  ;;  %v5774_v55 = vsub.f32 %v9974_v41, %v5772_v61  ;;  %v5653_v49 = vsub.f32 %v5651_v63, %v5645_v62  ;;  %v10701_v61 = vld [vmem:[#allocation29_spill] sm:$0xff] }
 0xc90   : > { %v5785_v35 = vadd.f32 3.5, %v5783_v54  ;;  %v7588_v10 = vadd.f32 -4.5, %v9974_v41  ;;  %v5789_v58 = vmax.f32 %v7587_v16, 0.0  ;;  %v5654_v29 = vsub.f32 %v5652_v15, %v5646_v30 }
 0xc91   : > { %v5669_v46 = vsub.f32 %v5667_v17, %v5661_v47  ;;  %v5775_v37 = vsub.f32 %v5773_v9, %v5767_v39  ;;  %v5776_v7 = vsub.f32 %v5774_v55, %v5768_v44  ;;  %v5670_v40 = vsub.f32 %v5668_v27, %v5662_v22  ;;  %v10702_v47 = vld [vmem:[#allocation31_spill] sm:$0xff] }
 0xc92   : > { %v5786_v26 = vadd.f32 3.5, %v5784_v21  ;;  %v5790_v3 = vmax.f32 %v7588_v10, 0.0  ;;  %v5791_v25 = vsub.f32 %v9966_v18, %v5789_v58  ;;  %v5701_v8 = vsub.f32 %v5699_v45, %v5693_v24  ;;  %v10700_v21 = vld [vmem:[#allocation47_spill] sm:$0xff] }
 0xc93   : > { %v5702_v53 = vsub.f32 %v5700_v50, %v5694_v20  ;;  %v5777_v19 = vmax.f32 %v5775_v37, 0.0  ;;  %v5778_v5 = vmax.f32 %v5776_v7, 0.0  ;;  %v5637_v62 = vsub.f32 %v9989_v56, %v9983_v32 }
 0xc94   : > { %v5638_v54 = vsub.f32 %v9992_v2, %v9986_v11  ;;  %v5792_v16 = vsub.f32 %v9974_v41, %v5790_v3  ;;  %v5793_v30 = vsub.f32 %v5791_v25, %v5785_v35  ;;  %v10016_v9 = vmax.f32 %v5653_v49, 0.0 }
 0xc95   : > { %v10018_v44 = vmax.f32 %v5654_v29, 0.0  ;;  %v10021_v63 = vmul.f32 %v5777_v19, %v9933_v48  ;;  %v10024_v24 = vmul.f32 %v5778_v5, %v9930_v38  ;;  %v10026_v37 = vmax.f32 %v5669_v46, 0.0 }
 0xc96   : > { %v10028_v7 = vmax.f32 %v5670_v40, 0.0  ;;  %v5794_v32 = vsub.f32 %v5792_v16, %v5786_v26  ;;  %v5795_v56 = vmax.f32 %v5793_v30, 0.0  ;;  %v10030_v11 = vmax.f32 %v5701_v8, 0.0 }
 0xc97   : > { %v10032_v2 = vmax.f32 %v5702_v53, 0.0  ;;  %v10036_v20 = vmul.f32 %v10021_v63, %v10016_v9  ;;  %v10040_v45 = vmul.f32 %v10024_v24, %v10018_v44  ;;  %v10044_v5 = vmul.f32 %v10021_v63, %v10026_v37 }
 0xc98   : > { %v10048_v46 = vmul.f32 %v10024_v24, %v10028_v7  ;;  %v10052_v53 = vmul.f32 %v10021_v63, %v9972_v57  ;;  %v10056_v50 = vmul.f32 %v10024_v24, %v9980_v1  ;;  %v10058_v15 = vmax.f32 %v5637_v62, 0.0 }
 0xc99   : > { %v10064_v22 = vmul.f32 %v10021_v63, %v10030_v11  ;;  %v10068_v17 = vmul.f32 %v10024_v24, %v10032_v2  ;;  %v5796_v27 = vmax.f32 %v5794_v32, 0.0  ;;  %v5797_v39 = vmul.f32 %v5795_v56, %v9933_v48 }
 0xc9a   : > { %v10075_v55 = vmax.f32 %v5638_v54, 0.0  ;;  %v5287_v62 = vmul.f32 %v9933_v48, %v10701_v61  ;;  %v5288_v54 = vmul.f32 %v9930_v38, %v10702_v47 }
 0xc9b   : > { %10687 = vst [vmem:[#allocation71_spill] sm:$0xff] %v10064_v22  ;;  %10688 = vst [vmem:[#allocation72_spill] sm:$0xff] %v10068_v17  ;;  %v5798_v49 = vmul.f32 %v5796_v27, %v9930_v38  ;;  %v10081_v35 = vmul.f32 %v5797_v39, %v10058_v15  ;;  %v10084_v10 = vmul.f32 %v5797_v39, %v10016_v9  ;;  %v10699_v27 = vld [vmem:[#allocation46_spill] sm:$0xff] }
 0xc9c   : > { %v10087_v58 = vmul.f32 %v5797_v39, %v10026_v37  ;;  %v10090_v29 = vmul.f32 %v5797_v39, %v9972_v57  ;;  %v10093_v40 = vmul.f32 %v5797_v39, %v10030_v11  ;;  %v10128_v30 = vpack.c.bf16 %v5288_v54, %v5287_v62  ;;  %v10706_v62 = vld [vmem:[#allocation51_spill] sm:$0xff] }
 0xc9d   : > { %10689 = vst [vmem:[#allocation73_spill] sm:$0xff] %v10081_v35  ;;  %10690 = vst [vmem:[#allocation74_spill] sm:$0xff] %v10084_v10  ;;  %v10096_v26 = vmul.f32 %v5798_v49, %v10075_v55  ;;  %v10099_v3 = vmul.f32 %v5798_v49, %v10018_v44  ;;  %v10102_v25 = vmul.f32 %v5798_v49, %v10028_v7  ;;  %v7573_v54 = vadd.f32 -0.5, %v9964_v31 }
 0xc9e   : > { %10691 = vst [vmem:[#allocation75_spill] sm:$0xff] %v10087_v58  ;;  %10692 = vst [vmem:[#allocation76_spill] sm:$0xff] %v10090_v29  ;;  %v10105_v8 = vmul.f32 %v5798_v49, %v9980_v1  ;;  %v10108_v19 = vmul.f32 %v5798_v49, %v10032_v2 }
 0xc9f   : > { %10693 = vst [vmem:[#allocation77_spill] sm:$0xff] %v10093_v40  ;;  %10694 = vst [vmem:[#allocation78_spill] sm:$0xff] %v10096_v26  ;;  %v7571_v40 = vadd.f32 -0.5, %v9966_v18 }
 0xca0   : > { %10695 = vst [vmem:[#allocation79_spill] sm:$0xff] %v10099_v3  ;;  %10696 = vst [vmem:[#allocation80_spill] sm:$0xff] %v10102_v25 }
 0xca1   : > { %10697 = vst [vmem:[#allocation81_spill] sm:$0xff] %v10105_v8  ;;  %10698 = vst [vmem:[#allocation82_spill] sm:$0xff] %v10108_v19  ;;  %v7572_v19 = vadd.f32 -0.5, %v9974_v41 }
 0xd3c   : > { %v8124_v56 = vpop.f32.mrb[34].mxu0 }
 0xd3d   : > { %v4929_v39 = vadd.f32 %v8124_v56, %v10699_v27  ;;  %v4923_v49 = vpop.f32.mrb[35].mxu0 }
 0xd3e   : > { %v4924_v0 = vadd.f32 %v4923_v49, %v10700_v21  ;;  %v10703_v21 = vld [vmem:[#allocation48_spill] sm:$0xff] }
 0xd3f   : > { %v4933_v16 = vmax.f32 %v4929_v39, 0.0  ;;  %v7576_v39 = vadd.f32 -1.5, %v9974_v41 }
 0xd40   : > { %v4932_v10 = vmax.f32 %v4924_v0, 0.0  ;;  %v10704_v0 = vld [vmem:[#allocation49_spill] sm:$0xff] }
 0xd42   : > { %8127 = vmatprep.mubr.msk.f32.mxu1 %vm2455_vm5, %v4932_v10  ;;  %v10705_v10 = vld [vmem:[#allocation50_spill] sm:$0xff] }
 0xd43   : > { %8128 = vmatmul.mubr.msk.f32.vlgmr.msra.gmra.mrb[34].mxu1 %vm2455_vm5, %v4933_v16  ;;  %v7574_v16 = vadd.f32 -0.5, %v9968_v14 }
 0xd44   : > { %8419 = vmatpush3.bf16.msra.mxu1 %v10681_v6  ;;  %v7570_v6 = vadd.f32 0.5, %v9968_v14 }
 0xd45   : > { %8425 = vmatprep.subr.bf16.mxu1 %v10128_v30 }
 0xe16   : > { %v8129_v56 = vpop.f32.mrb[34].mxu1 }
 0xe17   : > { %v5012_v27 = vadd.f32 %v8129_v56, %v10703_v21  ;;  %v5006_v49 = vpop.f32.mrb[35].mxu1  ;;  %v5729_v56 = vmax.f32 %v7573_v54, 0.0 }
 0xe18   : > { %v5007_v61 = vadd.f32 %v10703_v21, %v5006_v49  ;;  %v5730_v21 = vmax.f32 %v7574_v16, 0.0  ;;  %v5736_v49 = vmax.f32 %v7576_v39, 0.0  ;;  %v5710_v16 = vmax.f32 %v7570_v6, 0.0 }
 0xe19   : > { %v5016_v47 = vmax.f32 %v5012_v27, 0.0  ;;  %v5718_v39 = vmax.f32 %v7572_v19, 0.0 }
 0xe1a   : > { %v5015_v32 = vmax.f32 %v5007_v61, 0.0  ;;  %v5731_v61 = vadd.f32 0.5, %v5729_v56  ;;  %v7577_v56 = vadd.f32 -1.5, %v9964_v31  ;;  %v5712_v35 = vadd.f32 -0.5, %v5710_v16  ;;  %v10172_v16 = vld [vmem:[%s8871_s22] ss:$0 sm:$0xff] }
 0xe1c   : > { %8132 = vmatprep.mubr.msk.f32.mxu0 %vm2455_vm5, %v5015_v32  ;;  %v7575_v32 = vadd.f32 -1.5, %v9966_v18  ;;  %v5747_v6 = vmax.f32 %v7577_v56, 0.0 }
 0xe1d   : > { %8133 = vmatmul.mubr.msk.f32.vlgmr.msra.gmra.mrb[36].mxu0 %vm2455_vm5, %v5016_v47  ;;  %v5732_v47 = vadd.f32 0.5, %v5730_v21  ;;  %v7578_v21 = vadd.f32 -1.5, %v9968_v14 }
 0xe1e   : > { %8423 = vmatpush3.bf16.msra.mxu0 %v9939_v4  ;;  %8146 = vmatprep.mubr.msk.f32.mxu0 %vm1263_vm0, %v10704_v0  ;;  %v5735_v27 = vmax.f32 %v7575_v32, 0.0  ;;  %v5717_v32 = vmax.f32 %v7571_v40, 0.0 }
 0xe1f   : > { %8163 = vmatprep.subr.msk.mxu0 %vm1538_vm3, %v10705_v10  ;;  %v5748_v40 = vmax.f32 %v7578_v21, 0.0 }
 0xe20   : > { %v5737_v0 = vsub.f32 %v9966_v18, %v5735_v27  ;;  %v7579_v27 = vadd.f32 -2.5, %v9966_v18 }
 0xe21   : > { %8147 = vmatmul.mubr.msk.f32.vlgmr.msra.gmra.mrb[38].mxu0 %vm1263_vm0, %v10706_v62  ;;  %v7569_v62 = vadd.f32 0.5, %v9964_v31 }
 0xe22   : > { %8164 = vmatpush3.msk.msra.mxu0 %vm1538_vm3, %v10705_v10  ;;  %v5738_v10 = vsub.f32 %v9974_v41, %v5736_v49  ;;  %v5739_v29 = vsub.f32 %v5737_v0, %v5731_v61  ;;  %v7580_v49 = vadd.f32 -2.5, %v9974_v41  ;;  %v5719_v61 = vsub.f32 %v9966_v18, %v5717_v32 }
 0xe23   : > { %8168 = vmatprep.subr.msk.mxu0 %vm1538_vm3, %v9736_v42  ;;  %v5709_v54 = vmax.f32 %v7569_v62, 0.0  ;;  %v5753_v19 = vmax.f32 %v7579_v27, 0.0  ;;  %v10707_v62 = vld [vmem:[#allocation30_spill] sm:$0xff]  ;;  %v5750_v27 = vadd.f32 1.5, %v5748_v40 }
 0xe24   : > { %v5740_v8 = vsub.f32 %v5738_v10, %v5732_v47  ;;  %v5741_v58 = vmax.f32 %v5739_v29, 0.0  ;;  %v5720_v47 = vsub.f32 %v9974_v41, %v5718_v39  ;;  %v5754_v0 = vmax.f32 %v7580_v49, 0.0  ;;  %v10708_v29 = vld [vmem:[#allocation32_spill] sm:$0xff] }
 0xe25   : > { %v5711_v3 = vadd.f32 -0.5, %v5709_v54  ;;  %v5285_v26 = vmul.f32 %v9933_v48, %v10707_v62  ;;  %v5755_v49 = vsub.f32 %v9966_v18, %v5753_v19 }
 0xe26   : > { %v5742_v25 = vmax.f32 %v5740_v8, 0.0  ;;  %v5286_v8 = vmul.f32 %v9930_v38, %v10708_v29  ;;  %v10169_v54 = vmul.f32 %v5741_v58, %v9933_v48  ;;  %v5722_v21 = vsub.f32 %v5720_v47, %v5712_v35 }
 0xe27   : > { %v5721_v56 = vsub.f32 %v5719_v61, %v5711_v3 }
 0xe28   : > { %v10176_v39 = vmul.f32 %v5742_v25, %v9930_v38  ;;  %v8428_v58 = vpack.c.bf16 %v5286_v8, %v5285_v26  ;;  %v5724_v17 = vmax.f32 %v5722_v21, 0.0  ;;  %v5815_v25 = vmul.f32 %v10169_v54, %v9972_v57 }
 0xe29   : > { %v5723_v22 = vmax.f32 %v5721_v56, 0.0 }
 0xe2a   : > { %v5816_v35 = vmul.f32 %v10176_v39, %v9980_v1 }
 0xe2b   : > { %v5725_v18 = vmul.f32 %v5723_v22, %v9933_v48  ;;  %v5817_v22 = vmul.f32 %v10169_v54, %v10030_v11 }
 0xe2c   : > { %v8432_v26 = vpack.c.bf16 %v5816_v35, %v5815_v25 }
 0xe2d   : > { %v5803_v56 = vmul.f32 %v5725_v18, %v10026_v37  ;;  %v5807_v35 = vmul.f32 %v5725_v18, %v10030_v11 }
 0xef0   : > { %v8134_v31 = vpop.f32.mrb[36].mxu0 }
 0xef1   : > { %v5095_v14 = vadd.f32 %v8134_v31, %v9604_v28  ;;  %v5089_v10 = vpop.f32.mrb[37].mxu0  ;;  %v5749_v28 = vadd.f32 1.5, %v5747_v6  ;;  %v5756_v31 = vsub.f32 %v9974_v41, %v5754_v0  ;;  %v5726_v41 = vmul.f32 %v5724_v17, %v9930_v38 }
 0xef2   : > { %v5090_v32 = vadd.f32 %v10172_v16, %v5089_v10  ;;  %v5818_v17 = vmul.f32 %v10176_v39, %v10032_v2  ;;  %v5801_v0 = vmul.f32 %v5725_v18, %v10016_v9 }
 0xef3   : > { %v5099_v29 = vmax.f32 %v5095_v14, 0.0  ;;  %v5757_v3 = vsub.f32 %v5755_v49, %v5749_v28  ;;  %v5758_v61 = vsub.f32 %v5756_v31, %v5750_v27  ;;  %v5804_v21 = vmul.f32 %v5726_v41, %v10028_v7 }
 0xef4   : > { %v5098_v62 = vmax.f32 %v5090_v32, 0.0  ;;  %v8436_v14 = vpack.c.bf16 %v5818_v17, %v5817_v22  ;;  %v5805_v31 = vmul.f32 %v5725_v18, %v9972_v57 }
 0xef5   : > { %v5759_v47 = vmax.f32 %v5757_v3, 0.0  ;;  %v5760_v6 = vmax.f32 %v5758_v61, 0.0  ;;  %v5808_v3 = vmul.f32 %v5726_v41, %v10032_v2 }
 0xef6   : > { %8139 = vmatprep.mubr.msk.f32.mxu1 %vm1263_vm0, %v5098_v62  ;;  %v5806_v62 = vmul.f32 %v5726_v41, %v9980_v1 }
 0xef7   : > { %8140 = vmatmul.mubr.msk.f32.vlgmr.msra.gmra.mrb[36].mxu1 %vm1263_vm0, %v5099_v29  ;;  %v5762_v40 = vmul.f32 %v5760_v6, %v9930_v38  ;;  %v8450_v6 = vpack.c.bf16 %v5808_v3, %v5807_v35  ;;  %v10735_v35 = vld [vmem:[#allocation57_spill] sm:$0xff] }
 0xef8   : > { %8427 = vmatpush3.bf16.msra.mxu1 %v10128_v30  ;;  %8153 = vmatprep.mubr.msk.f32.mxu1 %vm1263_vm0, %v9630_v36  ;;  %v5799_v30 = vmul.f32 %v5725_v18, %v10058_v15  ;;  %v5800_v36 = vmul.f32 %v5726_v41, %v10075_v55  ;;  %v8446_v25 = vpack.c.bf16 %v5806_v62, %v5805_v31 }
 0xef9   : > { %8429 = vmatprep.subr.bf16.mxu1 %v8428_v58  ;;  %v5820_v8 = vmul.f32 %v5762_v40, %v10075_v55  ;;  %v5822_v49 = vmul.f32 %v5762_v40, %v10018_v44  ;;  %v5828_v18 = vmul.f32 %v5762_v40, %v10032_v2  ;;  %v5813_v2 = vmul.f32 %v10169_v54, %v10026_v37 }
 0xefa   : > { %v8434_v19 = vpack.c.bf16 %v5800_v36, %v5799_v30  ;;  %v5809_v30 = vmul.f32 %v10169_v54, %v10058_v15  ;;  %v5810_v36 = vmul.f32 %v10176_v39, %v10075_v55 }
 0xefb   : > { %8154 = vmatmul.mubr.msk.f32.vlgmr.msra.gmra.mrb[38].mxu1 %vm1263_vm0, %v9637_v33  ;;  %v5761_v33 = vmul.f32 %v5759_v47, %v9933_v48  ;;  %v5826_v47 = vmul.f32 %v5762_v40, %v9980_v1  ;;  %v5812_v1 = vmul.f32 %v10176_v39, %v10018_v44 }
 0xefc   : > { %8431 = vmatpush3.bf16.msra.mxu1 %v8428_v58  ;;  %8160 = vmatprep.mubr.msk.f32.mxu1 %vm1263_vm0, %v9642_v34  ;;  %v5802_v34 = vmul.f32 %v5726_v41, %v10018_v44  ;;  %v5824_v58 = vmul.f32 %v5762_v40, %v10028_v7  ;;  %v8454_v41 = vpack.c.bf16 %v5810_v36, %v5809_v30  ;;  %v10739_v30 = vld [vmem:[#allocation59_spill] sm:$0xff]  ;;  %v8656_v36 = vld [vmem:[%s10625_s5] sm:$0x3f] }
 0xefd   : > { %8433 = vmatprep.subr.bf16.mxu1 %v8432_v26  ;;  %v5819_v10 = vmul.f32 %v5761_v33, %v10058_v15  ;;  %v5821_v27 = vmul.f32 %v5761_v33, %v10016_v9  ;;  %v5825_v26 = vmul.f32 %v5761_v33, %v9972_v57  ;;  %v5827_v17 = vmul.f32 %v5761_v33, %v10030_v11 }
 0xefe   : > { %v8438_v32 = vpack.c.bf16 %v5802_v34, %v5801_v0  ;;  %v5811_v57 = vmul.f32 %v10169_v54, %v10016_v9  ;;  %v5829_v0 = vmul.f32 %v10021_v63, %v10058_v15  ;;  %v5830_v34 = vmul.f32 %v10024_v24, %v10075_v55  ;;  %v10709_v63 = vld [vmem:[#allocation52_spill] sm:$0xff]  ;;  %v10718_v55 = vld [vmem:[#allocation78_spill] sm:$0xff]  ;;  %v10719_v54 = vld [vmem:[#allocation73_spill] sm:$0xff] }
 0xeff   : > { %v8440_v28 = vpack.c.bf16 %v5820_v8, %v5819_v10  ;;  %v8444_v29 = vpack.c.bf16 %v5822_v49, %v5821_v27  ;;  %v8452_v22 = vpack.c.bf16 %v5826_v47, %v5825_v26  ;;  %v10711_v24 = vpack.c.bf16 %v10040_v45, %v10036_v20  ;;  %v10715_v15 = vld [vmem:[#allocation72_spill] sm:$0xff]  ;;  %v10716_v20 = vld [vmem:[#allocation71_spill] sm:$0xff]  ;;  %v10727_v8 = vld [vmem:[#allocation81_spill] sm:$0xff] }
 0xf00   : > { %v8458_v11 = vpack.c.bf16 %v5812_v1, %v5811_v57  ;;  %v8460_v9 = vpack.c.bf16 %v5830_v34, %v5829_v0  ;;  %v10717_v45 = vpack.c.bf16 %v10715_v15, %v10716_v20  ;;  %v10730_v49 = vld [vmem:[#allocation82_spill] sm:$0xff]  ;;  %v8655_v47 = vld [vmem:[%s10612_s2] sm:$0x3f] }
 0xf01   : > { %v10737_v26 = vld [vmem:[#allocation34_spill] sm:$0xff]  ;;  %v10744_v20 = vld [vmem:[#allocation61_spill] sm:$0xff] }
 0xf03   : > { %8161 = vmatmul.mubr.msk.f32.vlgmr.msra.gmra.mrb[38].mxu1 %vm1263_vm0, %v9657_v59  ;;  %v8442_v59 = vpack.c.bf16 %v5804_v21, %v5803_v56 }
 0xf04   : > { %8435 = vmatpush3.bf16.msra.mxu1 %v8434_v19  ;;  %5913 = vmatprep.mubr.f32.mxu1 %v9664_v51  ;;  %v5823_v51 = vmul.f32 %v5761_v33, %v10026_v37  ;;  %v8456_v19 = vpack.c.bf16 %v5828_v18, %v5827_v17  ;;  %v5814_v33 = vmul.f32 %v10176_v39, %v10028_v7  ;;  %v10712_v37 = vld [vmem:[#allocation55_spill] sm:$0xff] }
 0xf05   : > { %8437 = vmatprep.subr.bf16.mxu1 %v8436_v14  ;;  %v10714_v7 = vpack.c.bf16 %v10056_v50, %v10052_v53  ;;  %v10720_v39 = vpack.c.bf16 %v10718_v55, %v10719_v54  ;;  %v10724_v53 = vld [vmem:[#allocation80_spill] sm:$0xff]  ;;  %v10725_v50 = vld [vmem:[#allocation75_spill] sm:$0xff]  ;;  %v10745_v54 = vld [vmem:[#allocation62_spill] sm:$0xff] }
 0xf06   : > { %v8448_v61 = vpack.c.bf16 %v5824_v58, %v5823_v51  ;;  %v8462_v44 = vpack.c.bf16 %v5814_v33, %v5813_v2  ;;  %v10726_v14 = vpack.c.bf16 %v10724_v53, %v10725_v50  ;;  %v10734_v58 = vld [vmem:[#allocation56_spill] sm:$0xff] }
 0xf08   : > { %8439 = vmatpush3.bf16.msra.mxu1 %v8438_v32  ;;  %v10728_v32 = vld [vmem:[#allocation76_spill] sm:$0xff] }
 0xf09   : > { %8441 = vmatprep.subr.bf16.mxu1 %v8440_v28  ;;  %v10729_v56 = vpack.c.bf16 %v10727_v8, %v10728_v32  ;;  %v10747_v8 = vld [vmem:[#allocation64_spill] sm:$0xff] }
 0xf0a   : > { %v8657_v32 = vld [vmem:[%s10636_s20] sm:$0xff] }
 0xf0c   : > { %8443 = vmatpush3.bf16.msra.mxu1 %v8442_v59  ;;  %v10731_v59 = vld [vmem:[#allocation77_spill] sm:$0xff] }
 0xf0d   : > { %8445 = vmatprep.subr.bf16.mxu1 %v8444_v29  ;;  %v10732_v31 = vpack.c.bf16 %v10730_v49, %v10731_v59  ;;  %v10733_v29 = vld [vmem:[#allocation33_spill] sm:$0xff] }
 0xf10   : > { %8447 = vmatpush3.bf16.msra.mxu1 %v8446_v25 }
 0xf11   : > { %8449 = vmatprep.subr.bf16.mxu1 %v8448_v61  ;;  %v10736_v61 = vld [vmem:[#allocation60_spill] sm:$0xff] }
 0xf14   : > { %8451 = vmatpush3.bf16.msra.mxu1 %v8450_v6  ;;  %v10738_v6 = vld [vmem:[#allocation58_spill] sm:$0xff] }
 0xf15   : > { %8453 = vmatprep.subr.bf16.mxu1 %v8452_v22  ;;  %v10740_v22 = vld [vmem:[#allocation70_spill] sm:$0xff] }
 0xf18   : > { %8455 = vmatpush3.bf16.msra.mxu1 %v8454_v41 }
 0xf19   : > { %8457 = vmatprep.subr.bf16.mxu1 %v8456_v19 }
 0xf1c   : > { %8459 = vmatpush3.bf16.msra.mxu1 %v8458_v11 }
 0xf1d   : > { %8461 = vmatprep.subr.bf16.mxu1 %v8460_v9 }
 0xf20   : > { %8463 = vmatpush3.bf16.msra.mxu1 %v8462_v44 }
 0xf21   : > { %8492 = vmatprep.subr.bf16.mxu1 %v9939_v4 }
 0xf23   : > { %5914 = vmatmul.mubr.f32.vlgmr.msra.gmra.mrb[40].mxu1 %v9699_v52  ;;  %v8148_v52 = vpop.f32.mrb[38].mxu0 }
 0xf24   : > { %8494 = vmatpush3.bf16.msra.mxu1 %v9939_v4  ;;  %5918 = vmatprep.mubr.f32.mxu1 %v9704_v43  ;;  %v5276_v4 = vpop.f32.mrb[39].mxu0  ;;  %v10710_v43 = vmov 0.0|0.0  }
 0xf25   : > { %8180 = vmatprep.subr.msk.mxu1 %vm1538_vm3, %v9708_v60  ;;  %8165 = vmatprep.mubr.msk.f32.mxu0 %vm1531_vm4, %v5276_v4 }
 0xf26   : > { %8166 = vmatmul.mubr.msk.f32.vlgmr.msra.gmra.mrb[40].mxu0 %vm1531_vm4, %v8148_v52 }
 0xf27   : > { %5919 = vmatmul.mubr.f32.gmra.mrb[42].mxu1 %v9713_v23  ;;  %8169 = vmatpush3.msk.msra.mxu0 %vm1538_vm3, %v9736_v42  ;;  %v10713_v42 = vpack.c.bf16 %v10048_v46, %v10044_v5  ;;  %v10721_v5 = vld [vmem:[#allocation79_spill] sm:$0xff]  ;;  %v10722_v46 = vld [vmem:[#allocation74_spill] sm:$0xff] }
 0xf28   : > { %8177 = vmatprep.mubr.msk.f32.mxu1 %vm1263_vm0, %v9717_v12  ;;  %8464 = vmatprep.subr.bf16.mxu0 %v10710_v43  ;;  %v10723_v40 = vpack.c.bf16 %v10721_v5, %v10722_v46 }
 0xf2b   : > { %8178 = vmatmul.mubr.msk.f32.vlgmr.msra.gmra.mrb[44].mxu1 %vm1263_vm0, %v9722_v13 }
 0xf2c   : > { %8181 = vmatpush3.msk.msra.mxu1 %vm1538_vm3, %v9708_v60 }
 0xf2d   : > { %8185 = vmatprep.subr.msk.mxu1 %vm1538_vm3, %v10709_v63  ;;  %v10741_v63 = vld [vmem:[#allocation38_spill] sm:$0xff] }
 0xfca   : > { %v10260_v23 = vpop.f32.mrb[36].mxu1 }
 0xfcb   : > { %v10262_v12 = vpop.f32.mrb[37].mxu1 }
 0xfd6   : > { %v8162_v13 = vpop.f32.mrb[38].mxu1 }
 0xfd7   : > { %v5430_v60 = vpop.f32.mrb[39].mxu1 }
 0xfd8   : > { %8170 = vmatprep.mubr.msk.f32.mxu0 %vm1531_vm4, %v5430_v60 }
 0xfd9   : > { %8171 = vmatmul.mubr.msk.f32.vlgmr.msra.gmra.mrb[42].mxu0 %vm1531_vm4, %v8162_v13 }
 0xfda   : > { %8466 = vmatpush1.bf16.msra.mxu0 %v10711_v24  ;;  %7589 = vmatprep.mubr.msk.f32.mxu0 %vm1263_vm0, %v10712_v37  ;;  %v10743_v37 = vld [vmem:[#allocation35_spill] sm:$0xff] }
 0xfdb   : > { %8467 = vmatprep.subr.bf16.mxu0 %v10710_v43 }
 0xfde   : > { %8469 = vmatpush1.bf16.msra.mxu0 %v10713_v42 }
 0xfdf   : > { %8470 = vmatprep.subr.bf16.mxu0 %v10710_v43 }
 0xfe2   : > { %8472 = vmatpush1.bf16.msra.mxu0 %v10714_v7 }
 0xfe3   : > { %8473 = vmatprep.subr.bf16.mxu0 %v10710_v43 }
 0xfe6   : > { %8475 = vmatpush1.bf16.msra.mxu0 %v10717_v45 }
 0xfe7   : > { %8476 = vmatprep.subr.bf16.mxu0 %v10710_v43 }
 0xfea   : > { %8478 = vmatpush1.bf16.msra.mxu0 %v10720_v39 }
 0xfeb   : > { %8479 = vmatprep.subr.bf16.mxu0 %v10710_v43 }
 0xfee   : > { %8481 = vmatpush1.bf16.msra.mxu0 %v10723_v40  ;;  %v10746_v40 = vld [vmem:[#allocation63_spill] sm:$0xff] }
 0xfef   : > { %8482 = vmatprep.subr.bf16.mxu0 %v10710_v43 }
 0xff2   : > { %8484 = vmatpush1.bf16.msra.mxu0 %v10726_v14 }
 0xff3   : > { %8485 = vmatprep.subr.bf16.mxu0 %v10710_v43 }
 0xff6   : > { %v7885_v10 = vpop.f32.mrb[40].mxu1  ;;  %8487 = vmatpush1.bf16.msra.mxu0 %v10729_v56 }
 0xff7   : > { %v7886_v21 = vpop.f32.mrb[41].mxu1  ;;  %8488 = vmatprep.subr.bf16.mxu0 %v10710_v43  ;;  %v10742_v43 = vld [vmem:[#allocation39_spill] sm:$0xff] }
 0xff8   : > { %v7887_v28 = vadd.f32 %v7886_v21, %v7885_v10  ;;  %v10748_v21 = vld [vmem:[#allocation44_spill] sm:$0xff] }
 0xff9   : > { %v10336_v17 = vpop.f32.mrb[40].mxu0 }
 0xffa   : > { %v7888_v27 = vpop.f32.mrb[42].mxu1  ;;  %8490 = vmatpush1.bf16.msra.mxu0 %v10732_v31  ;;  %v10338_v18 = vpop.f32.mrb[41].mxu0 }
 0xffb   : > { %v7889_v62 = vpop.f32.mrb[43].mxu1  ;;  %8496 = vmatprep.subr.bf16.mxu0 %v10733_v29 }
 0xffc   : > { %v7890_v51 = vadd.f32 %v7889_v62, %v7888_v27 }
 0xffd   : > { %5989 = vmatmul.mubr.f32.vlgmr.msra.gmra.mrb[44].mxu0 %v10734_v58 }
 0xffe   : > { %v8179_v25 = vpop.f32.mrb[44].mxu1  ;;  %7590 = vmatprep.mubr.msk.f32.mxu0 %vm1263_vm0, %v10735_v35  ;;  %8498 = vmatpush3.bf16.msra.mxu0 %v10733_v29  ;;  %v10749_v29 = vld [vmem:[#allocation65_spill] sm:$0xff] }
 0xfff   : > { %v6067_v3 = vpop.f32.mrb[45].mxu1  ;;  %8197 = vmatprep.subr.mxu0 %v10736_v61 }
0x1000   : > { %8182 = vmatprep.mubr.msk.f32.mxu1 %vm1531_vm4, %v6067_v3 }
0x1001   : > { %5994 = vmatmul.mubr.f32.gmra.mrb[46].mxu0 %v10737_v26  ;;  %8183 = vmatmul.mubr.msk.f32.vlgmr.msra.gmra.mrb[46].mxu1 %vm1531_vm4, %v8179_v25 }
0x1002   : > { %8186 = vmatpush3.msk.msra.mxu1 %vm1538_vm3, %v8655_v47  ;;  %8187 = vmatprep.mubr.msk.f32.mxu1 %vm1531_vm4, %v9933_v48 }
0x1003   : > { %8202 = vmatprep.subr.msk.mxu1 %vm1538_vm3, %v10738_v6 }
0x1009   : > { %8188 = vmatmul.mubr.msk.f32.vlgmr.msra.gmra.mrb[46].mxu1 %vm1531_vm4, %v9930_v38 }
0x100a   : > { %8204 = vmatprep.mubr.msk.f32.mxu1 %vm1531_vm4, %v6067_v3  ;;  %8203 = vmatpush3.msk.msra.mxu1 %vm1538_vm3, %v10738_v6 }
0x100b   : > { %8207 = vmatprep.subr.msk.mxu1 %vm1538_vm3, %v10739_v30 }
0x100d   : > { %8205 = vmatmul.mubr.msk.f32.vlgmr.msra.gmra.mrb[48].mxu1 %vm1531_vm4, %v8179_v25 }
0x100e   : > { %8209 = vmatprep.mubr.msk.f32.mxu1 %vm1531_vm4, %v9933_v48  ;;  %8208 = vmatpush3.msk.msra.mxu1 %vm1538_vm3, %v10739_v30 }
0x100f   : > { %8224 = vmatprep.subr.msk.mxu1 %vm1538_vm3, %v8656_v36 }
0x1015   : > { %8210 = vmatmul.mubr.msk.f32.vlgmr.msra.gmra.mrb[48].mxu1 %vm1531_vm4, %v9930_v38 }
0x1016   : > { %8225 = vmatpush3.msk.msra.mxu1 %vm1538_vm3, %v8656_v36 }
0x1017   : > { %8234 = vmatprep.subr.mxu1 %v10740_v22 }
0x10ac   : > { %v10340_v41 = vpop.f32.mrb[42].mxu0 }
0x10ad   : > { %v5602_v57 = vsub.f32 %v10336_v17, %v10340_v41  ;;  %v10344_v1 = vpop.f32.mrb[43].mxu0  ;;  %v10762_v17 = vld [vmem:[#allocation54_spill] sm:$0xff] }
0x10ae   : > { %v5601_v19 = vsub.f32 %v10338_v18, %v10344_v1 }
0x10d0   : > { %v5990_v0 = vpop.f32.mrb[44].mxu0 }
0x10d1   : > { %v10348_v34 = vadd.f32 %v7887_v28, %v5990_v0  ;;  %v5992_v11 = vpop.f32.mrb[45].mxu0 }
0x10d4   : > { %v5995_v2 = vpop.f32.mrb[46].mxu0 }
0x10d5   : > { %v10350_v33 = vadd.f32 %v7890_v51, %v5995_v2  ;;  %v5997_v9 = vpop.f32.mrb[47].mxu0  ;;  %v10751_v2 = vld [vmem:[#allocation36_spill] sm:$0xff] }
0x10d6   : > { %v10752_v9 = vld [vmem:[#allocation37_spill] sm:$0xff] }
0x10dc   : > { %v8189_v44 = vpop.f32.mrb[46].mxu1 }
0x10dd   : > { %v6233_v52 = vadd.f32 %v10741_v63, %v8189_v44  ;;  %v6223_v4 = vpop.f32.mrb[47].mxu1  ;;  %v10753_v44 = vld [vmem:[#allocation66_spill] sm:$0xff]  ;;  %v10754_v63 = vld [vmem:[#allocation67_spill] sm:$0xff] }
0x10de   : > { %v6232_v13 = vadd.f32 %v10742_v43, %v6223_v4  ;;  %v10756_v4 = vld [vmem:[#allocation40_spill] sm:$0xff]  ;;  %v10757_v43 = vld [vmem:[#allocation69_spill] sm:$0xff] }
0x10df   : > { %v6235_v24 = vmax.f32 %v6233_v52, 0.0  ;;  %v10755_v52 = vld [vmem:[#allocation41_spill] sm:$0xff] }
0x10e0   : > { %v6234_v60 = vmax.f32 %v6232_v13, 0.0  ;;  %v10758_v13 = vld [vmem:[#allocation68_spill] sm:$0xff] }
0x10e2   : > { %8194 = vmatprep.mubr.msk.f32.mxu0 %vm1263_vm0, %v6234_v60  ;;  %v10759_v60 = vld [vmem:[#allocation43_spill] sm:$0xff] }
0x10e3   : > { %8195 = vmatmul.mubr.msk.f32.vlgmr.msra.gmra.mrb[48].mxu0 %vm1263_vm0, %v6235_v24  ;;  %v10760_v24 = vld [vmem:[#allocation42_spill] sm:$0xff] }
0x10e4   : > { %8198 = vmatpush3.msra.mxu0 %v10736_v61  ;;  %v10750_v61 = vld [vmem:[#allocation45_spill] sm:$0xff] }
0x10e5   : > { %8500 = vmatprep.subr.bf16.mxu0 %v10743_v37 }
0x10e8   : > { %v8211_v42 = vpop.f32.mrb[48].mxu1 }
0x10e9   : > { %v6581_v7 = vpop.f32.mrb[49].mxu1  ;;  %v6591_v53 = vadd.f32 %v10746_v40, %v8211_v42  ;;  %v5999_v42 = vsub.f32 %v10348_v34, %v9933_v48 }
0x10ea   : > { %v6590_v39 = vadd.f32 %v10745_v54, %v6581_v7  ;;  %v6000_v54 = vsub.f32 %v10350_v33, %v9930_v38 }
0x10eb   : > { %v6593_v10 = vmax.f32 %v6591_v53, 0.0 }
0x10ec   : > { %v6592_v14 = vmax.f32 %v6590_v39, 0.0 }
0x11b6   : > { %v8196_v15 = vpop.f32.mrb[48].mxu0 }
0x11b7   : > { %v6314_v45 = vadd.f32 %v10744_v20, %v8196_v15  ;;  %v6308_v55 = vpop.f32.mrb[49].mxu0 }
0x11b8   : > { %v6309_v5 = vadd.f32 %v10744_v20, %v6308_v55 }
0x11b9   : > { %v6318_v50 = vmax.f32 %v6314_v45, 0.0 }
0x11ba   : > { %v6317_v46 = vmax.f32 %v6309_v5, 0.0 }
0x11bc   : > { %8199 = vmatprep.mubr.msk.f32.mxu0 %vm2455_vm5, %v6317_v46 }
0x11bd   : > { %8200 = vmatmul.mubr.msk.f32.vlgmr.msra.gmra.mrb[50].mxu0 %vm2455_vm5, %v6318_v50 }
0x11be   : > { %8502 = vmatpush3.bf16.msra.mxu0 %v10743_v37  ;;  %8216 = vmatprep.mubr.msk.f32.mxu0 %vm1263_vm0, %v6592_v14 }
0x11bf   : > { %8219 = vmatprep.subr.mxu0 %v10747_v8 }
0x11c1   : > { %8217 = vmatmul.mubr.msk.f32.vlgmr.msra.gmra.mrb[52].mxu0 %vm1263_vm0, %v6593_v10  ;;  %v10411_v10 = vld [vmem:[#allocation3] ss:$0 sm:$0xff] }
0x11c2   : > { %8220 = vmatpush3.msra.mxu0 %v10747_v8  ;;  %v3260_v41 = vadd.f32 %v10411_v10, %v10762_v17 }
0x11c3   : > { %8229 = vmatprep.subr.mxu0 %v8657_v32 }
0x1290   : > { %v8201_v56 = vpop.f32.mrb[50].mxu0 }
0x1291   : > { %v6397_v28 = vadd.f32 %v10748_v21, %v8201_v56  ;;  %v6391_v27 = vpop.f32.mrb[51].mxu0 }
0x1292   : > { %v6392_v49 = vadd.f32 %v10748_v21, %v6391_v27 }
0x1293   : > { %v7604_v59 = vmul.f32 -1.442695, %v6397_v28 }
0x1294   : > { %v7603_v31 = vmul.f32 -1.442695, %v6392_v49  ;;  %v8218_v62 = vpop.f32.mrb[52].mxu0  ;;  %v5173_v49 = vadd.f32 %v10411_v10, %v10262_v12 }
0x1295   : > { %8603 = vpow2.f32 %v7604_v59  ;;  %v6672_v51 = vadd.f32 %v10749_v29, %v8218_v62  ;;  %v6666_v58 = vpop.f32.mrb[53].mxu0 }
0x1296   : > { %8605 = vpow2.f32 %v7603_v31  ;;  %v6667_v25 = vadd.f32 %v10749_v29, %v6666_v58 }
0x1297   : > { %v6676_v3 = vmax.f32 %v6672_v51, 0.0  ;;  %v5178_v51 = vadd.f32 %v10260_v23, %v10411_v10 }
0x1298   : > { %v6675_v35 = vmax.f32 %v6667_v25, 0.0 }
0x129a   : > { %8221 = vmatprep.mubr.msk.f32.mxu0 %vm2455_vm5, %v6675_v35 }
0x129b   : > { %8222 = vmatmul.mubr.msk.f32.vlgmr.msra.gmra.mrb[54].mxu0 %vm2455_vm5, %v6676_v3 }
0x129c   : > { %8230 = vmatpush3.msra.mxu0 %v8657_v32  ;;  %v10763_v32 = vld [vmem:[#allocation53_spill] sm:$0xff] }
0x129d   : > { %8504 = vmatprep.subr.bf16.mxu0 %v10750_v61  ;;  %v3265_v56 = vadd.f32 %v10763_v32, %v10411_v10 }
0x129f   : > { %v8604_v26 = vpop.eup %8603 }
0x12a0   : > { %v8606_v47 = vpop.eup %8605  ;;  %v6407_v6 = vadd.f32 1.0, %v8604_v26 }
0x12a1   : > { %v6406_v30 = vadd.f32 1.0, %v8606_v47 }
0x12a3   : > { %8607 = vrcp.f32 %v6406_v30 }
0x12a4   : > { %8609 = vrcp.f32 %v6407_v6 }
0x12ad   : > { %v8608_v36 = vpop.eup %8607 }
0x12ae   : > { %6414 = vperm.xlu0 %8573, %v8608_v36   ;;  %v6424_v22 = vsub.f32 1.0, %v8608_v36  ;;  %v8610_v0 = vpop.eup %8609 }
0x12af   : > { %v6425_v11 = vsub.f32 1.0, %v8610_v0 }
0x12b0   : > { %6428 = vperm.xlu1 %8574, %v6424_v22  }
0x12b2   : > { %6419 = vperm.xlu0 %8573, %v8610_v0  }
0x12b4   : > { %6433 = vperm.xlu1 %8574, %v6425_v11  }
0x12b6   : > { %3268 = vrot.lane.b32.xlu0 %v10751_v2, %s8707_s21 }
0x12b8   : > { %3270 = vrot.lane.b32.xlu1 %v10752_v9, %s8707_s21 }
0x12ba   : > { %5181 = vrot.lane.b32.xlu0 %v10753_v44, %s8707_s21 }
0x12bc   : > { %5183 = vrot.lane.b32.xlu1 %v10754_v63, %s8707_s21 }
0x12be   : > { %7092 = vrot.lane.b32.xlu0 %v8608_v36, %s8707_s21  ;;  %v8658_v36 = vld [vmem:[%s10630_s17] ss:$0 sm:$0xff] }
0x12c0   : > { %7094 = vrot.lane.b32.xlu1 %v8610_v0, %s8707_s21 }
0x12c2   : > { %3276 = vrot.lane.b32.xlu0 %v10755_v52, %s8708_s3 }
0x12c4   : > { %3278 = vrot.lane.b32.xlu1 %v10756_v4, %s8708_s3  ;;  %v8660_v4 = vld [vmem:[%s9542_s29 + $0x8] sm:$0xff] }
0x12c6   : > { %5189 = vrot.lane.b32.xlu0 %v10757_v43, %s8708_s3 }
0x12c8   : > { %5191 = vrot.lane.b32.xlu1 %v10758_v13, %s8708_s3  ;;  %v8661_v13 = vld [vmem:[%s9542_s29] sm:$0xff] }
0x12ca   : > { %3282 = vrot.lane.b32.xlu0 %v10759_v60, %s8709_s0 }
0x12cc   : > { %3284 = vrot.lane.b32.xlu1 %v10760_v24, %s8709_s0 }
0x12ce   : > { %5195 = vrot.lane.b32.xlu0 %v9933_v48, %s8709_s0 }
0x12d0   : > { %5197 = vrot.lane.b32.xlu1 %v9930_v38, %s8709_s0 }
0x132d   : > { %v6415_v37 = vpop.permute.xlu0 %6414 }
0x132e   : > { %v6422_v15 = vmul.f32 %v6415_v37, %v5601_v19 }
0x132f   : > { %v6429_v7 = vpop.permute.xlu1 %6428 }
0x1330   : > { %v6436_v20 = vmul.f32 %v6429_v7, %v5999_v42  ;;  %v8662_v7 = vld [vmem:[%s10641_s10] ss:$0 sm:$0xff] }
0x1331   : > { %v6420_v45 = vpop.permute.xlu0 %6419 }
0x1332   : > { %v6438_v55 = vadd.f32 %v6436_v20, %v6422_v15  ;;  %v6423_v5 = vmul.f32 %v6420_v45, %v5602_v57 }
0x1333   : > { %v6434_v39 = vpop.permute.xlu1 %6433 }
0x1334   : > { %v6437_v46 = vmul.f32 %v6434_v39, %v6000_v54  ;;  %v6758_v9 = vadd.f32 %v6438_v55, %v9933_v48 }
0x1335   : > { %v3269_v40 = vpop.permute.xlu0 %3268 }
0x1336   : > { %v6439_v34 = vadd.f32 %v6437_v46, %v6423_v5  ;;  %v3289_v21 = vsel %vm3288_vm10, %v3260_v41, %v3269_v40 }
0x1337   : > { %v3271_v53 = vpop.permute.xlu1 %3270 }
0x1338   : > { %v3290_v59 = vsel %vm3288_vm10, %v3265_v56, %v3271_v53  ;;  %v6759_v0 = vadd.f32 %v6439_v34, %v9930_v38  ;;  %v8659_v38 = vld [vmem:[%s10626_s13] sm:$0xff] }
0x1339   : > { %v5182_v50 = vpop.permute.xlu0 %5181 }
0x133a   : > { %v5201_v58 = vsel %vm3288_vm10, %v5173_v49, %v5182_v50 }
0x133b   : > { %v5184_v18 = vpop.permute.xlu1 %5183 }
0x133c   : > { %v5202_v3 = vsel %vm3288_vm10, %v5178_v51, %v5184_v18 }
0x133d   : > { %v10407_v1 = vpop.permute.xlu0 %7092 }
0x133f   : > { %v10409_v19 = vpop.permute.xlu1 %7094 }
0x1341   : > { %v3277_v14 = vpop.permute.xlu0 %3276 }
0x1342   : > { %v3292_v28 = vsel %vm3291_vm11, %v3289_v21, %v3277_v14 }
0x1343   : > { %v3279_v33 = vpop.permute.xlu1 %3278 }
0x1344   : > { %v3293_v62 = vsel %vm3291_vm11, %v3290_v59, %v3279_v33 }
0x1345   : > { %v5190_v8 = vpop.permute.xlu0 %5189 }
0x1346   : > { %v5203_v12 = vsel %vm3291_vm11, %v5201_v58, %v5190_v8 }
0x1347   : > { %v5192_v57 = vpop.permute.xlu1 %5191 }
0x1348   : > { %v5204_v47 = vsel %vm3291_vm11, %v5202_v3, %v5192_v57 }
0x1349   : > { %v3283_v27 = vpop.permute.xlu0 %3282 }
0x134a   : > { %v3294_v31 = vsel %vm2455_vm5, %v3292_v28, %v3283_v27 }
0x134b   : > { %3297 = vst.msk [vmem:[%s10420_s28] sm:$0xff] %vm3296_vm12, %v3294_v31  ;;  %v3285_v29 = vpop.permute.xlu1 %3284 }
0x134c   : > { %v3295_v25 = vsel %vm2455_vm5, %v3293_v62, %v3285_v29 }
0x134d   : > { %3298 = vst.msk [vmem:[%s10420_s28 + $0x8] sm:$0xff] %vm3296_vm12, %v3295_v25  ;;  %v5196_v35 = vpop.permute.xlu0 %5195 }
0x134e   : > { %v5205_v26 = vsel %vm2455_vm5, %v5203_v12, %v5196_v35 }
0x134f   : > { %7527 = vst.msk [vmem:[%s10420_s28 + $0x10] sm:$0xff] %vm3296_vm12, %v5205_v26  ;;  %v5198_v6 = vpop.permute.xlu1 %5197 }
0x1350   : > { %v5206_v23 = vsel %vm2455_vm5, %v5204_v47, %v5198_v6 }
0x1351   : > { %7528 = vst.msk [vmem:[%s10420_s28 + $0x18] sm:$0xff] %vm3296_vm12, %v5206_v23 }
0x136e   : > { %v8223_v30 = vpop.f32.mrb[54].mxu0 }
0x136f   : > { %v6755_v22 = vadd.f32 %v8658_v36, %v8223_v30  ;;  %v6749_v11 = vpop.f32.mrb[55].mxu0 }
0x1370   : > { %v6750_v2 = vadd.f32 %v8658_v36, %v6749_v11 }
0x1371   : > { %v6761_v44 = vadd.f32 %v6759_v0, %v6755_v22  ;;  %7102 = vrot.lane.b32.xlu1 %v6755_v22, %s8708_s3 }
0x1372   : > { %v6760_v63 = vadd.f32 %v6758_v9, %v6750_v2  ;;  %7100 = vrot.lane.b32.xlu0 %v6750_v2, %s8708_s3 }
0x1374   : > { %8226 = vmatprep.mubr.msk.f32.mxu1 %vm1531_vm4, %v6760_v63 }
0x1375   : > { %7108 = vrot.lane.b32.xlu1 %v6761_v44, %s8709_s0  ;;  %8227 = vmatmul.mubr.msk.f32.vlgmr.msra.gmra.mrb[50].mxu1 %vm1531_vm4, %v6761_v44 }
0x1376   : > { %7106 = vrot.lane.b32.xlu0 %v6760_v63, %s8709_s0  ;;  %8235 = vmatpush3.msra.mxu1 %v8659_v38 }
0x13e4   : > { %v7101_v50 = vpop.permute.xlu0 %7100 }
0x13e8   : > { %v7107_v32 = vpop.permute.xlu0 %7106 }
0x1448   : > { %v8228_v52 = vpop.f32.mrb[50].mxu1 }
0x1449   : > { %v6840_v48 = vadd.f32 %v8660_v4, %v8228_v52  ;;  %v6834_v43 = vpop.f32.mrb[51].mxu1 }
0x144a   : > { %v6835_v60 = vadd.f32 %v8661_v13, %v6834_v43 }
0x144b   : > { %v6844_v37 = vmax.f32 %v6840_v48, 0.0 }
0x144c   : > { %v6843_v24 = vmax.f32 %v6835_v60, 0.0 }
0x144e   : > { %8231 = vmatprep.mubr.msk.f32.mxu0 %vm2455_vm5, %v6843_v24 }
0x144f   : > { %8232 = vmatmul.mubr.msk.f32.vlgmr.msra.gmra.mrb[56].mxu0 %vm2455_vm5, %v6844_v37 }
0x1450   : > { %8506 = vmatpush3.bf16.msra.mxu0 %v10750_v61  ;;  %v7103_v61 = vpop.permute.xlu1 %7102 }
0x1522   : > { %v8233_v42 = vpop.f32.mrb[56].mxu0 }
0x1523   : > { %v6923_v15 = vadd.f32 %v8662_v7, %v8233_v42  ;;  %v6917_v20 = vpop.f32.mrb[57].mxu0 }
0x1524   : > { %v6918_v45 = vadd.f32 %v8662_v7, %v6917_v20 }
0x1525   : > { %v6927_v54 = vmax.f32 %v6923_v15, 0.0 }
0x1526   : > { %v6926_v55 = vmax.f32 %v6918_v45, 0.0 }
0x1528   : > { %8236 = vmatprep.mubr.msk.f32.mxu1 %vm2455_vm5, %v6926_v55 }
0x1529   : > { %8237 = vmatmul.mubr.msk.f32.vlgmr.msra.gmra.mrb[52].mxu1 %vm2455_vm5, %v6927_v54 }
0x15fc   : > { %v8238_v39 = vpop.f32.mrb[52].mxu1 }
0x15fd   : > { %v7006_v5 = vadd.f32 %v10172_v16, %v8238_v39  ;;  %v7000_v46 = vpop.f32.mrb[53].mxu1 }
0x15fe   : > { %v7001_v40 = vadd.f32 %v10172_v16, %v7000_v46  ;;  %v7109_v16 = vpop.permute.xlu1 %7108 }
0x15ff   : > { %v7010_v53 = vmax.f32 %v7006_v5, 0.0 }
0x1600   : > { %v7009_v34 = vmax.f32 %v7001_v40, 0.0 }
0x1602   : > { %8243 = vmatprep.mubr.msk.f32.mxu0 %vm1263_vm0, %v7009_v34 }
0x1603   : > { %8244 = vmatmul.mubr.msk.f32.vlgmr.msra.gmra.mrb[58].mxu0 %vm1263_vm0, %v7010_v53 }
0x16d6   : > { %v8245_v18 = vpop.f32.mrb[58].mxu0 }
0x16d7   : > { %v7089_v14 = vadd.f32 %v8245_v18, %v10411_v10  ;;  %v7083_v33 = vpop.f32.mrb[59].mxu0 }
0x16d8   : > { %v7084_v8 = vadd.f32 %v10411_v10, %v7083_v33 }
0x16d9   : > { %v7113_v17 = vsel %vm3288_vm10, %v7089_v14, %v10409_v19 }
0x16da   : > { %v7115_v41 = vsel %vm3291_vm11, %v7113_v17, %v7103_v61  ;;  %v7112_v57 = vsel %vm3288_vm10, %v7084_v8, %v10407_v1 }
0x16db   : > { %v7117_v56 = vsel %vm2455_vm5, %v7115_v41, %v7109_v16  ;;  %v7114_v21 = vsel %vm3291_vm11, %v7112_v57, %v7101_v50 }
0x16dc   : > { %7625 = vst.msk [vmem:[%s10420_s28 + $0x28] sm:$0xff] %vm3296_vm12, %v7117_v56  ;;  %v7116_v28 = vsel %vm2455_vm5, %v7114_v21, %v7107_v32 }
0x16dd   : > { %7624 = vst.msk [vmem:[%s10420_s28 + $0x20] sm:$0xff] %vm3296_vm12, %v7116_v28 }
0x16de PF: > { %s10764_s29 = sld [smem:[#allocation28_spill]] }
0x16e4   : > { %s83_s3 = sadd.s32 1, %s10764_s29  }
0x16e5   : > { %p80_p4 = scmp.ge.s32.totalorder %s83_s3, 4  }
0x16e7   :  { %82 = sbr.rel (!%p80_p4) target bundleno = 66 (0x42), region = 246 }

// kernel: conflictnet_forward.2
= control target key start
LH: loop header
LB: loop body
LE: loop exit
PB: predicated region body
PF: predicated region fallthrough
CT: control target
= control target key end

     0   :  { %s9019_s6 = smov 1   ;;  %s9020_s10 = smov 2   ;;  %s9991_s0 = inlined_call_operand.smem [shape: u32[44], index: -1, kind: input, shape index: {}] }
   0x1   :  { %s9083_s5 = sld [smem:[%s9991_s0]]   ;;  %s9021_s14 = smov 3  }
   0x2   :  { %s9088_s9 = sld [smem:[%s9991_s0 + %s9019_s6]]   ;;  %s9022_s18 = smov 4  }
   0x3   :  { %s9093_s13 = sld [smem:[%s9991_s0 + %s9020_s10]]   ;;  %s9023_s22 = smov 5  }
   0x4   :  { %s9098_s17 = sld [smem:[%s9991_s0 + %s9021_s14]]   ;;  %s9024_s26 = smov 6  }
   0x5   :  { %s9103_s21 = sld [smem:[%s9991_s0 + %s9022_s18]]   ;;  %s9025_s30 = smov 7  }
   0x6   :  { %s9108_s25 = sld [smem:[%s9991_s0 + %s9023_s22]]   ;;  %s9026_s4 = smov 8  }
   0x7   :  { %10007 = sst [smem:[#allocation2_spill]] %s9083_s5  ;;  %s9027_s10 = smov 9  }
   0x8   :  { %s9113_s29 = sld [smem:[%s9991_s0 + %s9024_s26]]   ;;  %s9028_s15 = smov 10  }
   0x9   :  { %s9118_s3 = sld [smem:[%s9991_s0 + %s9025_s30]]   ;;  %s9029_s20 = smov 11  }
   0xa   :  { %10008 = sst [smem:[#allocation3_spill]] %s9098_s17  ;;  %s9030_s26 = smov 12  }
   0xb   :  { %10009 = sst [smem:[#allocation4_spill]] %s9103_s21  ;;  %s9031_s1 = smov 13  }
   0xc   :  { %10010 = sst [smem:[#allocation5_spill]] %s9108_s25  ;;  %s9032_s7 = smov 14  }
   0xd   :  { %s9123_s8 = sld [smem:[%s9991_s0 + %s9026_s4]]   ;;  %s9034_s22 = smov 16  }
   0xe   :  { %s9128_s14 = sld [smem:[%s9991_s0 + %s9027_s10]]   ;;  %s9035_s28 = smov 17  }
   0xf   :  { %10011 = sst [smem:[#allocation6_spill]] %s9118_s3 }
  0x10   :  { %s9133_s19 = sld [smem:[%s9991_s0 + %s9028_s15]]   ;;  %s9033_s15 = smov 15  }
  0x11   :  { %s9138_s24 = sld [smem:[%s9991_s0 + %s9029_s20]]  }
  0x12   :  { %s9143_s30 = sld [smem:[%s9991_s0 + %s9030_s26]]  }
  0x13   :  { %s9148_s6 = sld [smem:[%s9991_s0 + %s9031_s1]]  }
  0x14   :  { %s9153_s12 = sld [smem:[%s9991_s0 + %s9032_s7]]   ;;  %s9036_s7 = smov 18  }
  0x15   :  { %s9158_s20 = sld [smem:[%s9991_s0 + %s9033_s15]]   ;;  %s9037_s15 = smov 19  }
  0x16   :  { %s9163_s27 = sld [smem:[%s9991_s0 + %s9034_s22]]   ;;  %s9038_s22 = smov 20  }
  0x17   :  { %s9168_s4 = sld [smem:[%s9991_s0 + %s9035_s28]]   ;;  %s9039_s28 = smov 21  }
  0x18   :  { %s9173_s25 = sld [smem:[%s9991_s0 + %s9036_s7]]   ;;  %s9040_s7 = smov 22  }
  0x19   :  { %s9178_s21 = sld [smem:[%s9991_s0 + %s9037_s15]]   ;;  %s9041_s15 = smov 23  }
  0x1a   :  { %s9183_s17 = sld [smem:[%s9991_s0 + %s9038_s22]]   ;;  %s9042_s22 = smov 24  }
  0x1d   :  { %10012 = sst [smem:[#allocation7_spill]] %s9168_s4 }
  0x1e   :  { %10013 = sst [smem:[#allocation8_spill]] %s9173_s25 }
  0x1f   :  { %10014 = sst [smem:[#allocation9_spill]] %s9178_s21 }
  0x20   :  { %10015 = sst [smem:[#allocation10_spill]] %s9183_s17 }
  0x21   :  { %s9188_s4 = sld [smem:[%s9991_s0 + %s9039_s28]]   ;;  %s9043_s28 = smov 25  }
  0x22   :  { %s9193_s25 = sld [smem:[%s9991_s0 + %s9040_s7]]   ;;  %s9044_s7 = smov 26  }
  0x23   :  { %s9198_s21 = sld [smem:[%s9991_s0 + %s9041_s15]]   ;;  %s9045_s15 = smov 27  }
  0x24   :  { %s9203_s17 = sld [smem:[%s9991_s0 + %s9042_s22]]   ;;  %s9046_s22 = smov 28  }
  0x27   :  { %10016 = sst [smem:[#allocation11_spill]] %s9188_s4 }
  0x28   :  { %10017 = sst [smem:[#allocation12_spill]] %s9193_s25 }
  0x29   :  { %10018 = sst [smem:[#allocation13_spill]] %s9198_s21 }
  0x2a   :  { %10019 = sst [smem:[#allocation14_spill]] %s9203_s17 }
  0x2b   :  { %s9208_s4 = sld [smem:[%s9991_s0 + %s9043_s28]]   ;;  %s9047_s28 = smov 29  }
  0x2c   :  { %s9213_s25 = sld [smem:[%s9991_s0 + %s9044_s7]]   ;;  %s9048_s7 = smov 30  }
  0x2d   :  { %s9218_s21 = sld [smem:[%s9991_s0 + %s9045_s15]]   ;;  %s9049_s15 = smov 31  }
  0x2e   :  { %s9223_s17 = sld [smem:[%s9991_s0 + %s9046_s22]]   ;;  %s9050_s22 = smov 32  }
  0x31   :  { %10020 = sst [smem:[#allocation15_spill]] %s9208_s4 }
  0x32   :  { %10021 = sst [smem:[#allocation16_spill]] %s9213_s25 }
  0x33   :  { %10022 = sst [smem:[#allocation17_spill]] %s9218_s21 }
  0x34   :  { %10023 = sst [smem:[#allocation18_spill]] %s9223_s17 }
  0x35   :  { %s9228_s4 = sld [smem:[%s9991_s0 + %s9047_s28]]   ;;  %s9051_s28 = smov 33  }
  0x36   :  { %s9233_s25 = sld [smem:[%s9991_s0 + %s9048_s7]]   ;;  %s9052_s7 = smov 34  }
  0x37   :  { %s9238_s21 = sld [smem:[%s9991_s0 + %s9049_s15]]   ;;  %s9053_s15 = smov 35  }
  0x38   :  { %s9243_s17 = sld [smem:[%s9991_s0 + %s9050_s22]]   ;;  %s9054_s22 = smov 36  }
  0x3b   :  { %10024 = sst [smem:[#allocation19_spill]] %s9228_s4 }
  0x3c   :  { %10025 = sst [smem:[#allocation20_spill]] %s9233_s25 }
  0x3d   :  { %10026 = sst [smem:[#allocation21_spill]] %s9238_s21 }
  0x3e   :  { %10027 = sst [smem:[#allocation22_spill]] %s9243_s17 }
  0x3f   :  { %s9248_s4 = sld [smem:[%s9991_s0 + %s9051_s28]]   ;;  %s9055_s28 = smov 37  }
  0x40   :  { %s9253_s25 = sld [smem:[%s9991_s0 + %s9052_s7]]   ;;  %s9056_s7 = smov 38  }
  0x41   :  { %s9258_s21 = sld [smem:[%s9991_s0 + %s9053_s15]]   ;;  %s9057_s15 = smov 39  }
  0x42   :  { %s9263_s17 = sld [smem:[%s9991_s0 + %s9054_s22]]   ;;  %s9058_s22 = smov 40  }
  0x45   :  { %10028 = sst [smem:[#allocation23_spill]] %s9248_s4 }
  0x46   :  { %10029 = sst [smem:[#allocation24_spill]] %s9253_s25 }
  0x47   :  { %10030 = sst [smem:[#allocation25_spill]] %s9258_s21 }
  0x48   :  { %10031 = sst [smem:[#allocation26_spill]] %s9263_s17 }
  0x49   :  { %s9268_s4 = sld [smem:[%s9991_s0 + %s9055_s28]]   ;;  %s9059_s28 = smov 41  }
  0x4a   :  { %s9273_s25 = sld [smem:[%s9991_s0 + %s9056_s7]]   ;;  %s9060_s7 = smov 42  }
  0x4b   :  { %s9278_s21 = sld [smem:[%s9991_s0 + %s9057_s15]]   ;;  %s9061_s15 = smov 43  }
  0x4c   :  { %s9283_s17 = sld [smem:[%s9991_s0 + %s9058_s22]]   ;;  %s9300_s22 = smov 0  }
  0x4f   :  { %10032 = sst [smem:[#allocation27_spill]] %s9268_s4 }
  0x50   :  { %10033 = sst [smem:[#allocation28_spill]] %s9273_s25 }
  0x51   :  { %10034 = sst [smem:[#allocation29_spill]] %s9278_s21 }
  0x52   :  { %s9288_s4 = sld [smem:[%s9991_s0 + %s9059_s28]]  }
  0x53   :  { %s9293_s25 = sld [smem:[%s9991_s0 + %s9060_s7]]  }
  0x54   :  { %s9298_s21 = sld [smem:[%s9991_s0 + %s9061_s15]]  }
  0x55 LB: > { %s7730_s23 = sadd.s32 4294967295, %s9017_s22   ;;  %p7734_p0 = scmp.ge.s32.totalorder %s9017_s22, 1  ;;  %s9017_s22 = sphi %s9300_s22, %s97_s22  }
  0x56   : > { %p1229_p1 = scmp.lt.s32.totalorder %s9017_s22, 5 }
  0x58   : > { %p1230_p2 = pnand %p7734_p0, %p1229_p1 }
  0x59   : > { %p1356_p3 = scmp.lt.s32.totalorder (!%p1230_p2), %s7730_s23, 3  ;;  %s10035_s5 = sld [smem:[#allocation2_spill]] (!%p1230_p2)  ;;  %v9309_v0 = vld [vmem:[%s9113_s29] sm:$0xff] (!%p1230_p2)  ;;  %vm1470_vm0 = vcmask (!%p1230_p2), 130048   ;;  %v9324_v4 = vld [vmem:[%s9113_s29 + $0x8] sm:$0xff] (!%p1230_p2)  ;;  %vm1565_vm1 = vcmask (!%p1230_p2), 1041408  }
  0x5a   : > { %1233 = sbr.rel (%p1230_p2) target bundleno = 10533 (0x2925), region = 192  ;;  %s10036_s3 = sld [smem:[#allocation6_spill]] (!%p1230_p2)  ;;  %8166 = vmatprep.mubr.msk.f32.mxu0 (!%p1230_p2), %vm1470_vm0, %v9309_v0  ;;  %vm1558_vm2 = vcmask (!%p1230_p2), 15360   ;;  %v1411_v8 = vld [vmem:[%s9128_s14] sm:$0xff] (!%p1230_p2)  ;;  %v1412_v9 = vld [vmem:[%s9128_s14 + $0x8] sm:$0xff] (!%p1230_p2)  ;;  %v9062_v55 = vmov (!%p1230_p2), 0.0  }
  0x5b   : > { %v9341_v10 = vpack.c.bf16 (!%p1230_p2), %v1412_v9, %v1411_v8  ;;  %v9348_v11 = vld [vmem:[%s9123_s8] ss:$0 sm:$0xff] (!%p1230_p2)  ;;  %vm2442_vm3 = vcmask (!%p1230_p2), 64512   ;;  %s9063_s28 = smov (!%p1230_p2), 112   ;;  %s9064_s1 = smov (!%p1230_p2), 8   ;;  %vm9067_vm4 = vmmov (!%p1230_p2), 1  }
  0x5c   : > { %v9399_v51 = vld [vmem:[%s9143_s30] sm:$0xff] (!%p1230_p2)  ;;  %s9065_s2 = smov (!%p1230_p2), 16   ;;  %s10003_s7 = smov (!%p1230_p2), 104   ;;  %vm9575_vm5 = vmpackc.low (!%p1230_p2), %vm1565_vm1, %vm9067_vm4  ;;  %vm3807_vm6 = vcmask (!%p1230_p2), 80896   ;;  %vm9070_vm7 = vmmov (!%p1230_p2), 0   ;;  %vm6664_vm8 = vcmask (!%p1230_p2), 195584  }
  0x5d   : > { %v9402_v52 = vld [vmem:[%s9133_s19] ss:$0 sm:$0xff] (!%p1230_p2)  ;;  %s10039_s16 = sld [smem:[#allocation8_spill]] (!%p1230_p2)  ;;  %s10040_s18 = sld [smem:[#allocation10_spill]] (!%p1230_p2)  ;;  %vm6752_vm9 = vcmask (!%p1230_p2), 261120   ;;  %vm6999_vm10 = vcmask (!%p1230_p2), 31744  }
  0x5e   : > { %v9407_v54 = vld [vmem:[%s9138_s24] sm:$0xff] (!%p1230_p2)  ;;  %vm7028_vm11 = vcmask (!%p1230_p2), 1043456   ;;  %vm7569_vm12 = vcmask (!%p1230_p2), 89088  }
  0x5f   : > { %v9426_v61 = vld [vmem:[%s9148_s6] ss:$0 sm:$0xff] (!%p1230_p2) }
  0x60   : > { %v9329_v5 = vld [vmem:[%s10036_s3] sm:$0x3] (!%p1230_p2)  ;;  %s10056_s3 = sld [smem:[#allocation22_spill]] (!%p1230_p2) }
  0x61   : > { %s10067_s23 = smov (!%p1356_p3, %s7730_s23), 3  ;;  %8169 = vmatprep.subr.msk.mxu1 %vm1565_vm1, %v9329_v5 }
  0x62   : > { %s8741_s0 = smul.u32 48, %s10067_s23  ;;  %8170 = vmatpush3.msk.msra.mxu1 %vm1565_vm1, %v9329_v5  ;;  %s9545_s10 = sshll.u32 %s10067_s23, 4 }
  0x63   : > { %s1365_s11 = scalar_lea.vmem %s9088_s9, %s9545_s10 }
  0x64   : > { %s9319_s26 = scalar_lea.vmem %s10035_s5, %s8741_s0  ;;  %s9599_s15 = scalar_lea.vmem %s9093_s13, %s8741_s0 }
  0x65   : > { %v1389_v1 = vld [vmem:[%s9319_s26] sm:$0xff]  ;;  %v1390_v2 = vld [vmem:[%s9319_s26 + $0x8] sm:$0xff]  ;;  %v1391_v17 = vld [vmem:[%s9319_s26 + $0x10] sm:$0xff]  ;;  %s10041_s0 = sld [smem:[#allocation9_spill]]  ;;  %s10057_s5 = sld [smem:[#allocation20_spill]] }
  0x66   : > { %v8572_v3 = vpack.c.bf16 %v1390_v2, %v1389_v1  ;;  %v1392_v18 = vld [vmem:[%s9319_s26 + $0x18] sm:$0xff]  ;;  %v1393_v33 = vld [vmem:[%s9319_s26 + $0x20] sm:$0xff]  ;;  %v1394_v34 = vld [vmem:[%s9319_s26 + $0x28] sm:$0xff]  ;;  %s10042_s26 = sld [smem:[#allocation13_spill]] }
  0x67   : > { %v8584_v21 = vpack.c.bf16 %v1392_v18, %v1391_v17  ;;  %v8596_v37 = vpack.c.bf16 %v1394_v34, %v1393_v33 }
  0x68   : > { %8573 = vmatprep.subr.bf16.mxu0 %v8572_v3 }
  0x69   : > { %8575 = vmatpush3.bf16.msra.mxu0 %v8572_v3 }
  0x6a   : > { %8581 = vmatprep.subr.bf16.mxu0 %v9341_v10 }
  0x6c   : > { %8167 = vmatmul.mubr.msk.f32.vlgmr.msra.gmra.mrb[0].mxu0 %vm1470_vm0, %v9324_v4 }
  0x6d   : > { %8583 = vmatpush3.bf16.msra.mxu0 %v9341_v10 }
  0x6e   : > { %8195 = vmatprep.subr.msk.mxu0 %vm1565_vm1, %v9329_v5 }
 0x13f   : > { %v8168_v6 = vpop.f32.mrb[0].mxu0 }
 0x140   : > { %v1543_v7 = vpop.f32.mrb[1].mxu0 }
 0x141   : > { %8171 = vmatprep.mubr.msk.f32.mxu1 %vm1558_vm2, %v1543_v7 }
 0x142   : > { %8172 = vmatmul.mubr.msk.f32.vlgmr.msra.gmra.mrb[0].mxu1 %vm1558_vm2, %v8168_v6 }
 0x143   : > { %8178 = vmatprep.mubr.msk.f32.mxu1 %vm1470_vm0, %v9309_v0 }
 0x215   : > { %v8173_v12 = vpop.f32.mrb[0].mxu1 }
 0x216   : > { %v1641_v13 = vadd.f32 %v8173_v12, %v9348_v11  ;;  %v1635_v14 = vpop.f32.mrb[1].mxu1 }
 0x217   : > { %v1636_v15 = vadd.f32 %v9348_v11, %v1635_v14 }
 0x218   : > { %v1645_v16 = vmax.f32 %v1641_v13, 0.0 }
 0x219   : > { %v1644_v19 = vmax.f32 %v1636_v15, 0.0 }
 0x21b   : > { %v8576_v20 = vpack.c.bf16 %v1645_v16, %v1644_v19 }
 0x21d   : > { %8577 = vmatprep.subr.bf16.mxu1 %v8576_v20 }
 0x21e   : > { %8579 = vmatpush3.bf16.msra.mxu1 %v8576_v20 }
 0x21f   : > { %8585 = vmatprep.subr.bf16.mxu1 %v8584_v21 }
 0x221   : > { %8179 = vmatmul.mubr.msk.f32.vlgmr.msra.gmra.mrb[2].mxu1 %vm1470_vm0, %v9324_v4 }
 0x222   : > { %8587 = vmatpush3.bf16.msra.mxu1 %v8584_v21  ;;  %8192 = vmatprep.mubr.msk.f32.mxu1 %vm1470_vm0, %v9309_v0 }
 0x225   : > { %8193 = vmatmul.mubr.msk.f32.vlgmr.msra.gmra.mrb[4].mxu1 %vm1470_vm0, %v9324_v4 }
 0x226   : > { %8204 = vmatprep.mubr.msk.f32.mxu1 %vm1470_vm0, %v9309_v0 }
 0x2f4   : > { %v8180_v22 = vpop.f32.mrb[2].mxu1 }
 0x2f5   : > { %v1712_v23 = vpop.f32.mrb[3].mxu1 }
 0x2f6   : > { %8185 = vmatprep.mubr.msk.f32.mxu0 %vm1470_vm0, %v1712_v23 }
 0x2f7   : > { %8186 = vmatmul.mubr.msk.f32.vlgmr.msra.gmra.mrb[2].mxu0 %vm1470_vm0, %v8180_v22 }
 0x2f8   : > { %v8194_v24 = vpop.f32.mrb[4].mxu1  ;;  %8196 = vmatpush3.msk.msra.mxu0 %vm1565_vm1, %v9329_v5 }
 0x2f9   : > { %v1876_v25 = vpop.f32.mrb[5].mxu1  ;;  %8593 = vmatprep.subr.bf16.mxu0 %v9341_v10 }
 0x2fa   : > { %8197 = vmatprep.mubr.msk.f32.mxu0 %vm1558_vm2, %v1876_v25 }
 0x2fb   : > { %8198 = vmatmul.mubr.msk.f32.vlgmr.msra.gmra.mrb[4].mxu0 %vm1558_vm2, %v8194_v24 }
 0x2fc   : > { %8595 = vmatpush3.bf16.msra.mxu0 %v9341_v10 }
 0x2fd   : > { %8221 = vmatprep.subr.msk.mxu0 %vm1565_vm1, %v9329_v5 }
 0x3ca   : > { %v8187_v26 = vpop.f32.mrb[2].mxu0 }
 0x3cb   : > { %v1799_v27 = vpop.f32.mrb[3].mxu0  ;;  %v1805_v57 = vadd.f32 %v8187_v26, %v9402_v52  ;;  %v9445_v26 = vld [vmem:[%s9143_s30 + $0x8] sm:$0xff] }
 0x3cc   : > { %v1800_v53 = vadd.f32 %v9402_v52, %v1799_v27  ;;  %v9448_v27 = vld [vmem:[%s9138_s24 + $0x8] sm:$0xff] }
 0x3cd   : > { %v1809_v58 = vmax.f32 %v1805_v57, 0.0 }
 0x3ce   : > { %v8199_v28 = vpop.f32.mrb[4].mxu0  ;;  %v1808_v56 = vmax.f32 %v1800_v53, 0.0 }
 0x3cf   : > { %v1963_v29 = vadd.f32 %v8199_v28, %v9348_v11  ;;  %v1957_v30 = vpop.f32.mrb[5].mxu0 }
 0x3d0   : > { %v1958_v31 = vadd.f32 %v9348_v11, %v1957_v30 }
 0x3d1   : > { %v1967_v32 = vmax.f32 %v1963_v29, 0.0 }
 0x3d2   : > { %v1966_v35 = vmax.f32 %v1958_v31, 0.0 }
 0x3d4   : > { %v8588_v36 = vpack.c.bf16 %v1967_v32, %v1966_v35 }
 0x3d6   : > { %8589 = vmatprep.subr.bf16.mxu1 %v8588_v36 }
 0x3d7   : > { %8591 = vmatpush3.bf16.msra.mxu1 %v8588_v36 }
 0x3d8   : > { %8597 = vmatprep.subr.bf16.mxu1 %v8596_v37 }
 0x3da   : > { %8205 = vmatmul.mubr.msk.f32.vlgmr.msra.gmra.mrb[6].mxu1 %vm1470_vm0, %v9324_v4 }
 0x3db   : > { %8599 = vmatpush3.bf16.msra.mxu1 %v8596_v37  ;;  %8218 = vmatprep.mubr.msk.f32.mxu1 %vm1470_vm0, %v9309_v0 }
 0x3de   : > { %8219 = vmatmul.mubr.msk.f32.vlgmr.msra.gmra.mrb[8].mxu1 %vm1470_vm0, %v9324_v4 }
 0x3df   : > { %8230 = vmatprep.mubr.msk.f32.mxu1 %vm1470_vm0, %v9309_v0 }
 0x4ad   : > { %v8206_v38 = vpop.f32.mrb[6].mxu1 }
 0x4ae   : > { %v2034_v39 = vpop.f32.mrb[7].mxu1 }
 0x4af   : > { %8211 = vmatprep.mubr.msk.f32.mxu0 %vm1470_vm0, %v2034_v39 }
 0x4b0   : > { %8212 = vmatmul.mubr.msk.f32.vlgmr.msra.gmra.mrb[6].mxu0 %vm1470_vm0, %v8206_v38 }
 0x4b1   : > { %v8220_v40 = vpop.f32.mrb[8].mxu1  ;;  %8222 = vmatpush3.msk.msra.mxu0 %vm1565_vm1, %v9329_v5 }
 0x4b2   : > { %v2192_v41 = vpop.f32.mrb[9].mxu1  ;;  %8605 = vmatprep.subr.bf16.mxu0 %v9341_v10 }
 0x4b3   : > { %8223 = vmatprep.mubr.msk.f32.mxu0 %vm1558_vm2, %v2192_v41 }
 0x4b4   : > { %8224 = vmatmul.mubr.msk.f32.vlgmr.msra.gmra.mrb[8].mxu0 %vm1558_vm2, %v8220_v40  ;;  %v9477_v40 = vld [vmem:[%s9148_s6 + $0x1] ss:$0 sm:$0xff] }
 0x4b5   : > { %8607 = vmatpush3.bf16.msra.mxu0 %v9341_v10 }
 0x4b6   : > { %8250 = vmatprep.subr.mxu0 %v9445_v26 }
 0x583   : > { %v9392_v42 = vpop.f32.mrb[6].mxu0 }
 0x584   : > { %v9394_v43 = vpop.f32.mrb[7].mxu0  ;;  %v2121_v38 = vadd.f32 %v9392_v42, %v9402_v52 }
 0x585   : > { %v2116_v34 = vadd.f32 %v9402_v52, %v9394_v43 }
 0x586   : > { %v2125_v39 = vmax.f32 %v2121_v38, 0.0 }
 0x587   : > { %v8225_v44 = vpop.f32.mrb[8].mxu0  ;;  %v2124_v36 = vmax.f32 %v2116_v34, 0.0 }
 0x588   : > { %v2279_v45 = vadd.f32 %v8225_v44, %v9348_v11  ;;  %v2273_v46 = vpop.f32.mrb[9].mxu0 }
 0x589   : > { %v2274_v47 = vadd.f32 %v9348_v11, %v2273_v46 }
 0x58a   : > { %v2283_v48 = vmax.f32 %v2279_v45, 0.0 }
 0x58b   : > { %v2282_v49 = vmax.f32 %v2274_v47, 0.0 }
 0x58d   : > { %v8600_v50 = vpack.c.bf16 %v2283_v48, %v2282_v49 }
 0x58f   : > { %8601 = vmatprep.subr.bf16.mxu1 %v8600_v50 }
 0x590   : > { %8603 = vmatpush3.bf16.msra.mxu1 %v8600_v50 }
 0x591   : > { %8240 = vmatprep.subr.mxu1 %v9399_v51 }
 0x593   : > { %8231 = vmatmul.mubr.msk.f32.vlgmr.msra.gmra.mrb[10].mxu1 %vm1470_vm0, %v9324_v4 }
 0x594   : > { %8241 = vmatpush3.msra.mxu1 %v9399_v51  ;;  %8242 = vmatprep.mubr.f32.mxu1 %v9062_v55 }
 0x595   : > { %8245 = vmatprep.subr.mxu1 %v9407_v54 }
 0x597   : > { %8243 = vmatmul.mubr.f32.vlgmr.msra.gmra.mrb[12].mxu1 %v9062_v55 }
 0x598   : > { %8246 = vmatpush3.msra.mxu1 %v9407_v54  ;;  %8247 = vmatprep.mubr.msk.f32.mxu1 %vm2442_vm3, %v1808_v56 }
 0x599   : > { %8260 = vmatprep.subr.mxu1 %v9399_v51 }
 0x59f   : > { %8248 = vmatmul.mubr.msk.f32.vlgmr.msra.gmra.mrb[12].mxu1 %vm2442_vm3, %v1809_v58 }
 0x5a0   : > { %8261 = vmatpush3.msra.mxu1 %v9399_v51 }
 0x5a1   : > { %8265 = vmatprep.subr.mxu1 %v9407_v54 }
 0x666   : > { %v8232_v59 = vpop.f32.mrb[10].mxu1 }
 0x667   : > { %v2350_v60 = vpop.f32.mrb[11].mxu1 }
 0x668   : > { %8237 = vmatprep.mubr.msk.f32.mxu0 %vm1470_vm0, %v2350_v60 }
 0x669   : > { %8238 = vmatmul.mubr.msk.f32.vlgmr.msra.gmra.mrb[10].mxu0 %vm1470_vm0, %v8232_v59 }
 0x66a   : > { %8252 = vmatprep.mubr.f32.mxu0 %v9062_v55  ;;  %8251 = vmatpush3.msra.mxu0 %v9445_v26 }
 0x66b   : > { %8255 = vmatprep.subr.mxu0 %v9448_v27 }
 0x66d   : > { %8253 = vmatmul.mubr.f32.vlgmr.msra.gmra.mrb[12].mxu0 %v9062_v55 }
 0x66e   : > { %8256 = vmatpush3.msra.mxu0 %v9448_v27 }
 0x66f   : > { %8270 = vmatprep.subr.mxu0 %v9445_v26 }
 0x672   : > { %v8249_v62 = vpop.f32.mrb[12].mxu1 }
 0x673   : > { %v2593_v63 = vpop.f32.mrb[13].mxu1  ;;  %v2609_v2 = vadd.f32 %v8249_v62, %v9426_v61 }
 0x674   : > { %v2608_v1 = vadd.f32 %v9426_v61, %v2593_v63 }
 0x675   : > { %v7778_v7 = vmul.f32 -1.442695, %v2609_v2 }
 0x676   : > { %8808 = vtanh.f32 %v2608_v1  ;;  %v7777_v6 = vmul.f32 -1.442695, %v2608_v1 }
 0x677   : > { %8810 = vtanh.f32 %v2609_v2 }
 0x678   : > { %8812 = vpow2.f32 %v7777_v6 }
 0x679   : > { %8814 = vpow2.f32 %v7778_v7 }
 0x680   : > { %v8809_v3 = vpop.eup %8808 }
 0x681   : > { %2628 = vrot.lane.b32.xlu0 %v8809_v3, %s9063_s28  ;;  %v8811_v5 = vpop.eup %8810 }
 0x682   : > { %v8813_v8 = vpop.eup %8812 }
 0x683   : > { %v2616_v9 = vadd.f32 1.0, %v8813_v8  ;;  %v8815_v10 = vpop.eup %8814 }
 0x684   : > { %v2617_v11 = vadd.f32 1.0, %v8815_v10 }
 0x685   : > { %2630 = vrot.lane.b32.xlu0 %v8811_v5, %s9063_s28  ;;  %8816 = vrcp.f32 %v2616_v9 }
 0x686   : > { %8818 = vrcp.f32 %v2617_v11 }
 0x68f   : > { %v8817_v12 = vpop.eup %8816 }
 0x690   : > { %v8819_v15 = vpop.eup %8818  ;;  %v2624_v20 = vmul.f32 0.0, %v8817_v12 }
 0x691   : > { %v2625_v23 = vmul.f32 0.0, %v8819_v15 }
 0x6f3   : > { %v2629_v13 = vpop.permute.xlu0 %2628 }
 0x6f4   : > { %v2634_v14 = vmul.f32 %v8817_v12, %v2629_v13 }
 0x6f6   : > { %2638 = vrot.lane.b32.xlu1 %v2634_v14, %s9064_s1 }
 0x6f7   : > { %v2631_v16 = vpop.permute.xlu0 %2630 }
 0x6f8   : > { %v2635_v17 = vmul.f32 %v8819_v15, %v2631_v16 }
 0x6fa   : > { %2640 = vrot.lane.b32.xlu1 %v2635_v17, %s9064_s1 }
 0x73c   : > { %v9434_v18 = vpop.f32.mrb[10].mxu0 }
 0x73d   : > { %v9436_v19 = vpop.f32.mrb[11].mxu0 }
 0x768   : > { %v2639_v21 = vpop.permute.xlu1 %2638 }
 0x769   : > { %v9438_v22 = vadd.f32 %v2639_v21, %v2624_v20 }
 0x76b   : > { %8820 = vtanh.f32 %v9438_v22 }
 0x76c   : > { %v2641_v24 = vpop.permute.xlu1 %2640 }
 0x76d   : > { %v9441_v25 = vadd.f32 %v2641_v24, %v2625_v23 }
 0x76f   : > { %8822 = vtanh.f32 %v9441_v25 }
 0x775   : > { %v8821_v28 = vpop.eup %8820 }
 0x776   : > { %2650 = vrot.lane.b32.xlu0 %v8821_v28, %s9065_s2 }
 0x779   : > { %v8823_v29 = vpop.eup %8822 }
 0x77a   : > { %2652 = vrot.lane.b32.xlu1 %v8823_v29, %s9065_s2 }
 0x7e8   : > { %v2651_v30 = vpop.permute.xlu0 %2650 }
 0x7e9   : > { %v2656_v31 = vmul.f32 %v8817_v12, %v2651_v30 }
 0x7eb   : > { %2735 = vrot.lane.b32.xlu0 %v2656_v31, %s10003_s7 }
 0x7ec   : > { %v2653_v32 = vpop.permute.xlu1 %2652 }
 0x7ed   : > { %v2657_v33 = vmul.f32 %v8819_v15, %v2653_v32 }
 0x7ef   : > { %2737 = vrot.lane.b32.xlu1 %v2657_v33, %s10003_s7 }
 0x85d   : > { %v2736_v35 = vpop.permute.xlu0 %2735 }
 0x85e   : > { %8257 = vmatprep.mubr.msk.f32.mxu0 %vm2442_vm3, %v2736_v35  ;;  %8262 = vmatprep.mubr.msk.f32.mxu1 %vm2442_vm3, %v2736_v35 }
 0x861   : > { %v2738_v37 = vpop.permute.xlu1 %2737 }
 0x862   : > { %8258 = vmatmul.mubr.msk.f32.vlgmr.msra.gmra.mrb[12].mxu0 %vm2442_vm3, %v2738_v37  ;;  %8263 = vmatmul.mubr.msk.f32.vlgmr.msra.gmra.mrb[14].mxu1 %vm2442_vm3, %v2738_v37 }
 0x863   : > { %8266 = vmatpush3.msra.mxu1 %v9407_v54  ;;  %8267 = vmatprep.mubr.msk.f32.mxu1 %vm2442_vm3, %v2124_v36 }
 0x864   : > { %8271 = vmatpush3.msra.mxu0 %v9445_v26  ;;  %8280 = vmatprep.subr.mxu1 %v9399_v51 }
 0x865   : > { %8275 = vmatprep.subr.mxu0 %v9448_v27 }
 0x86a   : > { %8268 = vmatmul.mubr.msk.f32.vlgmr.msra.gmra.mrb[14].mxu1 %vm2442_vm3, %v2125_v39 }
 0x86b   : > { %8281 = vmatpush3.msra.mxu1 %v9399_v51 }
 0x86c   : > { %8285 = vmatprep.subr.mxu1 %v9407_v54 }
 0x935   : > { %v8259_v41 = vpop.f32.mrb[12].mxu0 }
 0x936   : > { %v2825_v43 = vadd.f32 %v8259_v41, %v9477_v40  ;;  %v2809_v44 = vpop.f32.mrb[13].mxu0 }
 0x937   : > { %v2824_v42 = vadd.f32 %v9477_v40, %v2809_v44 }
 0x938   : > { %8824 = vtanh.f32 %v2825_v43  ;;  %v7783_v56 = vmul.f32 -1.442695, %v2825_v43 }
 0x939   : > { %8826 = vtanh.f32 %v2824_v42  ;;  %v7782_v57 = vmul.f32 -1.442695, %v2824_v42 }
 0x93d   : > { %v8269_v45 = vpop.f32.mrb[14].mxu1 }
 0x93e   : > { %v3031_v46 = vadd.f32 %v8269_v45, %v9426_v61  ;;  %v3021_v47 = vpop.f32.mrb[15].mxu1 }
 0x93f   : > { %v3030_v48 = vadd.f32 %v9426_v61, %v3021_v47 }
 0x940   : > { %8828 = vtanh.f32 %v3031_v46  ;;  %v7789_v58 = vmul.f32 -1.442695, %v3031_v46 }
 0x941   : > { %8830 = vtanh.f32 %v3030_v48  ;;  %v7788_v59 = vmul.f32 -1.442695, %v3030_v48 }
 0x942   : > { %v8825_v49 = vpop.eup %8824  ;;  %8832 = vpow2.f32 %v7783_v56 }
 0x943   : > { %v8827_v50 = vpop.eup %8826  ;;  %2846 = vrot.lane.b32.xlu1 %v8825_v49, %s9063_s28  ;;  %8834 = vpow2.f32 %v7782_v57  ;;  %v2437_v57 = vadd.f32 %v9434_v18, %v9402_v52 }
 0x944   : > { %2844 = vrot.lane.b32.xlu0 %v8827_v50, %s9063_s28  ;;  %8836 = vpow2.f32 %v7789_v58  ;;  %v2432_v50 = vadd.f32 %v9402_v52, %v9436_v19 }
 0x945   : > { %8838 = vpow2.f32 %v7788_v59  ;;  %v2441_v19 = vmax.f32 %v2437_v57, 0.0 }
 0x94a   : > { %v8829_v51 = vpop.eup %8828 }
 0x94b   : > { %v8831_v53 = vpop.eup %8830  ;;  %3052 = vrot.lane.b32.xlu1 %v8829_v51, %s9063_s28 }
 0x94c   : > { %3050 = vrot.lane.b32.xlu0 %v8831_v53, %s9063_s28  ;;  %v8833_v60 = vpop.eup %8832  ;;  %v2440_v53 = vmax.f32 %v2432_v50, 0.0 }
 0x94d   : > { %v8835_v62 = vpop.eup %8834  ;;  %v2833_v63 = vadd.f32 1.0, %v8833_v60 }
 0x94e   : > { %v2832_v1 = vadd.f32 1.0, %v8835_v62  ;;  %v8837_v2 = vpop.eup %8836 }
 0x94f   : > { %8840 = vrcp.f32 %v2833_v63  ;;  %v8839_v3 = vpop.eup %8838  ;;  %v3039_v5 = vadd.f32 1.0, %v8837_v2 }
 0x950   : > { %8842 = vrcp.f32 %v2832_v1  ;;  %v3038_v6 = vadd.f32 1.0, %v8839_v3 }
 0x951   : > { %8844 = vrcp.f32 %v3039_v5 }
 0x952   : > { %8846 = vrcp.f32 %v3038_v6 }
 0x959   : > { %v8841_v7 = vpop.eup %8840 }
 0x95a   : > { %v8843_v9 = vpop.eup %8842  ;;  %v2841_v21 = vmul.f32 0.0, %v8841_v7 }
 0x95b   : > { %v8845_v13 = vpop.eup %8844  ;;  %v2840_v24 = vmul.f32 0.0, %v8843_v9 }
 0x95c   : > { %v8847_v15 = vpop.eup %8846  ;;  %v3047_v31 = vmul.f32 %v8845_v13, %v9441_v25 }
 0x95d   : > { %v3046_v33 = vmul.f32 %v8847_v15, %v9438_v22 }
 0x9b5   : > { %v2847_v8 = vpop.permute.xlu1 %2846 }
 0x9b6   : > { %v2851_v10 = vmul.f32 %v8841_v7, %v2847_v8  ;;  %v2845_v11 = vpop.permute.xlu0 %2844 }
 0x9b7   : > { %v2850_v12 = vmul.f32 %v8843_v9, %v2845_v11 }
 0x9b8   : > { %2856 = vrot.lane.b32.xlu1 %v2851_v10, %s9064_s1 }
 0x9b9   : > { %2854 = vrot.lane.b32.xlu0 %v2850_v12, %s9064_s1 }
 0x9bd   : > { %v3053_v14 = vpop.permute.xlu1 %3052 }
 0x9be   : > { %v3057_v16 = vmul.f32 %v8845_v13, %v3053_v14  ;;  %v3051_v17 = vpop.permute.xlu0 %3050 }
 0x9bf   : > { %v3056_v20 = vmul.f32 %v8847_v15, %v3051_v17 }
 0x9c0   : > { %3062 = vrot.lane.b32.xlu1 %v3057_v16, %s9064_s1 }
 0x9c1   : > { %3060 = vrot.lane.b32.xlu0 %v3056_v20, %s9064_s1 }
 0xa2a   : > { %v2857_v23 = vpop.permute.xlu1 %2856 }
 0xa2b   : > { %v9491_v28 = vadd.f32 %v2857_v23, %v2841_v21  ;;  %v2855_v29 = vpop.permute.xlu0 %2854 }
 0xa2c   : > { %v9493_v30 = vadd.f32 %v2855_v29, %v2840_v24 }
 0xa2d   : > { %8848 = vtanh.f32 %v9491_v28 }
 0xa2e   : > { %8850 = vtanh.f32 %v9493_v30 }
 0xa32   : > { %v3063_v32 = vpop.permute.xlu1 %3062 }
 0xa33   : > { %v9499_v34 = vadd.f32 %v3063_v32, %v3047_v31  ;;  %v3061_v35 = vpop.permute.xlu0 %3060 }
 0xa34   : > { %v9501_v36 = vadd.f32 %v3061_v35, %v3046_v33 }
 0xa35   : > { %8852 = vtanh.f32 %v9499_v34 }
 0xa36   : > { %8854 = vtanh.f32 %v9501_v36 }
 0xa37   : > { %v8849_v37 = vpop.eup %8848 }
 0xa38   : > { %v8851_v38 = vpop.eup %8850  ;;  %2868 = vrot.lane.b32.xlu1 %v8849_v37, %s9065_s2  ;;  %v1395_v37 = vld [vmem:[%s1365_s11] sm:$0xff] }
 0xa39   : > { %2866 = vrot.lane.b32.xlu0 %v8851_v38, %s9065_s2  ;;  %v1396_v38 = vld [vmem:[%s1365_s11 + $0x8] sm:$0xff]  ;;  %s10043_s11 = sld [smem:[#allocation11_spill]] }
 0xa3f   : > { %v8853_v39 = vpop.eup %8852 }
 0xa40   : > { %v8855_v25 = vpop.eup %8854  ;;  %3074 = vrot.lane.b32.xlu1 %v8853_v39, %s9065_s2  ;;  %v8608_v39 = vpack.c.bf16 %v1396_v38, %v1395_v37 }
 0xa41   : > { %3072 = vrot.lane.b32.xlu0 %v8855_v25, %s9065_s2 }
 0xaaa   : > { %v2869_v22 = vpop.permute.xlu1 %2868 }
 0xaab   : > { %v2873_v41 = vmul.f32 %v8841_v7, %v2869_v22  ;;  %v2867_v43 = vpop.permute.xlu0 %2866 }
 0xaac   : > { %v2872_v44 = vmul.f32 %v8843_v9, %v2867_v43 }
 0xaad   : > { %3084 = vrot.lane.b32.xlu1 %v2873_v41, %s10003_s7 }
 0xaae   : > { %3082 = vrot.lane.b32.xlu0 %v2872_v44, %s10003_s7 }
 0xab2   : > { %v3075_v42 = vpop.permute.xlu1 %3074 }
 0xab3   : > { %v3079_v45 = vmul.f32 %v8845_v13, %v3075_v42  ;;  %v3073_v46 = vpop.permute.xlu0 %3072 }
 0xab4   : > { %v3078_v47 = vmul.f32 %v8847_v15, %v3073_v46 }
 0xab5   : > { %3169 = vrot.lane.b32.xlu1 %v3079_v45, %s10003_s7 }
 0xab6   : > { %3167 = vrot.lane.b32.xlu0 %v3078_v47, %s10003_s7 }
 0xb1f   : > { %v3085_v49 = vpop.permute.xlu1 %3084 }
 0xb20   : > { %v3083_v48 = vpop.permute.xlu0 %3082 }
 0xb21   : > { %8272 = vmatprep.mubr.msk.f32.mxu0 %vm2442_vm3, %v3083_v48 }
 0xb22   : > { %8273 = vmatmul.mubr.msk.f32.vlgmr.msra.gmra.mrb[14].mxu0 %vm2442_vm3, %v3085_v49 }
 0xb23   : > { %8276 = vmatpush3.msra.mxu0 %v9448_v27 }
 0xb24   : > { %8290 = vmatprep.subr.mxu0 %v9445_v26 }
 0xb27   : > { %v3170_v56 = vpop.permute.xlu1 %3169 }
 0xb28   : > { %v3168_v51 = vpop.permute.xlu0 %3167 }
 0xb29   : > { %8277 = vmatprep.mubr.msk.f32.mxu0 %vm2442_vm3, %v3168_v51  ;;  %8282 = vmatprep.mubr.msk.f32.mxu1 %vm2442_vm3, %v3168_v51 }
 0xb2a   : > { %8278 = vmatmul.mubr.msk.f32.vlgmr.msra.gmra.mrb[14].mxu0 %vm2442_vm3, %v3170_v56  ;;  %8283 = vmatmul.mubr.msk.f32.vlgmr.msra.gmra.mrb[16].mxu1 %vm2442_vm3, %v3170_v56 }
 0xb2b   : > { %8286 = vmatpush3.msra.mxu1 %v9407_v54  ;;  %8287 = vmatprep.mubr.msk.f32.mxu1 %vm2442_vm3, %v2440_v53 }
 0xb2c   : > { %8291 = vmatpush3.msra.mxu0 %v9445_v26  ;;  %8609 = vmatprep.subr.bf16.mxu1 %v8608_v39 }
 0xb2d   : > { %8295 = vmatprep.subr.mxu0 %v9448_v27 }
 0xb32   : > { %8288 = vmatmul.mubr.msk.f32.vlgmr.msra.gmra.mrb[16].mxu1 %vm2442_vm3, %v2441_v19 }
 0xb33   : > { %8304 = vmatprep.mubr.msk.f32.mxu1 %vm1470_vm0, %v9309_v0  ;;  %8611 = vmatpush3.bf16.msra.mxu1 %v8608_v39  ;;  %v9635_v39 = vld [vmem:[%s10041_s0] ss:$0 sm:$0xff]  ;;  %s10046_s0 = sld [smem:[#allocation3_spill]] }
 0xb36   : > { %8305 = vmatmul.mubr.msk.f32.vlgmr.msra.gmra.mrb[18].mxu1 %vm1470_vm0, %v9324_v4 }
 0xb37   : > { %8318 = vmatprep.mubr.msk.f32.mxu1 %vm1470_vm0, %v9309_v0 }
 0xbfd   : > { %v8279_v58 = vpop.f32.mrb[14].mxu0 }
 0xbfe   : > { %v3251_v59 = vadd.f32 %v8279_v58, %v9477_v40  ;;  %v3241_v60 = vpop.f32.mrb[15].mxu0 }
 0xbff   : > { %v3250_v54 = vadd.f32 %v9477_v40, %v3241_v60 }
 0xc00   : > { %8856 = vtanh.f32 %v3251_v59  ;;  %v7795_v40 = vmul.f32 -1.442695, %v3251_v59 }
 0xc01   : > { %8858 = vtanh.f32 %v3250_v54  ;;  %v7794_v5 = vmul.f32 -1.442695, %v3250_v54 }
 0xc05   : > { %v8289_v62 = vpop.f32.mrb[16].mxu1 }
 0xc06   : > { %v3457_v52 = vadd.f32 %v8289_v62, %v9426_v61  ;;  %v3447_v18 = vpop.f32.mrb[17].mxu1 }
 0xc07   : > { %v3456_v26 = vadd.f32 %v9426_v61, %v3447_v18  ;;  %v1421_v18 = vld [vmem:[%s9153_s12 + $0x8] sm:$0x3] }
 0xc08   : > { %8860 = vtanh.f32 %v3457_v52  ;;  %v7801_v6 = vmul.f32 -1.442695, %v3457_v52  ;;  %v1420_v52 = vld [vmem:[%s9153_s12] sm:$0xff] }
 0xc09   : > { %8862 = vtanh.f32 %v3456_v26  ;;  %v7800_v61 = vmul.f32 -1.442695, %v3456_v26 }
 0xc0a   : > { %v8857_v63 = vpop.eup %8856  ;;  %8864 = vpow2.f32 %v7795_v40 }
 0xc0b   : > { %v8859_v1 = vpop.eup %8858  ;;  %3272 = vrot.lane.b32.xlu1 %v8857_v63, %s9063_s28  ;;  %8866 = vpow2.f32 %v7794_v5  ;;  %v8612_v63 = vpack.c.bf16 %v1421_v18, %v1420_v52  ;;  %v1424_v5 = vld [vmem:[%s9163_s27 + $0x8] sm:$0xff]  ;;  %v9669_v18 = vld [vmem:[%s9113_s29] sm:$0xff] }
 0xc0c   : > { %3270 = vrot.lane.b32.xlu0 %v8859_v1, %s9063_s28  ;;  %8868 = vpow2.f32 %v7801_v6  ;;  %v9664_v52 = vld [vmem:[%s9113_s29 + $0x8] sm:$0xff] }
 0xc0d   : > { %8870 = vpow2.f32 %v7800_v61 }
 0xc12   : > { %v8861_v2 = vpop.eup %8860 }
 0xc13   : > { %v8863_v3 = vpop.eup %8862  ;;  %3478 = vrot.lane.b32.xlu1 %v8861_v2, %s9063_s28 }
 0xc14   : > { %3476 = vrot.lane.b32.xlu0 %v8863_v3, %s9063_s28  ;;  %v8865_v7 = vpop.eup %8864 }
 0xc15   : > { %v8867_v8 = vpop.eup %8866  ;;  %v3259_v9 = vadd.f32 1.0, %v8865_v7 }
 0xc16   : > { %v3258_v10 = vadd.f32 1.0, %v8867_v8  ;;  %v8869_v11 = vpop.eup %8868  ;;  %v7810_v8 = vld [vmem:[%s9158_s20] ss:$0 sm:$0xff] }
 0xc17   : > { %8872 = vrcp.f32 %v3259_v9  ;;  %v8871_v12 = vpop.eup %8870  ;;  %v3465_v13 = vadd.f32 1.0, %v8869_v11 }
 0xc18   : > { %8874 = vrcp.f32 %v3258_v10  ;;  %v3464_v14 = vadd.f32 1.0, %v8871_v12 }
 0xc19   : > { %8876 = vrcp.f32 %v3465_v13 }
 0xc1a   : > { %8878 = vrcp.f32 %v3464_v14  ;;  %v1397_v14 = vld [vmem:[%s9599_s15] sm:$0xff] }
 0xc21   : > { %v8873_v15 = vpop.eup %8872 }
 0xc22   : > { %v8875_v17 = vpop.eup %8874  ;;  %v3267_v25 = vmul.f32 %v8873_v15, %v9491_v28 }
 0xc23   : > { %v8877_v24 = vpop.eup %8876  ;;  %v3266_v41 = vmul.f32 %v8875_v17, %v9493_v30 }
 0xc24   : > { %v8879_v31 = vpop.eup %8878  ;;  %v3473_v45 = vmul.f32 %v8877_v24, %v9499_v34 }
 0xc25   : > { %v3472_v47 = vmul.f32 %v8879_v31, %v9501_v36  ;;  %v8306_v36 = vpop.f32.mrb[18].mxu1 }
 0xc26   : > { %v3792_v19 = vpop.f32.mrb[19].mxu1 }
 0xc7d   : > { %v3273_v16 = vpop.permute.xlu1 %3272 }
 0xc7e   : > { %v3277_v20 = vmul.f32 %v8873_v15, %v3273_v16  ;;  %v3271_v21 = vpop.permute.xlu0 %3270 }
 0xc7f   : > { %v3276_v23 = vmul.f32 %v8875_v17, %v3271_v21  ;;  %v9612_v21 = vld [vmem:[%s10039_s16] sm:$0x3]  ;;  %s10045_s16 = sld [smem:[#allocation14_spill]] }
 0xc80   : > { %3282 = vrot.lane.b32.xlu1 %v3277_v20, %s9064_s1 }
 0xc81   : > { %3280 = vrot.lane.b32.xlu0 %v3276_v23, %s9064_s1 }
 0xc85   : > { %v3479_v29 = vpop.permute.xlu1 %3478 }
 0xc86   : > { %v3483_v32 = vmul.f32 %v8877_v24, %v3479_v29  ;;  %v3477_v33 = vpop.permute.xlu0 %3476 }
 0xc87   : > { %v3482_v35 = vmul.f32 %v8879_v31, %v3477_v33  ;;  %v1429_v33 = vld [vmem:[%s10040_s18 + $0x8] sm:$0xff] }
 0xc88   : > { %3488 = vrot.lane.b32.xlu1 %v3483_v32, %s9064_s1  ;;  %v1428_v32 = vld [vmem:[%s10040_s18] sm:$0xff] }
 0xc89   : > { %3486 = vrot.lane.b32.xlu0 %v3482_v35, %s9064_s1  ;;  %v9624_v35 = vpack.c.bf16 %v1429_v33, %v1428_v32 }
 0xcf2   : > { %v3283_v22 = vpop.permute.xlu1 %3282 }
 0xcf3   : > { %v9555_v43 = vadd.f32 %v3283_v22, %v3267_v25  ;;  %v3281_v44 = vpop.permute.xlu0 %3280 }
 0xcf4   : > { %v9557_v42 = vadd.f32 %v3281_v44, %v3266_v41 }
 0xcf5   : > { %8880 = vtanh.f32 %v9555_v43 }
 0xcf6   : > { %8882 = vtanh.f32 %v9557_v42 }
 0xcfa   : > { %v3489_v46 = vpop.permute.xlu1 %3488 }
 0xcfb   : > { %v3493_v48 = vadd.f32 %v3489_v46, %v3473_v45  ;;  %v3487_v49 = vpop.permute.xlu0 %3486  ;;  %v1399_v46 = vld [vmem:[%s9599_s15 + $0x10] sm:$0xff] }
 0xcfc   : > { %v3492_v28 = vadd.f32 %v3487_v49, %v3472_v47  ;;  %v1400_v47 = vld [vmem:[%s9599_s15 + $0x18] sm:$0xff] }
 0xcfd   : > { %8884 = vtanh.f32 %v3493_v48 }
 0xcfe   : > { %8886 = vtanh.f32 %v3492_v28  ;;  %v8638_v28 = vpack.c.bf16 %v1400_v47, %v1399_v46 }
 0xcff   : > { %v8881_v30 = vpop.eup %8880 }
 0xd00   : > { %v8883_v50 = vpop.eup %8882  ;;  %3294 = vrot.lane.b32.xlu1 %v8881_v30, %s9065_s2 }
 0xd01   : > { %3292 = vrot.lane.b32.xlu0 %v8883_v50, %s9065_s2 }
 0xd07   : > { %v8885_v51 = vpop.eup %8884 }
 0xd08   : > { %v8887_v53 = vpop.eup %8886  ;;  %3500 = vrot.lane.b32.xlu1 %v8885_v51, %s9065_s2 }
 0xd09   : > { %3498 = vrot.lane.b32.xlu0 %v8887_v53, %s9065_s2 }
 0xd72   : > { %v3295_v34 = vpop.permute.xlu1 %3294 }
 0xd73   : > { %v3299_v56 = vmul.f32 %v8873_v15, %v3295_v34  ;;  %v3293_v57 = vpop.permute.xlu0 %3292  ;;  %v1398_v15 = vld [vmem:[%s9599_s15 + $0x8] sm:$0xff] }
 0xd74   : > { %v3298_v58 = vmul.f32 %v8875_v17, %v3293_v57  ;;  %v8626_v20 = vpack.c.bf16 %v1398_v15, %v1397_v14  ;;  %v9695_v14 = vld [vmem:[%s10043_s11] ss:$0 sm:$0xff]  ;;  %s1375_s11 = scalar_lea.vmem %s10046_s0, %s9545_s10  ;;  %s10047_s0 = sld [smem:[#allocation15_spill]] }
 0xd75   : > { %3510 = vrot.lane.b32.xlu1 %v3299_v56, %s10003_s7 }
 0xd76   : > { %3508 = vrot.lane.b32.xlu0 %v3298_v58, %s10003_s7  ;;  %v1401_v58 = vld [vmem:[%s9599_s15 + $0x20] sm:$0xff] }
 0xd7a   : > { %v3501_v59 = vpop.permute.xlu1 %3500 }
 0xd7b   : > { %v3505_v60 = vmul.f32 %v8877_v24, %v3501_v59  ;;  %v3499_v54 = vpop.permute.xlu0 %3498  ;;  %v1402_v59 = vld [vmem:[%s9599_s15 + $0x28] sm:$0xff]  ;;  %s10044_s15 = sld [smem:[#allocation12_spill]] }
 0xd7c   : > { %v3504_v62 = vmul.f32 %v8879_v31, %v3499_v54 }
 0xd7d   : > { %3595 = vrot.lane.b32.xlu1 %v3505_v60, %s10003_s7 }
 0xd7e   : > { %3593 = vrot.lane.b32.xlu0 %v3504_v62, %s10003_s7  ;;  %v8650_v62 = vpack.c.bf16 %v1402_v59, %v1401_v58  ;;  %v9738_v58 = vld [vmem:[%s10042_s26 + $0x8] sm:$0xff] }
 0xd81   : > { %v9741_v59 = vld [vmem:[%s10044_s15 + $0x8] sm:$0xff] }
 0xde7   : > { %v3511_v1 = vpop.permute.xlu1 %3510 }
 0xde8   : > { %v3509_v26 = vpop.permute.xlu0 %3508 }
 0xde9   : > { %8292 = vmatprep.mubr.msk.f32.mxu0 %vm2442_vm3, %v3509_v26 }
 0xdea   : > { %8293 = vmatmul.mubr.msk.f32.vlgmr.msra.gmra.mrb[16].mxu0 %vm2442_vm3, %v3511_v1 }
 0xdeb   : > { %8296 = vmatpush3.msra.mxu0 %v9448_v27  ;;  %v1423_v27 = vld [vmem:[%s9163_s27] sm:$0xff] }
 0xdec   : > { %8614 = vmatprep.subr.msk.bf16.mxu0 %vm9575_vm5, %v8612_v63  ;;  %v8622_v6 = vpack.c.bf16 %v1424_v5, %v1423_v27 }
 0xdef   : > { %v3596_v40 = vpop.permute.xlu1 %3595 }
 0xdf0   : > { %v3594_v3 = vpop.permute.xlu0 %3593 }
 0xdf1   : > { %8297 = vmatprep.mubr.msk.f32.mxu0 %vm2442_vm3, %v3594_v3 }
 0xdf2   : > { %8298 = vmatmul.mubr.msk.f32.vlgmr.msra.gmra.mrb[16].mxu0 %vm2442_vm3, %v3596_v40 }
 0xdf3   : > { %8617 = vmatpush3.bf16.msk.msra.mxu0 %vm9575_vm5, %v8612_v63  ;;  %8311 = vmatprep.mubr.msk.f32.mxu0 %vm3807_vm6, %v3792_v19 }
 0xdf4   : > { %8623 = vmatprep.subr.bf16.mxu0 %v8622_v6 }
 0xdf6   : > { %8312 = vmatmul.mubr.msk.f32.vlgmr.msra.gmra.mrb[18].mxu0 %vm3807_vm6, %v8306_v36 }
 0xdf7   : > { %8625 = vmatpush3.bf16.msra.mxu0 %v8622_v6 }
 0xdf8   : > { %8335 = vmatprep.subr.msk.mxu0 %vm1565_vm1, %v9612_v21 }
 0xec5   : > { %v9591_v61 = vpop.f32.mrb[16].mxu0 }
 0xec6   : > { %v9593_v7 = vpop.f32.mrb[17].mxu0 }
 0xec9   : > { %v8313_v9 = vpop.f32.mrb[18].mxu0 }
 0xeca   : > { %v3889_v10 = vadd.f32 %v8313_v9, %v7810_v8  ;;  %v3883_v11 = vpop.f32.mrb[19].mxu0 }
 0xecb   : > { %v3884_v12 = vadd.f32 %v7810_v8, %v3883_v11 }
 0xecc   : > { %v3893_v13 = vmax.f32 %v3889_v10, 0.0 }
 0xecd   : > { %v3892_v16 = vmax.f32 %v3884_v12, 0.0 }
 0xecf   : > { %v8618_v17 = vpack.c.bf16 %v3893_v13, %v3892_v16  ;;  %v9692_v13 = vld [vmem:[%s10042_s26] sm:$0xff] }
 0xed0   : > { %v9700_v16 = vld [vmem:[%s10044_s15] sm:$0xff] }
 0xed1   : > { %8619 = vmatprep.subr.bf16.mxu1 %v8618_v17 }
 0xed2   : > { %8621 = vmatpush3.bf16.msra.mxu1 %v8618_v17 }
 0xed3   : > { %8627 = vmatprep.subr.bf16.mxu1 %v8626_v20 }
 0xed5   : > { %8319 = vmatmul.mubr.msk.f32.vlgmr.msra.gmra.mrb[20].mxu1 %vm1470_vm0, %v9324_v4 }
 0xed6   : > { %8629 = vmatpush3.bf16.msra.mxu1 %v8626_v20  ;;  %8332 = vmatprep.mubr.msk.f32.mxu1 %vm1470_vm0, %v9309_v0 }
 0xed9   : > { %8333 = vmatmul.mubr.msk.f32.vlgmr.msra.gmra.mrb[22].mxu1 %vm1470_vm0, %v9324_v4 }
 0xeda   : > { %8344 = vmatprep.mubr.msk.f32.mxu1 %vm1470_vm0, %v9309_v0 }
 0xfa8   : > { %v8320_v23 = vpop.f32.mrb[20].mxu1 }
 0xfa9   : > { %v3960_v24 = vpop.f32.mrb[21].mxu1 }
 0xfaa   : > { %8325 = vmatprep.mubr.msk.f32.mxu0 %vm1470_vm0, %v3960_v24 }
 0xfab   : > { %8326 = vmatmul.mubr.msk.f32.vlgmr.msra.gmra.mrb[20].mxu0 %vm1470_vm0, %v8320_v23 }
 0xfac   : > { %v8334_v29 = vpop.f32.mrb[22].mxu1  ;;  %8336 = vmatpush3.msk.msra.mxu0 %vm1565_vm1, %v9612_v21 }
 0xfad   : > { %v4122_v31 = vpop.f32.mrb[23].mxu1  ;;  %8635 = vmatprep.subr.bf16.mxu0 %v9624_v35 }
 0xfae   : > { %8337 = vmatprep.mubr.msk.f32.mxu0 %vm1558_vm2, %v4122_v31 }
 0xfaf   : > { %8338 = vmatmul.mubr.msk.f32.vlgmr.msra.gmra.mrb[22].mxu0 %vm1558_vm2, %v8334_v29  ;;  %v9719_v29 = vld [vmem:[%s10045_s16] ss:$0 sm:$0xff] }
 0xfb0   : > { %8637 = vmatpush3.bf16.msra.mxu0 %v9624_v35 }
 0xfb1   : > { %8361 = vmatprep.subr.msk.mxu0 %vm1565_vm1, %v9612_v21 }
0x107e   : > { %v9630_v37 = vpop.f32.mrb[20].mxu0 }
0x107f   : > { %v9632_v38 = vpop.f32.mrb[21].mxu0 }
0x1082   : > { %v8339_v25 = vpop.f32.mrb[22].mxu0 }
0x1083   : > { %v4218_v22 = vadd.f32 %v8339_v25, %v9635_v39  ;;  %v4212_v41 = vpop.f32.mrb[23].mxu0 }
0x1084   : > { %v4213_v44 = vadd.f32 %v9635_v39, %v4212_v41 }
0x1085   : > { %v4222_v45 = vmax.f32 %v4218_v22, 0.0 }
0x1086   : > { %v4221_v48 = vmax.f32 %v4213_v44, 0.0 }
0x1088   : > { %v8630_v49 = vpack.c.bf16 %v4222_v45, %v4221_v48 }
0x108a   : > { %8631 = vmatprep.subr.bf16.mxu1 %v8630_v49 }
0x108b   : > { %8633 = vmatpush3.bf16.msra.mxu1 %v8630_v49 }
0x108c   : > { %8639 = vmatprep.subr.bf16.mxu1 %v8638_v28 }
0x108e   : > { %8345 = vmatmul.mubr.msk.f32.vlgmr.msra.gmra.mrb[24].mxu1 %vm1470_vm0, %v9324_v4 }
0x108f   : > { %8641 = vmatpush3.bf16.msra.mxu1 %v8638_v28  ;;  %8358 = vmatprep.mubr.msk.f32.mxu1 %vm1470_vm0, %v9309_v0 }
0x1092   : > { %8359 = vmatmul.mubr.msk.f32.vlgmr.msra.gmra.mrb[26].mxu1 %vm1470_vm0, %v9324_v4 }
0x1093   : > { %8370 = vmatprep.mubr.msk.f32.mxu1 %vm1470_vm0, %v9309_v0 }
0x1161   : > { %v8346_v30 = vpop.f32.mrb[24].mxu1 }
0x1162   : > { %v4289_v50 = vpop.f32.mrb[25].mxu1 }
0x1163   : > { %8351 = vmatprep.mubr.msk.f32.mxu0 %vm1470_vm0, %v4289_v50 }
0x1164   : > { %8352 = vmatmul.mubr.msk.f32.vlgmr.msra.gmra.mrb[24].mxu0 %vm1470_vm0, %v8346_v30 }
0x1165   : > { %v8360_v51 = vpop.f32.mrb[26].mxu1  ;;  %8362 = vmatpush3.msk.msra.mxu0 %vm1565_vm1, %v9612_v21 }
0x1166   : > { %v4453_v53 = vpop.f32.mrb[27].mxu1  ;;  %8647 = vmatprep.subr.bf16.mxu0 %v9624_v35 }
0x1167   : > { %8363 = vmatprep.mubr.msk.f32.mxu0 %vm1558_vm2, %v4453_v53 }
0x1168   : > { %8364 = vmatmul.mubr.msk.f32.vlgmr.msra.gmra.mrb[26].mxu0 %vm1558_vm2, %v8360_v51 }
0x1169   : > { %8649 = vmatpush3.bf16.msra.mxu0 %v9624_v35 }
0x116a   : > { %8387 = vmatprep.subr.msk.mxu0 %vm1565_vm1, %v9612_v21 }
0x1237   : > { %v8353_v0 = vpop.f32.mrb[24].mxu0 }
0x1238   : > { %v4376_v4 = vpop.f32.mrb[25].mxu0  ;;  %v4382_v20 = vadd.f32 %v8353_v0, %v9695_v14 }
0x1239   : > { %v4377_v15 = vadd.f32 %v9695_v14, %v4376_v4 }
0x123b   : > { %v8365_v34 = vpop.f32.mrb[26].mxu0  ;;  %v4385_v17 = vmax.f32 %v4377_v15, 0.0 }
0x123c   : > { %v4540_v36 = vadd.f32 %v8365_v34, %v9635_v39  ;;  %v4534_v56 = vpop.f32.mrb[27].mxu0 }
0x123d   : > { %v4535_v57 = vadd.f32 %v9635_v39, %v4534_v56 }
0x123e   : > { %v4544_v19 = vmax.f32 %v4540_v36, 0.0 }
0x123f   : > { %v4543_v60 = vmax.f32 %v4535_v57, 0.0 }
0x1241   : > { %v8642_v54 = vpack.c.bf16 %v4544_v19, %v4543_v60 }
0x1243   : > { %8643 = vmatprep.subr.bf16.mxu1 %v8642_v54 }
0x1244   : > { %8645 = vmatpush3.bf16.msra.mxu1 %v8642_v54 }
0x1245   : > { %8651 = vmatprep.subr.bf16.mxu1 %v8650_v62 }
0x1247   : > { %8371 = vmatmul.mubr.msk.f32.vlgmr.msra.gmra.mrb[28].mxu1 %vm1470_vm0, %v9664_v52 }
0x1248   : > { %8653 = vmatpush3.bf16.msra.mxu1 %v8650_v62  ;;  %8384 = vmatprep.mubr.msk.f32.mxu1 %vm1470_vm0, %v9669_v18 }
0x124b   : > { %8385 = vmatmul.mubr.msk.f32.vlgmr.msra.gmra.mrb[30].mxu1 %vm1470_vm0, %v9664_v52 }
0x124c   : > { %8396 = vmatprep.mubr.msk.f32.mxu1 %vm1470_vm0, %v9669_v18 }
0x131a   : > { %v8372_v26 = vpop.f32.mrb[28].mxu1 }
0x131b   : > { %v4611_v63 = vpop.f32.mrb[29].mxu1 }
0x131c   : > { %8377 = vmatprep.mubr.msk.f32.mxu0 %vm1470_vm0, %v4611_v63 }
0x131d   : > { %8378 = vmatmul.mubr.msk.f32.vlgmr.msra.gmra.mrb[28].mxu0 %vm1470_vm0, %v8372_v26 }
0x131e   : > { %v8386_v1 = vpop.f32.mrb[30].mxu1  ;;  %8388 = vmatpush3.msk.msra.mxu0 %vm1565_vm1, %v9612_v21  ;;  %v4386_v21 = vmax.f32 %v4382_v20, 0.0 }
0x131f   : > { %v4769_v3 = vpop.f32.mrb[31].mxu1  ;;  %8659 = vmatprep.subr.bf16.mxu0 %v9624_v35 }
0x1320   : > { %8389 = vmatprep.mubr.msk.f32.mxu0 %vm1558_vm2, %v4769_v3 }
0x1321   : > { %8390 = vmatmul.mubr.msk.f32.vlgmr.msra.gmra.mrb[30].mxu0 %vm1558_vm2, %v8386_v1 }
0x1322   : > { %8661 = vmatpush3.bf16.msra.mxu0 %v9624_v35 }
0x1323   : > { %8416 = vmatprep.subr.mxu0 %v9738_v58 }
0x13f0   : > { %v9685_v40 = vpop.f32.mrb[28].mxu0 }
0x13f1   : > { %v9687_v27 = vpop.f32.mrb[29].mxu0 }
0x13f2   : > { %v4693_v3 = vadd.f32 %v9695_v14, %v9687_v27 }
0x13f4   : > { %v8391_v5 = vpop.f32.mrb[30].mxu0 }
0x13f5   : > { %v4856_v6 = vadd.f32 %v8391_v5, %v9635_v39  ;;  %v4850_v8 = vpop.f32.mrb[31].mxu0 }
0x13f6   : > { %v4851_v9 = vadd.f32 %v9635_v39, %v4850_v8 }
0x13f7   : > { %v4860_v10 = vmax.f32 %v4856_v6, 0.0  ;;  %v4701_v6 = vmax.f32 %v4693_v3, 0.0 }
0x13f8   : > { %v4859_v11 = vmax.f32 %v4851_v9, 0.0  ;;  %v4698_v9 = vadd.f32 %v9685_v40, %v9695_v14 }
0x13fa   : > { %v8654_v12 = vpack.c.bf16 %v4860_v10, %v4859_v11  ;;  %v4702_v27 = vmax.f32 %v4698_v9, 0.0  ;;  %v9770_v10 = vld [vmem:[%s10045_s16 + $0x1] ss:$0 sm:$0xff] }
0x13fc   : > { %8655 = vmatprep.subr.bf16.mxu1 %v8654_v12 }
0x13fd   : > { %8657 = vmatpush3.bf16.msra.mxu1 %v8654_v12 }
0x13fe   : > { %8406 = vmatprep.subr.mxu1 %v9692_v13 }
0x1400   : > { %8397 = vmatmul.mubr.msk.f32.vlgmr.msra.gmra.mrb[32].mxu1 %vm1470_vm0, %v9664_v52 }
0x1401   : > { %8407 = vmatpush3.msra.mxu1 %v9692_v13  ;;  %8408 = vmatprep.mubr.f32.mxu1 %v9062_v55 }
0x1402   : > { %8411 = vmatprep.subr.mxu1 %v9700_v16 }
0x1404   : > { %8409 = vmatmul.mubr.f32.vlgmr.msra.gmra.mrb[34].mxu1 %v9062_v55 }
0x1405   : > { %8412 = vmatpush3.msra.mxu1 %v9700_v16  ;;  %8413 = vmatprep.mubr.msk.f32.mxu1 %vm2442_vm3, %v4385_v17 }
0x1406   : > { %8426 = vmatprep.subr.mxu1 %v9692_v13 }
0x140c   : > { %8414 = vmatmul.mubr.msk.f32.vlgmr.msra.gmra.mrb[34].mxu1 %vm2442_vm3, %v4386_v21 }
0x140d   : > { %8427 = vmatpush3.msra.mxu1 %v9692_v13 }
0x140e   : > { %8431 = vmatprep.subr.mxu1 %v9700_v16 }
0x14d3   : > { %v8398_v23 = vpop.f32.mrb[32].mxu1 }
0x14d4   : > { %v4927_v24 = vpop.f32.mrb[33].mxu1 }
0x14d5   : > { %8403 = vmatprep.mubr.msk.f32.mxu0 %vm1470_vm0, %v4927_v24 }
0x14d6   : > { %8404 = vmatmul.mubr.msk.f32.vlgmr.msra.gmra.mrb[32].mxu0 %vm1470_vm0, %v8398_v23 }
0x14d7   : > { %8418 = vmatprep.mubr.f32.mxu0 %v9062_v55  ;;  %8417 = vmatpush3.msra.mxu0 %v9738_v58 }
0x14d8   : > { %8421 = vmatprep.subr.mxu0 %v9741_v59 }
0x14da   : > { %8419 = vmatmul.mubr.f32.vlgmr.msra.gmra.mrb[34].mxu0 %v9062_v55 }
0x14db   : > { %8422 = vmatpush3.msra.mxu0 %v9741_v59 }
0x14dc   : > { %8436 = vmatprep.subr.mxu0 %v9738_v58 }
0x14df   : > { %v8415_v31 = vpop.f32.mrb[34].mxu1 }
0x14e0   : > { %v5182_v32 = vadd.f32 %v8415_v31, %v9719_v29  ;;  %v5166_v33 = vpop.f32.mrb[35].mxu1 }
0x14e1   : > { %v5181_v35 = vadd.f32 %v9719_v29, %v5166_v33 }
0x14e2   : > { %8888 = vtanh.f32 %v5182_v32  ;;  %v7852_v22 = vmul.f32 -1.442695, %v5182_v32 }
0x14e3   : > { %8890 = vtanh.f32 %v5181_v35  ;;  %v7851_v41 = vmul.f32 -1.442695, %v5181_v35 }
0x14e4   : > { %8892 = vpow2.f32 %v7852_v22 }
0x14e5   : > { %8894 = vpow2.f32 %v7851_v41 }
0x14ec   : > { %v8889_v39 = vpop.eup %8888 }
0x14ed   : > { %v8891_v25 = vpop.eup %8890  ;;  %5203 = vrot.lane.b32.xlu1 %v8889_v39, %s9063_s28 }
0x14ee   : > { %5201 = vrot.lane.b32.xlu0 %v8891_v25, %s9063_s28  ;;  %v8893_v44 = vpop.eup %8892 }
0x14ef   : > { %v8895_v45 = vpop.eup %8894  ;;  %v5190_v46 = vadd.f32 1.0, %v8893_v44 }
0x14f0   : > { %v5189_v47 = vadd.f32 1.0, %v8895_v45 }
0x14f1   : > { %8896 = vrcp.f32 %v5190_v46 }
0x14f2   : > { %8898 = vrcp.f32 %v5189_v47 }
0x14fb   : > { %v8897_v48 = vpop.eup %8896 }
0x14fc   : > { %v8899_v28 = vpop.eup %8898  ;;  %v5198_v4 = vmul.f32 0.0, %v8897_v48 }
0x14fd   : > { %v5197_v36 = vmul.f32 0.0, %v8899_v28 }
0x155f   : > { %v5204_v49 = vpop.permute.xlu1 %5203 }
0x1560   : > { %v5208_v30 = vmul.f32 %v8897_v48, %v5204_v49  ;;  %v5202_v50 = vpop.permute.xlu0 %5201 }
0x1561   : > { %v5207_v51 = vmul.f32 %v8899_v28, %v5202_v50 }
0x1562   : > { %5213 = vrot.lane.b32.xlu1 %v5208_v30, %s9064_s1 }
0x1563   : > { %5211 = vrot.lane.b32.xlu0 %v5207_v51, %s9064_s1 }
0x15a9   : > { %v9727_v53 = vpop.f32.mrb[32].mxu0 }
0x15aa   : > { %v9729_v0 = vpop.f32.mrb[33].mxu0 }
0x15d4   : > { %v5214_v34 = vpop.permute.xlu1 %5213 }
0x15d5   : > { %v9731_v56 = vadd.f32 %v5214_v34, %v5198_v4  ;;  %v5212_v57 = vpop.permute.xlu0 %5211 }
0x15d6   : > { %v9733_v19 = vadd.f32 %v5212_v57, %v5197_v36 }
0x15d7   : > { %8900 = vtanh.f32 %v9731_v56 }
0x15d8   : > { %8902 = vtanh.f32 %v9733_v19 }
0x15e1   : > { %v8901_v60 = vpop.eup %8900 }
0x15e2   : > { %v8903_v54 = vpop.eup %8902  ;;  %5225 = vrot.lane.b32.xlu1 %v8901_v60, %s9065_s2 }
0x15e3   : > { %5223 = vrot.lane.b32.xlu0 %v8903_v54, %s9065_s2 }
0x1654   : > { %v5226_v62 = vpop.permute.xlu1 %5225 }
0x1655   : > { %v5230_v26 = vmul.f32 %v8897_v48, %v5226_v62  ;;  %v5224_v63 = vpop.permute.xlu0 %5223 }
0x1656   : > { %v5229_v1 = vmul.f32 %v8899_v28, %v5224_v63 }
0x1657   : > { %5310 = vrot.lane.b32.xlu1 %v5230_v26, %s10003_s7 }
0x1658   : > { %5308 = vrot.lane.b32.xlu0 %v5229_v1, %s10003_s7 }
0x16c9   : > { %v5311_v8 = vpop.permute.xlu1 %5310 }
0x16ca   : > { %v5309_v5 = vpop.permute.xlu0 %5308 }
0x16cb   : > { %8423 = vmatprep.mubr.msk.f32.mxu0 %vm2442_vm3, %v5309_v5  ;;  %8428 = vmatprep.mubr.msk.f32.mxu1 %vm2442_vm3, %v5309_v5 }
0x16cc   : > { %8424 = vmatmul.mubr.msk.f32.vlgmr.msra.gmra.mrb[34].mxu0 %vm2442_vm3, %v5311_v8  ;;  %8429 = vmatmul.mubr.msk.f32.vlgmr.msra.gmra.mrb[36].mxu1 %vm2442_vm3, %v5311_v8 }
0x16cd   : > { %8432 = vmatpush3.msra.mxu1 %v9700_v16  ;;  %8433 = vmatprep.mubr.msk.f32.mxu1 %vm2442_vm3, %v4701_v6 }
0x16ce   : > { %8437 = vmatpush3.msra.mxu0 %v9738_v58  ;;  %8446 = vmatprep.subr.mxu1 %v9692_v13 }
0x16cf   : > { %8441 = vmatprep.subr.mxu0 %v9741_v59 }
0x16d4   : > { %8434 = vmatmul.mubr.msk.f32.vlgmr.msra.gmra.mrb[36].mxu1 %vm2442_vm3, %v4702_v27 }
0x16d5   : > { %8447 = vmatpush3.msra.mxu1 %v9692_v13 }
0x16d6   : > { %8451 = vmatprep.subr.mxu1 %v9700_v16 }
0x179f   : > { %v8425_v11 = vpop.f32.mrb[34].mxu0 }
0x17a0   : > { %v5398_v12 = vadd.f32 %v8425_v11, %v9770_v10  ;;  %v5382_v15 = vpop.f32.mrb[35].mxu0 }
0x17a1   : > { %v5397_v40 = vadd.f32 %v9770_v10, %v5382_v15 }
0x17a2   : > { %8904 = vtanh.f32 %v5398_v12  ;;  %v7857_v33 = vmul.f32 -1.442695, %v5398_v12 }
0x17a3   : > { %8906 = vtanh.f32 %v5397_v40  ;;  %v7856_v35 = vmul.f32 -1.442695, %v5397_v40 }
0x17a7   : > { %v8435_v17 = vpop.f32.mrb[36].mxu1 }
0x17a8   : > { %v5604_v20 = vadd.f32 %v8435_v17, %v9719_v29  ;;  %v5594_v21 = vpop.f32.mrb[37].mxu1 }
0x17a9   : > { %v5603_v23 = vadd.f32 %v9719_v29, %v5594_v21 }
0x17aa   : > { %8908 = vtanh.f32 %v5604_v20  ;;  %v7863_v39 = vmul.f32 -1.442695, %v5604_v20 }
0x17ab   : > { %8910 = vtanh.f32 %v5603_v23  ;;  %v7862_v25 = vmul.f32 -1.442695, %v5603_v23 }
0x17ac   : > { %v8905_v13 = vpop.eup %8904  ;;  %8912 = vpow2.f32 %v7857_v33 }
0x17ad   : > { %v8907_v24 = vpop.eup %8906  ;;  %5419 = vrot.lane.b32.xlu1 %v8905_v13, %s9063_s28  ;;  %8914 = vpow2.f32 %v7856_v35 }
0x17ae   : > { %5417 = vrot.lane.b32.xlu0 %v8907_v24, %s9063_s28  ;;  %8916 = vpow2.f32 %v7863_v39 }
0x17af   : > { %8918 = vpow2.f32 %v7862_v25 }
0x17b4   : > { %v8909_v31 = vpop.eup %8908 }
0x17b5   : > { %v8911_v32 = vpop.eup %8910  ;;  %5625 = vrot.lane.b32.xlu1 %v8909_v31, %s9063_s28 }
0x17b6   : > { %5623 = vrot.lane.b32.xlu0 %v8911_v32, %s9063_s28  ;;  %v8913_v22 = vpop.eup %8912 }
0x17b7   : > { %v8915_v41 = vpop.eup %8914  ;;  %v5406_v44 = vadd.f32 1.0, %v8913_v22  ;;  %v5009_v22 = vadd.f32 %v9695_v14, %v9729_v0 }
0x17b8   : > { %v5405_v45 = vadd.f32 1.0, %v8915_v41  ;;  %v8917_v46 = vpop.eup %8916 }
0x17b9   : > { %8920 = vrcp.f32 %v5406_v44  ;;  %v8919_v47 = vpop.eup %8918  ;;  %v5612_v48 = vadd.f32 1.0, %v8917_v46  ;;  %v5017_v44 = vmax.f32 %v5009_v22, 0.0  ;;  %v5014_v46 = vadd.f32 %v9727_v53, %v9695_v14 }
0x17ba   : > { %8922 = vrcp.f32 %v5405_v45  ;;  %v5611_v49 = vadd.f32 1.0, %v8919_v47 }
0x17bb   : > { %8924 = vrcp.f32 %v5612_v48  ;;  %v5018_v0 = vmax.f32 %v5014_v46, 0.0 }
0x17bc   : > { %8926 = vrcp.f32 %v5611_v49 }
0x17c3   : > { %v8921_v28 = vpop.eup %8920 }
0x17c4   : > { %v8923_v50 = vpop.eup %8922  ;;  %v5414_v63 = vmul.f32 0.0, %v8921_v28 }
0x17c5   : > { %v8925_v36 = vpop.eup %8924  ;;  %v5413_v3 = vmul.f32 0.0, %v8923_v50 }
0x17c6   : > { %v8927_v60 = vpop.eup %8926  ;;  %v5620_v9 = vmul.f32 %v8925_v36, %v9731_v56 }
0x17c7   : > { %v5619_v11 = vmul.f32 %v8927_v60, %v9733_v19 }
0x181f   : > { %v5420_v30 = vpop.permute.xlu1 %5419 }
0x1820   : > { %v5424_v51 = vmul.f32 %v8921_v28, %v5420_v30  ;;  %v5418_v4 = vpop.permute.xlu0 %5417 }
0x1821   : > { %v5423_v34 = vmul.f32 %v8923_v50, %v5418_v4 }
0x1822   : > { %5429 = vrot.lane.b32.xlu1 %v5424_v51, %s9064_s1 }
0x1823   : > { %5427 = vrot.lane.b32.xlu0 %v5423_v34, %s9064_s1 }
0x1827   : > { %v5626_v57 = vpop.permute.xlu1 %5625 }
0x1828   : > { %v5630_v54 = vmul.f32 %v8925_v36, %v5626_v57  ;;  %v5624_v62 = vpop.permute.xlu0 %5623 }
0x1829   : > { %v5629_v26 = vmul.f32 %v8927_v60, %v5624_v62 }
0x182a   : > { %5635 = vrot.lane.b32.xlu1 %v5630_v54, %s9064_s1 }
0x182b   : > { %5633 = vrot.lane.b32.xlu0 %v5629_v26, %s9064_s1 }
0x1894   : > { %v5430_v1 = vpop.permute.xlu1 %5429 }
0x1895   : > { %v9784_v5 = vadd.f32 %v5430_v1, %v5414_v63  ;;  %v5428_v6 = vpop.permute.xlu0 %5427 }
0x1896   : > { %v9786_v8 = vadd.f32 %v5428_v6, %v5413_v3 }
0x1897   : > { %8928 = vtanh.f32 %v9784_v5 }
0x1898   : > { %8930 = vtanh.f32 %v9786_v8 }
0x189c   : > { %v5636_v27 = vpop.permute.xlu1 %5635 }
0x189d   : > { %v9792_v12 = vadd.f32 %v5636_v27, %v5620_v9  ;;  %v5634_v15 = vpop.permute.xlu0 %5633 }
0x189e   : > { %v9794_v40 = vadd.f32 %v5634_v15, %v5619_v11 }
0x189f   : > { %8932 = vtanh.f32 %v9792_v12 }
0x18a0   : > { %8934 = vtanh.f32 %v9794_v40 }
0x18a1   : > { %v8929_v17 = vpop.eup %8928 }
0x18a2   : > { %v8931_v20 = vpop.eup %8930  ;;  %5441 = vrot.lane.b32.xlu1 %v8929_v17, %s9065_s2 }
0x18a3   : > { %5439 = vrot.lane.b32.xlu0 %v8931_v20, %s9065_s2 }
0x18a9   : > { %v8933_v21 = vpop.eup %8932 }
0x18aa   : > { %v8935_v56 = vpop.eup %8934  ;;  %5647 = vrot.lane.b32.xlu1 %v8933_v21, %s9065_s2 }
0x18ab   : > { %5645 = vrot.lane.b32.xlu0 %v8935_v56, %s9065_s2 }
0x1914   : > { %v5442_v19 = vpop.permute.xlu1 %5441 }
0x1915   : > { %v5446_v23 = vmul.f32 %v8921_v28, %v5442_v19  ;;  %v5440_v13 = vpop.permute.xlu0 %5439 }
0x1916   : > { %v5445_v24 = vmul.f32 %v8923_v50, %v5440_v13 }
0x1917   : > { %5657 = vrot.lane.b32.xlu1 %v5446_v23, %s10003_s7 }
0x1918   : > { %5655 = vrot.lane.b32.xlu0 %v5445_v24, %s10003_s7 }
0x191c   : > { %v5648_v31 = vpop.permute.xlu1 %5647 }
0x191d   : > { %v5652_v32 = vmul.f32 %v8925_v36, %v5648_v31  ;;  %v5646_v33 = vpop.permute.xlu0 %5645  ;;  %v1403_v31 = vld [vmem:[%s1375_s11] sm:$0xff] }
0x191e   : > { %v5651_v35 = vmul.f32 %v8927_v60, %v5646_v33 }
0x191f   : > { %5742 = vrot.lane.b32.xlu1 %v5652_v32, %s10003_s7  ;;  %v1404_v32 = vld [vmem:[%s1375_s11 + $0x8] sm:$0xff]  ;;  %s10048_s11 = sld [smem:[#allocation16_spill]] }
0x1920   : > { %5740 = vrot.lane.b32.xlu0 %v5651_v35, %s10003_s7  ;;  %v8662_v33 = vpack.c.bf16 %v1404_v32, %v1403_v31 }
0x1989   : > { %v5658_v25 = vpop.permute.xlu1 %5657 }
0x198a   : > { %v5656_v39 = vpop.permute.xlu0 %5655 }
0x198b   : > { %8438 = vmatprep.mubr.msk.f32.mxu0 %vm2442_vm3, %v5656_v39 }
0x198c   : > { %8439 = vmatmul.mubr.msk.f32.vlgmr.msra.gmra.mrb[36].mxu0 %vm2442_vm3, %v5658_v25 }
0x198d   : > { %8442 = vmatpush3.msra.mxu0 %v9741_v59 }
0x198e   : > { %8456 = vmatprep.subr.mxu0 %v9738_v58 }
0x1991   : > { %v5743_v45 = vpop.permute.xlu1 %5742 }
0x1992   : > { %v5741_v41 = vpop.permute.xlu0 %5740 }
0x1993   : > { %8443 = vmatprep.mubr.msk.f32.mxu0 %vm2442_vm3, %v5741_v41  ;;  %8448 = vmatprep.mubr.msk.f32.mxu1 %vm2442_vm3, %v5741_v41 }
0x1994   : > { %8444 = vmatmul.mubr.msk.f32.vlgmr.msra.gmra.mrb[36].mxu0 %vm2442_vm3, %v5743_v45  ;;  %8449 = vmatmul.mubr.msk.f32.vlgmr.msra.gmra.mrb[38].mxu1 %vm2442_vm3, %v5743_v45 }
0x1995   : > { %8452 = vmatpush3.msra.mxu1 %v9700_v16  ;;  %8453 = vmatprep.mubr.msk.f32.mxu1 %vm2442_vm3, %v5017_v44 }
0x1996   : > { %8457 = vmatpush3.msra.mxu0 %v9738_v58  ;;  %8663 = vmatprep.subr.bf16.mxu1 %v8662_v33 }
0x1997   : > { %8461 = vmatprep.subr.mxu0 %v9741_v59 }
0x199c   : > { %8454 = vmatmul.mubr.msk.f32.vlgmr.msra.gmra.mrb[38].mxu1 %vm2442_vm3, %v5018_v0 }
0x199d   : > { %8470 = vmatprep.mubr.msk.f32.mxu1 %vm1470_vm0, %v9669_v18  ;;  %8665 = vmatpush3.bf16.msra.mxu1 %v8662_v33 }
0x19a0   : > { %8471 = vmatmul.mubr.msk.f32.vlgmr.msra.gmra.mrb[40].mxu1 %vm1470_vm0, %v9664_v52 }
0x19a1   : > { %8484 = vmatprep.mubr.msk.f32.mxu1 %vm1470_vm0, %v9669_v18 }
0x1a67   : > { %v8445_v47 = vpop.f32.mrb[36].mxu0 }
0x1a68   : > { %v5824_v48 = vadd.f32 %v8445_v47, %v9770_v10  ;;  %v5814_v49 = vpop.f32.mrb[37].mxu0 }
0x1a69   : > { %v5823_v16 = vadd.f32 %v9770_v10, %v5814_v49 }
0x1a6a   : > { %8936 = vtanh.f32 %v5824_v48  ;;  %v7869_v34 = vmul.f32 -1.442695, %v5824_v48 }
0x1a6b   : > { %8938 = vtanh.f32 %v5823_v16  ;;  %v7868_v36 = vmul.f32 -1.442695, %v5823_v16 }
0x1a6f   : > { %v8455_v28 = vpop.f32.mrb[38].mxu1 }
0x1a70   : > { %v6030_v14 = vadd.f32 %v8455_v28, %v9719_v29  ;;  %v6020_v53 = vpop.f32.mrb[39].mxu1 }
0x1a71   : > { %v6029_v58 = vadd.f32 %v9719_v29, %v6020_v53 }
0x1a72   : > { %8940 = vtanh.f32 %v6030_v14  ;;  %v7875_v57 = vmul.f32 -1.442695, %v6030_v14 }
0x1a73   : > { %8942 = vtanh.f32 %v6029_v58  ;;  %v7874_v29 = vmul.f32 -1.442695, %v6029_v58  ;;  %v8472_v14 = vpop.f32.mrb[40].mxu1 }
0x1a74   : > { %v8937_v30 = vpop.eup %8936  ;;  %8944 = vpow2.f32 %v7869_v34 }
0x1a75   : > { %v8939_v50 = vpop.eup %8938  ;;  %5845 = vrot.lane.b32.xlu1 %v8937_v30, %s9063_s28  ;;  %8946 = vpow2.f32 %v7868_v36 }
0x1a76   : > { %5843 = vrot.lane.b32.xlu0 %v8939_v50, %s9063_s28  ;;  %8948 = vpow2.f32 %v7875_v57  ;;  %v6365_v50 = vpop.f32.mrb[41].mxu1 }
0x1a77   : > { %8950 = vpow2.f32 %v7874_v29  ;;  %v1437_v29 = vld [vmem:[%s10047_s0] sm:$0xff] }
0x1a7c   : > { %v8941_v51 = vpop.eup %8940 }
0x1a7d   : > { %v8943_v4 = vpop.eup %8942  ;;  %6051 = vrot.lane.b32.xlu1 %v8941_v51, %s9063_s28 }
0x1a7e   : > { %6049 = vrot.lane.b32.xlu0 %v8943_v4, %s9063_s28  ;;  %v8945_v60 = vpop.eup %8944 }
0x1a7f   : > { %v8947_v54 = vpop.eup %8946  ;;  %v5832_v62 = vadd.f32 1.0, %v8945_v60  ;;  %v1438_v60 = vld [vmem:[%s10047_s0 + $0x8] sm:$0x3]  ;;  %s10052_s0 = sld [smem:[#allocation18_spill]] }
0x1a80   : > { %v5831_v26 = vadd.f32 1.0, %v8947_v54  ;;  %v8949_v63 = vpop.eup %8948 }
0x1a81   : > { %8952 = vrcp.f32 %v5832_v62  ;;  %v8951_v1 = vpop.eup %8950  ;;  %v6038_v3 = vadd.f32 1.0, %v8949_v63  ;;  %v8666_v62 = vpack.c.bf16 %v1438_v60, %v1437_v29 }
0x1a82   : > { %8954 = vrcp.f32 %v5831_v26  ;;  %v6037_v6 = vadd.f32 1.0, %v8951_v1 }
0x1a83   : > { %8956 = vrcp.f32 %v6038_v3 }
0x1a84   : > { %8958 = vrcp.f32 %v6037_v6 }
0x1a8b   : > { %v8953_v9 = vpop.eup %8952 }
0x1a8c   : > { %v8955_v11 = vpop.eup %8954  ;;  %v5840_v35 = vmul.f32 %v8953_v9, %v9784_v5 }
0x1a8d   : > { %v8957_v21 = vpop.eup %8956  ;;  %v5839_v25 = vmul.f32 %v8955_v11, %v9786_v8 }
0x1a8e   : > { %v8959_v19 = vpop.eup %8958  ;;  %v6046_v45 = vmul.f32 %v8957_v21, %v9792_v12  ;;  %v9010_v12 = vld [vmem:[%s9148_s6 + $0x1] ss:$0 sm:$0xff] }
0x1a8f   : > { %v6045_v18 = vmul.f32 %v8959_v19, %v9794_v40  ;;  %v3677_v40 = vadd.f32 %v9010_v12, %v9591_v61  ;;  %v3676_v53 = vadd.f32 %v9010_v12, %v9593_v7 }
0x1a91   : > { %v7807_v3 = vmul.f32 -1.442695, %v3677_v40  ;;  %v7806_v6 = vmul.f32 -1.442695, %v3676_v53 }
0x1ae7   : > { %v5846_v27 = vpop.permute.xlu1 %5845 }
0x1ae8   : > { %v5850_v15 = vmul.f32 %v8953_v9, %v5846_v27  ;;  %v5844_v17 = vpop.permute.xlu0 %5843 }
0x1ae9   : > { %v5849_v20 = vmul.f32 %v8955_v11, %v5844_v17 }
0x1aea   : > { %5855 = vrot.lane.b32.xlu1 %v5850_v15, %s9064_s1 }
0x1aeb   : > { %5853 = vrot.lane.b32.xlu0 %v5849_v20, %s9064_s1 }
0x1aef   : > { %v6052_v56 = vpop.permute.xlu1 %6051 }
0x1af0   : > { %v6056_v23 = vmul.f32 %v8957_v21, %v6052_v56  ;;  %v6050_v13 = vpop.permute.xlu0 %6049 }
0x1af1   : > { %v6055_v24 = vmul.f32 %v8959_v19, %v6050_v13 }
0x1af2   : > { %6061 = vrot.lane.b32.xlu1 %v6056_v23, %s9064_s1 }
0x1af3   : > { %6059 = vrot.lane.b32.xlu0 %v6055_v24, %s9064_s1 }
0x1b5c   : > { %v5856_v39 = vpop.permute.xlu1 %5855 }
0x1b5d   : > { %v9845_v22 = vadd.f32 %v5856_v39, %v5840_v35  ;;  %v5854_v41 = vpop.permute.xlu0 %5853 }
0x1b5e   : > { %v9847_v44 = vadd.f32 %v5854_v41, %v5839_v25 }
0x1b5f   : > { %8960 = vtanh.f32 %v9845_v22 }
0x1b60   : > { %8962 = vtanh.f32 %v9847_v44 }
0x1b64   : > { %v6062_v46 = vpop.permute.xlu1 %6061 }
0x1b65   : > { %v6066_v0 = vadd.f32 %v6062_v46, %v6046_v45  ;;  %v6060_v5 = vpop.permute.xlu0 %6059 }
0x1b66   : > { %v6065_v47 = vadd.f32 %v6060_v5, %v6045_v18 }
0x1b67   : > { %8964 = vtanh.f32 %v6066_v0 }
0x1b68   : > { %8966 = vtanh.f32 %v6065_v47 }
0x1b69   : > { %v8961_v8 = vpop.eup %8960  ;;  %8968 = vtanh.f32 %v3677_v40 }
0x1b6a   : > { %v8963_v48 = vpop.eup %8962  ;;  %5867 = vrot.lane.b32.xlu1 %v8961_v8, %s9065_s2  ;;  %8970 = vtanh.f32 %v3676_v53 }
0x1b6b   : > { %5865 = vrot.lane.b32.xlu0 %v8963_v48, %s9065_s2  ;;  %8972 = vpow2.f32 %v7807_v3 }
0x1b6c   : > { %8974 = vpow2.f32 %v7806_v6 }
0x1b71   : > { %v8965_v49 = vpop.eup %8964 }
0x1b72   : > { %v8967_v16 = vpop.eup %8966  ;;  %6073 = vrot.lane.b32.xlu1 %v8965_v49, %s9065_s2 }
0x1b73   : > { %6071 = vrot.lane.b32.xlu0 %v8967_v16, %s9065_s2  ;;  %v8969_v7 = vpop.eup %8968 }
0x1b74   : > { %v8971_v57 = vpop.eup %8970 }
0x1bdc   : > { %v5868_v28 = vpop.permute.xlu1 %5867 }
0x1bdd   : > { %v5872_v58 = vmul.f32 %v8953_v9, %v5868_v28  ;;  %v5866_v30 = vpop.permute.xlu0 %5865 }
0x1bde   : > { %v5871_v51 = vmul.f32 %v8955_v11, %v5866_v30 }
0x1bdf   : > { %6083 = vrot.lane.b32.xlu1 %v5872_v58, %s10003_s7 }
0x1be0   : > { %6081 = vrot.lane.b32.xlu0 %v5871_v51, %s10003_s7 }
0x1be4   : > { %v6074_v4 = vpop.permute.xlu1 %6073 }
0x1be5   : > { %v6078_v34 = vmul.f32 %v8957_v21, %v6074_v4  ;;  %v6072_v36 = vpop.permute.xlu0 %6071  ;;  %v7884_v21 = vld [vmem:[%s10048_s11] ss:$0 sm:$0xff]  ;;  %s10051_s11 = smov 104  }
0x1be6   : > { %v6077_v61 = vmul.f32 %v8959_v19, %v6072_v36 }
0x1be7   : > { %6168 = vrot.lane.b32.xlu1 %v6078_v34, %s10003_s7 }
0x1be8   : > { %6166 = vrot.lane.b32.xlu0 %v6077_v61, %s10003_s7  ;;  %s10049_s7 = sld [smem:[#allocation17_spill]] }
0x1beb   : > { %3698 = vrot.lane.b32.xlu1 %v8969_v7, %s9063_s28 }
0x1bec   : > { %3696 = vrot.lane.b32.xlu0 %v8971_v57, %s9063_s28 }
0x1bee   : > { %v1440_v18 = vld [vmem:[%s10049_s7] sm:$0xff]  ;;  %v1441_v0 = vld [vmem:[%s10049_s7 + $0x8] sm:$0xff] }
0x1bef   : > { %v8676_v5 = vpack.c.bf16 %v1441_v0, %v1440_v18 }
0x1c51   : > { %v6084_v26 = vpop.permute.xlu1 %6083 }
0x1c52   : > { %v6082_v54 = vpop.permute.xlu0 %6081 }
0x1c53   : > { %8458 = vmatprep.mubr.msk.f32.mxu0 %vm2442_vm3, %v6082_v54 }
0x1c54   : > { %8459 = vmatmul.mubr.msk.f32.vlgmr.msra.gmra.mrb[38].mxu0 %vm2442_vm3, %v6084_v26 }
0x1c55   : > { %8462 = vmatpush3.msra.mxu0 %v9741_v59  ;;  %v8973_v59 = vpop.eup %8972 }
0x1c56   : > { %8668 = vmatprep.subr.msk.bf16.mxu0 %vm9575_vm5, %v8666_v62  ;;  %v8975_v9 = vpop.eup %8974  ;;  %v3685_v11 = vadd.f32 1.0, %v8973_v59 }
0x1c57   : > { %v3684_v20 = vadd.f32 1.0, %v8975_v9 }
0x1c59   : > { %v6169_v1 = vpop.permute.xlu1 %6168 }
0x1c5a   : > { %v6167_v63 = vpop.permute.xlu0 %6166 }
0x1c5b   : > { %8463 = vmatprep.mubr.msk.f32.mxu0 %vm2442_vm3, %v6167_v63 }
0x1c5c   : > { %8464 = vmatmul.mubr.msk.f32.vlgmr.msra.gmra.mrb[38].mxu0 %vm2442_vm3, %v6169_v1 }
0x1c5d   : > { %8671 = vmatpush3.bf16.msk.msra.mxu0 %vm9575_vm5, %v8666_v62  ;;  %8477 = vmatprep.mubr.msk.f32.mxu0 %vm3807_vm6, %v6365_v50  ;;  %v3699_v35 = vpop.permute.xlu1 %3698 }
0x1c5e   : > { %8677 = vmatprep.subr.bf16.mxu0 %v8676_v5 }
0x1c60   : > { %8478 = vmatmul.mubr.msk.f32.vlgmr.msra.gmra.mrb[40].mxu0 %vm3807_vm6, %v8472_v14 }
0x1c61   : > { %8679 = vmatpush3.bf16.msra.mxu0 %v8676_v5 }
0x1d2f   : > { %v8465_v27 = vpop.f32.mrb[38].mxu0 }
0x1d30   : > { %v6250_v15 = vadd.f32 %v8465_v27, %v9770_v10  ;;  %v6240_v17 = vpop.f32.mrb[39].mxu0 }
0x1d31   : > { %v6249_v2 = vadd.f32 %v9770_v10, %v6240_v17  ;;  %v3697_v10 = vpop.permute.xlu0 %3696 }
0x1d32   : > { %8976 = vtanh.f32 %v6250_v15  ;;  %v7881_v47 = vmul.f32 -1.442695, %v6250_v15 }
0x1d33   : > { %8978 = vtanh.f32 %v6249_v2  ;;  %v8479_v56 = vpop.f32.mrb[40].mxu0  ;;  %v7880_v8 = vmul.f32 -1.442695, %v6249_v2  ;;  %v9069_v2 = vmov 0.0|0.0  }
0x1d34   : > { %8980 = vrcp.f32 %v3685_v11  ;;  %v6461_v19 = vadd.f32 %v8479_v56, %v7884_v21  ;;  %v6455_v23 = vpop.f32.mrb[41].mxu0  ;;  %8683 = vmatprep.subr.bf16.mxu0 %v9069_v2 }
0x1d35   : > { %8982 = vrcp.f32 %v3684_v20  ;;  %v6456_v13 = vadd.f32 %v7884_v21, %v6455_v23 }
0x1d36   : > { %v6465_v24 = vmax.f32 %v6461_v19, 0.0  ;;  %8984 = vpow2.f32 %v7881_v47 }
0x1d37   : > { %v6464_v31 = vmax.f32 %v6456_v13, 0.0  ;;  %8986 = vpow2.f32 %v7880_v8 }
0x1d39   : > { %v8672_v32 = vpack.c.bf16 %v6465_v24, %v6464_v31 }
0x1d3b   : > { %8673 = vmatprep.subr.bf16.mxu1 %v8672_v32 }
0x1d3c   : > { %v8977_v33 = vpop.eup %8976  ;;  %8675 = vmatpush3.bf16.msra.mxu1 %v8672_v32 }
0x1d3d   : > { %v8979_v39 = vpop.eup %8978  ;;  %6271 = vrot.lane.b32.xlu1 %v8977_v33, %s9063_s28  ;;  %8680 = vmatprep.subr.bf16.mxu1 %v9069_v2 }
0x1d3e   : > { %v8981_v25 = vpop.eup %8980  ;;  %6269 = vrot.lane.b32.xlu0 %v8979_v39, %s9063_s28  ;;  %s10050_s28 = sld [smem:[#allocation7_spill]] }
0x1d3f   : > { %v8983_v41 = vpop.eup %8982  ;;  %v3703_v45 = vmul.f32 %v8981_v25, %v3699_v35  ;;  %8485 = vmatmul.mubr.msk.f32.vlgmr.msra.gmra.mrb[42].mxu1 %vm1470_vm0, %v9664_v52  ;;  %v3693_v30 = vmul.f32 %v8981_v25, %v9555_v43 }
0x1d40   : > { %v3702_v46 = vmul.f32 %v8983_v41, %v3697_v10  ;;  %v8985_v48 = vpop.eup %8984  ;;  %v3692_v51 = vmul.f32 %v8983_v41, %v9557_v42  ;;  %8498 = vmatprep.mubr.msk.f32.mxu1 %vm9070_vm7, %v9062_v55 }
0x1d41   : > { %3708 = vrot.lane.b32.xlu1 %v3703_v45, %s9064_s1  ;;  %v8987_v49 = vpop.eup %8986  ;;  %v6258_v16 = vadd.f32 1.0, %v8985_v48 }
0x1d42   : > { %3706 = vrot.lane.b32.xlu0 %v3702_v46, %s9064_s1  ;;  %v6257_v12 = vadd.f32 1.0, %v8987_v49 }
0x1d43   : > { %8988 = vrcp.f32 %v6258_v16 }
0x1d44   : > { %8990 = vrcp.f32 %v6257_v12  ;;  %v7816_v9 = vld [vmem:[%s10050_s28] ss:$0 sm:$0xff]  ;;  %s10053_s28 = sld [smem:[#allocation19_spill]] }
0x1d4a   : > { %v1443_v23 = vld [vmem:[%s10053_s28] sm:$0xff]  ;;  %v1444_v13 = vld [vmem:[%s10053_s28 + $0x8] sm:$0xff]  ;;  %v1445_v24 = vld [vmem:[%s10053_s28 + $0x10] sm:$0xff] }
0x1d4b   : > { %v8684_v31 = vpack.c.bf16 %v1444_v13, %v1443_v23  ;;  %v1446_v32 = vld [vmem:[%s10053_s28 + $0x18] sm:$0xff] }
0x1d4c   : > { %v8687_v33 = vpack.c.bf16 %v1446_v32, %v1445_v24 }
0x1d4d   : > { %v8989_v52 = vpop.eup %8988 }
0x1d4e   : > { %v8991_v28 = vpop.eup %8990  ;;  %v6266_v43 = vmul.f32 %v8989_v52, %v9845_v22  ;;  %v4053_v22 = vadd.f32 %v9630_v37, %v7816_v9  ;;  %v7890_v37 = vld [vmem:[%s10052_s0] ss:$0 sm:$0xff]  ;;  %s10055_s0 = sld [smem:[#allocation4_spill]] }
0x1d4f   : > { %v6265_v60 = vmul.f32 %v8991_v28, %v9847_v44  ;;  %v4048_v44 = vadd.f32 %v7816_v9, %v9632_v38 }
0x1daf   : > { %v6272_v40 = vpop.permute.xlu1 %6271 }
0x1db0   : > { %v6276_v14 = vmul.f32 %v8989_v52, %v6272_v40  ;;  %v6270_v53 = vpop.permute.xlu0 %6269 }
0x1db1   : > { %v6275_v58 = vmul.f32 %v8991_v28, %v6270_v53 }
0x1db2   : > { %6281 = vrot.lane.b32.xlu1 %v6276_v14, %s9064_s1 }
0x1db3   : > { %v3709_v50 = vpop.permute.xlu1 %3708  ;;  %6279 = vrot.lane.b32.xlu0 %v6275_v58, %s9064_s1 }
0x1db4   : > { %v3713_v4 = vadd.f32 %v3709_v50, %v3693_v30  ;;  %v3707_v34 = vpop.permute.xlu0 %3706  ;;  %v7896_v50 = vld [vmem:[%s10056_s3] ss:$0 sm:$0xff]  ;;  %s10059_s3 = sld [smem:[#allocation23_spill]] }
0x1db5   : > { %v3712_v36 = vadd.f32 %v3707_v34, %v3692_v51 }
0x1db6   : > { %8992 = vtanh.f32 %v3713_v4 }
0x1db7   : > { %8994 = vtanh.f32 %v3712_v36 }
0x1dc0   : > { %v8993_v61 = vpop.eup %8992 }
0x1dc1   : > { %v8995_v7 = vpop.eup %8994  ;;  %3720 = vrot.lane.b32.xlu1 %v8993_v61, %s9065_s2  ;;  %v7894_v61 = vld [vmem:[%s10057_s5] ss:$0 sm:$0xff] }
0x1dc2   : > { %3718 = vrot.lane.b32.xlu0 %v8995_v7, %s9065_s2 }
0x1e12   : > { %v8486_v57 = vpop.f32.mrb[42].mxu1 }
0x1e13   : > { %v6532_v29 = vpop.f32.mrb[43].mxu1 }
0x1e14   : > { %8491 = vmatprep.mubr.msk.f32.mxu0 %vm1470_vm0, %v6532_v29 }
0x1e15   : > { %8492 = vmatmul.mubr.msk.f32.vlgmr.msra.gmra.mrb[42].mxu0 %vm1470_vm0, %v8486_v57 }
0x1e16   : > { %8509 = vmatprep.mubr.msk.f32.mxu0 %vm9070_vm7, %v9062_v55  ;;  %8685 = vmatpush3.bf16.msra.mxu0 %v8684_v31 }
0x1e17   : > { %8686 = vmatprep.subr.bf16.mxu0 %v9069_v2 }
0x1e1a   : > { %8688 = vmatpush3.bf16.msra.mxu0 %v8687_v33 }
0x1e24   : > { %v6282_v42 = vpop.permute.xlu1 %6281 }
0x1e25   : > { %v6286_v54 = vadd.f32 %v6282_v42, %v6266_v43  ;;  %v6280_v62 = vpop.permute.xlu0 %6279  ;;  %v9072_v43 = vmov 0  }
0x1e26   : > { %v6285_v26 = vadd.f32 %v6280_v62, %v6265_v60  ;;  %8806 = vset.pattern.permute.xlu1 %v9072_v43  ;;  %8807 = vset.pattern.permute.xlu0 %v9072_v43 }
0x1e27   : > { %8996 = vtanh.f32 %v6286_v54 }
0x1e28   : > { %8998 = vtanh.f32 %v6285_v26 }
0x1e31   : > { %v8997_v63 = vpop.eup %8996 }
0x1e32   : > { %v8999_v1 = vpop.eup %8998  ;;  %6293 = vrot.lane.b32.xlu1 %v8997_v63, %s9065_s2 }
0x1e33   : > { %v3721_v3 = vpop.permute.xlu1 %3720  ;;  %6291 = vrot.lane.b32.xlu0 %v8999_v1, %s9065_s2  ;;  %s9068_s2 = smov 120  }
0x1e34   : > { %v3725_v6 = vmul.f32 %v8981_v25, %v3721_v3  ;;  %v3719_v59 = vpop.permute.xlu0 %3718 }
0x1e35   : > { %v3724_v27 = vmul.f32 %v8983_v41, %v3719_v59 }
0x1e36   : > { %6632 = vrot.lane.b32.xlu1 %v3725_v6, %s10051_s11 }
0x1e37   : > { %6630 = vrot.lane.b32.xlu0 %v3724_v27, %s10051_s11  ;;  %s10054_s11 = sld [smem:[#allocation21_spill]] }
0x1e3a   : > { %6640 = vrot.lane.b32.xlu1 %v4053_v22, %s9064_s1 }
0x1e3b   : > { %6638 = vrot.lane.b32.xlu0 %v4048_v44, %s9064_s1  ;;  %s9071_s1 = smov 24  }
0x1e3d   : > { %v1448_v46 = vld [vmem:[%s10054_s11] sm:$0xff]  ;;  %v1449_v18 = vld [vmem:[%s10054_s11 + $0x8] sm:$0xff]  ;;  %v1450_v40 = vld [vmem:[%s10054_s11 + $0x10] sm:$0xff] }
0x1e3e   : > { %v8689_v12 = vpack.c.bf16 %v1449_v18, %v1448_v46 }
0x1ea4   : > { %v6294_v11 = vpop.permute.xlu1 %6293 }
0x1ea5   : > { %v6298_v15 = vmul.f32 %v8989_v52, %v6294_v11  ;;  %v6292_v17 = vpop.permute.xlu0 %6291 }
0x1ea6   : > { %v6297_v20 = vmul.f32 %v8991_v28, %v6292_v17  ;;  %v1451_v28 = vld [vmem:[%s10054_s11 + $0x18] sm:$0xff] }
0x1ea7   : > { %6648 = vrot.lane.b32.xlu1 %v6298_v15, %s9068_s2  ;;  %v8693_v53 = vpack.c.bf16 %v1451_v28, %v1450_v40 }
0x1ea8   : > { %6646 = vrot.lane.b32.xlu0 %v6297_v20, %s9068_s2  ;;  %v6633_v55 = vpop.permute.xlu1 %6632  ;;  %s7741_s2 = sshll.u32 %s10067_s23, 2  ;;  %s10060_s23 = sld [smem:[#allocation25_spill]] }
0x1ea9   : > { %v6631_v35 = vpop.permute.xlu0 %6630 }
0x1eac   : > { %v6641_v39 = vpop.permute.xlu1 %6640 }
0x1ead   : > { %v6639_v10 = vpop.permute.xlu0 %6638  ;;  %v6661_v45 = vsel %vm2442_vm3, %v6633_v55, %v6641_v39 }
0x1eae   : > { %v6660_v0 = vsel %vm2442_vm3, %v6631_v35, %v6639_v10  ;;  %v1458_v10 = vld [vmem:[%s10060_s23] sm:$0xff]  ;;  %v1461_v46 = vld [vmem:[%s10060_s23 + $0x18] sm:$0xff] }
0x1ee8   : > { %v8493_v38 = vpop.f32.mrb[42].mxu0 }
0x1ee9   : > { %v6625_v21 = vadd.f32 %v8493_v38, %v7890_v37  ;;  %v6619_v56 = vpop.f32.mrb[43].mxu0  ;;  %v1454_v38 = vld [vmem:[%s10059_s3 + $0x8] sm:$0xff] }
0x1eea   : > { %v6620_v19 = vadd.f32 %v7890_v37, %v6619_v56  ;;  %v1453_v37 = vld [vmem:[%s10059_s3] sm:$0xff] }
0x1eeb   : > { %6656 = vrot.lane.b32.xlu1 %v6625_v21, %s9071_s1  ;;  %v1455_v21 = vld [vmem:[%s10059_s3 + $0x10] sm:$0xff]  ;;  %v8697_v56 = vpack.c.bf16 %v1454_v38, %v1453_v37 }
0x1eec   : > { %6654 = vrot.lane.b32.xlu0 %v6620_v19, %s9071_s1  ;;  %s1379_s1 = scalar_lea.vmem %s10055_s0, %s7741_s2  ;;  %s10058_s0 = sld [smem:[#allocation5_spill]]  ;;  %v1456_v19 = vld [vmem:[%s10059_s3 + $0x18] sm:$0xff] }
0x1eed   : > { %v1405_v14 = vld [vmem:[%s1379_s1] sm:$0xf]  ;;  %v8701_v23 = vpack.c.bf16 %v1456_v19, %v1455_v21  ;;  %s9073_s1 = smov 32   ;;  %s9074_s3 = smov 96  }
0x1ef2   : > { %s1383_s5 = scalar_lea.vmem %s10058_s0, %s7741_s2  ;;  %s10061_s2 = sld [smem:[#allocation24_spill]] }
0x1ef3   : > { %v1406_v1 = vld [vmem:[%s1383_s5] sm:$0xf]  ;;  %s10062_s0 = sld [smem:[#allocation27_spill]]  ;;  %s10063_s5 = sld [smem:[#allocation26_spill]] }
0x1f19   : > { %v6649_v25 = vpop.permute.xlu1 %6648 }
0x1f1a   : > { %v6647_v41 = vpop.permute.xlu0 %6646  ;;  %v6663_v5 = vsel %vm1470_vm0, %v6661_v45, %v6649_v25  ;;  %v1459_v25 = vld [vmem:[%s10060_s23 + $0x8] sm:$0xff] }
0x1f1b   : > { %v6662_v8 = vsel %vm1470_vm0, %v6660_v0, %v6647_v41  ;;  %v1460_v41 = vld [vmem:[%s10060_s23 + $0x10] sm:$0xff]  ;;  %v8705_v45 = vpack.c.bf16 %v1459_v25, %v1458_v10 }
0x1f1c   : > { %v8709_v18 = vpack.c.bf16 %v1461_v46, %v1460_v41 }
0x1f5d   : > { %v6657_v47 = vpop.permute.xlu1 %6656 }
0x1f5e   : > { %v6666_v48 = vsel %vm6664_vm8, %v6663_v5, %v6657_v47  ;;  %v6655_v49 = vpop.permute.xlu0 %6654  ;;  %v7907_v47 = vld [vmem:[%s10061_s2] ss:$0 sm:$0xff]  ;;  %s10064_s2 = sld [smem:[#allocation29_spill]] }
0x1f5f   : > { %v6665_v16 = vsel %vm6664_vm8, %v6662_v8, %v6655_v49 }
0x1f60   : > { %v8681_v52 = vpack.c.bf16 %v6666_v48, %v6665_v16 }
0x1f62   : > { %8682 = vmatpush3.bf16.msra.mxu1 %v8681_v52 }
0x1f63   : > { %8690 = vmatprep.subr.bf16.mxu1 %v8689_v12 }
0x1f65   : > { %8499 = vmatmul.mubr.msk.f32.vlgmr.msra.gmra.mrb[44].mxu1 %vm1470_vm0, %v1405_v14 }
0x1f66   : > { %8692 = vmatpush3.bf16.msra.mxu1 %v8689_v12  ;;  %8520 = vmatprep.mubr.msk.f32.mxu1 %vm6752_vm9, %v6665_v16 }
0x1f67   : > { %8694 = vmatprep.subr.bf16.mxu1 %v8693_v53 }
0x1f6a   : > { %8696 = vmatpush3.bf16.msra.mxu1 %v8693_v53  ;;  %v1463_v53 = vld [vmem:[%s10062_s0] sm:$0xff] }
0x1f6d   : > { %8521 = vmatmul.mubr.msk.f32.vlgmr.msra.gmra.mrb[46].mxu1 %vm6752_vm9, %v6666_v48 }
0x2038   : > { %v6736_v58 = vpop.f32.mrb[44].mxu1 }
0x2039   : > { %v8500_v30 = vpop.f32.mrb[45].mxu1  ;;  %8510 = vmatmul.mubr.msk.f32.vlgmr.msra.gmra.mrb[44].mxu0 %vm6752_vm9, %v6736_v58 }
0x2040   : > { %v8522_v51 = vpop.f32.mrb[46].mxu1 }
0x2041   : > { %v9933_v4 = vadd.f32 %v8522_v51, %v7896_v50  ;;  %v6904_v34 = vpop.f32.mrb[47].mxu1 }
0x2042   : > { %v9935_v36 = vadd.f32 %v7896_v50, %v6904_v34  ;;  %v7908_v50 = vld [vmem:[%s10063_s5] ss:$0 sm:$0xff] }
0x2044   : > { %8525 = vmatprep.mubr.msk.f32.mxu0 %vm6752_vm9, %v9935_v36 }
0x210c   : > { %v6822_v7 = vpop.f32.mrb[44].mxu0 }
0x210d   : > { %v6823_v57 = vadd.f32 %v7894_v61, %v6822_v7  ;;  %v8511_v29 = vpop.f32.mrb[45].mxu0 }
0x210f   : > { %8523 = vmatprep.subr.msk.mxu0 %vm6752_vm9, %v6823_v57 }
0x2110   : > { %8524 = vmatpush3.xpose.msk.msra.mxu0 %vm6752_vm9, %v6823_v57  ;;  %v1466_v57 = vld [vmem:[%s10064_s2] sm:$0xff] }
0x2111   : > { %8698 = vmatprep.subr.bf16.mxu0 %v8697_v56 }
0x2113   : > { %8526 = vmatmul.mubr.msk.f32.vlgmr.msra.gmra.mrb[46].mxu0 %vm6752_vm9, %v9933_v4 }
0x2114   : > { %8700 = vmatpush3.bf16.msra.mxu0 %v8697_v56 }
0x2115   : > { %8702 = vmatprep.subr.bf16.mxu0 %v8701_v23 }
0x2118   : > { %8704 = vmatpush3.bf16.msra.mxu0 %v8701_v23 }
0x21e6   : > { %v8527_v42 = vpop.f32.mrb[46].mxu0 }
0x21e7   : > { %v6998_v60 = vmul.f32 0.17677669, %v8527_v42  ;;  %v6988_v54 = vpop.f32.mrb[47].mxu0 }
0x21e8   : > { %v6997_v62 = vmul.f32 0.17677669, %v6988_v54 }
0x21e9   : > { %v7003_v26 = vsel %vm6999_vm10, %v6998_v60, -inf }
0x21ea   : > { %7004 = vmax.xlane.f32.xlu1 %v7003_v26  ;;  %v7000_v63 = vsel %vm6999_vm10, %v6997_v62, -inf }
0x21eb   : > { %7001 = vmax.xlane.f32.xlu0 %v7000_v63  ;;  %v1468_v63 = vld [vmem:[%s9288_s4] sm:$0xf] }
0x21fb   : > { %6742 = vperm.xlu1 %8806, %v1406_v1   ;;  %v7914_v1 = vld [vmem:[%s9283_s17] ss:$0 sm:$0xff] }
0x2277   : > { %v7005_v3 = vpop.xlane.xlu1 %7004 }
0x2278   : > { %v7007_v6 = vsub.f32 %v6998_v60, %v7005_v3  ;;  %v7002_v59 = vpop.xlane.xlu0 %7001 }
0x2279   : > { %v7006_v9 = vsub.f32 %v6997_v62, %v7002_v59 }
0x227a   : > { %v7010_v27 = vmul.f32 1.442695, %v7007_v6 }
0x227b   : > { %v7008_v22 = vmul.f32 1.442695, %v7006_v9  ;;  %v6743_v44 = vpop.permute.xlu1 %6742 }
0x227c   : > { %v6745_v11 = vmul.f32 %v6743_v44, %v6736_v58  ;;  %v1464_v58 = vld [vmem:[%s10062_s0 + $0x8] sm:$0xff]  ;;  %v7917_v44 = vld [vmem:[%s9293_s25] ss:$0 sm:$0xff] }
0x227d   : > { %9000 = vpow2.f32 %v7008_v22  ;;  %v8713_v30 = vpack.c.bf16 %v1464_v58, %v1463_v53 }
0x227e   : > { %8528 = vmatprep.subr.msk.mxu1 %vm7028_vm11, %v6745_v11  ;;  %9002 = vpow2.f32 %v7010_v27 }
0x227f   : > { %8529 = vmatpush3.msk.msra.mxu1 %vm7028_vm11, %v6745_v11  ;;  %8714 = vmatprep.subr.bf16.mxu0 %v8713_v30 }
0x2280   : > { %8706 = vmatprep.subr.bf16.mxu1 %v8705_v45 }
0x2287   : > { %v9001_v15 = vpop.eup %9000 }
0x2288   : > { %v7012_v17 = vsel %vm6999_vm10, %v9001_v15, 0.0  ;;  %v9003_v20 = vpop.eup %9002 }
0x2289   : > { %7013 = vadd.xlane.f32.xlu0 %v7012_v17  ;;  %v7015_v2 = vsel %vm6999_vm10, %v9003_v20, 0.0 }
0x228d   : > { %7016 = vadd.xlane.f32.xlu0 %v7015_v2 }
0x2316   : > { %v7014_v13 = vpop.xlane.xlu0 %7013 }
0x2317   : > { %9004 = vrcp.f32 %v7014_v13 }
0x231a   : > { %v7017_v24 = vpop.xlane.xlu0 %7016 }
0x231b   : > { %9006 = vrcp.f32 %v7017_v24 }
0x2321   : > { %v9005_v31 = vpop.eup %9004 }
0x2322   : > { %v7020_v32 = vmul.f32 %v9005_v31, %v9001_v15 }
0x2324   : > { %8530 = vmatprep.mubr.msk.f32.mxu1 %vm6999_vm10, %v7020_v32 }
0x2325   : > { %v9007_v33 = vpop.eup %9006 }
0x2326   : > { %v7021_v55 = vmul.f32 %v9007_v33, %v9003_v20 }
0x2328   : > { %8531 = vmatmul.mubr.msk.f32.vlgmr.msra.gmra.mrb[48].mxu1 %vm6999_vm10, %v7021_v55 }
0x2329   : > { %8708 = vmatpush3.bf16.msra.mxu1 %v8705_v45 }
0x232a   : > { %8710 = vmatprep.subr.bf16.mxu1 %v8709_v18 }
0x232d   : > { %8712 = vmatpush3.bf16.msra.mxu1 %v8709_v18 }
0x232e   : > { %8562 = vmatprep.subr.mxu1 %v1466_v57 }
0x23fb   : > { %v8532_v35 = vpop.f32.mrb[48].mxu1 }
0x23fc   : > { %v7098_v39 = vpop.f32.mrb[49].mxu1 }
0x23fd   : > { %8541 = vmatprep.mubr.msk.f32.mxu0 %vm6752_vm9, %v7098_v39 }
0x23fe   : > { %8542 = vmatmul.mubr.msk.f32.vlgmr.msra.gmra.mrb[48].mxu0 %vm6752_vm9, %v8532_v35 }
0x23ff   : > { %8716 = vmatpush3.bf16.msra.mxu0 %v8713_v30 }
0x2400   : > { %8567 = vmatprep.subr.msk.mxu0 %vm7028_vm11, %v1468_v63 }
0x24d1   : > { %v8543_v0 = vpop.f32.mrb[48].mxu0 }
0x24d2   : > { %7192 = vrot.lane.b32.xlu1 %v8543_v0, %s9073_s1  ;;  %v7179_v5 = vpop.f32.mrb[49].mxu0 }
0x24d3   : > { %7190 = vrot.lane.b32.xlu0 %v7179_v5, %s9073_s1 }
0x24d6   : > { %7203 = vrot.lane.b32.xlu1 %v7907_v47, %s9073_s1  ;;  %s10065_s1 = sld [smem:[#allocation28_spill]] }
0x24dc   : > { %v7911_v29 = vld [vmem:[%s10065_s1] ss:$0 sm:$0xff] }
0x2544   : > { %v7193_v8 = vpop.permute.xlu1 %7192 }
0x2545   : > { %v7191_v48 = vpop.permute.xlu0 %7190  ;;  %v7197_v16 = vadd.f32 %v7193_v8, %v9933_v4 }
0x2546   : > { %v7196_v49 = vadd.f32 %v7191_v48, %v9935_v36 }
0x2548   : > { %v7204_v12 = vpop.permute.xlu1 %7203 }
0x2549   : > { %v7206_v52 = vadd.f32 %v7204_v12, %v7196_v49  ;;  %v7207_v40 = vadd.f32 %v7204_v12, %v7197_v16 }
0x254b   : > { %7218 = vrot.lane.b32.xlu1 %v7207_v40, %s9074_s3  ;;  %7216 = vrot.lane.b32.xlu0 %v7206_v52, %s9074_s3  ;;  %s1388_s3 = scalar_lea.vmem %s9298_s21, %s9545_s10 }
0x25bd   : > { %v7219_v28 = vpop.permute.xlu1 %7218  ;;  %v7217_v14 = vpop.permute.xlu0 %7216 }
0x25be   : > { %8552 = vmatprep.mubr.msk.f32.mxu1 %vm6752_vm9, %v7217_v14 }
0x25bf   : > { %8553 = vmatmul.mubr.msk.f32.vlgmr.msra.gmra.mrb[50].mxu1 %vm6752_vm9, %v7219_v28 }
0x25c0   : > { %8563 = vmatpush3.msra.mxu1 %v1466_v57 }
0x2692   : > { %v8554_v51 = vpop.f32.mrb[50].mxu1 }
0x2693   : > { %v7296_v4 = vadd.f32 %v8554_v51, %v7908_v50  ;;  %v7290_v34 = vpop.f32.mrb[51].mxu1 }
0x2694   : > { %v7291_v36 = vadd.f32 %v7908_v50, %v7290_v34 }
0x2695   : > { %v7300_v7 = vmax.f32 %v7296_v4, 0.0 }
0x2696   : > { %v7299_v61 = vmax.f32 %v7291_v36, 0.0 }
0x2698   : > { %8559 = vmatprep.mubr.msk.f32.mxu0 %vm1470_vm0, %v7299_v61 }
0x2699   : > { %8560 = vmatmul.mubr.msk.f32.vlgmr.msra.gmra.mrb[50].mxu0 %vm1470_vm0, %v7300_v7 }
0x269a   : > { %8568 = vmatpush3.msk.msra.mxu0 %vm7028_vm11, %v1468_v63 }
0x276c   : > { %v8561_v43 = vpop.f32.mrb[50].mxu0 }
0x276d   : > { %v7385_v42 = vadd.f32 %v8561_v43, %v7911_v29  ;;  %v7379_v60 = vpop.f32.mrb[51].mxu0 }
0x276e   : > { %v7380_v54 = vadd.f32 %v7911_v29, %v7379_v60 }
0x276f   : > { %v7389_v26 = vmax.f32 %v7385_v42, 0.0 }
0x2770   : > { %v7388_v62 = vmax.f32 %v7380_v54, 0.0 }
0x2772   : > { %8564 = vmatprep.mubr.msk.f32.mxu1 %vm2442_vm3, %v7388_v62 }
0x2773   : > { %8565 = vmatmul.mubr.msk.f32.vlgmr.msra.gmra.mrb[52].mxu1 %vm2442_vm3, %v7389_v26 }
0x2846   : > { %v8566_v3 = vpop.f32.mrb[52].mxu1 }
0x2847   : > { %v7474_v6 = vadd.f32 %v8566_v3, %v7914_v1  ;;  %v7468_v59 = vpop.f32.mrb[53].mxu1 }
0x2848   : > { %v7469_v9 = vadd.f32 %v7914_v1, %v7468_v59 }
0x2849   : > { %v7478_v22 = vmax.f32 %v7474_v6, 0.0 }
0x284a   : > { %v7477_v27 = vmax.f32 %v7469_v9, 0.0 }
0x284c   : > { %8569 = vmatprep.mubr.msk.f32.mxu0 %vm6999_vm10, %v7477_v27 }
0x284d   : > { %8570 = vmatmul.mubr.msk.f32.vlgmr.msra.gmra.mrb[52].mxu0 %vm6999_vm10, %v7478_v22 }
0x2920   : > { %v8571_v11 = vpop.f32.mrb[52].mxu0 }
0x2921   : > { %v7566_v15 = vadd.f32 %v8571_v11, %v7917_v44  ;;  %v7560_v17 = vpop.f32.mrb[53].mxu0 }
0x2922   : > { %v7561_v20 = vadd.f32 %v7917_v44, %v7560_v17 }
0x2923   : > { %7571 = vst.msk [vmem:[%s1388_s3 + $0x8] sm:$0xff] %vm7569_vm12, %v7566_v15 }
0x2924   : > { %7570 = vst.msk [vmem:[%s1388_s3] sm:$0xff] %vm7569_vm12, %v7561_v20 }
0x2925 PF: > { %s97_s22 = sadd.s32 1, %s9017_s22  }
0x2926   : > { %p94_p4 = scmp.ge.s32.totalorder %s97_s22, 6  }
0x2928   :  { %96 = sbr.rel (!%p94_p4) target bundleno = 85 (0x55), region = 280 }

</bundles_post_ra>
